<compile_context>
chip_gen: v7x
topology: tpu7x:2x2x1
jax: 0.10.0
libtpu: 0.0.40
codegen_flags: <defaults>
</compile_context>

<pallas_src>
import jax
import jax.numpy as jnp
from jax.experimental import pallas as pl
from jax.experimental.pallas import tpu as pltpu

C_IN = 3        # input channels
C1 = 32         # conv1 out channels
C2 = 64         # conv2 out channels
H = W = 32      # input spatial size (fc1 expects 64*8*8 -> 32x32 input)
K1 = 9 * C_IN   # conv1 im2col depth (27)
K1_PAD = 32     # conv1 im2col depth padded to a lane-friendly 32
K2 = 9 * C1     # conv2 im2col depth (288)
HID = 128       # fc1 hidden size
NCLS_PAD = 128  # fc2 outputs padded to one full lane width


# ---------------------------------------------------------------------------
# Kernel 1: conv1 + relu + pool + conv2 + relu + pool, whole batch, one step
# ---------------------------------------------------------------------------
def conv_block_kernel(xcol_ref, w1_ref, b1_ref, w2_ref, b2_ref, feat_ref,
                      s_a, s_p, s_cat, s_b):
    f32, bf16 = jnp.float32, jnp.bfloat16
    batch = feat_ref.shape[0]

    # Zero the conv2 halo once: the interior [1:17, 8:24] is fully rewritten
    # for every image and the halo region is never written again.
    s_p[...] = jnp.zeros(s_p.shape, f32)

    for b in range(batch):  # static unroll; batch is tiny
        # ---- conv1 + bias + relu: single im2col matmul (M=1024, K=32) ------
        h1 = jnp.dot(xcol_ref[b * H * W:(b + 1) * H * W, :], w1_ref[...],
                     preferred_element_type=f32)
        h1 = jnp.maximum(h1 + b1_ref[...], 0.0)             # (1024, 32) f32

        # ---- maxpool 2x2 #1: H pairs via slab split, W pairs via stride-2 --
        h1 = h1.reshape(H // 2, 2, W, C1)
        s_a[...] = jnp.maximum(h1[:, 0], h1[:, 1])          # (16, 32, 32)
        p1 = jnp.maximum(s_a[:, pl.ds(0, W // 2, stride=2), :],
                         s_a[:, pl.ds(1, W // 2, stride=2), :])  # (16,16,32)

        # interior stored at sublane offset 8 so the store stays 8-aligned;
        # conv2 halo reads cover rows 0..17 and columns 7..24 (all zero).
        s_p[1:17, 8:24, :] = p1

        # ---- conv2 im2col: pack the 9 taps as lane-offset column blocks ----
        for di in range(3):
            for dj in range(3):
                t = di * 3 + dj
                tap = s_p[di:di + 16, 7 + dj:7 + dj + 16, :]     # (16,16,32)
                s_cat[:, t * C1:(t + 1) * C1] = tap.reshape(256, C1)

        # ---- conv2 + bias + relu: single matmul (M=256, K=288) -------------
        h2 = jnp.dot(s_cat[...].astype(bf16), w2_ref[...],
                     preferred_element_type=f32)
        h2 = jnp.maximum(h2 + b2_ref[...], 0.0)             # (256, 64) f32

        # ---- maxpool 2x2 #2 -------------------------------------------------
        h2 = h2.reshape(8, 2, 16, C2)
        s_b[...] = jnp.maximum(h2[:, 0], h2[:, 1])          # (8, 16, 64)
        p2 = jnp.maximum(s_b[:, pl.ds(0, 8, stride=2), :],
                         s_b[:, pl.ds(1, 8, stride=2), :])  # (8, 8, 64)

        feat_ref[b] = p2.reshape(8 * 8, C2).astype(bf16)    # rows = (h, w)


def _vmem_spec():
    return pl.BlockSpec(memory_space=pltpu.MemorySpace.VMEM)


def conv_block_pallas(xcol, w1col, b1, w2col, b2, batch):
    return pl.pallas_call(
        conv_block_kernel,
        out_shape=jax.ShapeDtypeStruct((batch, 64, C2), jnp.bfloat16),
        in_specs=[_vmem_spec() for _ in range(5)],
        out_specs=_vmem_spec(),
        scratch_shapes=[
            pltpu.VMEM((H // 2, W, C1), jnp.float32),   # H-pooled conv1
            pltpu.VMEM((18, 32, C1), jnp.float32),      # zero-padded pool1 out
            pltpu.VMEM((256, K2), jnp.float32),         # conv2 im2col slab
            pltpu.VMEM((8, 16, C2), jnp.float32),       # H-pooled conv2
        ],
    )(xcol, w1col, b1, w2col, b2)


# ---------------------------------------------------------------------------
# Kernel 2: fc1 + relu + (dropout=identity) + fc2, fused, whole batch
# ---------------------------------------------------------------------------
def fc_kernel(x_ref, w1_ref, b1_ref, w2_ref, b2_ref, o_ref):
    f32, bf16 = jnp.float32, jnp.bfloat16
    h = jnp.dot(x_ref[...], w1_ref[...], preferred_element_type=f32)
    h = jnp.maximum(h + b1_ref[...], 0.0)
    # TODO(synk): nn.Dropout(0.5) is identity in eval/inference mode; training
    # mode Bernoulli masking (pltpu.prng_*) is not implemented here.
    y = jnp.dot(h.astype(bf16), w2_ref[...], preferred_element_type=f32)
    o_ref[...] = y + b2_ref[...]


def fc_pallas(feat, w1, b1, w2, b2):
    batch = feat.shape[0]
    return pl.pallas_call(
        fc_kernel,
        out_shape=jax.ShapeDtypeStruct((batch, NCLS_PAD), jnp.float32),
        in_specs=[_vmem_spec() for _ in range(5)],
        out_specs=_vmem_spec(),
    )(feat, w1, b1, w2, b2)


# ---------------------------------------------------------------------------
# Model: parameters + forward
# ---------------------------------------------------------------------------
def init_params(key, num_classes=10):
    ks = jax.random.split(key, 8)
    f32, bf16 = jnp.float32, jnp.bfloat16
    # conv weights kept in im2col layout (kh*kw*cin, cout), rows ordered
    # (kh, kw, cin); equivalent to torch weight (cout,cin,kh,kw) permuted
    # (2,3,1,0) and reshaped.  conv1 rows are zero-padded 27 -> 32.
    w1 = jax.random.normal(ks[0], (9, C_IN, C1), f32) * 0.1
    w1col = jnp.zeros((K1_PAD, C1), f32).at[:K1].set(w1.reshape(K1, C1))
    w2 = jax.random.normal(ks[1], (9, C1, C2), f32) * 0.05
    w2col = w2.reshape(K2, C2)
    # fc1 rows ordered (h, w, c); torch flattens (c, h, w), so a converted
    # torch weight must be permuted accordingly (free at conversion time).
    wf1 = jax.random.normal(ks[2], (8 * 8 * C2, HID), f32) * 0.02
    # fc2 padded num_classes -> 128 lanes; pad columns are zero, sliced off in
    # the wrapper.
    wf2 = jnp.zeros((HID, NCLS_PAD), f32).at[:, :num_classes].set(
        jax.random.normal(ks[3], (HID, num_classes), f32) * 0.05)
    bf2 = jnp.zeros((1, NCLS_PAD), f32).at[:, :num_classes].set(
        jax.random.normal(ks[7], (1, num_classes), f32) * 0.01)
    return {
        "w1col": w1col.astype(bf16),
        "b1": jax.random.normal(ks[4], (1, C1), f32) * 0.01,
        "w2col": w2col.astype(bf16),
        "b2": jax.random.normal(ks[5], (1, C2), f32) * 0.01,
        "wf1": wf1.astype(bf16),
        "bf1": jax.random.normal(ks[6], (1, HID), f32) * 0.01,
        "wf2": wf2.astype(bf16),
        "bf2": bf2,
    }


def cnn_forward(x_nchw, params, num_classes=10):
    batch = x_nchw.shape[0]
    # NCHW (PyTorch) -> NHWC, pre-cast to bf16, conv padding=1 halo.
    x = jnp.transpose(x_nchw, (0, 2, 3, 1)).astype(jnp.bfloat16)
    xp = jnp.pad(x, ((0, 0), (1, 1), (1, 1), (0, 0)))            # (B,34,34,3)

    # conv1 im2col built in the wrapper: taps ordered (kh, kw, cin), padded to
    # 32 columns, rows ordered (b, h, w).
    cols = [xp[:, di:di + H, dj:dj + W, :]
            for di in range(3) for dj in range(3)]
    xcol = jnp.concatenate(cols, axis=-1)                        # (B,32,32,27)
    xcol = jnp.pad(xcol, ((0, 0), (0, 0), (0, 0), (0, K1_PAD - K1)))
    xcol = xcol.reshape(batch * H * W, K1_PAD)                   # (B*1024, 32)

    feat = conv_block_pallas(xcol, params["w1col"], params["b1"],
                             params["w2col"], params["b2"], batch)
    feat = feat.reshape(batch, 8 * 8 * C2)                       # free view

    logits = fc_pallas(feat, params["wf1"], params["bf1"],
                       params["wf2"], params["bf2"])             # (B, 128)
    return logits[:, :num_classes]


# ---------------------------------------------------------------------------
if __name__ == "__main__":
    key = jax.random.PRNGKey(0)
    pkey, xkey = jax.random.split(key)
    params = init_params(pkey, num_classes=10)

    # fc1 expects 64*8*8 features => 32x32 spatial input (CIFAR-like), NCHW.
    x = jax.random.normal(xkey, (2, 3, 32, 32), jnp.float32)

    logits = jax.jit(cnn_forward)(x, params)
    logits = jax.block_until_ready(logits)
    assert logits.shape == (2, 10), logits.shape
    assert bool(jnp.all(jnp.isfinite(logits)))
    print("KERNEL_OK")
</pallas_src>

<mosaic_0001>
module attributes {stable_mosaic.version = 11 : i64} {
  func.func @conv_block_kernel(%arg0: memref<2048x32xbf16, #tpu.memory_space<vmem>>, %arg1: memref<32x32xbf16, #tpu.memory_space<vmem>>, %arg2: memref<1x32xf32, #tpu.memory_space<vmem>>, %arg3: memref<288x64xbf16, #tpu.memory_space<vmem>>, %arg4: memref<1x64xf32, #tpu.memory_space<vmem>>, %arg5: memref<2x64x64xbf16, #tpu.memory_space<vmem>>, %arg6: memref<16x32x32xf32, #tpu.memory_space<vmem>>, %arg7: memref<18x32x32xf32, #tpu.memory_space<vmem>>, %arg8: memref<256x288xf32, #tpu.memory_space<vmem>>, %arg9: memref<8x16x64xf32, #tpu.memory_space<vmem>>) attributes {dimension_semantics = [], scalar_prefetch = 0 : i64, scratch_operands = 4 : i64, tpu.core_type = #tpu.core_type<tc>} {
    %cst = arith.constant 0.000000e+00 : f32
    %0 = vector.broadcast %cst : f32 to vector<18x32x32xf32>
    %c0 = arith.constant 0 : index
    %c0_0 = arith.constant 0 : index
    %c0_1 = arith.constant 0 : index
    %1 = vector.load %arg7[%c0, %c0_0, %c0_1] : memref<18x32x32xf32, #tpu.memory_space<vmem>>, vector<18x32x32xf32>
    tpu.vector_store %arg7[%c0, %c0_0, %c0_1], %0 {strides = array<i32>} : memref<18x32x32xf32, #tpu.memory_space<vmem>>, vector<18x32x32xf32>,
    %c0_2 = arith.constant 0 : index
    %c0_3 = arith.constant 0 : index
    %2 = vector.load %arg0[%c0_2, %c0_3] : memref<2048x32xbf16, #tpu.memory_space<vmem>>, vector<1024x32xbf16>
    %c0_4 = arith.constant 0 : index
    %c0_5 = arith.constant 0 : index
    %3 = vector.load %arg1[%c0_4, %c0_5] : memref<32x32xbf16, #tpu.memory_space<vmem>>, vector<32x32xbf16>
    %cst_6 = arith.constant dense<0.000000e+00> : vector<1024x32xf32>
    %4 = tpu.matmul %2, %3, %cst_6 {dimension_numbers = #tpu.dot_dimension_numbers<[1], [0], [0], [1], [0, 0, 1, 1], [], []>} : vector<1024x32xbf16>, vector<32x32xbf16>, vector<1024x32xf32> -> vector<1024x32xf32>
    %c0_7 = arith.constant 0 : index
    %c0_8 = arith.constant 0 : index
    %5 = vector.load %arg2[%c0_7, %c0_8] : memref<1x32xf32, #tpu.memory_space<vmem>>, vector<1x32xf32>
    %6 = vector.broadcast %5 : vector<1x32xf32> to vector<1024x32xf32>
    %7 = arith.addf %4, %6 : vector<1024x32xf32>
    %cst_9 = arith.constant 0.000000e+00 : f32
    %8 = vector.broadcast %cst_9 : f32 to vector<1024x32xf32>
    %9 = arith.maximumf %7, %8 : vector<1024x32xf32>
    %10 = vector.shape_cast %9 : vector<1024x32xf32> to vector<16x2x32x32xf32>
    %11 = vector.extract_strided_slice %10 {offsets = [0, 0, 0, 0], sizes = [16, 1, 32, 32], strides = [1, 1, 1, 1]} : vector<16x2x32x32xf32> to vector<16x1x32x32xf32>
    %12 = vector.shape_cast %11 : vector<16x1x32x32xf32> to vector<16x32x32xf32>
    %13 = vector.extract_strided_slice %10 {offsets = [0, 1, 0, 0], sizes = [16, 1, 32, 32], strides = [1, 1, 1, 1]} : vector<16x2x32x32xf32> to vector<16x1x32x32xf32>
    %14 = vector.shape_cast %13 : vector<16x1x32x32xf32> to vector<16x32x32xf32>
    %15 = arith.maximumf %12, %14 : vector<16x32x32xf32>
    %c0_10 = arith.constant 0 : index
    %c0_11 = arith.constant 0 : index
    %c0_12 = arith.constant 0 : index
    %16 = vector.load %arg6[%c0_10, %c0_11, %c0_12] : memref<16x32x32xf32, #tpu.memory_space<vmem>>, vector<16x32x32xf32>
    tpu.vector_store %arg6[%c0_10, %c0_11, %c0_12], %15 {strides = array<i32>} : memref<16x32x32xf32, #tpu.memory_space<vmem>>, vector<16x32x32xf32>,
    %c0_13 = arith.constant 0 : index
    %c0_14 = arith.constant 0 : index
    %c0_15 = arith.constant 0 : index
    %17 = tpu.strided_load %arg6[%c0_13, %c0_14, %c0_15] {strides = array<i32: 1, 2, 1>} : memref<16x32x32xf32, #tpu.memory_space<vmem>>, vector<16x16x32xf32>
    %c0_16 = arith.constant 0 : index
    %c1 = arith.constant 1 : index
    %c0_17 = arith.constant 0 : index
    %18 = tpu.strided_load %arg6[%c0_16, %c1, %c0_17] {strides = array<i32: 1, 2, 1>} : memref<16x32x32xf32, #tpu.memory_space<vmem>>, vector<16x16x32xf32>
    %19 = arith.maximumf %17, %18 : vector<16x16x32xf32>
    %c1_18 = arith.constant 1 : index
    %c8 = arith.constant 8 : index
    %c0_19 = arith.constant 0 : index
    %20 = vector.load %arg7[%c1_18, %c8, %c0_19] : memref<18x32x32xf32, #tpu.memory_space<vmem>>, vector<16x16x32xf32>
    tpu.vector_store %arg7[%c1_18, %c8, %c0_19], %19 {strides = array<i32>} : memref<18x32x32xf32, #tpu.memory_space<vmem>>, vector<16x16x32xf32>,
    %c0_20 = arith.constant 0 : index
    %c7 = arith.constant 7 : index
    %c0_21 = arith.constant 0 : index
    %21 = vector.load %arg7[%c0_20, %c7, %c0_21] : memref<18x32x32xf32, #tpu.memory_space<vmem>>, vector<16x16x32xf32>
    %22 = vector.shape_cast %21 : vector<16x16x32xf32> to vector<256x32xf32>
    %c0_22 = arith.constant 0 : index
    %c0_23 = arith.constant 0 : index
    %23 = vector.load %arg8[%c0_22, %c0_23] : memref<256x288xf32, #tpu.memory_space<vmem>>, vector<256x32xf32>
    tpu.vector_store %arg8[%c0_22, %c0_23], %22 {strides = array<i32>} : memref<256x288xf32, #tpu.memory_space<vmem>>, vector<256x32xf32>,
    %c0_24 = arith.constant 0 : index
    %c8_25 = arith.constant 8 : index
    %c0_26 = arith.constant 0 : index
    %24 = vector.load %arg7[%c0_24, %c8_25, %c0_26] : memref<18x32x32xf32, #tpu.memory_space<vmem>>, vector<16x16x32xf32>
    %25 = vector.shape_cast %24 : vector<16x16x32xf32> to vector<256x32xf32>
    %c0_27 = arith.constant 0 : index
    %c32 = arith.constant 32 : index
    %26 = vector.load %arg8[%c0_27, %c32] : memref<256x288xf32, #tpu.memory_space<vmem>>, vector<256x32xf32>
    tpu.vector_store %arg8[%c0_27, %c32], %25 {strides = array<i32>} : memref<256x288xf32, #tpu.memory_space<vmem>>, vector<256x32xf32>,
    %c0_28 = arith.constant 0 : index
    %c9 = arith.constant 9 : index
    %c0_29 = arith.constant 0 : index
    %27 = vector.load %arg7[%c0_28, %c9, %c0_29] : memref<18x32x32xf32, #tpu.memory_space<vmem>>, vector<16x16x32xf32>
    %28 = vector.shape_cast %27 : vector<16x16x32xf32> to vector<256x32xf32>
    %c0_30 = arith.constant 0 : index
    %c64 = arith.constant 64 : index
    %29 = vector.load %arg8[%c0_30, %c64] : memref<256x288xf32, #tpu.memory_space<vmem>>, vector<256x32xf32>
    tpu.vector_store %arg8[%c0_30, %c64], %28 {strides = array<i32>} : memref<256x288xf32, #tpu.memory_space<vmem>>, vector<256x32xf32>,
    %c1_31 = arith.constant 1 : index
    %c7_32 = arith.constant 7 : index
    %c0_33 = arith.constant 0 : index
    %30 = vector.load %arg7[%c1_31, %c7_32, %c0_33] : memref<18x32x32xf32, #tpu.memory_space<vmem>>, vector<16x16x32xf32>
    %31 = vector.shape_cast %30 : vector<16x16x32xf32> to vector<256x32xf32>
    %c0_34 = arith.constant 0 : index
    %c96 = arith.constant 96 : index
    %32 = vector.load %arg8[%c0_34, %c96] : memref<256x288xf32, #tpu.memory_space<vmem>>, vector<256x32xf32>
    tpu.vector_store %arg8[%c0_34, %c96], %31 {strides = array<i32>} : memref<256x288xf32, #tpu.memory_space<vmem>>, vector<256x32xf32>,
    %c1_35 = arith.constant 1 : index
    %c8_36 = arith.constant 8 : index
    %c0_37 = arith.constant 0 : index
    %33 = vector.load %arg7[%c1_35, %c8_36, %c0_37] : memref<18x32x32xf32, #tpu.memory_space<vmem>>, vector<16x16x32xf32>
    %34 = vector.shape_cast %33 : vector<16x16x32xf32> to vector<256x32xf32>
    %c0_38 = arith.constant 0 : index
    %c128 = arith.constant 128 : index
    %35 = vector.load %arg8[%c0_38, %c128] : memref<256x288xf32, #tpu.memory_space<vmem>>, vector<256x32xf32>
    tpu.vector_store %arg8[%c0_38, %c128], %34 {strides = array<i32>} : memref<256x288xf32, #tpu.memory_space<vmem>>, vector<256x32xf32>,
    %c1_39 = arith.constant 1 : index
    %c9_40 = arith.constant 9 : index
    %c0_41 = arith.constant 0 : index
    %36 = vector.load %arg7[%c1_39, %c9_40, %c0_41] : memref<18x32x32xf32, #tpu.memory_space<vmem>>, vector<16x16x32xf32>
    %37 = vector.shape_cast %36 : vector<16x16x32xf32> to vector<256x32xf32>
    %c0_42 = arith.constant 0 : index
    %c160 = arith.constant 160 : index
    %38 = vector.load %arg8[%c0_42, %c160] : memref<256x288xf32, #tpu.memory_space<vmem>>, vector<256x32xf32>
    tpu.vector_store %arg8[%c0_42, %c160], %37 {strides = array<i32>} : memref<256x288xf32, #tpu.memory_space<vmem>>, vector<256x32xf32>,
    %c2 = arith.constant 2 : index
    %c7_43 = arith.constant 7 : index
    %c0_44 = arith.constant 0 : index
    %39 = vector.load %arg7[%c2, %c7_43, %c0_44] : memref<18x32x32xf32, #tpu.memory_space<vmem>>, vector<16x16x32xf32>
    %40 = vector.shape_cast %39 : vector<16x16x32xf32> to vector<256x32xf32>
    %c0_45 = arith.constant 0 : index
    %c192 = arith.constant 192 : index
    %41 = vector.load %arg8[%c0_45, %c192] : memref<256x288xf32, #tpu.memory_space<vmem>>, vector<256x32xf32>
    tpu.vector_store %arg8[%c0_45, %c192], %40 {strides = array<i32>} : memref<256x288xf32, #tpu.memory_space<vmem>>, vector<256x32xf32>,
    %c2_46 = arith.constant 2 : index
    %c8_47 = arith.constant 8 : index
    %c0_48 = arith.constant 0 : index
    %42 = vector.load %arg7[%c2_46, %c8_47, %c0_48] : memref<18x32x32xf32, #tpu.memory_space<vmem>>, vector<16x16x32xf32>
    %43 = vector.shape_cast %42 : vector<16x16x32xf32> to vector<256x32xf32>
    %c0_49 = arith.constant 0 : index
    %c224 = arith.constant 224 : index
    %44 = vector.load %arg8[%c0_49, %c224] : memref<256x288xf32, #tpu.memory_space<vmem>>, vector<256x32xf32>
    tpu.vector_store %arg8[%c0_49, %c224], %43 {strides = array<i32>} : memref<256x288xf32, #tpu.memory_space<vmem>>, vector<256x32xf32>,
    %c2_50 = arith.constant 2 : index
    %c9_51 = arith.constant 9 : index
    %c0_52 = arith.constant 0 : index
    %45 = vector.load %arg7[%c2_50, %c9_51, %c0_52] : memref<18x32x32xf32, #tpu.memory_space<vmem>>, vector<16x16x32xf32>
    %46 = vector.shape_cast %45 : vector<16x16x32xf32> to vector<256x32xf32>
    %c0_53 = arith.constant 0 : index
    %c256 = arith.constant 256 : index
    %47 = vector.load %arg8[%c0_53, %c256] : memref<256x288xf32, #tpu.memory_space<vmem>>, vector<256x32xf32>
    tpu.vector_store %arg8[%c0_53, %c256], %46 {strides = array<i32>} : memref<256x288xf32, #tpu.memory_space<vmem>>, vector<256x32xf32>,
    %c0_54 = arith.constant 0 : index
    %c0_55 = arith.constant 0 : index
    %48 = vector.load %arg8[%c0_54, %c0_55] : memref<256x288xf32, #tpu.memory_space<vmem>>, vector<256x288xf32>
    %49 = arith.truncf %48 : vector<256x288xf32> to vector<256x288xbf16>
    %c0_56 = arith.constant 0 : index
    %c0_57 = arith.constant 0 : index
    %50 = vector.load %arg3[%c0_56, %c0_57] : memref<288x64xbf16, #tpu.memory_space<vmem>>, vector<288x64xbf16>
    %cst_58 = arith.constant dense<0.000000e+00> : vector<256x64xf32>
    %51 = tpu.matmul %49, %50, %cst_58 {dimension_numbers = #tpu.dot_dimension_numbers<[1], [0], [0], [1], [0, 0, 1, 1], [], []>} : vector<256x288xbf16>, vector<288x64xbf16>, vector<256x64xf32> -> vector<256x64xf32>
    %c0_59 = arith.constant 0 : index
    %c0_60 = arith.constant 0 : index
    %52 = vector.load %arg4[%c0_59, %c0_60] : memref<1x64xf32, #tpu.memory_space<vmem>>, vector<1x64xf32>
    %53 = vector.broadcast %52 : vector<1x64xf32> to vector<256x64xf32>
    %54 = arith.addf %51, %53 : vector<256x64xf32>
    %cst_61 = arith.constant 0.000000e+00 : f32
    %55 = vector.broadcast %cst_61 : f32 to vector<256x64xf32>
    %56 = arith.maximumf %54, %55 : vector<256x64xf32>
    %57 = vector.shape_cast %56 : vector<256x64xf32> to vector<8x2x16x64xf32>
    %58 = vector.extract_strided_slice %57 {offsets = [0, 0, 0, 0], sizes = [8, 1, 16, 64], strides = [1, 1, 1, 1]} : vector<8x2x16x64xf32> to vector<8x1x16x64xf32>
    %59 = vector.shape_cast %58 : vector<8x1x16x64xf32> to vector<8x16x64xf32>
    %60 = vector.extract_strided_slice %57 {offsets = [0, 1, 0, 0], sizes = [8, 1, 16, 64], strides = [1, 1, 1, 1]} : vector<8x2x16x64xf32> to vector<8x1x16x64xf32>
    %61 = vector.shape_cast %60 : vector<8x1x16x64xf32> to vector<8x16x64xf32>
    %62 = arith.maximumf %59, %61 : vector<8x16x64xf32>
    %c0_62 = arith.constant 0 : index
    %c0_63 = arith.constant 0 : index
    %c0_64 = arith.constant 0 : index
    %63 = vector.load %arg9[%c0_62, %c0_63, %c0_64] : memref<8x16x64xf32, #tpu.memory_space<vmem>>, vector<8x16x64xf32>
    tpu.vector_store %arg9[%c0_62, %c0_63, %c0_64], %62 {strides = array<i32>} : memref<8x16x64xf32, #tpu.memory_space<vmem>>, vector<8x16x64xf32>,
    %c0_65 = arith.constant 0 : index
    %c0_66 = arith.constant 0 : index
    %c0_67 = arith.constant 0 : index
    %64 = tpu.strided_load %arg9[%c0_65, %c0_66, %c0_67] {strides = array<i32: 1, 2, 1>} : memref<8x16x64xf32, #tpu.memory_space<vmem>>, vector<8x8x64xf32>
    %c0_68 = arith.constant 0 : index
    %c1_69 = arith.constant 1 : index
    %c0_70 = arith.constant 0 : index
    %65 = tpu.strided_load %arg9[%c0_68, %c1_69, %c0_70] {strides = array<i32: 1, 2, 1>} : memref<8x16x64xf32, #tpu.memory_space<vmem>>, vector<8x8x64xf32>
    %66 = arith.maximumf %64, %65 : vector<8x8x64xf32>
    %67 = vector.shape_cast %66 : vector<8x8x64xf32> to vector<64x64xf32>
    %68 = arith.truncf %67 : vector<64x64xf32> to vector<64x64xbf16>
    %c0_71 = arith.constant 0 : index
    %c0_72 = arith.constant 0 : index
    %c0_73 = arith.constant 0 : index
    %69 = vector.load %arg5[%c0_71, %c0_72, %c0_73] : memref<2x64x64xbf16, #tpu.memory_space<vmem>>, vector<1x64x64xbf16>
    %70 = vector.shape_cast %69 : vector<1x64x64xbf16> to vector<64x64xbf16>
    %71 = vector.shape_cast %68 : vector<64x64xbf16> to vector<1x64x64xbf16>
    tpu.vector_store %arg5[%c0_71, %c0_72, %c0_73], %71 {strides = array<i32>} : memref<2x64x64xbf16, #tpu.memory_space<vmem>>, vector<1x64x64xbf16>,
    %c1024 = arith.constant 1024 : index
    %c0_74 = arith.constant 0 : index
    %72 = vector.load %arg0[%c1024, %c0_74] : memref<2048x32xbf16, #tpu.memory_space<vmem>>, vector<1024x32xbf16>
    %c0_75 = arith.constant 0 : index
    %c0_76 = arith.constant 0 : index
    %73 = vector.load %arg1[%c0_75, %c0_76] : memref<32x32xbf16, #tpu.memory_space<vmem>>, vector<32x32xbf16>
    %cst_77 = arith.constant dense<0.000000e+00> : vector<1024x32xf32>
    %74 = tpu.matmul %72, %73, %cst_77 {dimension_numbers = #tpu.dot_dimension_numbers<[1], [0], [0], [1], [0, 0, 1, 1], [], []>} : vector<1024x32xbf16>, vector<32x32xbf16>, vector<1024x32xf32> -> vector<1024x32xf32>
    %c0_78 = arith.constant 0 : index
    %c0_79 = arith.constant 0 : index
    %75 = vector.load %arg2[%c0_78, %c0_79] : memref<1x32xf32, #tpu.memory_space<vmem>>, vector<1x32xf32>
    %76 = vector.broadcast %75 : vector<1x32xf32> to vector<1024x32xf32>
    %77 = arith.addf %74, %76 : vector<1024x32xf32>
    %cst_80 = arith.constant 0.000000e+00 : f32
    %78 = vector.broadcast %cst_80 : f32 to vector<1024x32xf32>
    %79 = arith.maximumf %77, %78 : vector<1024x32xf32>
    %80 = vector.shape_cast %79 : vector<1024x32xf32> to vector<16x2x32x32xf32>
    %81 = vector.extract_strided_slice %80 {offsets = [0, 0, 0, 0], sizes = [16, 1, 32, 32], strides = [1, 1, 1, 1]} : vector<16x2x32x32xf32> to vector<16x1x32x32xf32>
    %82 = vector.shape_cast %81 : vector<16x1x32x32xf32> to vector<16x32x32xf32>
    %83 = vector.extract_strided_slice %80 {offsets = [0, 1, 0, 0], sizes = [16, 1, 32, 32], strides = [1, 1, 1, 1]} : vector<16x2x32x32xf32> to vector<16x1x32x32xf32>
    %84 = vector.shape_cast %83 : vector<16x1x32x32xf32> to vector<16x32x32xf32>
    %85 = arith.maximumf %82, %84 : vector<16x32x32xf32>
    %c0_81 = arith.constant 0 : index
    %c0_82 = arith.constant 0 : index
    %c0_83 = arith.constant 0 : index
    %86 = vector.load %arg6[%c0_81, %c0_82, %c0_83] : memref<16x32x32xf32, #tpu.memory_space<vmem>>, vector<16x32x32xf32>
    tpu.vector_store %arg6[%c0_81, %c0_82, %c0_83], %85 {strides = array<i32>} : memref<16x32x32xf32, #tpu.memory_space<vmem>>, vector<16x32x32xf32>,
    %c0_84 = arith.constant 0 : index
    %c0_85 = arith.constant 0 : index
    %c0_86 = arith.constant 0 : index
    %87 = tpu.strided_load %arg6[%c0_84, %c0_85, %c0_86] {strides = array<i32: 1, 2, 1>} : memref<16x32x32xf32, #tpu.memory_space<vmem>>, vector<16x16x32xf32>
    %c0_87 = arith.constant 0 : index
    %c1_88 = arith.constant 1 : index
    %c0_89 = arith.constant 0 : index
    %88 = tpu.strided_load %arg6[%c0_87, %c1_88, %c0_89] {strides = array<i32: 1, 2, 1>} : memref<16x32x32xf32, #tpu.memory_space<vmem>>, vector<16x16x32xf32>
    %89 = arith.maximumf %87, %88 : vector<16x16x32xf32>
    %c1_90 = arith.constant 1 : index
    %c8_91 = arith.constant 8 : index
    %c0_92 = arith.constant 0 : index
    %90 = vector.load %arg7[%c1_90, %c8_91, %c0_92] : memref<18x32x32xf32, #tpu.memory_space<vmem>>, vector<16x16x32xf32>
    tpu.vector_store %arg7[%c1_90, %c8_91, %c0_92], %89 {strides = array<i32>} : memref<18x32x32xf32, #tpu.memory_space<vmem>>, vector<16x16x32xf32>,
    %c0_93 = arith.constant 0 : index
    %c7_94 = arith.constant 7 : index
    %c0_95 = arith.constant 0 : index
    %91 = vector.load %arg7[%c0_93, %c7_94, %c0_95] : memref<18x32x32xf32, #tpu.memory_space<vmem>>, vector<16x16x32xf32>
    %92 = vector.shape_cast %91 : vector<16x16x32xf32> to vector<256x32xf32>
    %c0_96 = arith.constant 0 : index
    %c0_97 = arith.constant 0 : index
    %93 = vector.load %arg8[%c0_96, %c0_97] : memref<256x288xf32, #tpu.memory_space<vmem>>, vector<256x32xf32>
    tpu.vector_store %arg8[%c0_96, %c0_97], %92 {strides = array<i32>} : memref<256x288xf32, #tpu.memory_space<vmem>>, vector<256x32xf32>,
    %c0_98 = arith.constant 0 : index
    %c8_99 = arith.constant 8 : index
    %c0_100 = arith.constant 0 : index
    %94 = vector.load %arg7[%c0_98, %c8_99, %c0_100] : memref<18x32x32xf32, #tpu.memory_space<vmem>>, vector<16x16x32xf32>
    %95 = vector.shape_cast %94 : vector<16x16x32xf32> to vector<256x32xf32>
    %c0_101 = arith.constant 0 : index
    %c32_102 = arith.constant 32 : index
    %96 = vector.load %arg8[%c0_101, %c32_102] : memref<256x288xf32, #tpu.memory_space<vmem>>, vector<256x32xf32>
    tpu.vector_store %arg8[%c0_101, %c32_102], %95 {strides = array<i32>} : memref<256x288xf32, #tpu.memory_space<vmem>>, vector<256x32xf32>,
    %c0_103 = arith.constant 0 : index
    %c9_104 = arith.constant 9 : index
    %c0_105 = arith.constant 0 : index
    %97 = vector.load %arg7[%c0_103, %c9_104, %c0_105] : memref<18x32x32xf32, #tpu.memory_space<vmem>>, vector<16x16x32xf32>
    %98 = vector.shape_cast %97 : vector<16x16x32xf32> to vector<256x32xf32>
    %c0_106 = arith.constant 0 : index
    %c64_107 = arith.constant 64 : index
    %99 = vector.load %arg8[%c0_106, %c64_107] : memref<256x288xf32, #tpu.memory_space<vmem>>, vector<256x32xf32>
    tpu.vector_store %arg8[%c0_106, %c64_107], %98 {strides = array<i32>} : memref<256x288xf32, #tpu.memory_space<vmem>>, vector<256x32xf32>,
    %c1_108 = arith.constant 1 : index
    %c7_109 = arith.constant 7 : index
    %c0_110 = arith.constant 0 : index
    %100 = vector.load %arg7[%c1_108, %c7_109, %c0_110] : memref<18x32x32xf32, #tpu.memory_space<vmem>>, vector<16x16x32xf32>
    %101 = vector.shape_cast %100 : vector<16x16x32xf32> to vector<256x32xf32>
    %c0_111 = arith.constant 0 : index
    %c96_112 = arith.constant 96 : index
    %102 = vector.load %arg8[%c0_111, %c96_112] : memref<256x288xf32, #tpu.memory_space<vmem>>, vector<256x32xf32>
    tpu.vector_store %arg8[%c0_111, %c96_112], %101 {strides = array<i32>} : memref<256x288xf32, #tpu.memory_space<vmem>>, vector<256x32xf32>,
    %c1_113 = arith.constant 1 : index
    %c8_114 = arith.constant 8 : index
    %c0_115 = arith.constant 0 : index
    %103 = vector.load %arg7[%c1_113, %c8_114, %c0_115] : memref<18x32x32xf32, #tpu.memory_space<vmem>>, vector<16x16x32xf32>
    %104 = vector.shape_cast %103 : vector<16x16x32xf32> to vector<256x32xf32>
    %c0_116 = arith.constant 0 : index
    %c128_117 = arith.constant 128 : index
    %105 = vector.load %arg8[%c0_116, %c128_117] : memref<256x288xf32, #tpu.memory_space<vmem>>, vector<256x32xf32>
    tpu.vector_store %arg8[%c0_116, %c128_117], %104 {strides = array<i32>} : memref<256x288xf32, #tpu.memory_space<vmem>>, vector<256x32xf32>,
    %c1_118 = arith.constant 1 : index
    %c9_119 = arith.constant 9 : index
    %c0_120 = arith.constant 0 : index
    %106 = vector.load %arg7[%c1_118, %c9_119, %c0_120] : memref<18x32x32xf32, #tpu.memory_space<vmem>>, vector<16x16x32xf32>
    %107 = vector.shape_cast %106 : vector<16x16x32xf32> to vector<256x32xf32>
    %c0_121 = arith.constant 0 : index
    %c160_122 = arith.constant 160 : index
    %108 = vector.load %arg8[%c0_121, %c160_122] : memref<256x288xf32, #tpu.memory_space<vmem>>, vector<256x32xf32>
    tpu.vector_store %arg8[%c0_121, %c160_122], %107 {strides = array<i32>} : memref<256x288xf32, #tpu.memory_space<vmem>>, vector<256x32xf32>,
    %c2_123 = arith.constant 2 : index
    %c7_124 = arith.constant 7 : index
    %c0_125 = arith.constant 0 : index
    %109 = vector.load %arg7[%c2_123, %c7_124, %c0_125] : memref<18x32x32xf32, #tpu.memory_space<vmem>>, vector<16x16x32xf32>
    %110 = vector.shape_cast %109 : vector<16x16x32xf32> to vector<256x32xf32>
    %c0_126 = arith.constant 0 : index
    %c192_127 = arith.constant 192 : index
    %111 = vector.load %arg8[%c0_126, %c192_127] : memref<256x288xf32, #tpu.memory_space<vmem>>, vector<256x32xf32>
    tpu.vector_store %arg8[%c0_126, %c192_127], %110 {strides = array<i32>} : memref<256x288xf32, #tpu.memory_space<vmem>>, vector<256x32xf32>,
    %c2_128 = arith.constant 2 : index
    %c8_129 = arith.constant 8 : index
    %c0_130 = arith.constant 0 : index
    %112 = vector.load %arg7[%c2_128, %c8_129, %c0_130] : memref<18x32x32xf32, #tpu.memory_space<vmem>>, vector<16x16x32xf32>
    %113 = vector.shape_cast %112 : vector<16x16x32xf32> to vector<256x32xf32>
    %c0_131 = arith.constant 0 : index
    %c224_132 = arith.constant 224 : index
    %114 = vector.load %arg8[%c0_131, %c224_132] : memref<256x288xf32, #tpu.memory_space<vmem>>, vector<256x32xf32>
    tpu.vector_store %arg8[%c0_131, %c224_132], %113 {strides = array<i32>} : memref<256x288xf32, #tpu.memory_space<vmem>>, vector<256x32xf32>,
    %c2_133 = arith.constant 2 : index
    %c9_134 = arith.constant 9 : index
    %c0_135 = arith.constant 0 : index
    %115 = vector.load %arg7[%c2_133, %c9_134, %c0_135] : memref<18x32x32xf32, #tpu.memory_space<vmem>>, vector<16x16x32xf32>
    %116 = vector.shape_cast %115 : vector<16x16x32xf32> to vector<256x32xf32>
    %c0_136 = arith.constant 0 : index
    %c256_137 = arith.constant 256 : index
    %117 = vector.load %arg8[%c0_136, %c256_137] : memref<256x288xf32, #tpu.memory_space<vmem>>, vector<256x32xf32>
    tpu.vector_store %arg8[%c0_136, %c256_137], %116 {strides = array<i32>} : memref<256x288xf32, #tpu.memory_space<vmem>>, vector<256x32xf32>,
    %c0_138 = arith.constant 0 : index
    %c0_139 = arith.constant 0 : index
    %118 = vector.load %arg8[%c0_138, %c0_139] : memref<256x288xf32, #tpu.memory_space<vmem>>, vector<256x288xf32>
    %119 = arith.truncf %118 : vector<256x288xf32> to vector<256x288xbf16>
    %c0_140 = arith.constant 0 : index
    %c0_141 = arith.constant 0 : index
    %120 = vector.load %arg3[%c0_140, %c0_141] : memref<288x64xbf16, #tpu.memory_space<vmem>>, vector<288x64xbf16>
    %cst_142 = arith.constant dense<0.000000e+00> : vector<256x64xf32>
    %121 = tpu.matmul %119, %120, %cst_142 {dimension_numbers = #tpu.dot_dimension_numbers<[1], [0], [0], [1], [0, 0, 1, 1], [], []>} : vector<256x288xbf16>, vector<288x64xbf16>, vector<256x64xf32> -> vector<256x64xf32>
    %c0_143 = arith.constant 0 : index
    %c0_144 = arith.constant 0 : index
    %122 = vector.load %arg4[%c0_143, %c0_144] : memref<1x64xf32, #tpu.memory_space<vmem>>, vector<1x64xf32>
    %123 = vector.broadcast %122 : vector<1x64xf32> to vector<256x64xf32>
    %124 = arith.addf %121, %123 : vector<256x64xf32>
    %cst_145 = arith.constant 0.000000e+00 : f32
    %125 = vector.broadcast %cst_145 : f32 to vector<256x64xf32>
    %126 = arith.maximumf %124, %125 : vector<256x64xf32>
    %127 = vector.shape_cast %126 : vector<256x64xf32> to vector<8x2x16x64xf32>
    %128 = vector.extract_strided_slice %127 {offsets = [0, 0, 0, 0], sizes = [8, 1, 16, 64], strides = [1, 1, 1, 1]} : vector<8x2x16x64xf32> to vector<8x1x16x64xf32>
    %129 = vector.shape_cast %128 : vector<8x1x16x64xf32> to vector<8x16x64xf32>
    %130 = vector.extract_strided_slice %127 {offsets = [0, 1, 0, 0], sizes = [8, 1, 16, 64], strides = [1, 1, 1, 1]} : vector<8x2x16x64xf32> to vector<8x1x16x64xf32>
    %131 = vector.shape_cast %130 : vector<8x1x16x64xf32> to vector<8x16x64xf32>
    %132 = arith.maximumf %129, %131 : vector<8x16x64xf32>
    %c0_146 = arith.constant 0 : index
    %c0_147 = arith.constant 0 : index
    %c0_148 = arith.constant 0 : index
    %133 = vector.load %arg9[%c0_146, %c0_147, %c0_148] : memref<8x16x64xf32, #tpu.memory_space<vmem>>, vector<8x16x64xf32>
    tpu.vector_store %arg9[%c0_146, %c0_147, %c0_148], %132 {strides = array<i32>} : memref<8x16x64xf32, #tpu.memory_space<vmem>>, vector<8x16x64xf32>,
    %c0_149 = arith.constant 0 : index
    %c0_150 = arith.constant 0 : index
    %c0_151 = arith.constant 0 : index
    %134 = tpu.strided_load %arg9[%c0_149, %c0_150, %c0_151] {strides = array<i32: 1, 2, 1>} : memref<8x16x64xf32, #tpu.memory_space<vmem>>, vector<8x8x64xf32>
    %c0_152 = arith.constant 0 : index
    %c1_153 = arith.constant 1 : index
    %c0_154 = arith.constant 0 : index
    %135 = tpu.strided_load %arg9[%c0_152, %c1_153, %c0_154] {strides = array<i32: 1, 2, 1>} : memref<8x16x64xf32, #tpu.memory_space<vmem>>, vector<8x8x64xf32>
    %136 = arith.maximumf %134, %135 : vector<8x8x64xf32>
    %137 = vector.shape_cast %136 : vector<8x8x64xf32> to vector<64x64xf32>
    %138 = arith.truncf %137 : vector<64x64xf32> to vector<64x64xbf16>
    %c1_155 = arith.constant 1 : index
    %c0_156 = arith.constant 0 : index
    %c0_157 = arith.constant 0 : index
    %139 = vector.load %arg5[%c1_155, %c0_156, %c0_157] : memref<2x64x64xbf16, #tpu.memory_space<vmem>>, vector<1x64x64xbf16>
    %140 = vector.shape_cast %139 : vector<1x64x64xbf16> to vector<64x64xbf16>
    %141 = vector.shape_cast %138 : vector<64x64xbf16> to vector<1x64x64xbf16>
    tpu.vector_store %arg5[%c1_155, %c0_156, %c0_157], %141 {strides = array<i32>} : memref<2x64x64xbf16, #tpu.memory_space<vmem>>, vector<1x64x64xbf16>,
    return
  }
}

module attributes {stable_mosaic.version = 11 : i64} {
  func.func @fc_kernel(%arg0: memref<2x4096xbf16, #tpu.memory_space<vmem>>, %arg1: memref<4096x128xbf16, #tpu.memory_space<vmem>>, %arg2: memref<1x128xf32, #tpu.memory_space<vmem>>, %arg3: memref<128x128xbf16, #tpu.memory_space<vmem>>, %arg4: memref<1x128xf32, #tpu.memory_space<vmem>>, %arg5: memref<2x128xf32, #tpu.memory_space<vmem>>) attributes {dimension_semantics = [], scalar_prefetch = 0 : i64, scratch_operands = 0 : i64, tpu.core_type = #tpu.core_type<tc>} {
    %c0 = arith.constant 0 : index
    %c0_0 = arith.constant 0 : index
    %0 = vector.load %arg0[%c0, %c0_0] : memref<2x4096xbf16, #tpu.memory_space<vmem>>, vector<2x4096xbf16>
    %c0_1 = arith.constant 0 : index
    %c0_2 = arith.constant 0 : index
    %1 = vector.load %arg1[%c0_1, %c0_2] : memref<4096x128xbf16, #tpu.memory_space<vmem>>, vector<4096x128xbf16>
    %cst = arith.constant dense<0.000000e+00> : vector<2x128xf32>
    %2 = tpu.matmul %0, %1, %cst {dimension_numbers = #tpu.dot_dimension_numbers<[1], [0], [0], [1], [0, 0, 1, 1], [], []>} : vector<2x4096xbf16>, vector<4096x128xbf16>, vector<2x128xf32> -> vector<2x128xf32>
    %c0_3 = arith.constant 0 : index
    %c0_4 = arith.constant 0 : index
    %3 = vector.load %arg2[%c0_3, %c0_4] : memref<1x128xf32, #tpu.memory_space<vmem>>, vector<1x128xf32>
    %4 = vector.broadcast %3 : vector<1x128xf32> to vector<2x128xf32>
    %5 = arith.addf %2, %4 : vector<2x128xf32>
    %cst_5 = arith.constant 0.000000e+00 : f32
    %6 = vector.broadcast %cst_5 : f32 to vector<2x128xf32>
    %7 = arith.maximumf %5, %6 : vector<2x128xf32>
    %8 = arith.truncf %7 : vector<2x128xf32> to vector<2x128xbf16>
    %c0_6 = arith.constant 0 : index
    %c0_7 = arith.constant 0 : index
    %9 = vector.load %arg3[%c0_6, %c0_7] : memref<128x128xbf16, #tpu.memory_space<vmem>>, vector<128x128xbf16>
    %cst_8 = arith.constant dense<0.000000e+00> : vector<2x128xf32>
    %10 = tpu.matmul %8, %9, %cst_8 {dimension_numbers = #tpu.dot_dimension_numbers<[1], [0], [0], [1], [0, 0, 1, 1], [], []>} : vector<2x128xbf16>, vector<128x128xbf16>, vector<2x128xf32> -> vector<2x128xf32>
    %c0_9 = arith.constant 0 : index
    %c0_10 = arith.constant 0 : index
    %11 = vector.load %arg4[%c0_9, %c0_10] : memref<1x128xf32, #tpu.memory_space<vmem>>, vector<1x128xf32>
    %12 = vector.broadcast %11 : vector<1x128xf32> to vector<2x128xf32>
    %13 = arith.addf %10, %12 : vector<2x128xf32>
    %c0_11 = arith.constant 0 : index
    %c0_12 = arith.constant 0 : index
    %14 = vector.load %arg5[%c0_11, %c0_12] : memref<2x128xf32, #tpu.memory_space<vmem>>, vector<2x128xf32>
    tpu.vector_store %arg5[%c0_11, %c0_12], %13 {strides = array<i32>} : memref<2x128xf32, #tpu.memory_space<vmem>>, vector<2x128xf32>,
    return
  }
}

</mosaic_0001>

<bundles_post_ra>
// kernel: cnn_forward.3
= control target key start
LH: loop header
LB: loop body
LE: loop exit
PB: predicated region body
PF: predicated region fallthrough
CT: control target
= control target key end

     0   :  { %v553_v28 = vlaneseq  ;;  %v4024_v36 = vmov 1966171168   ;;  %s4926_s0 = inlined_call_operand.vmem [shape: bf16[2,4096], index: 0, kind: input, shape index: {}]   ;;  %s4927_s1 = inlined_call_operand.vmem [shape: bf16[4096,128], index: 1, kind: input, shape index: {}]   ;;  %s4928_s2 = inlined_call_operand.vmem [shape: f32[1,128], index: 2, kind: input, shape index: {}]   ;;  %s4929_s3 = inlined_call_operand.vmem [shape: bf16[128,128], index: 3, kind: input, shape index: {}]   ;;  %s4930_s4 = inlined_call_operand.vmem [shape: f32[1,128], index: 4, kind: input, shape index: {}]   ;;  %s4931_s5 = inlined_call_operand.hbm [shape: f32[2,128], index: 5, kind: output, shape index: {}]  }
   0x1   :  { %v3732_v0 = vld [vmem:[%s4927_s1 + $0x40] sm:$0xff]   ;;  %v3736_v4 = vld [vmem:[%s4927_s1 + $0x48] sm:$0xff]   ;;  %v3740_v8 = vld [vmem:[%s4927_s1 + $0x50] sm:$0xff]   ;;  %v551_v37 = vunpack.c.l.s4 %v4024_v36 }
   0x2   :  { %v3733_v1 = vld [vmem:[%s4927_s1 + $0xc0] sm:$0xff]   ;;  %3347 = vmatprep.subr.bf16.mxu0 %v3732_v0  ;;  %v3737_v5 = vld [vmem:[%s4927_s1 + $0xc8] sm:$0xff]   ;;  %v3741_v9 = vld [vmem:[%s4927_s1 + $0xd0] sm:$0xff]   ;;  %v554_v33 = vshrl.u32 %v553_v28, 7 }
   0x3   :  { %v3734_v2 = vld [vmem:[%s4927_s1] sm:$0xff]   ;;  %3369 = vmatprep.subr.bf16.mxu1 %v3733_v1  ;;  %v3738_v6 = vld [vmem:[%s4927_s1 + $0x8] sm:$0xff]   ;;  %v3742_v10 = vld [vmem:[%s4927_s1 + $0x10] sm:$0xff]   ;;  %v552_v40 = vunpack.c.0.s8 %v551_v37 }
   0x4   :  { %v3735_v3 = vld [vmem:[%s4927_s1 + $0x80] sm:$0xff]   ;;  %3348 = vmatpush3.bf16.msra.mxu0 %v3734_v2  ;;  %v3739_v7 = vld [vmem:[%s4927_s1 + $0x88] sm:$0xff]   ;;  %v3743_v11 = vld [vmem:[%s4927_s1 + $0x90] sm:$0xff]  }
   0x5   :  { %3370 = vmatpush3.bf16.msra.mxu1 %v3735_v3  ;;  %3349 = vmatprep.subr.bf16.mxu0 %v3736_v4  ;;  %v3744_v12 = vld [vmem:[%s4927_s1 + $0x58] sm:$0xff]   ;;  %v3748_v16 = vld [vmem:[%s4927_s1 + $0x60] sm:$0xff]   ;;  %v3752_v20 = vld [vmem:[%s4927_s1 + $0x68] sm:$0xff]   ;;  %v4163_v41 = vsub.s32 %v552_v40, %v554_v33 }
   0x6   :  { %3371 = vmatprep.subr.bf16.mxu1 %v3737_v5  ;;  %v3745_v13 = vld [vmem:[%s4927_s1 + $0xd8] sm:$0xff]   ;;  %v3749_v17 = vld [vmem:[%s4927_s1 + $0xe0] sm:$0xff]   ;;  %v3753_v21 = vld [vmem:[%s4927_s1 + $0xe8] sm:$0xff]  }
   0x7   :  { %v3746_v14 = vld [vmem:[%s4927_s1 + $0x18] sm:$0xff]   ;;  %v3750_v18 = vld [vmem:[%s4927_s1 + $0x20] sm:$0xff]   ;;  %v3754_v22 = vld [vmem:[%s4927_s1 + $0x28] sm:$0xff]  }
   0x8   :  { %3350 = vmatpush3.bf16.msra.mxu0 %v3738_v6  ;;  %v3747_v15 = vld [vmem:[%s4927_s1 + $0x98] sm:$0xff]   ;;  %v3751_v19 = vld [vmem:[%s4927_s1 + $0xa0] sm:$0xff]   ;;  %v3755_v23 = vld [vmem:[%s4927_s1 + $0xa8] sm:$0xff]  }
   0x9   :  { %3372 = vmatpush3.bf16.msra.mxu1 %v3739_v7  ;;  %3351 = vmatprep.subr.bf16.mxu0 %v3740_v8  ;;  %v3756_v24 = vld [vmem:[%s4927_s1 + $0x70] sm:$0xff]   ;;  %v3760_v29 = vld [vmem:[%s4927_s1 + $0x78] sm:$0xff]   ;;  %v22_v34 = vld [vmem:[%s4926_s0] sm:$0xff] }
   0xa   :  { %3373 = vmatprep.subr.bf16.mxu1 %v3741_v9  ;;  %v3757_v25 = vld [vmem:[%s4927_s1 + $0xf0] sm:$0xff]   ;;  %v3761_v30 = vld [vmem:[%s4927_s1 + $0xf8] sm:$0xff]   ;;  %v3765_v35 = vld [vmem:[%s4927_s1 + $0x140] sm:$0xff]   ;;  %v549_v39 = vcombine.high %v22_v34, %v22_v34  ;;  %v556_v42 = vrot.slane %v22_v34, %v4163_v41 }
   0xb   :  { %v3758_v26 = vld [vmem:[%s4927_s1 + $0x30] sm:$0xff]   ;;  %v3762_v31 = vld [vmem:[%s4927_s1 + $0x38] sm:$0xff]   ;;  %v3766_v38 = vld [vmem:[%s4927_s1 + $0x1c0] sm:$0xff]  }
   0xc   :  { %3352 = vmatpush3.bf16.msra.mxu0 %v3742_v10  ;;  %v3759_v27 = vld [vmem:[%s4927_s1 + $0xb0] sm:$0xff]   ;;  %v3763_v32 = vld [vmem:[%s4927_s1 + $0xb8] sm:$0xff]   ;;  %v4167_v43 = vrot.slane %v549_v39, %v4163_v41  ;;  %v564_v44 = vcombine.high %v556_v42, %v556_v42  ;;  %v572_v45 = vrot.slane %v556_v42, %v4163_v41  ;;  %v3767_v47 = vld [vmem:[%s4927_s1 + $0x100] sm:$0xff]  }
   0xd   :  { %3374 = vmatpush3.bf16.msra.mxu1 %v3743_v11  ;;  %3353 = vmatprep.subr.bf16.mxu0 %v3744_v12  ;;  %v3768_v49 = vld [vmem:[%s4927_s1 + $0x180] sm:$0xff]   ;;  %v3769_v52 = vld [vmem:[%s4927_s1 + $0x148] sm:$0xff]   ;;  %v3773_v58 = vld [vmem:[%s4927_s1 + $0x150] sm:$0xff]  }
   0xe   :  { %3375 = vmatprep.subr.bf16.mxu1 %v3745_v13  ;;  %v565_v46 = vcombine.high %v4167_v43, %v4167_v43  ;;  %v586_v48 = vrot.slane %v564_v44, %v4163_v41  ;;  %v594_v51 = vcombine.high %v572_v45, %v572_v45  ;;  %v3770_v54 = vld [vmem:[%s4927_s1 + $0x1c8] sm:$0xff]   ;;  %v3774_v59 = vld [vmem:[%s4927_s1 + $0x1d0] sm:$0xff]   ;;  %v3777_v62 = vld [vmem:[%s4927_s1 + $0x158] sm:$0xff]  }
   0xf   :  { %v3771_v55 = vld [vmem:[%s4927_s1 + $0x108] sm:$0xff]   ;;  %v3775_v60 = vld [vmem:[%s4927_s1 + $0x110] sm:$0xff]   ;;  %v3778_v63 = vld [vmem:[%s4927_s1 + $0x1d8] sm:$0xff]  }
  0x10   :  { %3354 = vmatpush3.bf16.msra.mxu0 %v3746_v14  ;;  %v593_v50 = vrot.slane %v565_v46, %v4163_v41  ;;  %2345 = vmatprep.mubr.bf16.mxu0 %v586_v48  ;;  %v596_v53 = vcombine.high %v586_v48, %v586_v48  ;;  %v3772_v57 = vld [vmem:[%s4927_s1 + $0x188] sm:$0xff]   ;;  %v3776_v61 = vld [vmem:[%s4927_s1 + $0x190] sm:$0xff]   ;;  %v3779_v0 = vld [vmem:[%s4927_s1 + $0x118] sm:$0xff]  }
  0x11   :  { %3376 = vmatpush3.bf16.msra.mxu1 %v3747_v15  ;;  %3355 = vmatprep.subr.bf16.mxu0 %v3748_v16  ;;  %v3780_v1 = vld [vmem:[%s4927_s1 + $0x198] sm:$0xff]   ;;  %v3781_v2 = vld [vmem:[%s4927_s1 + $0x160] sm:$0xff]   ;;  %v3785_v6 = vld [vmem:[%s4927_s1 + $0x168] sm:$0xff]  }
  0x12   :  { %3377 = vmatprep.subr.bf16.mxu1 %v3749_v17  ;;  %v597_v56 = vcombine.high %v593_v50, %v593_v50  ;;  %2385 = vmatprep.mubr.bf16.mxu1 %v596_v53  ;;  %v3782_v3 = vld [vmem:[%s4927_s1 + $0x1e0] sm:$0xff]   ;;  %v3786_v7 = vld [vmem:[%s4927_s1 + $0x1e8] sm:$0xff]   ;;  %v3789_v10 = vld [vmem:[%s4927_s1 + $0x170] sm:$0xff]  }
  0x13   :  { %v3783_v4 = vld [vmem:[%s4927_s1 + $0x120] sm:$0xff]   ;;  %v3787_v8 = vld [vmem:[%s4927_s1 + $0x128] sm:$0xff]   ;;  %v3790_v11 = vld [vmem:[%s4927_s1 + $0x1f0] sm:$0xff]  }
  0x14   :  { %3356 = vmatpush3.bf16.msra.mxu0 %v3750_v18  ;;  %v3784_v5 = vld [vmem:[%s4927_s1 + $0x1a0] sm:$0xff]   ;;  %v3788_v9 = vld [vmem:[%s4927_s1 + $0x1a8] sm:$0xff]   ;;  %v3791_v12 = vld [vmem:[%s4927_s1 + $0x130] sm:$0xff]   ;;  %v579_v18 = vrot.slane %v4167_v43, %v4163_v41 }
  0x15   :  { %3378 = vmatpush3.bf16.msra.mxu1 %v3751_v19  ;;  %3357 = vmatprep.subr.bf16.mxu0 %v3752_v20  ;;  %v3792_v13 = vld [vmem:[%s4927_s1 + $0x1b0] sm:$0xff]   ;;  %v3793_v14 = vld [vmem:[%s4927_s1 + $0x178] sm:$0xff]   ;;  %v3797_v19 = vld [vmem:[%s4927_s1 + $0x240] sm:$0xff]  }
  0x16   :  { %3379 = vmatprep.subr.bf16.mxu1 %v3753_v21  ;;  %v3794_v15 = vld [vmem:[%s4927_s1 + $0x1f8] sm:$0xff]   ;;  %v3798_v20 = vld [vmem:[%s4927_s1 + $0x2c0] sm:$0xff]   ;;  %v3805_v28 = vld [vmem:[%s4927_s1 + $0x250] sm:$0xff]  }
  0x17   :  { %v3795_v16 = vld [vmem:[%s4927_s1 + $0x138] sm:$0xff]   ;;  %v3799_v21 = vld [vmem:[%s4927_s1 + $0x200] sm:$0xff]   ;;  %v3817_v40 = vld [vmem:[%s4927_s1 + $0x268] sm:$0xff]  }
  0x18   :  { %3358 = vmatpush3.bf16.msra.mxu0 %v3754_v22  ;;  %v3796_v17 = vld [vmem:[%s4927_s1 + $0x1b8] sm:$0xff]   ;;  %v3800_v22 = vld [vmem:[%s4927_s1 + $0x280] sm:$0xff]   ;;  %v3818_v42 = vld [vmem:[%s4927_s1 + $0x2e8] sm:$0xff]  }
  0x19   :  { %3380 = vmatpush3.bf16.msra.mxu1 %v3755_v23  ;;  %3359 = vmatprep.subr.bf16.mxu0 %v3756_v24  ;;  %v595_v23 = vcombine.high %v579_v18, %v579_v18  ;;  %v3801_v24 = vld [vmem:[%s4927_s1 + $0x248] sm:$0xff]   ;;  %v3810_v33 = vld [vmem:[%s4927_s1 + $0x2d8] sm:$0xff]   ;;  %v3813_v36 = vld [vmem:[%s4927_s1 + $0x260] sm:$0xff]  }
  0x1a   :  { %3381 = vmatprep.subr.bf16.mxu1 %v3757_v25  ;;  %v3802_v25 = vld [vmem:[%s4927_s1 + $0x2c8] sm:$0xff]   ;;  %v3811_v34 = vld [vmem:[%s4927_s1 + $0x218] sm:$0xff]   ;;  %v3814_v37 = vld [vmem:[%s4927_s1 + $0x2e0] sm:$0xff]  }
  0x1b   :  { %v3816_v39 = vld [vmem:[%s4927_s1 + $0x2a0] sm:$0xff]   ;;  %v3819_v43 = vld [vmem:[%s4927_s1 + $0x228] sm:$0xff]  }
  0x1c   :  { %3360 = vmatpush3.bf16.msra.mxu0 %v3758_v26  ;;  %v3803_v26 = vld [vmem:[%s4927_s1 + $0x208] sm:$0xff]  }
  0x1d   :  { %3382 = vmatpush3.bf16.msra.mxu1 %v3759_v27  ;;  %3361 = vmatprep.subr.bf16.mxu0 %v3760_v29  ;;  %v3804_v27 = vld [vmem:[%s4927_s1 + $0x288] sm:$0xff]   ;;  %v3806_v29 = vld [vmem:[%s4927_s1 + $0x2d0] sm:$0xff]  }
  0x1e   :  { %3383 = vmatprep.subr.bf16.mxu1 %v3761_v30  ;;  %v3807_v30 = vld [vmem:[%s4927_s1 + $0x210] sm:$0xff]   ;;  %v3820_v44 = vld [vmem:[%s4927_s1 + $0x2a8] sm:$0xff]  }
  0x1f   :  { %v23_v46 = vld [vmem:[%s4926_s0 + $0x8] sm:$0xff] }
  0x20   :  { %3362 = vmatpush3.bf16.msra.mxu0 %v3762_v31  ;;  %v3808_v31 = vld [vmem:[%s4927_s1 + $0x290] sm:$0xff]   ;;  %v605_v48 = vrot.slane %v23_v46, %v4163_v41 }
  0x21   :  { %3384 = vmatpush3.bf16.msra.mxu1 %v3763_v32  ;;  %3391 = vmatprep.subr.bf16.mxu0 %v3765_v35  ;;  %v3809_v32 = vld [vmem:[%s4927_s1 + $0x258] sm:$0xff]  }
  0x22   :  { %3413 = vmatprep.subr.bf16.mxu1 %v3766_v38  ;;  %v3812_v35 = vld [vmem:[%s4927_s1 + $0x298] sm:$0xff]   ;;  %v3815_v38 = vld [vmem:[%s4927_s1 + $0x220] sm:$0xff]  }
  0x23   :  { %2346 = vmatmul.mubr.bf16.vlgmr.msra.gmra.mrb[0].mxu0 %v572_v45  ;;  %v3821_v45 = vld [vmem:[%s4927_s1 + $0x270] sm:$0xff]  }
  0x24   :  { %3392 = vmatpush3.bf16.msra.mxu0 %v3767_v47  ;;  %2386 = vmatmul.mubr.bf16.vlgmr.msra.gmra.mrb[0].mxu1 %v594_v51  ;;  %v3822_v47 = vld [vmem:[%s4927_s1 + $0x2f0] sm:$0xff]  }
  0x25   :  { %3393 = vmatprep.subr.bf16.mxu0 %v3769_v52  ;;  %3414 = vmatpush3.bf16.msra.mxu1 %v3768_v49  ;;  %v598_v49 = vcombine.high %v23_v46, %v23_v46  ;;  %v3824_v51 = vld [vmem:[%s4927_s1 + $0x2b0] sm:$0xff]   ;;  %v613_v52 = vcombine.high %v605_v48, %v605_v48 }
  0x26   :  { %2425 = vmatprep.mubr.bf16.mxu0 %v593_v50  ;;  %3415 = vmatprep.subr.bf16.mxu1 %v3770_v54  ;;  %v3823_v50 = vld [vmem:[%s4927_s1 + $0x230] sm:$0xff]   ;;  %v3825_v54 = vld [vmem:[%s4927_s1 + $0x278] sm:$0xff]  }
  0x27   :  { %2465 = vmatprep.mubr.bf16.mxu1 %v597_v56  ;;  %v4355_v53 = vrot.slane %v598_v49, %v4163_v41  ;;  %v635_v56 = vrot.slane %v613_v52, %v4163_v41  ;;  %v3872_v46 = vld [vmem:[%s4927_s1 + $0x410] sm:$0xff]   ;;  %v3875_v49 = vld [vmem:[%s4927_s1 + $0x4d8] sm:$0xff]   ;;  %v3878_v52 = vld [vmem:[%s4927_s1 + $0x460] sm:$0xff]  }
  0x28   :  { %3394 = vmatpush3.bf16.msra.mxu0 %v3771_v55  ;;  %v3826_v55 = vld [vmem:[%s4927_s1 + $0x2f8] sm:$0xff]  }
  0x29   :  { %3395 = vmatprep.subr.bf16.mxu0 %v3773_v58  ;;  %3416 = vmatpush3.bf16.msra.mxu1 %v3772_v57  ;;  %v614_v57 = vcombine.high %v4355_v53, %v4355_v53  ;;  %v3827_v58 = vld [vmem:[%s4927_s1 + $0x238] sm:$0xff]  }
  0x2a   :  { %3417 = vmatprep.subr.bf16.mxu1 %v3774_v59  ;;  %v3828_v59 = vld [vmem:[%s4927_s1 + $0x2b8] sm:$0xff]  }
  0x2c   :  { %3396 = vmatpush3.bf16.msra.mxu0 %v3775_v60  ;;  %v645_v60 = vcombine.high %v635_v56, %v635_v56 }
  0x2d   :  { %3397 = vmatprep.subr.bf16.mxu0 %v3777_v62  ;;  %3418 = vmatpush3.bf16.msra.mxu1 %v3776_v61  ;;  %v621_v61 = vrot.slane %v605_v48, %v4163_v41  ;;  %v3829_v62 = vld [vmem:[%s4927_s1 + $0x340] sm:$0xff]   ;;  %v3874_v48 = vld [vmem:[%s4927_s1 + $0x458] sm:$0xff]  }
  0x2e   :  { %3419 = vmatprep.subr.bf16.mxu1 %v3778_v63  ;;  %v3830_v63 = vld [vmem:[%s4927_s1 + $0x3c0] sm:$0xff]  }
  0x30   :  { %3398 = vmatpush3.bf16.msra.mxu0 %v3779_v0  ;;  %v642_v0 = vrot.slane %v614_v57, %v4163_v41  ;;  %v3883_v57 = vld [vmem:[%s4927_s1 + $0x4e8] sm:$0xff]  }
  0x31   :  { %3399 = vmatprep.subr.bf16.mxu0 %v3781_v2  ;;  %3420 = vmatpush3.bf16.msra.mxu1 %v3780_v1  ;;  %v3831_v1 = vld [vmem:[%s4927_s1 + $0x300] sm:$0xff]  }
  0x32   :  { %3421 = vmatprep.subr.bf16.mxu1 %v3782_v3  ;;  %v3832_v2 = vld [vmem:[%s4927_s1 + $0x380] sm:$0xff]   ;;  %v643_v3 = vcombine.high %v621_v61, %v621_v61 }
  0x34   :  { %3400 = vmatpush3.bf16.msra.mxu0 %v3783_v4  ;;  %v3833_v4 = vld [vmem:[%s4927_s1 + $0x348] sm:$0xff]  }
  0x35   :  { %3401 = vmatprep.subr.bf16.mxu0 %v3785_v6  ;;  %3422 = vmatpush3.bf16.msra.mxu1 %v3784_v5  ;;  %v3834_v5 = vld [vmem:[%s4927_s1 + $0x3c8] sm:$0xff]   ;;  %v646_v6 = vcombine.high %v642_v0, %v642_v0 }
  0x36   :  { %3423 = vmatprep.subr.bf16.mxu1 %v3786_v7  ;;  %v3835_v7 = vld [vmem:[%s4927_s1 + $0x308] sm:$0xff]  }
  0x38   :  { %3402 = vmatpush3.bf16.msra.mxu0 %v3787_v8  ;;  %v3836_v8 = vld [vmem:[%s4927_s1 + $0x388] sm:$0xff]  }
  0x39   :  { %3403 = vmatprep.subr.bf16.mxu0 %v3789_v10  ;;  %3424 = vmatpush3.bf16.msra.mxu1 %v3788_v9  ;;  %v3837_v9 = vld [vmem:[%s4927_s1 + $0x350] sm:$0xff]  }
  0x3a   :  { %3425 = vmatprep.subr.bf16.mxu1 %v3790_v11  ;;  %v3838_v10 = vld [vmem:[%s4927_s1 + $0x3d0] sm:$0xff]  }
  0x3b   :  { %v3839_v11 = vld [vmem:[%s4927_s1 + $0x310] sm:$0xff]  }
  0x3c   :  { %3404 = vmatpush3.bf16.msra.mxu0 %v3791_v12  ;;  %v3840_v12 = vld [vmem:[%s4927_s1 + $0x390] sm:$0xff]  }
  0x3d   :  { %3405 = vmatprep.subr.bf16.mxu0 %v3793_v14  ;;  %3426 = vmatpush3.bf16.msra.mxu1 %v3792_v13  ;;  %v3841_v13 = vld [vmem:[%s4927_s1 + $0x358] sm:$0xff]  }
  0x3e   :  { %3427 = vmatprep.subr.bf16.mxu1 %v3794_v15  ;;  %v3842_v14 = vld [vmem:[%s4927_s1 + $0x3d8] sm:$0xff]  }
  0x3f   :  { %v3843_v15 = vld [vmem:[%s4927_s1 + $0x318] sm:$0xff]  }
  0x40   :  { %3406 = vmatpush3.bf16.msra.mxu0 %v3795_v16  ;;  %v3844_v16 = vld [vmem:[%s4927_s1 + $0x398] sm:$0xff]  }
  0x41   :  { %3435 = vmatprep.subr.bf16.mxu0 %v3797_v19  ;;  %3428 = vmatpush3.bf16.msra.mxu1 %v3796_v17  ;;  %v3845_v17 = vld [vmem:[%s4927_s1 + $0x360] sm:$0xff]  }
  0x42   :  { %3457 = vmatprep.subr.bf16.mxu1 %v3798_v20  ;;  %v3847_v19 = vld [vmem:[%s4927_s1 + $0x320] sm:$0xff]  }
  0x43   :  { %2426 = vmatmul.mubr.bf16.vlgmr.msra.gmra.mrb[4].mxu0 %v579_v18  ;;  %v3846_v18 = vld [vmem:[%s4927_s1 + $0x3e0] sm:$0xff]  }
  0x44   :  { %3436 = vmatpush3.bf16.msra.mxu0 %v3799_v21  ;;  %2466 = vmatmul.mubr.bf16.vlgmr.msra.gmra.mrb[4].mxu1 %v595_v23  ;;  %v3848_v20 = vld [vmem:[%s4927_s1 + $0x3a0] sm:$0xff]   ;;  %v3849_v21 = vld [vmem:[%s4927_s1 + $0x368] sm:$0xff]  }
  0x45   :  { %3437 = vmatprep.subr.bf16.mxu0 %v3801_v24  ;;  %3458 = vmatpush3.bf16.msra.mxu1 %v3800_v22  ;;  %v3850_v22 = vld [vmem:[%s4927_s1 + $0x3e8] sm:$0xff]  }
  0x46   :  { %3459 = vmatprep.subr.bf16.mxu1 %v3802_v25  ;;  %2505 = vmatprep.mubr.bf16.mxu0 %v635_v56  ;;  %v3851_v23 = vld [vmem:[%s4927_s1 + $0x328] sm:$0xff]   ;;  %v3853_v25 = vld [vmem:[%s4927_s1 + $0x370] sm:$0xff]  }
  0x47   :  { %2545 = vmatprep.mubr.bf16.mxu1 %v645_v60  ;;  %v3852_v24 = vld [vmem:[%s4927_s1 + $0x3a8] sm:$0xff]   ;;  %v3886_v60 = vld [vmem:[%s4927_s1 + $0x470] sm:$0xff]  }
  0x48   :  { %3438 = vmatpush3.bf16.msra.mxu0 %v3803_v26  ;;  %v3854_v26 = vld [vmem:[%s4927_s1 + $0x3f0] sm:$0xff]   ;;  %v3882_v56 = vld [vmem:[%s4927_s1 + $0x468] sm:$0xff]  }
  0x49   :  { %3439 = vmatprep.subr.bf16.mxu0 %v3805_v28  ;;  %3460 = vmatpush3.bf16.msra.mxu1 %v3804_v27  ;;  %v3855_v27 = vld [vmem:[%s4927_s1 + $0x330] sm:$0xff]  }
  0x4a   :  { %3461 = vmatprep.subr.bf16.mxu1 %v3806_v29  ;;  %v3856_v28 = vld [vmem:[%s4927_s1 + $0x3b0] sm:$0xff]   ;;  %v3857_v29 = vld [vmem:[%s4927_s1 + $0x378] sm:$0xff]  }
  0x4c   :  { %3440 = vmatpush3.bf16.msra.mxu0 %v3807_v30  ;;  %v3858_v30 = vld [vmem:[%s4927_s1 + $0x3f8] sm:$0xff]  }
  0x4d   :  { %3441 = vmatprep.subr.bf16.mxu0 %v3809_v32  ;;  %3462 = vmatpush3.bf16.msra.mxu1 %v3808_v31  ;;  %v3859_v31 = vld [vmem:[%s4927_s1 + $0x338] sm:$0xff]  }
  0x4e   :  { %3463 = vmatprep.subr.bf16.mxu1 %v3810_v33  ;;  %v3860_v32 = vld [vmem:[%s4927_s1 + $0x3b8] sm:$0xff]   ;;  %v628_v33 = vrot.slane %v4355_v53, %v4163_v41  ;;  %v3879_v53 = vld [vmem:[%s4927_s1 + $0x4e0] sm:$0xff]  }
  0x50   :  { %3442 = vmatpush3.bf16.msra.mxu0 %v3811_v34  ;;  %v3862_v34 = vld [vmem:[%s4927_s1 + $0x440] sm:$0xff]  }
  0x51   :  { %3443 = vmatprep.subr.bf16.mxu0 %v3813_v36  ;;  %3464 = vmatpush3.bf16.msra.mxu1 %v3812_v35  ;;  %v3863_v35 = vld [vmem:[%s4927_s1 + $0x4c0] sm:$0xff]  }
  0x52   :  { %3465 = vmatprep.subr.bf16.mxu1 %v3814_v37  ;;  %v3864_v36 = vld [vmem:[%s4927_s1 + $0x400] sm:$0xff]  }
  0x53   :  { %v3865_v37 = vld [vmem:[%s4927_s1 + $0x480] sm:$0xff]  }
  0x54   :  { %3444 = vmatpush3.bf16.msra.mxu0 %v3815_v38  ;;  %v644_v38 = vcombine.high %v628_v33, %v628_v33 }
  0x55   :  { %3445 = vmatprep.subr.bf16.mxu0 %v3817_v40  ;;  %3466 = vmatpush3.bf16.msra.mxu1 %v3816_v39  ;;  %v3866_v39 = vld [vmem:[%s4927_s1 + $0x448] sm:$0xff]  }
  0x56   :  { %3467 = vmatprep.subr.bf16.mxu1 %v3818_v42  ;;  %v3867_v40 = vld [vmem:[%s4927_s1 + $0x4c8] sm:$0xff]  }
  0x57   :  { %v3868_v42 = vld [vmem:[%s4927_s1 + $0x408] sm:$0xff]  }
  0x58   :  { %3446 = vmatpush3.bf16.msra.mxu0 %v3819_v43  ;;  %v3869_v43 = vld [vmem:[%s4927_s1 + $0x488] sm:$0xff]  }
  0x59   :  { %3447 = vmatprep.subr.bf16.mxu0 %v3821_v45  ;;  %3468 = vmatpush3.bf16.msra.mxu1 %v3820_v44  ;;  %v3870_v44 = vld [vmem:[%s4927_s1 + $0x450] sm:$0xff]  }
  0x5a   :  { %3469 = vmatprep.subr.bf16.mxu1 %v3822_v47  ;;  %v3871_v45 = vld [vmem:[%s4927_s1 + $0x4d0] sm:$0xff]  }
  0x5b   :  { %v3873_v47 = vld [vmem:[%s4927_s1 + $0x490] sm:$0xff]  }
  0x5c   :  { %3448 = vmatpush3.bf16.msra.mxu0 %v3823_v50  ;;  %v3876_v50 = vld [vmem:[%s4927_s1 + $0x418] sm:$0xff]  }
  0x5d   :  { %3449 = vmatprep.subr.bf16.mxu0 %v3825_v54  ;;  %3470 = vmatpush3.bf16.msra.mxu1 %v3824_v51  ;;  %v3877_v51 = vld [vmem:[%s4927_s1 + $0x498] sm:$0xff]   ;;  %v3880_v54 = vld [vmem:[%s4927_s1 + $0x420] sm:$0xff]  }
  0x5e   :  { %3471 = vmatprep.subr.bf16.mxu1 %v3826_v55  ;;  %v3881_v55 = vld [vmem:[%s4927_s1 + $0x4a0] sm:$0xff]  }
  0x60   :  { %3450 = vmatpush3.bf16.msra.mxu0 %v3827_v58  ;;  %v3884_v58 = vld [vmem:[%s4927_s1 + $0x428] sm:$0xff]  }
  0x61   :  { %3479 = vmatprep.subr.bf16.mxu0 %v3829_v62  ;;  %3472 = vmatpush3.bf16.msra.mxu1 %v3828_v59  ;;  %v3885_v59 = vld [vmem:[%s4927_s1 + $0x4a8] sm:$0xff]   ;;  %v3887_v62 = vld [vmem:[%s4927_s1 + $0x4f0] sm:$0xff]  }
  0x62   :  { %3501 = vmatprep.subr.bf16.mxu1 %v3830_v63 }
  0x63   :  { %2506 = vmatmul.mubr.bf16.vlgmr.msra.gmra.mrb[8].mxu0 %v621_v61  ;;  %v24_v61 = vld [vmem:[%s4926_s0 + $0x10] sm:$0xff] }
  0x64   :  { %3480 = vmatpush3.bf16.msra.mxu0 %v3831_v1  ;;  %2585 = vmatprep.mubr.bf16.mxu0 %v642_v0  ;;  %v654_v63 = vrot.slane %v24_v61, %v4163_v41  ;;  %v647_v0 = vcombine.high %v24_v61, %v24_v61  ;;  %v3888_v1 = vld [vmem:[%s4927_s1 + $0x430] sm:$0xff]  }
  0x65   :  { %2546 = vmatmul.mubr.bf16.vlgmr.msra.gmra.mrb[8].mxu1 %v643_v3  ;;  %3481 = vmatprep.subr.bf16.mxu0 %v3833_v4  ;;  %v3937_v61 = vld [vmem:[%s4927_s1 + $0x610] sm:$0xff]  }
  0x66   :  { %3502 = vmatpush3.bf16.msra.mxu1 %v3832_v2  ;;  %2625 = vmatprep.mubr.bf16.mxu1 %v646_v6  ;;  %v3889_v2 = vld [vmem:[%s4927_s1 + $0x4b0] sm:$0xff]   ;;  %v662_v3 = vcombine.high %v654_v63, %v654_v63  ;;  %v4561_v4 = vrot.slane %v647_v0, %v4163_v41  ;;  %v3891_v6 = vld [vmem:[%s4927_s1 + $0x4f8] sm:$0xff]  }
  0x67   :  { %3503 = vmatprep.subr.bf16.mxu1 %v3834_v5  ;;  %v3890_v5 = vld [vmem:[%s4927_s1 + $0x478] sm:$0xff]  }
  0x68   :  { %3482 = vmatpush3.bf16.msra.mxu0 %v3835_v7  ;;  %v684_v7 = vrot.slane %v662_v3, %v4163_v41  ;;  %v3940_v0 = vld [vmem:[%s4927_s1 + $0x6d8] sm:$0xff]   ;;  %v3943_v3 = vld [vmem:[%s4927_s1 + $0x660] sm:$0xff]  }
  0x69   :  { %3483 = vmatprep.subr.bf16.mxu0 %v3837_v9  ;;  %v3892_v9 = vld [vmem:[%s4927_s1 + $0x438] sm:$0xff]  }
  0x6a   :  { %3504 = vmatpush3.bf16.msra.mxu1 %v3836_v8  ;;  %v663_v8 = vcombine.high %v4561_v4, %v4561_v4 }
  0x6b   :  { %3505 = vmatprep.subr.bf16.mxu1 %v3838_v10  ;;  %v3893_v10 = vld [vmem:[%s4927_s1 + $0x4b8] sm:$0xff]  }
  0x6c   :  { %3484 = vmatpush3.bf16.msra.mxu0 %v3839_v11  ;;  %v694_v11 = vcombine.high %v684_v7, %v684_v7 }
  0x6d   :  { %3485 = vmatprep.subr.bf16.mxu0 %v3841_v13  ;;  %v3894_v13 = vld [vmem:[%s4927_s1 + $0x540] sm:$0xff]  }
  0x6e   :  { %3506 = vmatpush3.bf16.msra.mxu1 %v3840_v12  ;;  %v670_v12 = vrot.slane %v654_v63, %v4163_v41  ;;  %v3939_v63 = vld [vmem:[%s4927_s1 + $0x658] sm:$0xff]  }
  0x6f   :  { %3507 = vmatprep.subr.bf16.mxu1 %v3842_v14  ;;  %v3895_v14 = vld [vmem:[%s4927_s1 + $0x5c0] sm:$0xff]  }
  0x70   :  { %3486 = vmatpush3.bf16.msra.mxu0 %v3843_v15  ;;  %v691_v15 = vrot.slane %v663_v8, %v4163_v41  ;;  %v3948_v8 = vld [vmem:[%s4927_s1 + $0x6e8] sm:$0xff]  }
  0x71   :  { %3487 = vmatprep.subr.bf16.mxu0 %v3845_v17  ;;  %v3897_v17 = vld [vmem:[%s4927_s1 + $0x580] sm:$0xff]  }
  0x72   :  { %3508 = vmatpush3.bf16.msra.mxu1 %v3844_v16  ;;  %v3896_v16 = vld [vmem:[%s4927_s1 + $0x500] sm:$0xff]  }
  0x73   :  { %3509 = vmatprep.subr.bf16.mxu1 %v3846_v18  ;;  %v692_v18 = vcombine.high %v670_v12, %v670_v12 }
  0x74   :  { %3488 = vmatpush3.bf16.msra.mxu0 %v3847_v19  ;;  %v3898_v19 = vld [vmem:[%s4927_s1 + $0x548] sm:$0xff]  }
  0x75   :  { %3489 = vmatprep.subr.bf16.mxu0 %v3849_v21  ;;  %v695_v21 = vcombine.high %v691_v15, %v691_v15 }
  0x76   :  { %3510 = vmatpush3.bf16.msra.mxu1 %v3848_v20  ;;  %v3899_v20 = vld [vmem:[%s4927_s1 + $0x5c8] sm:$0xff]  }
  0x77   :  { %3511 = vmatprep.subr.bf16.mxu1 %v3850_v22  ;;  %v3900_v22 = vld [vmem:[%s4927_s1 + $0x508] sm:$0xff]  }
  0x78   :  { %3490 = vmatpush3.bf16.msra.mxu0 %v3851_v23  ;;  %v3901_v23 = vld [vmem:[%s4927_s1 + $0x588] sm:$0xff]  }
  0x79   :  { %3491 = vmatprep.subr.bf16.mxu0 %v3853_v25  ;;  %v3903_v25 = vld [vmem:[%s4927_s1 + $0x5d0] sm:$0xff]  }
  0x7a   :  { %3512 = vmatpush3.bf16.msra.mxu1 %v3852_v24  ;;  %v3902_v24 = vld [vmem:[%s4927_s1 + $0x550] sm:$0xff]  }
  0x7b   :  { %3513 = vmatprep.subr.bf16.mxu1 %v3854_v26  ;;  %v3904_v26 = vld [vmem:[%s4927_s1 + $0x510] sm:$0xff]  }
  0x7c   :  { %3492 = vmatpush3.bf16.msra.mxu0 %v3855_v27  ;;  %v3905_v27 = vld [vmem:[%s4927_s1 + $0x590] sm:$0xff]  }
  0x7d   :  { %3493 = vmatprep.subr.bf16.mxu0 %v3857_v29  ;;  %v3907_v29 = vld [vmem:[%s4927_s1 + $0x5d8] sm:$0xff]  }
  0x7e   :  { %3514 = vmatpush3.bf16.msra.mxu1 %v3856_v28  ;;  %v3906_v28 = vld [vmem:[%s4927_s1 + $0x558] sm:$0xff]  }
  0x7f   :  { %3515 = vmatprep.subr.bf16.mxu1 %v3858_v30  ;;  %v3908_v30 = vld [vmem:[%s4927_s1 + $0x518] sm:$0xff]  }
  0x80   :  { %3494 = vmatpush3.bf16.msra.mxu0 %v3859_v31  ;;  %v3909_v31 = vld [vmem:[%s4927_s1 + $0x598] sm:$0xff]  }
  0x81   :  { %3523 = vmatprep.subr.bf16.mxu0 %v3862_v34  ;;  %v3912_v34 = vld [vmem:[%s4927_s1 + $0x520] sm:$0xff]  }
  0x82   :  { %3516 = vmatpush3.bf16.msra.mxu1 %v3860_v32  ;;  %v3910_v32 = vld [vmem:[%s4927_s1 + $0x560] sm:$0xff]  }
  0x83   :  { %2586 = vmatmul.mubr.bf16.vlgmr.msra.gmra.mrb[12].mxu0 %v628_v33  ;;  %3545 = vmatprep.subr.bf16.mxu1 %v3863_v35  ;;  %v3911_v33 = vld [vmem:[%s4927_s1 + $0x5e0] sm:$0xff]  }
  0x84   :  { %3524 = vmatpush3.bf16.msra.mxu0 %v3864_v36  ;;  %2665 = vmatprep.mubr.bf16.mxu0 %v684_v7  ;;  %v3913_v35 = vld [vmem:[%s4927_s1 + $0x5a0] sm:$0xff]   ;;  %v3914_v36 = vld [vmem:[%s4927_s1 + $0x568] sm:$0xff]  }
  0x85   :  { %2626 = vmatmul.mubr.bf16.vlgmr.msra.gmra.mrb[12].mxu1 %v644_v38  ;;  %3525 = vmatprep.subr.bf16.mxu0 %v3866_v39  ;;  %v3916_v38 = vld [vmem:[%s4927_s1 + $0x528] sm:$0xff]  }
  0x86   :  { %3546 = vmatpush3.bf16.msra.mxu1 %v3865_v37  ;;  %2705 = vmatprep.mubr.bf16.mxu1 %v694_v11  ;;  %v3915_v37 = vld [vmem:[%s4927_s1 + $0x5e8] sm:$0xff]   ;;  %v3951_v11 = vld [vmem:[%s4927_s1 + $0x670] sm:$0xff]  }
  0x87   :  { %3547 = vmatprep.subr.bf16.mxu1 %v3867_v40  ;;  %v3917_v39 = vld [vmem:[%s4927_s1 + $0x5a8] sm:$0xff]   ;;  %v3918_v40 = vld [vmem:[%s4927_s1 + $0x570] sm:$0xff]  }
  0x88   :  { %3526 = vmatpush3.bf16.msra.mxu0 %v3868_v42  ;;  %v3919_v42 = vld [vmem:[%s4927_s1 + $0x5f0] sm:$0xff]   ;;  %v3947_v7 = vld [vmem:[%s4927_s1 + $0x668] sm:$0xff]  }
  0x89   :  { %3527 = vmatprep.subr.bf16.mxu0 %v3870_v44  ;;  %v3921_v44 = vld [vmem:[%s4927_s1 + $0x5b0] sm:$0xff]  }
  0x8a   :  { %3548 = vmatpush3.bf16.msra.mxu1 %v3869_v43  ;;  %v3920_v43 = vld [vmem:[%s4927_s1 + $0x530] sm:$0xff]  }
  0x8b   :  { %3549 = vmatprep.subr.bf16.mxu1 %v3871_v45  ;;  %v3922_v45 = vld [vmem:[%s4927_s1 + $0x578] sm:$0xff]  }
  0x8c   :  { %3528 = vmatpush3.bf16.msra.mxu0 %v3872_v46  ;;  %v3923_v46 = vld [vmem:[%s4927_s1 + $0x5f8] sm:$0xff]  }
  0x8d   :  { %3529 = vmatprep.subr.bf16.mxu0 %v3874_v48  ;;  %v3925_v48 = vld [vmem:[%s4927_s1 + $0x5b8] sm:$0xff]  }
  0x8e   :  { %3550 = vmatpush3.bf16.msra.mxu1 %v3873_v47  ;;  %v3924_v47 = vld [vmem:[%s4927_s1 + $0x538] sm:$0xff]  }
  0x8f   :  { %3551 = vmatprep.subr.bf16.mxu1 %v3875_v49  ;;  %v677_v49 = vrot.slane %v4561_v4, %v4163_v41  ;;  %v3944_v4 = vld [vmem:[%s4927_s1 + $0x6e0] sm:$0xff]  }
  0x90   :  { %3530 = vmatpush3.bf16.msra.mxu0 %v3876_v50  ;;  %v3927_v50 = vld [vmem:[%s4927_s1 + $0x640] sm:$0xff]  }
  0x91   :  { %3531 = vmatprep.subr.bf16.mxu0 %v3878_v52  ;;  %v3929_v52 = vld [vmem:[%s4927_s1 + $0x600] sm:$0xff]  }
  0x92   :  { %3552 = vmatpush3.bf16.msra.mxu1 %v3877_v51  ;;  %v3928_v51 = vld [vmem:[%s4927_s1 + $0x6c0] sm:$0xff]  }
  0x93   :  { %3553 = vmatprep.subr.bf16.mxu1 %v3879_v53  ;;  %v3930_v53 = vld [vmem:[%s4927_s1 + $0x680] sm:$0xff]  }
  0x94   :  { %3532 = vmatpush3.bf16.msra.mxu0 %v3880_v54  ;;  %v693_v54 = vcombine.high %v677_v49, %v677_v49 }
  0x95   :  { %3533 = vmatprep.subr.bf16.mxu0 %v3882_v56  ;;  %v3932_v56 = vld [vmem:[%s4927_s1 + $0x6c8] sm:$0xff]  }
  0x96   :  { %3554 = vmatpush3.bf16.msra.mxu1 %v3881_v55  ;;  %v3931_v55 = vld [vmem:[%s4927_s1 + $0x648] sm:$0xff]  }
  0x97   :  { %3555 = vmatprep.subr.bf16.mxu1 %v3883_v57  ;;  %v3933_v57 = vld [vmem:[%s4927_s1 + $0x608] sm:$0xff]  }
  0x98   :  { %3534 = vmatpush3.bf16.msra.mxu0 %v3884_v58  ;;  %v3934_v58 = vld [vmem:[%s4927_s1 + $0x688] sm:$0xff]  }
  0x99   :  { %3535 = vmatprep.subr.bf16.mxu0 %v3886_v60  ;;  %v3936_v60 = vld [vmem:[%s4927_s1 + $0x6d0] sm:$0xff]  }
  0x9a   :  { %3556 = vmatpush3.bf16.msra.mxu1 %v3885_v59  ;;  %v3935_v59 = vld [vmem:[%s4927_s1 + $0x650] sm:$0xff]  }
  0x9b   :  { %3557 = vmatprep.subr.bf16.mxu1 %v3887_v62  ;;  %v3938_v62 = vld [vmem:[%s4927_s1 + $0x690] sm:$0xff]  }
  0x9c   :  { %3536 = vmatpush3.bf16.msra.mxu0 %v3888_v1  ;;  %v3941_v1 = vld [vmem:[%s4927_s1 + $0x618] sm:$0xff]  }
  0x9d   :  { %3537 = vmatprep.subr.bf16.mxu0 %v3890_v5  ;;  %v3945_v5 = vld [vmem:[%s4927_s1 + $0x620] sm:$0xff]  }
  0x9e   :  { %3558 = vmatpush3.bf16.msra.mxu1 %v3889_v2  ;;  %v3942_v2 = vld [vmem:[%s4927_s1 + $0x698] sm:$0xff]  }
  0x9f   :  { %3559 = vmatprep.subr.bf16.mxu1 %v3891_v6  ;;  %v3946_v6 = vld [vmem:[%s4927_s1 + $0x6a0] sm:$0xff]  }
  0xa0   :  { %3538 = vmatpush3.bf16.msra.mxu0 %v3892_v9  ;;  %v3949_v9 = vld [vmem:[%s4927_s1 + $0x628] sm:$0xff]  }
  0xa1   :  { %3567 = vmatprep.subr.bf16.mxu0 %v3894_v13  ;;  %v3952_v13 = vld [vmem:[%s4927_s1 + $0x6f0] sm:$0xff]  }
  0xa2   :  { %3560 = vmatpush3.bf16.msra.mxu1 %v3893_v10  ;;  %v3950_v10 = vld [vmem:[%s4927_s1 + $0x6a8] sm:$0xff]  }
  0xa3   :  { %2666 = vmatmul.mubr.bf16.vlgmr.msra.gmra.mrb[16].mxu0 %v670_v12  ;;  %3589 = vmatprep.subr.bf16.mxu1 %v3895_v14  ;;  %v25_v12 = vld [vmem:[%s4926_s0 + $0x18] sm:$0xff] }
  0xa4   :  { %3568 = vmatpush3.bf16.msra.mxu0 %v3896_v16  ;;  %2745 = vmatprep.mubr.bf16.mxu0 %v691_v15  ;;  %v703_v14 = vrot.slane %v25_v12, %v4163_v41  ;;  %v696_v15 = vcombine.high %v25_v12, %v25_v12  ;;  %v3953_v16 = vld [vmem:[%s4927_s1 + $0x630] sm:$0xff]  }
  0xa5   :  { %2706 = vmatmul.mubr.bf16.vlgmr.msra.gmra.mrb[16].mxu1 %v692_v18  ;;  %3569 = vmatprep.subr.bf16.mxu0 %v3898_v19 }
  0xa6   :  { %3590 = vmatpush3.bf16.msra.mxu1 %v3897_v17  ;;  %2785 = vmatprep.mubr.bf16.mxu1 %v695_v21  ;;  %v3955_v17 = vld [vmem:[%s4927_s1 + $0x678] sm:$0xff]   ;;  %v711_v18 = vcombine.high %v703_v14, %v703_v14  ;;  %v4767_v19 = vrot.slane %v696_v15, %v4163_v41 }
  0xa7   :  { %3591 = vmatprep.subr.bf16.mxu1 %v3899_v20  ;;  %v3954_v20 = vld [vmem:[%s4927_s1 + $0x6b0] sm:$0xff]   ;;  %v3956_v21 = vld [vmem:[%s4927_s1 + $0x6f8] sm:$0xff]  }
  0xa8   :  { %3570 = vmatpush3.bf16.msra.mxu0 %v3900_v22  ;;  %v733_v22 = vrot.slane %v711_v18, %v4163_v41  ;;  %v726_v12 = vrot.slane %v4767_v19, %v4163_v41 }
  0xa9   :  { %3571 = vmatprep.subr.bf16.mxu0 %v3902_v24  ;;  %v3957_v24 = vld [vmem:[%s4927_s1 + $0x638] sm:$0xff]  }
  0xaa   :  { %3592 = vmatpush3.bf16.msra.mxu1 %v3901_v23  ;;  %v712_v23 = vcombine.high %v4767_v19, %v4767_v19 }
  0xab   :  { %3593 = vmatprep.subr.bf16.mxu1 %v3903_v25  ;;  %v743_v25 = vcombine.high %v733_v22, %v733_v22 }
  0xac   :  { %3572 = vmatpush3.bf16.msra.mxu0 %v3904_v26  ;;  %v719_v26 = vrot.slane %v703_v14, %v4163_v41 }
  0xad   :  { %3573 = vmatprep.subr.bf16.mxu0 %v3906_v28  ;;  %v3958_v28 = vld [vmem:[%s4927_s1 + $0x6b8] sm:$0xff]  }
  0xae   :  { %3594 = vmatpush3.bf16.msra.mxu1 %v3905_v27  ;;  %v3959_v27 = vld [vmem:[%s4927_s1 + $0x740] sm:$0xff]  }
  0xaf   :  { %3595 = vmatprep.subr.bf16.mxu1 %v3907_v29  ;;  %v740_v29 = vrot.slane %v712_v23, %v4163_v41 }
  0xb0   :  { %3574 = vmatpush3.bf16.msra.mxu0 %v3908_v30  ;;  %v3960_v30 = vld [vmem:[%s4927_s1 + $0x7c0] sm:$0xff]  }
  0xb1   :  { %3575 = vmatprep.subr.bf16.mxu0 %v3910_v32  ;;  %v741_v32 = vcombine.high %v719_v26, %v719_v26 }
  0xb2   :  { %3596 = vmatpush3.bf16.msra.mxu1 %v3909_v31  ;;  %v3961_v31 = vld [vmem:[%s4927_s1 + $0x700] sm:$0xff]  }
  0xb3   :  { %3597 = vmatprep.subr.bf16.mxu1 %v3911_v33  ;;  %v3963_v33 = vld [vmem:[%s4927_s1 + $0x748] sm:$0xff]  }
  0xb4   :  { %3576 = vmatpush3.bf16.msra.mxu0 %v3912_v34  ;;  %v3962_v34 = vld [vmem:[%s4927_s1 + $0x780] sm:$0xff]  }
  0xb5   :  { %3577 = vmatprep.subr.bf16.mxu0 %v3914_v36  ;;  %v3964_v36 = vld [vmem:[%s4927_s1 + $0x7c8] sm:$0xff]  }
  0xb6   :  { %3598 = vmatpush3.bf16.msra.mxu1 %v3913_v35  ;;  %v744_v35 = vcombine.high %v740_v29, %v740_v29 }
  0xb7   :  { %3599 = vmatprep.subr.bf16.mxu1 %v3915_v37  ;;  %v3965_v37 = vld [vmem:[%s4927_s1 + $0x708] sm:$0xff]  }
  0xb8   :  { %3578 = vmatpush3.bf16.msra.mxu0 %v3916_v38  ;;  %v3967_v38 = vld [vmem:[%s4927_s1 + $0x750] sm:$0xff]  }
  0xb9   :  { %3579 = vmatprep.subr.bf16.mxu0 %v3918_v40  ;;  %v3968_v40 = vld [vmem:[%s4927_s1 + $0x7d0] sm:$0xff]  }
  0xba   :  { %3600 = vmatpush3.bf16.msra.mxu1 %v3917_v39  ;;  %v3966_v39 = vld [vmem:[%s4927_s1 + $0x788] sm:$0xff]  }
  0xbb   :  { %3601 = vmatprep.subr.bf16.mxu1 %v3919_v42  ;;  %v3969_v42 = vld [vmem:[%s4927_s1 + $0x710] sm:$0xff]  }
  0xbc   :  { %3580 = vmatpush3.bf16.msra.mxu0 %v3920_v43  ;;  %v3971_v43 = vld [vmem:[%s4927_s1 + $0x758] sm:$0xff]  }
  0xbd   :  { %3581 = vmatprep.subr.bf16.mxu0 %v3922_v45  ;;  %v3972_v45 = vld [vmem:[%s4927_s1 + $0x7d8] sm:$0xff]  }
  0xbe   :  { %3602 = vmatpush3.bf16.msra.mxu1 %v3921_v44  ;;  %v3970_v44 = vld [vmem:[%s4927_s1 + $0x790] sm:$0xff]  }
  0xbf   :  { %3603 = vmatprep.subr.bf16.mxu1 %v3923_v46  ;;  %v3973_v46 = vld [vmem:[%s4927_s1 + $0x718] sm:$0xff]  }
  0xc0   :  { %3582 = vmatpush3.bf16.msra.mxu0 %v3924_v47  ;;  %v3974_v47 = vld [vmem:[%s4927_s1 + $0x798] sm:$0xff]  }
  0xc1   :  { %3611 = vmatprep.subr.bf16.mxu0 %v3927_v50  ;;  %v3977_v50 = vld [vmem:[%s4927_s1 + $0x720] sm:$0xff]  }
  0xc2   :  { %3604 = vmatpush3.bf16.msra.mxu1 %v3925_v48  ;;  %v3975_v48 = vld [vmem:[%s4927_s1 + $0x760] sm:$0xff]  }
  0xc3   :  { %2746 = vmatmul.mubr.bf16.vlgmr.msra.gmra.mrb[20].mxu0 %v677_v49  ;;  %3633 = vmatprep.subr.bf16.mxu1 %v3928_v51  ;;  %v3976_v49 = vld [vmem:[%s4927_s1 + $0x7e0] sm:$0xff]  }
  0xc4   :  { %3612 = vmatpush3.bf16.msra.mxu0 %v3929_v52  ;;  %2825 = vmatprep.mubr.bf16.mxu0 %v733_v22  ;;  %v3978_v51 = vld [vmem:[%s4927_s1 + $0x7a0] sm:$0xff]   ;;  %v3979_v52 = vld [vmem:[%s4927_s1 + $0x768] sm:$0xff]  }
  0xc5   :  { %2786 = vmatmul.mubr.bf16.vlgmr.msra.gmra.mrb[20].mxu1 %v693_v54  ;;  %3613 = vmatprep.subr.bf16.mxu0 %v3931_v55  ;;  %v3981_v54 = vld [vmem:[%s4927_s1 + $0x728] sm:$0xff]  }
  0xc6   :  { %3634 = vmatpush3.bf16.msra.mxu1 %v3930_v53  ;;  %2865 = vmatprep.mubr.bf16.mxu1 %v743_v25  ;;  %v3980_v53 = vld [vmem:[%s4927_s1 + $0x7e8] sm:$0xff]  }
  0xc7   :  { %3635 = vmatprep.subr.bf16.mxu1 %v3932_v56  ;;  %v3982_v55 = vld [vmem:[%s4927_s1 + $0x7a8] sm:$0xff]   ;;  %v3983_v56 = vld [vmem:[%s4927_s1 + $0x770] sm:$0xff]  }
  0xc8   :  { %3614 = vmatpush3.bf16.msra.mxu0 %v3933_v57  ;;  %v3081_v57 = vld [vmem:[%s4928_s2] ss:$0 sm:$0xff] }
  0xc9   :  { %3615 = vmatprep.subr.bf16.mxu0 %v3935_v59 }
  0xca   :  { %3636 = vmatpush3.bf16.msra.mxu1 %v3934_v58  ;;  %v3984_v58 = vld [vmem:[%s4927_s1 + $0x7f0] sm:$0xff]  }
  0xcb   :  { %3637 = vmatprep.subr.bf16.mxu1 %v3936_v60  ;;  %v3985_v60 = vld [vmem:[%s4927_s1 + $0x730] sm:$0xff]  }
  0xcc   :  { %3616 = vmatpush3.bf16.msra.mxu0 %v3937_v61 }
  0xcd   :  { %3617 = vmatprep.subr.bf16.mxu0 %v3939_v63 }
  0xce   :  { %3638 = vmatpush3.bf16.msra.mxu1 %v3938_v62  ;;  %v3987_v62 = vld [vmem:[%s4927_s1 + $0x778] sm:$0xff]  }
  0xcf   :  { %3639 = vmatprep.subr.bf16.mxu1 %v3940_v0 }
  0xd0   :  { %3618 = vmatpush3.bf16.msra.mxu0 %v3941_v1 }
  0xd1   :  { %3619 = vmatprep.subr.bf16.mxu0 %v3943_v3 }
  0xd2   :  { %3640 = vmatpush3.bf16.msra.mxu1 %v3942_v2  ;;  %v3986_v2 = vld [vmem:[%s4927_s1 + $0x7b0] sm:$0xff]  }
  0xd3   :  { %3641 = vmatprep.subr.bf16.mxu1 %v3944_v4 }
  0xd4   :  { %3620 = vmatpush3.bf16.msra.mxu0 %v3945_v5 }
  0xd5   :  { %3621 = vmatprep.subr.bf16.mxu0 %v3947_v7 }
  0xd6   :  { %3642 = vmatpush3.bf16.msra.mxu1 %v3946_v6 }
  0xd7   :  { %3643 = vmatprep.subr.bf16.mxu1 %v3948_v8  ;;  %v3988_v8 = vld [vmem:[%s4927_s1 + $0x7f8] sm:$0xff]  }
  0xd8   :  { %3622 = vmatpush3.bf16.msra.mxu0 %v3949_v9 }
  0xd9   :  { %3623 = vmatprep.subr.bf16.mxu0 %v3951_v11 }
  0xda   :  { %3644 = vmatpush3.bf16.msra.mxu1 %v3950_v10  ;;  %v3989_v10 = vld [vmem:[%s4927_s1 + $0x738] sm:$0xff]  }
  0xdb   :  { %3645 = vmatprep.subr.bf16.mxu1 %v3952_v13 }
  0xdc   :  { %3624 = vmatpush3.bf16.msra.mxu0 %v3953_v16 }
  0xdd   :  { %3625 = vmatprep.subr.bf16.mxu0 %v3955_v17 }
  0xde   :  { %3646 = vmatpush3.bf16.msra.mxu1 %v3954_v20 }
  0xdf   :  { %3647 = vmatprep.subr.bf16.mxu1 %v3956_v21 }
  0xe0   :  { %3626 = vmatpush3.bf16.msra.mxu0 %v3957_v24 }
  0xe1   :  { %3655 = vmatprep.subr.bf16.mxu0 %v3959_v27 }
  0xe2   :  { %3648 = vmatpush3.bf16.msra.mxu1 %v3958_v28 }
  0xe3   :  { %2826 = vmatmul.mubr.bf16.vlgmr.msra.gmra.mrb[24].mxu0 %v719_v26  ;;  %3677 = vmatprep.subr.bf16.mxu1 %v3960_v30 }
  0xe4   :  { %3656 = vmatpush3.bf16.msra.mxu0 %v3961_v31  ;;  %2905 = vmatprep.mubr.bf16.mxu0 %v740_v29 }
  0xe5   :  { %2866 = vmatmul.mubr.bf16.vlgmr.msra.gmra.mrb[24].mxu1 %v741_v32  ;;  %3657 = vmatprep.subr.bf16.mxu0 %v3963_v33 }
  0xe6   :  { %3678 = vmatpush3.bf16.msra.mxu1 %v3962_v34  ;;  %2945 = vmatprep.mubr.bf16.mxu1 %v744_v35 }
  0xe7   :  { %3679 = vmatprep.subr.bf16.mxu1 %v3964_v36 }
  0xe8   :  { %3658 = vmatpush3.bf16.msra.mxu0 %v3965_v37 }
  0xe9   :  { %3659 = vmatprep.subr.bf16.mxu0 %v3967_v38 }
  0xea   :  { %3680 = vmatpush3.bf16.msra.mxu1 %v3966_v39 }
  0xeb   :  { %3681 = vmatprep.subr.bf16.mxu1 %v3968_v40 }
  0xec   :  { %3660 = vmatpush3.bf16.msra.mxu0 %v3969_v42 }
  0xed   :  { %3661 = vmatprep.subr.bf16.mxu0 %v3971_v43 }
  0xee   :  { %3682 = vmatpush3.bf16.msra.mxu1 %v3970_v44 }
  0xef   :  { %3683 = vmatprep.subr.bf16.mxu1 %v3972_v45 }
  0xf0   :  { %3662 = vmatpush3.bf16.msra.mxu0 %v3973_v46 }
  0xf1   :  { %3663 = vmatprep.subr.bf16.mxu0 %v3975_v48 }
  0xf2   :  { %3684 = vmatpush3.bf16.msra.mxu1 %v3974_v47 }
  0xf3   :  { %3685 = vmatprep.subr.bf16.mxu1 %v3976_v49 }
  0xf4   :  { %3664 = vmatpush3.bf16.msra.mxu0 %v3977_v50 }
  0xf5   :  { %3665 = vmatprep.subr.bf16.mxu0 %v3979_v52 }
  0xf6   :  { %3686 = vmatpush3.bf16.msra.mxu1 %v3978_v51  ;;  %v3363_v59 = vpop.f32.mrb[0].mxu0 }
  0xf7   :  { %v3364_v61 = vpop.f32.mrb[1].mxu0  ;;  %3687 = vmatprep.subr.bf16.mxu1 %v3980_v53  ;;  %v3385_v63 = vpop.f32.mrb[0].mxu1 }
  0xf8   :  { %v3365_v0 = vadd.f32 %v3364_v61, %v3363_v59  ;;  %v3366_v1 = vpop.f32.mrb[2].mxu0  ;;  %3666 = vmatpush3.bf16.msra.mxu0 %v3981_v54  ;;  %v3386_v3 = vpop.f32.mrb[1].mxu1 }
  0xf9   :  { %v3367_v4 = vpop.f32.mrb[3].mxu0  ;;  %3667 = vmatprep.subr.bf16.mxu0 %v3983_v56  ;;  %v3387_v6 = vadd.f32 %v3386_v3, %v3385_v63  ;;  %v3388_v7 = vpop.f32.mrb[2].mxu1 }
  0xfa   :  { %v2348_v5 = vadd.f32 %v3365_v0, %v3081_v57  ;;  %3688 = vmatpush3.bf16.msra.mxu1 %v3982_v55  ;;  %v3389_v9 = vpop.f32.mrb[3].mxu1 }
  0xfb   :  { %3689 = vmatprep.subr.bf16.mxu1 %v3984_v58 }
  0xfc   :  { %v2388_v11 = vadd.f32 %v3387_v6, %v2348_v5  ;;  %3668 = vmatpush3.bf16.msra.mxu0 %v3985_v60 }
  0xfd   :  { %3669 = vmatprep.subr.bf16.mxu0 %v3987_v62 }
  0xfe   :  { %10 = vsyncpa [#allocation3], 0  ;;  %3690 = vmatpush3.bf16.msra.mxu1 %v3986_v2  ;;  %v3990_v13 = vld [vmem:[%s4927_s1 + $0x7b8] sm:$0xff]   ;;  %v742_v14 = vcombine.high %v726_v12, %v726_v12  ;;  %v3992_v38 = vld [vmem:[%s4929_s3] sm:$0xff]   ;;  %v4025_v39 = vmov 0.0   ;;  %vm4026_vm0 = vmmov 0  }
  0xff   :  { %3691 = vmatprep.subr.bf16.mxu1 %v3988_v8  ;;  %v3993_v40 = vld [vmem:[%s4929_s3 + $0x8] sm:$0xff]   ;;  %v3994_v42 = vld [vmem:[%s4929_s3 + $0x10] sm:$0xff]   ;;  %v3995_v43 = vld [vmem:[%s4929_s3 + $0x18] sm:$0xff]   ;;  %s4027_s26 = smov [#allocation2]  }
 0x100   :  { %3670 = vmatpush3.bf16.msra.mxu0 %v3989_v10  ;;  %v3996_v44 = vld [vmem:[%s4929_s3 + $0x20] sm:$0xff]   ;;  %v3997_v47 = vld [vmem:[%s4929_s3 + $0x28] sm:$0xff]   ;;  %v3998_v57 = vld [vmem:[%s4929_s3 + $0x30] sm:$0xff]   ;;  %s3073_s27 = sshll.u32 %s4027_s26, 4  ;;  %s3074_s27 = int_to_ptr.vmem [resolvable:$true] %s3073_s27 }
 0x101   :  { %3708 = vmatprep.subr.bf16.mxu0 %v4025_v39  ;;  %v3999_v59 = vld [vmem:[%s4929_s3 + $0x38] sm:$0xff]   ;;  %s4000_s28 = scalar_lea.vmem %s3074_s27, 32  ;;  %p4005_p1 = scmp.lt.s32.totalorder %s3074_s27, %s3074_s27 }
 0x102   :  { %3692 = vmatpush3.bf16.msra.mxu1 %v3990_v13  ;;  %p4001_p0 = scmp.ne.s32.totalorder %s3074_s27, %s4000_s28  ;;  %p4006_p2 = scmp.lt.s32.totalorder %s4000_s28, %s4000_s28 }
 0x103   :  { %2906 = vmatmul.mubr.bf16.vlgmr.msra.gmra.mrb[28].mxu0 %v726_v12 }
 0x104   :  { %3709 = vmatpush3.bf16.msra.mxu0 %v3992_v38  ;;  %3724 = vmatprep.mubr.msk.bf16.mxu0 %vm4026_vm0, %v4025_v39  ;;  %p4007_p3 = por %p4006_p2, %p4005_p1 }
 0x105   :  { %2946 = vmatmul.mubr.bf16.vlgmr.msra.gmra.mrb[28].mxu1 %v742_v14  ;;  %3710 = vmatprep.subr.bf16.mxu0 %v4025_v39 }
 0x106   :  { %p4008_p4 = pnand %p4007_p3, %p4001_p0 }
 0x108   :  { %3711 = vmatpush3.bf16.msra.mxu0 %v3993_v40 }
 0x109   :  { %3712 = vmatprep.subr.bf16.mxu0 %v4025_v39 }
 0x10c   :  { %3713 = vmatpush3.bf16.msra.mxu0 %v3994_v42 }
 0x10d   :  { %3714 = vmatprep.subr.bf16.mxu0 %v4025_v39 }
 0x110   :  { %3715 = vmatpush3.bf16.msra.mxu0 %v3995_v43 }
 0x111   :  { %3716 = vmatprep.subr.bf16.mxu0 %v4025_v39 }
 0x114   :  { %3717 = vmatpush3.bf16.msra.mxu0 %v3996_v44 }
 0x115   :  { %3718 = vmatprep.subr.bf16.mxu0 %v4025_v39 }
 0x116   :  { %v3407_v15 = vpop.f32.mrb[4].mxu0 }
 0x117   :  { %v3408_v16 = vpop.f32.mrb[5].mxu0  ;;  %v3429_v17 = vpop.f32.mrb[4].mxu1 }
 0x118   :  { %v3409_v18 = vadd.f32 %v3408_v16, %v3407_v15  ;;  %v3410_v20 = vpop.f32.mrb[6].mxu0  ;;  %v3430_v21 = vpop.f32.mrb[5].mxu1  ;;  %3719 = vmatpush3.bf16.msra.mxu0 %v3997_v47 }
 0x119   :  { %v3411_v22 = vpop.f32.mrb[7].mxu0  ;;  %v3431_v19 = vadd.f32 %v3430_v21, %v3429_v17  ;;  %v3432_v23 = vpop.f32.mrb[6].mxu1  ;;  %3720 = vmatprep.subr.bf16.mxu0 %v4025_v39 }
 0x11a   :  { %v2428_v41 = vadd.f32 %v3409_v18, %v2388_v11  ;;  %v3433_v24 = vpop.f32.mrb[7].mxu1 }
 0x11c   :  { %v2468_v25 = vadd.f32 %v3431_v19, %v2428_v41  ;;  %3721 = vmatpush3.bf16.msra.mxu0 %v3998_v57 }
 0x11d   :  { %3722 = vmatprep.subr.bf16.mxu0 %v4025_v39 }
 0x120   :  { %3723 = vmatpush3.bf16.msra.mxu0 %v3999_v59 }
 0x136   :  { %v3451_v26 = vpop.f32.mrb[8].mxu0 }
 0x137   :  { %v3452_v27 = vpop.f32.mrb[9].mxu0 }
 0x138   :  { %v3473_v28 = vpop.f32.mrb[8].mxu1  ;;  %v3453_v29 = vadd.f32 %v3452_v27, %v3451_v26  ;;  %v3454_v30 = vpop.f32.mrb[10].mxu0 }
 0x139   :  { %v3474_v31 = vpop.f32.mrb[9].mxu1  ;;  %v3455_v32 = vpop.f32.mrb[11].mxu0 }
 0x13a   :  { %v2508_v33 = vadd.f32 %v3453_v29, %v2468_v25  ;;  %v3475_v34 = vadd.f32 %v3474_v31, %v3473_v28  ;;  %v3476_v35 = vpop.f32.mrb[10].mxu1 }
 0x13b   :  { %v3477_v36 = vpop.f32.mrb[11].mxu1 }
 0x13c   :  { %v2548_v37 = vadd.f32 %v3475_v34, %v2508_v33 }
 0x156   :  { %v3495_v45 = vpop.f32.mrb[12].mxu0 }
 0x157   :  { %v3496_v46 = vpop.f32.mrb[13].mxu0 }
 0x158   :  { %v3517_v48 = vpop.f32.mrb[12].mxu1  ;;  %v3497_v49 = vadd.f32 %v3496_v46, %v3495_v45  ;;  %v3498_v50 = vpop.f32.mrb[14].mxu0  ;;  %v3338_v46 = vld [vmem:[%s4930_s4] ss:$0 sm:$0xff] }
 0x159   :  { %v3518_v51 = vpop.f32.mrb[13].mxu1  ;;  %v3499_v52 = vpop.f32.mrb[15].mxu0 }
 0x15a   :  { %v2588_v53 = vadd.f32 %v3497_v49, %v2548_v37  ;;  %v3519_v54 = vadd.f32 %v3518_v51, %v3517_v48  ;;  %v3520_v55 = vpop.f32.mrb[14].mxu1 }
 0x15b   :  { %v3521_v56 = vpop.f32.mrb[15].mxu1 }
 0x15c   :  { %v2628_v58 = vadd.f32 %v3519_v54, %v2588_v53 }
 0x176   :  { %v3539_v60 = vpop.f32.mrb[16].mxu0 }
 0x177   :  { %v3540_v61 = vpop.f32.mrb[17].mxu0 }
 0x178   :  { %v3561_v62 = vpop.f32.mrb[16].mxu1  ;;  %v3541_v63 = vadd.f32 %v3540_v61, %v3539_v60  ;;  %v3542_v0 = vpop.f32.mrb[18].mxu0 }
 0x179   :  { %v3562_v1 = vpop.f32.mrb[17].mxu1  ;;  %v3543_v2 = vpop.f32.mrb[19].mxu0 }
 0x17a   :  { %v2668_v3 = vadd.f32 %v3541_v63, %v2628_v58  ;;  %v3563_v4 = vadd.f32 %v3562_v1, %v3561_v62  ;;  %v3564_v5 = vpop.f32.mrb[18].mxu1 }
 0x17b   :  { %v3565_v6 = vpop.f32.mrb[19].mxu1 }
 0x17c   :  { %v2708_v7 = vadd.f32 %v3563_v4, %v2668_v3 }
 0x196   :  { %v3583_v8 = vpop.f32.mrb[20].mxu0 }
 0x197   :  { %v3584_v9 = vpop.f32.mrb[21].mxu0 }
 0x198   :  { %v3605_v10 = vpop.f32.mrb[20].mxu1  ;;  %v3585_v11 = vadd.f32 %v3584_v9, %v3583_v8  ;;  %v3586_v12 = vpop.f32.mrb[22].mxu0 }
 0x199   :  { %v3606_v13 = vpop.f32.mrb[21].mxu1  ;;  %v3587_v14 = vpop.f32.mrb[23].mxu0 }
 0x19a   :  { %v2748_v15 = vadd.f32 %v3585_v11, %v2708_v7  ;;  %v3607_v16 = vadd.f32 %v3606_v13, %v3605_v10  ;;  %v3608_v17 = vpop.f32.mrb[22].mxu1 }
 0x19b   :  { %v3609_v18 = vpop.f32.mrb[23].mxu1 }
 0x19c   :  { %v2788_v20 = vadd.f32 %v3607_v16, %v2748_v15 }
 0x1b6   :  { %v3627_v21 = vpop.f32.mrb[24].mxu0 }
 0x1b7   :  { %v3628_v22 = vpop.f32.mrb[25].mxu0 }
 0x1b8   :  { %v3649_v41 = vpop.f32.mrb[24].mxu1  ;;  %v3629_v19 = vadd.f32 %v3628_v22, %v3627_v21  ;;  %v3630_v23 = vpop.f32.mrb[26].mxu0 }
 0x1b9   :  { %v3650_v24 = vpop.f32.mrb[25].mxu1  ;;  %v3631_v25 = vpop.f32.mrb[27].mxu0 }
 0x1ba   :  { %v2828_v26 = vadd.f32 %v3629_v19, %v2788_v20  ;;  %v3651_v27 = vadd.f32 %v3650_v24, %v3649_v41  ;;  %v3652_v28 = vpop.f32.mrb[26].mxu1 }
 0x1bb   :  { %v3653_v29 = vpop.f32.mrb[27].mxu1 }
 0x1bc   :  { %v2868_v30 = vadd.f32 %v3651_v27, %v2828_v26 }
 0x1d6   :  { %v3671_v31 = vpop.f32.mrb[28].mxu0 }
 0x1d7   :  { %v3672_v32 = vpop.f32.mrb[29].mxu0 }
 0x1d8   :  { %v3693_v33 = vpop.f32.mrb[28].mxu1  ;;  %v3673_v34 = vadd.f32 %v3672_v32, %v3671_v31  ;;  %v3674_v35 = vpop.f32.mrb[30].mxu0 }
 0x1d9   :  { %v3694_v36 = vpop.f32.mrb[29].mxu1  ;;  %v3675_v37 = vpop.f32.mrb[31].mxu0 }
 0x1da   :  { %v2908_v38 = vadd.f32 %v3673_v34, %v2868_v30  ;;  %v3695_v39 = vadd.f32 %v3694_v36, %v3693_v33  ;;  %v3696_v40 = vpop.f32.mrb[30].mxu1 }
 0x1db   :  { %v3697_v42 = vpop.f32.mrb[31].mxu1 }
 0x1dc   :  { %v2948_v43 = vadd.f32 %v3695_v39, %v2908_v38 }
 0x1de   :  { %v2953_v44 = vmax.f32 %v2948_v43, 0.0 }
 0x1e0   :  { %v2954_v45 = vpack.c.bf16 %v2953_v44, %v2953_v44 }
 0x1e2   :  { %3725 = vmatmul.mubr.bf16.vlgmr.msra.gmra.mrb[32].mxu0 %v2954_v45 }
 0x2b5   :  { %v3060_v47 = vpop.f32.mrb[32].mxu0 }
 0x2b6   :  { %v3061_v48 = vadd.f32 %v3338_v46, %v3060_v47  ;;  %v3726_v49 = vpop.f32.mrb[33].mxu0 }
 0x2b7   :  { %v3063_v50 = vpop.f32.mrb[34].mxu0 }
 0x2b8   :  { %3066 = vst [vmem:[#allocation2] sm:$0x3] %v3061_v48  ;;  %v3727_v51 = vpop.f32.mrb[35].mxu0 }
 0x2b9   :  { %4011 = shalt.err (!%p4008_p4)
}
 0x2ba   :  { %s4012_s4 = scalar_lea.hbm %s4931_s5, 32 }
 0x2bb   :  { %p4013_p5 = scmp.ne.s32.totalorder %s4931_s5, %s4012_s4  ;;  %p4016_p6 = scmp.lt.u32.totalorder %s4012_s4, %s4931_s5 }
 0x2bd   :  { %p4018_p7 = pnand %p4016_p6, %p4013_p5 }
 0x2bf   :  { %4021 = shalt.err (!%p4018_p7)
}
 0x2c0   :  { %3076 = dma.vmem_to_hbm [thread:$0]  %s3074_s27, 32, %s4931_s5, [#allocation3]  }
 0x2c1   :  { %4022 = dma.done.wait [#allocation3], 32  }
 0x2c2   :  { %4023 = vsyncadd [#allocation3], 4294967264 }
 0x2c3   :  { %3080 = vsyncpa [#allocation3], 1 }

// kernel: cnn_forward.2
= control target key start
LH: loop header
LB: loop body
LE: loop exit
PB: predicated region body
PF: predicated region fallthrough
CT: control target
= control target key end

     0   :  { %vm21_vm0 = vcmask 261120   ;;  %v8918_v29 = vmov 0.0   ;;  %s8919_s30 = smov 32   ;;  %s8920_s10 = smov 64   ;;  %vm1974_vm1 = vcmask 523520   ;;  %vm2167_vm2 = vcmask 785920   ;;  %s12078_s1 = inlined_call_operand.vmem [shape: bf16[32,32], index: 1, kind: input, shape index: {}]   ;;  %s12079_s0 = inlined_call_operand.vmem [shape: bf16[2048,32], index: 0, kind: input, shape index: {}]   ;;  %s12080_s2 = inlined_call_operand.vmem [shape: f32[1,32], index: 2, kind: input, shape index: {}]   ;;  %s12081_s3 = inlined_call_operand.vmem [shape: bf16[288,64], index: 3, kind: input, shape index: {}]   ;;  %s12082_s4 = inlined_call_operand.vmem [shape: f32[1,64], index: 4, kind: input, shape index: {}]   ;;  %s12083_s5 = inlined_call_operand.vmem [shape: bf16[2,64,64], index: 5, kind: output, shape index: {}]  }
   0x1   :  { %v8746_v0 = vld [vmem:[%s12078_s1] sm:$0xff]   ;;  %v8747_v1 = vld [vmem:[%s12078_s1 + $0x8] sm:$0xff]   ;;  %v8750_v4 = vld [vmem:[%s12079_s0 + $0x10] sm:$0xff]   ;;  %23 = vst.msk [vmem:[#allocation3 + $0x8] sm:$0xff] %vm21_vm0, %v8918_v29  ;;  %s8921_s22 = smov 96   ;;  %vm2360_vm3 = vcmask 1048320  }
   0x2   :  { %8406 = vmatprep.subr.bf16.mxu0 %v8746_v0  ;;  %v8748_v2 = vld [vmem:[%s12079_s0] sm:$0xff]   ;;  %v8749_v3 = vld [vmem:[%s12079_s0 + $0x8] sm:$0xff]   ;;  %v8751_v5 = vld [vmem:[%s12079_s0 + $0x18] sm:$0xff]   ;;  %22 = vst.msk [vmem:[#allocation3] sm:$0xff] %vm21_vm0, %v8918_v29  ;;  %vm3811_vm4 = vcmask 523264   ;;  %vm3899_vm5 = vcmask 519168  }
   0x3   :  { %8407 = vmatpush3.bf16.msra.mxu0 %v8746_v0  ;;  %8410 = vmatprep.mubr.msk.bf16.mxu0 %vm21_vm0, %v8748_v2  ;;  %v8752_v6 = vld [vmem:[%s12079_s0 + $0x20] sm:$0xff]   ;;  %v8753_v7 = vld [vmem:[%s12079_s0 + $0x28] sm:$0xff]   ;;  %v8754_v8 = vld [vmem:[%s12079_s0 + $0x30] sm:$0xff]   ;;  %24 = vst.msk [vmem:[#allocation3 + $0x10] sm:$0xff] %vm21_vm0, %v8918_v29 }
   0x4   :  { %8408 = vmatprep.subr.bf16.mxu0 %v8747_v1  ;;  %v8755_v9 = vld [vmem:[%s12079_s0 + $0x38] sm:$0xff]   ;;  %v8756_v10 = vld [vmem:[%s12079_s0 + $0x40] sm:$0xff]   ;;  %v8757_v11 = vld [vmem:[%s12079_s0 + $0x48] sm:$0xff]   ;;  %25 = vst.msk [vmem:[#allocation3 + $0x18] sm:$0xff] %vm21_vm0, %v8918_v29 }
   0x5   :  { %v8758_v12 = vld [vmem:[%s12079_s0 + $0x50] sm:$0xff]   ;;  %v8759_v13 = vld [vmem:[%s12079_s0 + $0x58] sm:$0xff]   ;;  %v8760_v14 = vld [vmem:[%s12079_s0 + $0x60] sm:$0xff]   ;;  %26 = vst.msk [vmem:[#allocation3 + $0x20] sm:$0xff] %vm21_vm0, %v8918_v29 }
   0x6   :  { %v8761_v15 = vld [vmem:[%s12079_s0 + $0x68] sm:$0xff]   ;;  %v8762_v16 = vld [vmem:[%s12079_s0 + $0x70] sm:$0xff]   ;;  %v8763_v17 = vld [vmem:[%s12079_s0 + $0x78] sm:$0xff]   ;;  %27 = vst.msk [vmem:[#allocation3 + $0x28] sm:$0xff] %vm21_vm0, %v8918_v29 }
   0x7   :  { %8409 = vmatpush3.bf16.msra.mxu0 %v8747_v1  ;;  %v8764_v18 = vld [vmem:[%s12079_s0 + $0x80] sm:$0xff]   ;;  %v8765_v19 = vld [vmem:[%s12079_s0 + $0x88] sm:$0xff]   ;;  %v8766_v20 = vld [vmem:[%s12079_s0 + $0x90] sm:$0xff]   ;;  %28 = vst.msk [vmem:[#allocation3 + $0x30] sm:$0xff] %vm21_vm0, %v8918_v29 }
   0x8   :  { %v8767_v21 = vld [vmem:[%s12079_s0 + $0x98] sm:$0xff]   ;;  %v8768_v22 = vld [vmem:[%s12079_s0 + $0xa0] sm:$0xff]   ;;  %v8769_v23 = vld [vmem:[%s12079_s0 + $0xa8] sm:$0xff]   ;;  %29 = vst.msk [vmem:[#allocation3 + $0x38] sm:$0xff] %vm21_vm0, %v8918_v29 }
   0x9   :  { %v8770_v24 = vld [vmem:[%s12079_s0 + $0xb0] sm:$0xff]   ;;  %v8771_v25 = vld [vmem:[%s12079_s0 + $0xb8] sm:$0xff]   ;;  %v8772_v26 = vld [vmem:[%s12079_s0 + $0xc0] sm:$0xff]   ;;  %30 = vst.msk [vmem:[#allocation3 + $0x40] sm:$0xff] %vm21_vm0, %v8918_v29 }
   0xa   :  { %8411 = vmatmul.mubr.msk.bf16.vlgmr.msra.gmra.mrb[0].mxu0 %vm21_vm0, %v8749_v3  ;;  %v9061_v27 = vld [vmem:[%s12079_s0 + $0xc8] sm:$0xff]   ;;  %v9066_v28 = vld [vmem:[%s12079_s0 + $0xd0] sm:$0xff]   ;;  %31 = vst.msk [vmem:[#allocation3 + $0x48] sm:$0xff] %vm21_vm0, %v8918_v29  ;;  %32 = vst.msk [vmem:[#allocation3 + $0x50] sm:$0xff] %vm21_vm0, %v8918_v29 }
   0xb   :  { %8414 = vmatprep.mubr.msk.bf16.mxu0 %vm21_vm0, %v8750_v4  ;;  %33 = vst.msk [vmem:[#allocation3 + $0x58] sm:$0xff] %vm21_vm0, %v8918_v29  ;;  %34 = vst.msk [vmem:[#allocation3 + $0x60] sm:$0xff] %vm21_vm0, %v8918_v29  ;;  %v8775_v30 = vld [vmem:[%s12079_s0 + $0xd8] sm:$0xff]   ;;  %v8776_v31 = vld [vmem:[%s12079_s0 + $0xe0] sm:$0xff]  }
   0xc   :  { %35 = vst.msk [vmem:[#allocation3 + $0x68] sm:$0xff] %vm21_vm0, %v8918_v29  ;;  %36 = vst.msk [vmem:[#allocation3 + $0x70] sm:$0xff] %vm21_vm0, %v8918_v29  ;;  %v1814_v32 = vld [vmem:[#allocation3 + $0x8] sm:$0xff]  ;;  %v1815_v33 = vld [vmem:[#allocation3 + $0x10] sm:$0xff] }
   0xd   :  { %37 = vst.msk [vmem:[#allocation3 + $0x78] sm:$0xff] %vm21_vm0, %v8918_v29  ;;  %38 = vst.msk [vmem:[#allocation3 + $0x80] sm:$0xff] %vm21_vm0, %v8918_v29  ;;  %1878 = vrot.lane.b32.xlu1 %v1814_v32, %s8919_s30  ;;  %v8777_v34 = vld [vmem:[%s12079_s0 + $0xe8] sm:$0xff]   ;;  %v8778_v35 = vld [vmem:[%s12079_s0 + $0xf0] sm:$0xff]  }
   0xe   :  { %39 = vst.msk [vmem:[#allocation3 + $0x88] sm:$0xff] %vm21_vm0, %v8918_v29  ;;  %40 = vst.msk [vmem:[#allocation3 + $0x90] sm:$0xff] %vm21_vm0, %v8918_v29  ;;  %v2007_v36 = vld [vmem:[#allocation3 + $0x9] sm:$0xff]  ;;  %v2008_v37 = vld [vmem:[#allocation3 + $0x11] sm:$0xff] }
   0xf   :  { %41 = vst.msk [vmem:[#allocation3 + $0x98] sm:$0xff] %vm21_vm0, %v8918_v29  ;;  %42 = vst.msk [vmem:[#allocation3 + $0xa0] sm:$0xff] %vm21_vm0, %v8918_v29  ;;  %2071 = vrot.lane.b32.xlu0 %v2007_v36, %s8920_s10  ;;  %v8779_v40 = vld [vmem:[%s12079_s0 + $0xf8] sm:$0xff]   ;;  %v8780_v41 = vld [vmem:[%s12079_s0 + $0x100] sm:$0xff]  }
  0x10   :  { %43 = vst.msk [vmem:[#allocation3 + $0xa8] sm:$0xff] %vm21_vm0, %v8918_v29  ;;  %44 = vst.msk [vmem:[#allocation3 + $0xb0] sm:$0xff] %vm21_vm0, %v8918_v29  ;;  %v8781_v42 = vld [vmem:[%s12079_s0 + $0x108] sm:$0xff]   ;;  %v8782_v43 = vld [vmem:[%s12079_s0 + $0x110] sm:$0xff]  }
  0x11   :  { %45 = vst.msk [vmem:[#allocation3 + $0xb8] sm:$0xff] %vm21_vm0, %v8918_v29  ;;  %46 = vst.msk [vmem:[#allocation3 + $0xc0] sm:$0xff] %vm21_vm0, %v8918_v29  ;;  %1880 = vrot.lane.b32.xlu1 %v1815_v33, %s8919_s30  ;;  %v8783_v44 = vld [vmem:[%s12079_s0 + $0x118] sm:$0xff]   ;;  %v8784_v45 = vld [vmem:[%s12079_s0 + $0x120] sm:$0xff]  }
  0x12   :  { %8415 = vmatmul.mubr.msk.bf16.gmra.mrb[4].mxu0 %vm21_vm0, %v8751_v5  ;;  %47 = vst.msk [vmem:[#allocation3 + $0xc8] sm:$0xff] %vm21_vm0, %v8918_v29  ;;  %48 = vst.msk [vmem:[#allocation3 + $0xd0] sm:$0xff] %vm21_vm0, %v8918_v29  ;;  %v8785_v46 = vld [vmem:[%s12079_s0 + $0x128] sm:$0xff]   ;;  %v8786_v47 = vld [vmem:[%s12079_s0 + $0x130] sm:$0xff]  }
  0x13   :  { %8418 = vmatprep.mubr.msk.bf16.mxu0 %vm21_vm0, %v8752_v6  ;;  %49 = vst.msk [vmem:[#allocation3 + $0xd8] sm:$0xff] %vm21_vm0, %v8918_v29  ;;  %50 = vst.msk [vmem:[#allocation3 + $0xe0] sm:$0xff] %vm21_vm0, %v8918_v29  ;;  %v8787_v48 = vld [vmem:[%s12079_s0 + $0x138] sm:$0xff]   ;;  %v8788_v49 = vld [vmem:[%s12079_s0 + $0x140] sm:$0xff]  }
  0x14   :  { %51 = vst.msk [vmem:[#allocation3 + $0xe8] sm:$0xff] %vm21_vm0, %v8918_v29  ;;  %52 = vst.msk [vmem:[#allocation3 + $0xf0] sm:$0xff] %vm21_vm0, %v8918_v29  ;;  %v8789_v50 = vld [vmem:[%s12079_s0 + $0x148] sm:$0xff]   ;;  %v8790_v51 = vld [vmem:[%s12079_s0 + $0x150] sm:$0xff]  }
  0x15   :  { %53 = vst.msk [vmem:[#allocation3 + $0xf8] sm:$0xff] %vm21_vm0, %v8918_v29  ;;  %54 = vst.msk [vmem:[#allocation3 + $0x100] sm:$0xff] %vm21_vm0, %v8918_v29  ;;  %2073 = vrot.lane.b32.xlu1 %v2008_v37, %s8920_s10  ;;  %v8791_v52 = vld [vmem:[%s12079_s0 + $0x158] sm:$0xff]   ;;  %v8792_v53 = vld [vmem:[%s12079_s0 + $0x160] sm:$0xff]  }
  0x16   :  { %55 = vst.msk [vmem:[#allocation3 + $0x108] sm:$0xff] %vm21_vm0, %v8918_v29  ;;  %56 = vst.msk [vmem:[#allocation3 + $0x110] sm:$0xff] %vm21_vm0, %v8918_v29  ;;  %v8793_v54 = vld [vmem:[%s12079_s0 + $0x168] sm:$0xff]   ;;  %v8794_v55 = vld [vmem:[%s12079_s0 + $0x170] sm:$0xff]  }
  0x17   :  { %57 = vst.msk [vmem:[#allocation3 + $0x118] sm:$0xff] %vm21_vm0, %v8918_v29  ;;  %58 = vst.msk [vmem:[#allocation3 + $0x120] sm:$0xff] %vm21_vm0, %v8918_v29  ;;  %v8795_v56 = vld [vmem:[%s12079_s0 + $0x178] sm:$0xff]   ;;  %v8796_v57 = vld [vmem:[%s12079_s0 + $0x180] sm:$0xff]  }
  0x18   :  { %59 = vst.msk [vmem:[#allocation3 + $0x128] sm:$0xff] %vm21_vm0, %v8918_v29  ;;  %60 = vst.msk [vmem:[#allocation3 + $0x130] sm:$0xff] %vm21_vm0, %v8918_v29  ;;  %v8797_v58 = vld [vmem:[%s12079_s0 + $0x188] sm:$0xff]   ;;  %v8798_v59 = vld [vmem:[%s12079_s0 + $0x190] sm:$0xff]  }
  0x19   :  { %61 = vst.msk [vmem:[#allocation3 + $0x138] sm:$0xff] %vm21_vm0, %v8918_v29  ;;  %62 = vst.msk [vmem:[#allocation3 + $0x140] sm:$0xff] %vm21_vm0, %v8918_v29  ;;  %v8799_v60 = vld [vmem:[%s12079_s0 + $0x198] sm:$0xff]   ;;  %v8800_v61 = vld [vmem:[%s12079_s0 + $0x1a0] sm:$0xff]  }
  0x1a   :  { %8419 = vmatmul.mubr.msk.bf16.gmra.mrb[8].mxu0 %vm21_vm0, %v8753_v7  ;;  %63 = vst.msk [vmem:[#allocation3 + $0x148] sm:$0xff] %vm21_vm0, %v8918_v29  ;;  %64 = vst.msk [vmem:[#allocation3 + $0x150] sm:$0xff] %vm21_vm0, %v8918_v29  ;;  %v8801_v62 = vld [vmem:[%s12079_s0 + $0x1a8] sm:$0xff]   ;;  %v8802_v63 = vld [vmem:[%s12079_s0 + $0x1b0] sm:$0xff]  }
  0x1b   :  { %8422 = vmatprep.mubr.msk.bf16.mxu0 %vm21_vm0, %v8754_v8  ;;  %65 = vst.msk [vmem:[#allocation3 + $0x158] sm:$0xff] %vm21_vm0, %v8918_v29  ;;  %66 = vst.msk [vmem:[#allocation3 + $0x160] sm:$0xff] %vm21_vm0, %v8918_v29  ;;  %v8803_v2 = vld [vmem:[%s12079_s0 + $0x1b8] sm:$0xff]   ;;  %v8804_v4 = vld [vmem:[%s12079_s0 + $0x1c0] sm:$0xff]  }
  0x1c   :  { %67 = vst.msk [vmem:[#allocation3 + $0x168] sm:$0xff] %vm21_vm0, %v8918_v29  ;;  %68 = vst.msk [vmem:[#allocation3 + $0x170] sm:$0xff] %vm21_vm0, %v8918_v29  ;;  %v1750_v6 = vld [vmem:[#allocation3 + $0x7] sm:$0xff]  ;;  %v9343_v7 = vld [vmem:[%s12080_s2] ss:$0 sm:$0xff] }
  0x1d   :  { %69 = vst.msk [vmem:[#allocation3 + $0x178] sm:$0xff] %vm21_vm0, %v8918_v29  ;;  %70 = vst.msk [vmem:[#allocation3 + $0x180] sm:$0xff] %vm21_vm0, %v8918_v29 }
  0x1e   :  { %71 = vst.msk [vmem:[#allocation3 + $0x188] sm:$0xff] %vm21_vm0, %v8918_v29  ;;  %72 = vst.msk [vmem:[#allocation3 + $0x190] sm:$0xff] %vm21_vm0, %v8918_v29 }
  0x1f   :  { %73 = vst.msk [vmem:[#allocation3 + $0x198] sm:$0xff] %vm21_vm0, %v8918_v29  ;;  %74 = vst.msk [vmem:[#allocation3 + $0x1a0] sm:$0xff] %vm21_vm0, %v8918_v29 }
  0x20   :  { %75 = vst.msk [vmem:[#allocation3 + $0x1a8] sm:$0xff] %vm21_vm0, %v8918_v29  ;;  %76 = vst.msk [vmem:[#allocation3 + $0x1b0] sm:$0xff] %vm21_vm0, %v8918_v29 }
  0x21   :  { %77 = vst.msk [vmem:[#allocation3 + $0x1b8] sm:$0xff] %vm21_vm0, %v8918_v29  ;;  %78 = vst.msk [vmem:[#allocation3 + $0x1c0] sm:$0xff] %vm21_vm0, %v8918_v29 }
  0x22   :  { %8423 = vmatmul.mubr.msk.bf16.gmra.mrb[12].mxu0 %vm21_vm0, %v8755_v9  ;;  %79 = vst.msk [vmem:[#allocation3 + $0x1c8] sm:$0xff] %vm21_vm0, %v8918_v29  ;;  %80 = vst.msk [vmem:[#allocation3 + $0x1d0] sm:$0xff] %vm21_vm0, %v8918_v29 }
  0x23   :  { %8426 = vmatprep.mubr.msk.bf16.mxu0 %vm21_vm0, %v8756_v10  ;;  %81 = vst.msk [vmem:[#allocation3 + $0x1d8] sm:$0xff] %vm21_vm0, %v8918_v29  ;;  %82 = vst.msk [vmem:[#allocation3 + $0x1e0] sm:$0xff] %vm21_vm0, %v8918_v29  ;;  %v1751_v10 = vld [vmem:[#allocation3 + $0xf] sm:$0xff] }
  0x24   :  { %83 = vst.msk [vmem:[#allocation3 + $0x1e8] sm:$0xff] %vm21_vm0, %v8918_v29  ;;  %84 = vst.msk [vmem:[#allocation3 + $0x1f0] sm:$0xff] %vm21_vm0, %v8918_v29 }
  0x25   :  { %85 = vst.msk [vmem:[#allocation3 + $0x1f8] sm:$0xff] %vm21_vm0, %v8918_v29  ;;  %86 = vst.msk [vmem:[#allocation3 + $0x200] sm:$0xff] %vm21_vm0, %v8918_v29 }
  0x26   :  { %87 = vst.msk [vmem:[#allocation3 + $0x208] sm:$0xff] %vm21_vm0, %v8918_v29  ;;  %88 = vst.msk [vmem:[#allocation3 + $0x210] sm:$0xff] %vm21_vm0, %v8918_v29 }
  0x27   :  { %89 = vst.msk [vmem:[#allocation3 + $0x218] sm:$0xff] %vm21_vm0, %v8918_v29  ;;  %90 = vst.msk [vmem:[#allocation3 + $0x220] sm:$0xff] %vm21_vm0, %v8918_v29 }
  0x28   :  { %91 = vst.msk [vmem:[#allocation3 + $0x228] sm:$0xff] %vm21_vm0, %v8918_v29  ;;  %92 = vst.msk [vmem:[#allocation3 + $0x230] sm:$0xff] %vm21_vm0, %v8918_v29 }
  0x29   :  { %93 = vst.msk [vmem:[#allocation3 + $0x238] sm:$0xff] %vm21_vm0, %v8918_v29  ;;  %1782 = vst.msk [vmem:[#allocation4] sm:$0xff] %vm21_vm0, %v1750_v6 }
  0x2a   :  { %8427 = vmatmul.mubr.msk.bf16.gmra.mrb[16].mxu0 %vm21_vm0, %v8757_v11  ;;  %1783 = vst.msk [vmem:[#allocation4 + $0x18] sm:$0xff] %vm21_vm0, %v1751_v10 }
  0x2b   :  { %8430 = vmatprep.mubr.msk.bf16.mxu0 %vm21_vm0, %v8758_v12 }
  0x2f   :  { %v2680_v38 = vld [vmem:[#allocation3 + $0x227] sm:$0xff]  ;;  %v2681_v39 = vld [vmem:[#allocation3 + $0x22f] sm:$0xff] }
  0x30   :  { %2774 = vrot.lane.b32.xlu0 %v2680_v38, %s8920_s10  ;;  %2776 = vrot.lane.b32.xlu1 %v2681_v39, %s8920_s10 }
  0x32   :  { %8431 = vmatmul.mubr.msk.bf16.gmra.mrb[20].mxu0 %vm21_vm0, %v8759_v13 }
  0x33   :  { %8434 = vmatprep.mubr.msk.bf16.mxu0 %vm21_vm0, %v8760_v14 }
  0x3a   :  { %8435 = vmatmul.mubr.msk.bf16.gmra.mrb[24].mxu0 %vm21_vm0, %v8761_v15 }
  0x3b   :  { %8438 = vmatprep.mubr.msk.bf16.mxu0 %vm21_vm0, %v8762_v16  ;;  %v8805_v16 = vld [vmem:[%s12079_s0 + $0x1c8] sm:$0xff]  }
  0x42   :  { %8439 = vmatmul.mubr.msk.bf16.gmra.mrb[28].mxu0 %vm21_vm0, %v8763_v17 }
  0x43   :  { %8442 = vmatprep.mubr.msk.bf16.mxu0 %vm21_vm0, %v8764_v18 }
  0x4a   :  { %8443 = vmatmul.mubr.msk.bf16.gmra.mrb[32].mxu0 %vm21_vm0, %v8765_v19 }
  0x4b   :  { %8446 = vmatprep.mubr.msk.bf16.mxu0 %vm21_vm0, %v8766_v20 }
  0x52   :  { %8447 = vmatmul.mubr.msk.bf16.gmra.mrb[36].mxu0 %vm21_vm0, %v8767_v21  ;;  %v8806_v21 = vld [vmem:[%s12079_s0 + $0x1d0] sm:$0xff]  }
  0x53   :  { %8450 = vmatprep.mubr.msk.bf16.mxu0 %vm21_vm0, %v8768_v22 }
  0x5a   :  { %8451 = vmatmul.mubr.msk.bf16.gmra.mrb[40].mxu0 %vm21_vm0, %v8769_v23 }
  0x5b   :  { %8454 = vmatprep.mubr.msk.bf16.mxu0 %vm21_vm0, %v8770_v24 }
  0x62   :  { %8455 = vmatmul.mubr.msk.bf16.gmra.mrb[44].mxu0 %vm21_vm0, %v8771_v25 }
  0x63   :  { %8458 = vmatprep.mubr.msk.bf16.mxu0 %vm21_vm0, %v8772_v26 }
  0x6a   :  { %8459 = vmatmul.mubr.msk.bf16.gmra.mrb[48].mxu0 %vm21_vm0, %v9061_v27 }
  0x6b   :  { %8462 = vmatprep.mubr.msk.bf16.mxu0 %vm21_vm0, %v9066_v28 }
  0x72   :  { %8463 = vmatmul.mubr.msk.bf16.gmra.mrb[52].mxu0 %vm21_vm0, %v8775_v30 }
  0x73   :  { %8466 = vmatprep.mubr.msk.bf16.mxu0 %vm21_vm0, %v8776_v31 }
  0x7a   :  { %8467 = vmatmul.mubr.msk.bf16.gmra.mrb[56].mxu0 %vm21_vm0, %v8777_v34 }
  0x7b   :  { %8470 = vmatprep.mubr.msk.bf16.mxu0 %vm21_vm0, %v8778_v35 }
  0x7f   :  { %v1879_v8 = vpop.permute.xlu1 %1878 }
  0x80   :  { %1975 = vst.msk [vmem:[#allocation4] sm:$0xff] %vm1974_vm1, %v1879_v8 }
  0x81   :  { %v2072_v32 = vpop.permute.xlu0 %2071 }
  0x82   :  { %8471 = vmatmul.mubr.msk.bf16.gmra.mrb[60].mxu0 %vm21_vm0, %v8779_v40  ;;  %2168 = vst.msk [vmem:[#allocation4] sm:$0xff] %vm2167_vm2, %v2072_v32 }
  0x83   :  { %8474 = vmatprep.mubr.msk.bf16.mxu0 %vm21_vm0, %v8780_v41  ;;  %v1881_v17 = vpop.permute.xlu1 %1880  ;;  %v8807_v41 = vld [vmem:[%s12079_s0 + $0x1d8] sm:$0xff]  }
  0x84   :  { %1976 = vst.msk [vmem:[#allocation4 + $0x18] sm:$0xff] %vm1974_vm1, %v1881_v17  ;;  %v8812_v17 = vld [vmem:[%s12081_s3 + $0x40] sm:$0xff]  }
  0x85   :  { %8080 = vmatprep.subr.bf16.mxu1 %v8812_v17 }
  0x87   :  { %v2074_v33 = vpop.permute.xlu1 %2073 }
  0x88   :  { %2169 = vst.msk [vmem:[#allocation4 + $0x18] sm:$0xff] %vm2167_vm2, %v2074_v33 }
  0x8a   :  { %8475 = vmatmul.mubr.msk.bf16.gmra.mrb[64].mxu0 %vm21_vm0, %v8781_v42 }
  0x8b   :  { %8478 = vmatprep.mubr.msk.bf16.mxu0 %vm21_vm0, %v8782_v43  ;;  %v8808_v43 = vld [vmem:[%s12079_s0 + $0x1e0] sm:$0xff]  }
  0x92   :  { %8479 = vmatmul.mubr.msk.bf16.gmra.mrb[68].mxu0 %vm21_vm0, %v8783_v44 }
  0x93   :  { %8482 = vmatprep.mubr.msk.bf16.mxu0 %vm21_vm0, %v8784_v45 }
  0x9a   :  { %8483 = vmatmul.mubr.msk.bf16.gmra.mrb[72].mxu0 %vm21_vm0, %v8785_v46 }
  0x9b   :  { %8486 = vmatprep.mubr.msk.bf16.mxu0 %vm21_vm0, %v8786_v47 }
  0xa2   :  { %8487 = vmatmul.mubr.msk.bf16.gmra.mrb[76].mxu0 %vm21_vm0, %v8787_v48 }
  0xa3   :  { %8490 = vmatprep.mubr.msk.bf16.mxu0 %vm21_vm0, %v8788_v49 }
  0xaa   :  { %8491 = vmatmul.mubr.msk.bf16.gmra.mrb[80].mxu0 %vm21_vm0, %v8789_v50 }
  0xab   :  { %8494 = vmatprep.mubr.msk.bf16.mxu0 %vm21_vm0, %v8790_v51 }
  0xb2   :  { %8495 = vmatmul.mubr.msk.bf16.gmra.mrb[84].mxu0 %vm21_vm0, %v8791_v52 }
  0xb3   :  { %8498 = vmatprep.mubr.msk.bf16.mxu0 %vm21_vm0, %v8792_v53 }
  0xba   :  { %8499 = vmatmul.mubr.msk.bf16.gmra.mrb[88].mxu0 %vm21_vm0, %v8793_v54 }
  0xbb   :  { %8502 = vmatprep.mubr.msk.bf16.mxu0 %vm21_vm0, %v8794_v55 }
  0xc2   :  { %8503 = vmatmul.mubr.msk.bf16.gmra.mrb[92].mxu0 %vm21_vm0, %v8795_v56  ;;  %v8809_v56 = vld [vmem:[%s12079_s0 + $0x1e8] sm:$0xff]  }
  0xc3   :  { %8506 = vmatprep.mubr.msk.bf16.mxu0 %vm21_vm0, %v8796_v57 }
  0xca   :  { %8507 = vmatmul.mubr.msk.bf16.gmra.mrb[96].mxu0 %vm21_vm0, %v8797_v58 }
  0xcb   :  { %8510 = vmatprep.mubr.msk.bf16.mxu0 %vm21_vm0, %v8798_v59 }
  0xd2   :  { %8511 = vmatmul.mubr.msk.bf16.gmra.mrb[100].mxu0 %vm21_vm0, %v8799_v60 }
  0xd3   :  { %8514 = vmatprep.mubr.msk.bf16.mxu0 %vm21_vm0, %v8800_v61  ;;  %v8810_v61 = vld [vmem:[%s12079_s0 + $0x1f0] sm:$0xff]  }
  0xda   :  { %8515 = vmatmul.mubr.msk.bf16.gmra.mrb[104].mxu0 %vm21_vm0, %v8801_v62 }
  0xdb   :  { %8518 = vmatprep.mubr.msk.bf16.mxu0 %vm21_vm0, %v8802_v63 }
  0xdd   :  { %v8412_v0 = vpop.f32.mrb[0].mxu0 }
  0xde   :  { %v791_v1 = vpop.f32.mrb[1].mxu0  ;;  %v800_v9 = vadd.f32 %v8412_v0, %v9343_v7 }
  0xdf   :  { %v8413_v3 = vpop.f32.mrb[2].mxu0  ;;  %v792_v11 = vadd.f32 %v9343_v7, %v791_v1 }
  0xe0   :  { %v794_v5 = vpop.f32.mrb[3].mxu0  ;;  %v803_v13 = vadd.f32 %v8413_v3, %v9343_v7  ;;  %v1304_v22 = vmax.f32 %v800_v9, 0.0 }
  0xe1   :  { %v795_v18 = vadd.f32 %v9343_v7, %v794_v5  ;;  %v1302_v26 = vmax.f32 %v792_v11, 0.0 }
  0xe2   :  { %8519 = vmatmul.mubr.msk.bf16.gmra.mrb[108].mxu0 %vm21_vm0, %v8803_v2  ;;  %v1305_v29 = vmax.f32 %v803_v13, 0.0 }
  0xe3   :  { %8522 = vmatprep.mubr.msk.bf16.mxu0 %vm21_vm0, %v8804_v4  ;;  %v1303_v34 = vmax.f32 %v795_v18, 0.0 }
  0xe5   :  { %v8416_v12 = vpop.f32.mrb[4].mxu0 }
  0xe6   :  { %v816_v14 = vadd.f32 %v8416_v12, %v9343_v7  ;;  %v807_v15 = vpop.f32.mrb[5].mxu0 }
  0xe7   :  { %v808_v19 = vadd.f32 %v9343_v7, %v807_v15  ;;  %v8417_v20 = vpop.f32.mrb[6].mxu0  ;;  %v8811_v15 = vld [vmem:[%s12079_s0 + $0x1f8] sm:$0xff]  }
  0xe8   :  { %v1308_v23 = vmax.f32 %v816_v14, 0.0  ;;  %v819_v24 = vadd.f32 %v8417_v20, %v9343_v7  ;;  %v810_v25 = vpop.f32.mrb[7].mxu0 }
  0xe9   :  { %v1306_v27 = vmax.f32 %v808_v19, 0.0  ;;  %v811_v28 = vadd.f32 %v9343_v7, %v810_v25 }
  0xea   :  { %v1432_v30 = vmax.f32 %v1304_v22, %v1308_v23  ;;  %v1309_v31 = vmax.f32 %v819_v24, 0.0  ;;  %8523 = vmatmul.mubr.msk.bf16.gmra.mrb[112].mxu0 %vm21_vm0, %v8805_v16 }
  0xeb   :  { %v1430_v35 = vmax.f32 %v1302_v26, %v1306_v27  ;;  %v1307_v36 = vmax.f32 %v811_v28, 0.0  ;;  %8526 = vmatprep.mubr.msk.bf16.mxu0 %vm21_vm0, %v8806_v21 }
  0xec   :  { %1496 = vst.msk [vmem:[#allocation2 + $0x10] sm:$0xff] %vm21_vm0, %v1432_v30  ;;  %v1433_v37 = vmax.f32 %v1305_v29, %v1309_v31  ;;  %v8813_v29 = vld [vmem:[%s12081_s3] sm:$0xff]   ;;  %v8814_v30 = vld [vmem:[%s12081_s3 + $0x48] sm:$0xff]  }
  0xed   :  { %1494 = vst.msk [vmem:[#allocation2] sm:$0xff] %vm21_vm0, %v1430_v35  ;;  %v1431_v38 = vmax.f32 %v1303_v34, %v1307_v36  ;;  %v8420_v39 = vpop.f32.mrb[8].mxu0  ;;  %8081 = vmatpush3.bf16.msra.mxu1 %v8813_v29  ;;  %v8815_v31 = vld [vmem:[%s12081_s3 + $0x8] sm:$0xff]  }
  0xee   :  { %1497 = vst.msk [vmem:[#allocation2 + $0x18] sm:$0xff] %vm21_vm0, %v1433_v37  ;;  %v823_v40 = vpop.f32.mrb[9].mxu0  ;;  %v832_v45 = vadd.f32 %v8420_v39, %v9343_v7  ;;  %8082 = vmatprep.subr.bf16.mxu1 %v8814_v30 }
  0xef   :  { %1495 = vst.msk [vmem:[#allocation2 + $0x8] sm:$0xff] %vm21_vm0, %v1431_v38  ;;  %v8421_v42 = vpop.f32.mrb[10].mxu0  ;;  %v824_v48 = vadd.f32 %v9343_v7, %v823_v40 }
  0xf0   :  { %v826_v44 = vpop.f32.mrb[11].mxu0  ;;  %v835_v52 = vadd.f32 %v8421_v42, %v9343_v7  ;;  %v1312_v62 = vmax.f32 %v832_v45, 0.0 }
  0xf1   :  { %v827_v57 = vadd.f32 %v9343_v7, %v826_v44  ;;  %v1310_v2 = vmax.f32 %v824_v48, 0.0  ;;  %v8816_v44 = vld [vmem:[%s12081_s3 + $0x50] sm:$0xff]   ;;  %8083 = vmatpush3.bf16.msra.mxu1 %v8815_v31 }
  0xf2   :  { %8527 = vmatmul.mubr.msk.bf16.gmra.mrb[116].mxu0 %vm21_vm0, %v8807_v41  ;;  %v1313_v5 = vmax.f32 %v835_v52, 0.0  ;;  %v8817_v48 = vld [vmem:[%s12081_s3 + $0x10] sm:$0xff]   ;;  %8084 = vmatprep.subr.bf16.mxu1 %v8816_v44 }
  0xf3   :  { %8530 = vmatprep.mubr.msk.bf16.mxu0 %vm21_vm0, %v8808_v43  ;;  %v1311_v9 = vmax.f32 %v827_v57, 0.0  ;;  %v8818_v57 = vld [vmem:[%s12081_s3 + $0x58] sm:$0xff]   ;;  %v8824_v31 = vld [vmem:[%s12081_s3 + $0x70] sm:$0xff]  }
  0xf5   :  { %v1560_v46 = vld [vmem:[#allocation2 + $0x10] ss:$2 sm:$0xff]  ;;  %v1624_v47 = vld [vmem:[#allocation2 + $0x11] ss:$2 sm:$0xff]  ;;  %v8424_v49 = vpop.f32.mrb[12].mxu0  ;;  %8085 = vmatpush3.bf16.msra.mxu1 %v8817_v48 }
  0xf6   :  { %v1558_v50 = vld [vmem:[#allocation2] ss:$2 sm:$0xff]  ;;  %v1622_v51 = vld [vmem:[#allocation2 + $0x1] ss:$2 sm:$0xff]  ;;  %v848_v53 = vadd.f32 %v8424_v49, %v9343_v7  ;;  %v839_v54 = vpop.f32.mrb[13].mxu0  ;;  %v1686_v55 = vmax.f32 %v1560_v46, %v1624_v47  ;;  %8086 = vmatprep.subr.bf16.mxu1 %v8818_v57  ;;  %v8827_v48 = vld [vmem:[%s12081_s3 + $0x38] sm:$0xff]  }
  0xf7   :  { %v840_v58 = vadd.f32 %v9343_v7, %v839_v54  ;;  %v8425_v59 = vpop.f32.mrb[14].mxu0  ;;  %v1685_v60 = vmax.f32 %v1558_v50, %v1622_v51 }
  0xf8   :  { %v1316_v63 = vmax.f32 %v848_v53, 0.0  ;;  %v851_v0 = vadd.f32 %v8425_v59, %v9343_v7  ;;  %v842_v1 = vpop.f32.mrb[15].mxu0  ;;  %1719 = vst.msk [vmem:[#allocation3 + $0x30] sm:$0xff] %vm21_vm0, %v1686_v55 }
  0xf9   :  { %v1314_v3 = vmax.f32 %v840_v58, 0.0  ;;  %v843_v4 = vadd.f32 %v9343_v7, %v842_v1  ;;  %1718 = vst.msk [vmem:[#allocation3 + $0x28] sm:$0xff] %vm21_vm0, %v1685_v60  ;;  %v8819_v60 = vld [vmem:[%s12081_s3 + $0x18] sm:$0xff]  }
  0xfa   :  { %v1436_v6 = vmax.f32 %v1312_v62, %v1316_v63  ;;  %v1317_v8 = vmax.f32 %v851_v0, 0.0  ;;  %8531 = vmatmul.mubr.msk.bf16.gmra.mrb[120].mxu0 %vm21_vm0, %v8809_v56  ;;  %8087 = vmatpush3.bf16.msra.mxu1 %v8819_v60 }
  0xfb   :  { %v1434_v10 = vmax.f32 %v1310_v2, %v1314_v3  ;;  %v1315_v11 = vmax.f32 %v843_v4, 0.0  ;;  %8534 = vmatprep.mubr.msk.bf16.mxu0 %vm21_vm0, %v8810_v61  ;;  %v8820_v2 = vld [vmem:[%s12081_s3 + $0x60] sm:$0xff]  }
  0xfc   :  { %1500 = vst.msk [vmem:[#allocation2 + $0x30] sm:$0xff] %vm21_vm0, %v1436_v6  ;;  %v1437_v12 = vmax.f32 %v1313_v5, %v1317_v8  ;;  %v8821_v6 = vld [vmem:[%s12081_s3 + $0x20] sm:$0xff]   ;;  %8088 = vmatprep.subr.bf16.mxu1 %v8820_v2 }
  0xfd   :  { %1498 = vst.msk [vmem:[#allocation2 + $0x20] sm:$0xff] %vm21_vm0, %v1434_v10  ;;  %v1435_v13 = vmax.f32 %v1311_v9, %v1315_v11  ;;  %v8428_v14 = vpop.f32.mrb[16].mxu0 }
  0xfe   :  { %1501 = vst.msk [vmem:[#allocation2 + $0x38] sm:$0xff] %vm21_vm0, %v1437_v12  ;;  %v855_v16 = vpop.f32.mrb[17].mxu0  ;;  %v864_v21 = vadd.f32 %v8428_v14, %v9343_v7  ;;  %8089 = vmatpush3.bf16.msra.mxu1 %v8821_v6 }
  0xff   :  { %1499 = vst.msk [vmem:[#allocation2 + $0x28] sm:$0xff] %vm21_vm0, %v1435_v13  ;;  %v2458_v18 = vld [vmem:[#allocation3 + $0x31] sm:$0xff]  ;;  %v8429_v20 = vpop.f32.mrb[18].mxu0  ;;  %v856_v22 = vadd.f32 %v9343_v7, %v855_v16  ;;  %v8822_v16 = vld [vmem:[%s12081_s3 + $0x68] sm:$0xff]  }
 0x100   :  { %v1817_v19 = vld [vmem:[#allocation3 + $0x30] sm:$0xff]  ;;  %2523 = vrot.lane.b32.xlu0 %v2458_v18, %s8919_s30  ;;  %v858_v23 = vpop.f32.mrb[19].mxu0  ;;  %v2200_v25 = vld [vmem:[#allocation3 + $0x27] sm:$0xff]  ;;  %v867_v26 = vadd.f32 %v8429_v20, %v9343_v7  ;;  %v1320_v32 = vmax.f32 %v864_v21, 0.0  ;;  %8090 = vmatprep.subr.bf16.mxu1 %v8822_v16 }
 0x101   :  { %1884 = vrot.lane.b32.xlu1 %v1817_v19, %s8919_s30  ;;  %v2201_v24 = vld [vmem:[#allocation3 + $0x2f] sm:$0xff]  ;;  %2426 = vst.msk [vmem:[#allocation4 + $0x20] sm:$0xff] %vm21_vm0, %v1817_v19  ;;  %1784 = vst.msk [vmem:[#allocation4 + $0x30] sm:$0xff] %vm21_vm0, %v2200_v25  ;;  %v1318_v33 = vmax.f32 %v856_v22, 0.0  ;;  %v859_v37 = vadd.f32 %v9343_v7, %v858_v23 }
 0x102   :  { %v9415_v27 = vld [vmem:[#allocation3 + $0x29] sm:$0xff]  ;;  %1785 = vst.msk [vmem:[#allocation4 + $0x48] sm:$0xff] %vm21_vm0, %v2201_v24  ;;  %8535 = vmatmul.mubr.msk.bf16.gmra.mrb[124].mxu0 %vm21_vm0, %v8811_v15  ;;  %v1321_v36 = vmax.f32 %v867_v26, 0.0 }
 0x103   :  { %v1816_v28 = vld [vmem:[#allocation3 + $0x28] sm:$0xff]  ;;  %v1319_v52 = vmax.f32 %v859_v37, 0.0 }
 0x104   :  { %2425 = vst.msk [vmem:[#allocation4 + $0x8] sm:$0xff] %vm21_vm0, %v1816_v28  ;;  %2521 = vrot.lane.b32.xlu0 %v9415_v27, %s8919_s30 }
 0x105   :  { %2077 = vrot.lane.b32.xlu1 %v2458_v18, %s8920_s10  ;;  %v1564_v34 = vld [vmem:[#allocation2 + $0x30] ss:$2 sm:$0xff]  ;;  %v1628_v35 = vld [vmem:[#allocation2 + $0x31] ss:$2 sm:$0xff]  ;;  %v8432_v38 = vpop.f32.mrb[20].mxu0  ;;  %v8823_v18 = vld [vmem:[%s12081_s3 + $0x28] sm:$0xff]  }
 0x106   :  { %v1562_v39 = vld [vmem:[#allocation2 + $0x20] ss:$2 sm:$0xff]  ;;  %v1626_v40 = vld [vmem:[#allocation2 + $0x21] ss:$2 sm:$0xff]  ;;  %v880_v41 = vadd.f32 %v8432_v38, %v9343_v7  ;;  %v871_v42 = vpop.f32.mrb[21].mxu0  ;;  %v1688_v43 = vmax.f32 %v1564_v34, %v1628_v35  ;;  %8091 = vmatpush3.bf16.msra.mxu1 %v8823_v18  ;;  %v8825_v35 = vld [vmem:[%s12081_s3 + $0x30] sm:$0xff]  }
 0x107   :  { %v872_v45 = vadd.f32 %v9343_v7, %v871_v42  ;;  %v8433_v46 = vpop.f32.mrb[22].mxu0  ;;  %v1687_v47 = vmax.f32 %v1562_v39, %v1626_v40  ;;  %8092 = vmatprep.subr.bf16.mxu1 %v8824_v31 }
 0x108   :  { %v1324_v49 = vmax.f32 %v880_v41, 0.0  ;;  %v883_v50 = vadd.f32 %v8433_v46, %v9343_v7  ;;  %v874_v51 = vpop.f32.mrb[23].mxu0  ;;  %2264 = vrot.lane.b32.xlu0 %v2200_v25, %s8921_s22  ;;  %1721 = vst.msk [vmem:[#allocation3 + $0x50] sm:$0xff] %vm21_vm0, %v1688_v43 }
 0x109   :  { %2266 = vrot.lane.b32.xlu1 %v2201_v24, %s8921_s22  ;;  %v1322_v53 = vmax.f32 %v872_v45, 0.0  ;;  %v875_v54 = vadd.f32 %v9343_v7, %v874_v51  ;;  %1720 = vst.msk [vmem:[#allocation3 + $0x48] sm:$0xff] %vm21_vm0, %v1687_v47  ;;  %v8826_v45 = vld [vmem:[%s12081_s3 + $0x78] sm:$0xff]  }
 0x10a   :  { %v1440_v55 = vmax.f32 %v1320_v32, %v1324_v49  ;;  %v1325_v56 = vmax.f32 %v883_v50, 0.0  ;;  %8093 = vmatpush3.bf16.msra.mxu1 %v8825_v35 }
 0x10b   :  { %v1438_v58 = vmax.f32 %v1318_v33, %v1322_v53  ;;  %v1323_v59 = vmax.f32 %v875_v54, 0.0  ;;  %8094 = vmatprep.subr.bf16.mxu1 %v8826_v45 }
 0x10c   :  { %1504 = vst.msk [vmem:[#allocation2 + $0x50] sm:$0xff] %vm21_vm0, %v1440_v55  ;;  %v1441_v61 = vmax.f32 %v1321_v36, %v1325_v56  ;;  %1882 = vrot.lane.b32.xlu0 %v1816_v28, %s8919_s30 }
 0x10d   :  { %1502 = vst.msk [vmem:[#allocation2 + $0x40] sm:$0xff] %vm21_vm0, %v1438_v58  ;;  %v1439_v62 = vmax.f32 %v1319_v52, %v1323_v59  ;;  %v8436_v63 = vpop.f32.mrb[24].mxu0 }
 0x10e   :  { %1505 = vst.msk [vmem:[#allocation2 + $0x58] sm:$0xff] %vm21_vm0, %v1441_v61  ;;  %v9459_v0 = vadd.f32 %v8436_v63, %v9343_v7  ;;  %v887_v1 = vpop.f32.mrb[25].mxu0  ;;  %8095 = vmatpush3.bf16.msra.mxu1 %v8827_v48 }
 0x10f   :  { %1503 = vst.msk [vmem:[#allocation2 + $0x48] sm:$0xff] %vm21_vm0, %v1439_v62  ;;  %v2843_v3 = vld [vmem:[#allocation3 + $0x50] sm:$0xff]  ;;  %v888_v4 = vadd.f32 %v9343_v7, %v887_v1  ;;  %v8437_v5 = vpop.f32.mrb[26].mxu0 }
 0x110   :  { %2908 = vrot.lane.b32.xlu1 %v2843_v3, %s8921_s22  ;;  %2075 = vrot.lane.b32.xlu0 %v9415_v27, %s8920_s10  ;;  %v9472_v8 = vld [vmem:[#allocation3 + $0x48] sm:$0xff]  ;;  %v899_v9 = vadd.f32 %v8437_v5, %v9343_v7  ;;  %v890_v10 = vpop.f32.mrb[27].mxu0  ;;  %2428 = vst.msk [vmem:[#allocation4 + $0x50] sm:$0xff] %vm21_vm0, %v2843_v3  ;;  %v2460_v11 = vld [vmem:[#allocation3 + $0x51] sm:$0xff]  ;;  %v1328_v15 = vmax.f32 %v9459_v0, 0.0 }
 0x111   :  { %v9476_v12 = vld [vmem:[#allocation3 + $0x47] sm:$0xff]  ;;  %v9478_v13 = vld [vmem:[#allocation3 + $0x4f] sm:$0xff]  ;;  %2427 = vst.msk [vmem:[#allocation4 + $0x38] sm:$0xff] %vm21_vm0, %v9472_v8  ;;  %v1326_v17 = vmax.f32 %v888_v4, 0.0  ;;  %v891_v23 = vadd.f32 %v9343_v7, %v890_v10 }
 0x112   :  { %v1754_v14 = vld [vmem:[#allocation3 + $0x47] sm:$0xff]  ;;  %1787 = vst.msk [vmem:[#allocation4 + $0x78] sm:$0xff] %vm21_vm0, %v9478_v13  ;;  %v1329_v19 = vmax.f32 %v899_v9, 0.0  ;;  %v3035_v25 = vld [vmem:[#allocation3 + $0x51] sm:$0xff] }
 0x113   :  { %1786 = vst.msk [vmem:[#allocation4 + $0x60] sm:$0xff] %vm21_vm0, %v1754_v14  ;;  %v3034_v20 = vld [vmem:[#allocation3 + $0x49] sm:$0xff]  ;;  %3067 = vst.msk [vmem:[#allocation4 + $0x28] sm:$0xff] %vm21_vm0, %v3035_v25  ;;  %v1327_v39 = vmax.f32 %v891_v23, 0.0 }
 0x114   :  { %2527 = vrot.lane.b32.xlu1 %v2460_v11, %s8919_s30  ;;  %2714 = vrot.lane.b32.xlu0 %v9476_v12, %s8920_s10  ;;  %3066 = vst.msk [vmem:[#allocation4 + $0x10] sm:$0xff] %vm21_vm0, %v3034_v20  ;;  %v2459_v40 = vld [vmem:[#allocation3 + $0x49] sm:$0xff] }
 0x115   :  { %v1568_v21 = vld [vmem:[#allocation2 + $0x50] ss:$2 sm:$0xff]  ;;  %v1632_v22 = vld [vmem:[#allocation2 + $0x51] ss:$2 sm:$0xff]  ;;  %v8440_v24 = vpop.f32.mrb[28].mxu0 }
 0x116   :  { %v1566_v26 = vld [vmem:[#allocation2 + $0x40] ss:$2 sm:$0xff]  ;;  %v1630_v27 = vld [vmem:[#allocation2 + $0x41] ss:$2 sm:$0xff]  ;;  %v912_v28 = vadd.f32 %v8440_v24, %v9343_v7  ;;  %v903_v29 = vpop.f32.mrb[29].mxu0  ;;  %v1690_v30 = vmax.f32 %v1568_v21, %v1632_v22 }
 0x117   :  { %v904_v32 = vadd.f32 %v9343_v7, %v903_v29  ;;  %v8441_v33 = vpop.f32.mrb[30].mxu0  ;;  %v1689_v34 = vmax.f32 %v1566_v26, %v1630_v27 }
 0x118   :  { %1888 = vrot.lane.b32.xlu1 %v2843_v3, %s8919_s30  ;;  %2906 = vrot.lane.b32.xlu0 %v9472_v8, %s8921_s22  ;;  %v1332_v36 = vmax.f32 %v912_v28, 0.0  ;;  %v915_v37 = vadd.f32 %v8441_v33, %v9343_v7  ;;  %v906_v38 = vpop.f32.mrb[31].mxu0  ;;  %1723 = vst.msk [vmem:[#allocation3 + $0x70] sm:$0xff] %vm21_vm0, %v1690_v30 }
 0x119   :  { %v1330_v41 = vmax.f32 %v904_v32, 0.0  ;;  %v907_v42 = vadd.f32 %v9343_v7, %v906_v38  ;;  %1722 = vst.msk [vmem:[#allocation3 + $0x68] sm:$0xff] %vm21_vm0, %v1689_v34 }
 0x11a   :  { %v1444_v43 = vmax.f32 %v1328_v15, %v1332_v36  ;;  %v1333_v44 = vmax.f32 %v915_v37, 0.0 }
 0x11b   :  { %v1442_v46 = vmax.f32 %v1326_v17, %v1330_v41  ;;  %v1331_v47 = vmax.f32 %v907_v42, 0.0 }
 0x11c   :  { %2081 = vrot.lane.b32.xlu1 %v2460_v11, %s8920_s10  ;;  %2525 = vrot.lane.b32.xlu0 %v2459_v40, %s8919_s30  ;;  %1508 = vst.msk [vmem:[#allocation2 + $0x70] sm:$0xff] %vm21_vm0, %v1444_v43  ;;  %v1445_v49 = vmax.f32 %v1329_v19, %v1333_v44 }
 0x11d   :  { %1506 = vst.msk [vmem:[#allocation2 + $0x60] sm:$0xff] %vm21_vm0, %v1442_v46  ;;  %v1443_v50 = vmax.f32 %v1327_v39, %v1331_v47  ;;  %v8444_v51 = vpop.f32.mrb[32].mxu0 }
 0x11e   :  { %1509 = vst.msk [vmem:[#allocation2 + $0x78] sm:$0xff] %vm21_vm0, %v1445_v49  ;;  %v919_v52 = vpop.f32.mrb[33].mxu0  ;;  %v928_v57 = vadd.f32 %v8444_v51, %v9343_v7 }
 0x11f   :  { %1507 = vst.msk [vmem:[#allocation2 + $0x68] sm:$0xff] %vm21_vm0, %v1443_v50  ;;  %v9525_v53 = vld [vmem:[#allocation3 + $0x70] sm:$0xff]  ;;  %v8445_v54 = vpop.f32.mrb[34].mxu0  ;;  %v920_v61 = vadd.f32 %v9343_v7, %v919_v52 }
 0x120   :  { %v3037_v55 = vld [vmem:[#allocation3 + $0x71] sm:$0xff]  ;;  %2716 = vrot.lane.b32.xlu1 %v9478_v13, %s8920_s10  ;;  %2268 = vrot.lane.b32.xlu0 %v9476_v12, %s8921_s22  ;;  %v922_v56 = vpop.f32.mrb[35].mxu0  ;;  %2430 = vst.msk [vmem:[#allocation4 + $0x80] sm:$0xff] %vm21_vm0, %v9525_v53  ;;  %v2397_v59 = vld [vmem:[#allocation3 + $0x68] sm:$0xff]  ;;  %v931_v63 = vadd.f32 %v8445_v54, %v9343_v7  ;;  %v1336_v2 = vmax.f32 %v928_v57, 0.0 }
 0x121   :  { %3069 = vst.msk [vmem:[#allocation4 + $0x58] sm:$0xff] %vm21_vm0, %v3037_v55  ;;  %v9535_v58 = vld [vmem:[#allocation3 + $0x6f] sm:$0xff]  ;;  %v1756_v60 = vld [vmem:[#allocation3 + $0x67] sm:$0xff]  ;;  %2429 = vst.msk [vmem:[#allocation4 + $0x68] sm:$0xff] %vm21_vm0, %v2397_v59  ;;  %v923_v3 = vadd.f32 %v9343_v7, %v922_v56  ;;  %v1334_v9 = vmax.f32 %v920_v61, 0.0 }
 0x122   :  { %1789 = vst.msk [vmem:[#allocation4 + $0xa8] sm:$0xff] %vm21_vm0, %v9535_v58  ;;  %1788 = vst.msk [vmem:[#allocation4 + $0x90] sm:$0xff] %vm21_vm0, %v1756_v60  ;;  %v3036_v62 = vld [vmem:[#allocation3 + $0x69] sm:$0xff]  ;;  %v1337_v14 = vmax.f32 %v931_v63, 0.0  ;;  %v2462_v22 = vld [vmem:[#allocation3 + $0x71] sm:$0xff] }
 0x123   :  { %3068 = vst.msk [vmem:[#allocation4 + $0x40] sm:$0xff] %vm21_vm0, %v3036_v62  ;;  %v1335_v19 = vmax.f32 %v923_v3, 0.0  ;;  %v2652_v25 = vld [vmem:[#allocation3 + $0x67] sm:$0xff] }
 0x124   :  { %2270 = vrot.lane.b32.xlu1 %v9478_v13, %s8921_s22  ;;  %1886 = vrot.lane.b32.xlu0 %v9472_v8, %s8919_s30  ;;  %v2844_v32 = vld [vmem:[#allocation3 + $0x68] sm:$0xff] }
 0x125   :  { %v1572_v0 = vld [vmem:[#allocation2 + $0x70] ss:$2 sm:$0xff]  ;;  %v1636_v1 = vld [vmem:[#allocation2 + $0x71] ss:$2 sm:$0xff]  ;;  %v8448_v4 = vpop.f32.mrb[36].mxu0 }
 0x126   :  { %v1570_v5 = vld [vmem:[#allocation2 + $0x60] ss:$2 sm:$0xff]  ;;  %v1634_v6 = vld [vmem:[#allocation2 + $0x61] ss:$2 sm:$0xff]  ;;  %v944_v10 = vadd.f32 %v8448_v4, %v9343_v7  ;;  %v935_v11 = vpop.f32.mrb[37].mxu0  ;;  %v1692_v12 = vmax.f32 %v1572_v0, %v1636_v1 }
 0x127   :  { %v936_v15 = vadd.f32 %v9343_v7, %v935_v11  ;;  %v8449_v13 = vpop.f32.mrb[38].mxu0  ;;  %v1691_v16 = vmax.f32 %v1570_v5, %v1634_v6  ;;  %v2461_v42 = vld [vmem:[#allocation3 + $0x69] sm:$0xff] }
 0x128   :  { %2912 = vrot.lane.b32.xlu1 %v9525_v53, %s8921_s22  ;;  %2079 = vrot.lane.b32.xlu0 %v2459_v40, %s8920_s10  ;;  %v1340_v8 = vmax.f32 %v944_v10, 0.0  ;;  %v947_v17 = vadd.f32 %v8449_v13, %v9343_v7  ;;  %v938_v18 = vpop.f32.mrb[39].mxu0  ;;  %1725 = vst.msk [vmem:[#allocation3 + $0x90] sm:$0xff] %vm21_vm0, %v1692_v12 }
 0x129   :  { %v1338_v20 = vmax.f32 %v936_v15, 0.0  ;;  %v939_v21 = vadd.f32 %v9343_v7, %v938_v18  ;;  %1724 = vst.msk [vmem:[#allocation3 + $0x88] sm:$0xff] %vm21_vm0, %v1691_v16 }
 0x12a   :  { %v1448_v23 = vmax.f32 %v1336_v2, %v1340_v8  ;;  %v1341_v24 = vmax.f32 %v947_v17, 0.0 }
 0x12b   :  { %v1446_v26 = vmax.f32 %v1334_v9, %v1338_v20  ;;  %v1339_v27 = vmax.f32 %v939_v21, 0.0 }
 0x12c   :  { %2531 = vrot.lane.b32.xlu1 %v2462_v22, %s8919_s30  ;;  %2718 = vrot.lane.b32.xlu0 %v2652_v25, %s8920_s10  ;;  %1512 = vst.msk [vmem:[#allocation2 + $0x90] sm:$0xff] %vm21_vm0, %v1448_v23  ;;  %v1449_v28 = vmax.f32 %v1337_v14, %v1341_v24 }
 0x12d   :  { %1510 = vst.msk [vmem:[#allocation2 + $0x80] sm:$0xff] %vm21_vm0, %v1446_v26  ;;  %v1447_v29 = vmax.f32 %v1335_v19, %v1339_v27  ;;  %v8452_v30 = vpop.f32.mrb[40].mxu0 }
 0x12e   :  { %1513 = vst.msk [vmem:[#allocation2 + $0x98] sm:$0xff] %vm21_vm0, %v1449_v28  ;;  %v951_v31 = vpop.f32.mrb[41].mxu0  ;;  %v960_v39 = vadd.f32 %v8452_v30, %v9343_v7 }
 0x12f   :  { %1511 = vst.msk [vmem:[#allocation2 + $0x88] sm:$0xff] %vm21_vm0, %v1447_v29  ;;  %v8453_v33 = vpop.f32.mrb[42].mxu0  ;;  %v2400_v34 = vld [vmem:[#allocation3 + $0x90] sm:$0xff]  ;;  %v952_v43 = vadd.f32 %v9343_v7, %v951_v31 }
 0x130   :  { %1892 = vrot.lane.b32.xlu1 %v9525_v53, %s8919_s30  ;;  %2910 = vrot.lane.b32.xlu0 %v2844_v32, %s8921_s22  ;;  %v954_v35 = vpop.f32.mrb[43].mxu0  ;;  %2432 = vst.msk [vmem:[#allocation4 + $0xb0] sm:$0xff] %vm21_vm0, %v2400_v34  ;;  %v9568_v36 = vld [vmem:[#allocation3 + $0x8f] sm:$0xff]  ;;  %v1758_v38 = vld [vmem:[#allocation3 + $0x87] sm:$0xff]  ;;  %v963_v44 = vadd.f32 %v8453_v33, %v9343_v7  ;;  %v1344_v51 = vmax.f32 %v960_v39, 0.0 }
 0x131   :  { %v2399_v37 = vld [vmem:[#allocation3 + $0x88] sm:$0xff]  ;;  %1791 = vst.msk [vmem:[#allocation4 + $0xd8] sm:$0xff] %vm21_vm0, %v9568_v36  ;;  %1790 = vst.msk [vmem:[#allocation4 + $0xc0] sm:$0xff] %vm21_vm0, %v1758_v38  ;;  %v3039_v41 = vld [vmem:[#allocation3 + $0x91] sm:$0xff]  ;;  %v955_v47 = vadd.f32 %v9343_v7, %v954_v35  ;;  %v1342_v55 = vmax.f32 %v952_v43, 0.0 }
 0x132   :  { %2431 = vst.msk [vmem:[#allocation4 + $0x98] sm:$0xff] %vm21_vm0, %v2399_v37  ;;  %v3038_v40 = vld [vmem:[#allocation3 + $0x89] sm:$0xff]  ;;  %3071 = vst.msk [vmem:[#allocation4 + $0x88] sm:$0xff] %vm21_vm0, %v3039_v41  ;;  %v1345_v60 = vmax.f32 %v963_v44, 0.0  ;;  %v2464_v21 = vld [vmem:[#allocation3 + $0x91] sm:$0xff] }
 0x133   :  { %3070 = vst.msk [vmem:[#allocation4 + $0x70] sm:$0xff] %vm21_vm0, %v3038_v40  ;;  %v1343_v0 = vmax.f32 %v955_v47, 0.0  ;;  %v2847_v14 = vld [vmem:[#allocation3 + $0x90] sm:$0xff]  ;;  %v2846_v35 = vld [vmem:[#allocation3 + $0x88] sm:$0xff] }
 0x134   :  { %2085 = vrot.lane.b32.xlu1 %v2462_v22, %s8920_s10  ;;  %2529 = vrot.lane.b32.xlu0 %v2461_v42, %s8919_s30  ;;  %v2654_v22 = vld [vmem:[#allocation3 + $0x87] sm:$0xff] }
 0x135   :  { %v1576_v45 = vld [vmem:[#allocation2 + $0x90] ss:$2 sm:$0xff]  ;;  %v1640_v46 = vld [vmem:[#allocation2 + $0x91] ss:$2 sm:$0xff]  ;;  %v8456_v48 = vpop.f32.mrb[44].mxu0 }
 0x136   :  { %v1574_v49 = vld [vmem:[#allocation2 + $0x80] ss:$2 sm:$0xff]  ;;  %v1638_v50 = vld [vmem:[#allocation2 + $0x81] ss:$2 sm:$0xff]  ;;  %v976_v52 = vadd.f32 %v8456_v48, %v9343_v7  ;;  %v967_v53 = vpop.f32.mrb[45].mxu0  ;;  %v1694_v54 = vmax.f32 %v1576_v45, %v1640_v46 }
 0x137   :  { %v968_v56 = vadd.f32 %v9343_v7, %v967_v53  ;;  %v8457_v57 = vpop.f32.mrb[46].mxu0  ;;  %v1693_v59 = vmax.f32 %v1574_v49, %v1638_v50  ;;  %v2463_v50 = vld [vmem:[#allocation3 + $0x89] sm:$0xff] }
 0x138   :  { %2720 = vrot.lane.b32.xlu1 %v9535_v58, %s8920_s10  ;;  %2272 = vrot.lane.b32.xlu0 %v2652_v25, %s8921_s22  ;;  %v1348_v61 = vmax.f32 %v976_v52, 0.0  ;;  %v979_v62 = vadd.f32 %v8457_v57, %v9343_v7  ;;  %v970_v63 = vpop.f32.mrb[47].mxu0  ;;  %1727 = vst.msk [vmem:[#allocation3 + $0xb0] sm:$0xff] %vm21_vm0, %v1694_v54 }
 0x139   :  { %v1346_v1 = vmax.f32 %v968_v56, 0.0  ;;  %v971_v2 = vadd.f32 %v9343_v7, %v970_v63  ;;  %1726 = vst.msk [vmem:[#allocation3 + $0xa8] sm:$0xff] %vm21_vm0, %v1693_v59  ;;  %v9638_v63 = vld [vmem:[%s12080_s2] ss:$0 sm:$0xff] }
 0x13a   :  { %v1452_v3 = vmax.f32 %v1344_v51, %v1348_v61  ;;  %v1349_v4 = vmax.f32 %v979_v62, 0.0 }
 0x13b   :  { %v1450_v5 = vmax.f32 %v1342_v55, %v1346_v1  ;;  %v1347_v6 = vmax.f32 %v971_v2, 0.0 }
 0x13c   :  { %2274 = vrot.lane.b32.xlu1 %v9535_v58, %s8921_s22  ;;  %1890 = vrot.lane.b32.xlu0 %v2844_v32, %s8919_s30  ;;  %1516 = vst.msk [vmem:[#allocation2 + $0xb0] sm:$0xff] %vm21_vm0, %v1452_v3  ;;  %v1453_v9 = vmax.f32 %v1345_v60, %v1349_v4 }
 0x13d   :  { %1514 = vst.msk [vmem:[#allocation2 + $0xa0] sm:$0xff] %vm21_vm0, %v1450_v5  ;;  %v1451_v10 = vmax.f32 %v1343_v0, %v1347_v6  ;;  %v8460_v11 = vpop.f32.mrb[48].mxu0 }
 0x13e   :  { %1517 = vst.msk [vmem:[#allocation2 + $0xb8] sm:$0xff] %vm21_vm0, %v1453_v9  ;;  %v983_v12 = vpop.f32.mrb[49].mxu0  ;;  %v992_v18 = vadd.f32 %v8460_v11, %v9343_v7 }
 0x13f   :  { %1515 = vst.msk [vmem:[#allocation2 + $0xa8] sm:$0xff] %vm21_vm0, %v1451_v10  ;;  %v8461_v15 = vpop.f32.mrb[50].mxu0  ;;  %v2402_v13 = vld [vmem:[#allocation3 + $0xb0] sm:$0xff]  ;;  %v984_v23 = vadd.f32 %v9343_v7, %v983_v12 }
 0x140   :  { %2916 = vrot.lane.b32.xlu1 %v2847_v14, %s8921_s22  ;;  %2083 = vrot.lane.b32.xlu0 %v2461_v42, %s8920_s10  ;;  %v986_v58 = vpop.f32.mrb[51].mxu0  ;;  %2434 = vst.msk [vmem:[#allocation4 + $0xe0] sm:$0xff] %vm21_vm0, %v2402_v13  ;;  %v9601_v16 = vld [vmem:[#allocation3 + $0xaf] sm:$0xff]  ;;  %v1760_v17 = vld [vmem:[#allocation3 + $0xa7] sm:$0xff]  ;;  %v995_v24 = vadd.f32 %v8461_v15, %v9343_v7  ;;  %v1352_v31 = vmax.f32 %v992_v18, 0.0 }
 0x141   :  { %v2401_v8 = vld [vmem:[#allocation3 + $0xa8] sm:$0xff]  ;;  %1793 = vst.msk [vmem:[#allocation4 + $0x108] sm:$0xff] %vm21_vm0, %v9601_v16  ;;  %1792 = vst.msk [vmem:[#allocation4 + $0xf0] sm:$0xff] %vm21_vm0, %v1760_v17  ;;  %v3041_v20 = vld [vmem:[#allocation3 + $0xb1] sm:$0xff]  ;;  %v987_v27 = vadd.f32 %v9343_v7, %v986_v58  ;;  %v1350_v37 = vmax.f32 %v984_v23, 0.0 }
 0x142   :  { %2433 = vst.msk [vmem:[#allocation4 + $0xc8] sm:$0xff] %vm21_vm0, %v2401_v8  ;;  %v3040_v19 = vld [vmem:[#allocation3 + $0xa9] sm:$0xff]  ;;  %3073 = vst.msk [vmem:[#allocation4 + $0xb8] sm:$0xff] %vm21_vm0, %v3041_v20  ;;  %v1353_v41 = vmax.f32 %v995_v24, 0.0 }
 0x143   :  { %3072 = vst.msk [vmem:[#allocation4 + $0xa0] sm:$0xff] %vm21_vm0, %v3040_v19  ;;  %v1351_v45 = vmax.f32 %v987_v27, 0.0  ;;  %v2849_v8 = vld [vmem:[#allocation3 + $0xb0] sm:$0xff] }
 0x144   :  { %2535 = vrot.lane.b32.xlu1 %v2464_v21, %s8919_s30  ;;  %2722 = vrot.lane.b32.xlu0 %v2654_v22, %s8920_s10 }
 0x145   :  { %v1580_v25 = vld [vmem:[#allocation2 + $0xb0] ss:$2 sm:$0xff]  ;;  %v1644_v26 = vld [vmem:[#allocation2 + $0xb1] ss:$2 sm:$0xff]  ;;  %v8464_v28 = vpop.f32.mrb[52].mxu0 }
 0x146   :  { %v1578_v29 = vld [vmem:[#allocation2 + $0xa0] ss:$2 sm:$0xff]  ;;  %v1642_v30 = vld [vmem:[#allocation2 + $0xa1] ss:$2 sm:$0xff]  ;;  %v1008_v32 = vadd.f32 %v8464_v28, %v9343_v7  ;;  %v999_v33 = vpop.f32.mrb[53].mxu0  ;;  %v1696_v34 = vmax.f32 %v1580_v25, %v1644_v26 }
 0x147   :  { %v1000_v38 = vadd.f32 %v9343_v7, %v999_v33  ;;  %v8465_v39 = vpop.f32.mrb[54].mxu0  ;;  %v1695_v40 = vmax.f32 %v1578_v29, %v1642_v30  ;;  %v2466_v29 = vld [vmem:[#allocation3 + $0xb1] sm:$0xff]  ;;  %v2656_v30 = vld [vmem:[#allocation3 + $0xa7] sm:$0xff] }
 0x148   :  { %1896 = vrot.lane.b32.xlu1 %v2847_v14, %s8919_s30  ;;  %2914 = vrot.lane.b32.xlu0 %v2846_v35, %s8921_s22  ;;  %v1356_v42 = vmax.f32 %v1008_v32, 0.0  ;;  %v1011_v43 = vadd.f32 %v8465_v39, %v9343_v7  ;;  %v1002_v44 = vpop.f32.mrb[55].mxu0  ;;  %1729 = vst.msk [vmem:[#allocation3 + $0xd0] sm:$0xff] %vm21_vm0, %v1696_v34 }
 0x149   :  { %v1354_v46 = vmax.f32 %v1000_v38, 0.0  ;;  %v1003_v47 = vadd.f32 %v9343_v7, %v1002_v44  ;;  %1728 = vst.msk [vmem:[#allocation3 + $0xc8] sm:$0xff] %vm21_vm0, %v1695_v40  ;;  %v2848_v38 = vld [vmem:[#allocation3 + $0xa8] sm:$0xff] }
 0x14a   :  { %v1456_v48 = vmax.f32 %v1352_v31, %v1356_v42  ;;  %v1357_v49 = vmax.f32 %v1011_v43, 0.0 }
 0x14b   :  { %v1454_v51 = vmax.f32 %v1350_v37, %v1354_v46  ;;  %v1355_v52 = vmax.f32 %v1003_v47, 0.0 }
 0x14c   :  { %2089 = vrot.lane.b32.xlu1 %v2464_v21, %s8920_s10  ;;  %2533 = vrot.lane.b32.xlu0 %v2463_v50, %s8919_s30  ;;  %1520 = vst.msk [vmem:[#allocation2 + $0xd0] sm:$0xff] %vm21_vm0, %v1456_v48  ;;  %v1457_v53 = vmax.f32 %v1353_v41, %v1357_v49  ;;  %v2465_v48 = vld [vmem:[#allocation3 + $0xa9] sm:$0xff] }
 0x14d   :  { %1518 = vst.msk [vmem:[#allocation2 + $0xc0] sm:$0xff] %vm21_vm0, %v1454_v51  ;;  %v1455_v54 = vmax.f32 %v1351_v45, %v1355_v52  ;;  %v8468_v55 = vpop.f32.mrb[56].mxu0 }
 0x14e   :  { %1521 = vst.msk [vmem:[#allocation2 + $0xd8] sm:$0xff] %vm21_vm0, %v1457_v53  ;;  %v1015_v7 = vpop.f32.mrb[57].mxu0  ;;  %v1024_v0 = vadd.f32 %v9638_v63, %v8468_v55 }
 0x14f   :  { %1519 = vst.msk [vmem:[#allocation2 + $0xc8] sm:$0xff] %vm21_vm0, %v1455_v54  ;;  %v8469_v56 = vpop.f32.mrb[58].mxu0  ;;  %v2404_v57 = vld [vmem:[#allocation3 + $0xd0] sm:$0xff]  ;;  %v1016_v3 = vadd.f32 %v9638_v63, %v1015_v7 }
 0x150   :  { %2724 = vrot.lane.b32.xlu1 %v9568_v36, %s8920_s10  ;;  %2276 = vrot.lane.b32.xlu0 %v2654_v22, %s8921_s22  ;;  %v1018_v59 = vpop.f32.mrb[59].mxu0  ;;  %2436 = vst.msk [vmem:[#allocation4 + $0x110] sm:$0xff] %vm21_vm0, %v2404_v57  ;;  %v9633_v60 = vld [vmem:[#allocation3 + $0xcf] sm:$0xff]  ;;  %v1762_v62 = vld [vmem:[#allocation3 + $0xc7] sm:$0xff]  ;;  %v1027_v4 = vadd.f32 %v9638_v63, %v8469_v56  ;;  %v1360_v14 = vmax.f32 %v1024_v0, 0.0 }
 0x151   :  { %v2403_v61 = vld [vmem:[#allocation3 + $0xc8] sm:$0xff]  ;;  %1795 = vst.msk [vmem:[#allocation4 + $0x138] sm:$0xff] %vm21_vm0, %v9633_v60  ;;  %1794 = vst.msk [vmem:[#allocation4 + $0x120] sm:$0xff] %vm21_vm0, %v1762_v62  ;;  %v3043_v2 = vld [vmem:[#allocation3 + $0xd1] sm:$0xff]  ;;  %v1019_v9 = vadd.f32 %v9638_v63, %v1018_v59  ;;  %v1358_v17 = vmax.f32 %v1016_v3, 0.0 }
 0x152   :  { %2435 = vst.msk [vmem:[#allocation4 + $0xf8] sm:$0xff] %vm21_vm0, %v2403_v61  ;;  %v3042_v1 = vld [vmem:[#allocation3 + $0xc9] sm:$0xff]  ;;  %3075 = vst.msk [vmem:[#allocation4 + $0xe8] sm:$0xff] %vm21_vm0, %v3043_v2  ;;  %v1361_v20 = vmax.f32 %v1027_v4, 0.0 }
 0x153   :  { %3074 = vst.msk [vmem:[#allocation4 + $0xd0] sm:$0xff] %vm21_vm0, %v3042_v1  ;;  %v1359_v24 = vmax.f32 %v1019_v9, 0.0 }
 0x154   :  { %2278 = vrot.lane.b32.xlu1 %v9568_v36, %s8921_s22  ;;  %1894 = vrot.lane.b32.xlu0 %v2846_v35, %s8919_s30 }
 0x155   :  { %v1584_v5 = vld [vmem:[#allocation2 + $0xd0] ss:$2 sm:$0xff]  ;;  %v1648_v6 = vld [vmem:[#allocation2 + $0xd1] ss:$2 sm:$0xff]  ;;  %v8472_v10 = vpop.f32.mrb[60].mxu0 }
 0x156   :  { %v1582_v11 = vld [vmem:[#allocation2 + $0xc0] ss:$2 sm:$0xff]  ;;  %v1646_v12 = vld [vmem:[#allocation2 + $0xc1] ss:$2 sm:$0xff]  ;;  %v1040_v15 = vadd.f32 %v9638_v63, %v8472_v10  ;;  %v1031_v13 = vpop.f32.mrb[61].mxu0  ;;  %v1698_v58 = vmax.f32 %v1584_v5, %v1648_v6 }
 0x157   :  { %v1032_v36 = vadd.f32 %v9638_v63, %v1031_v13  ;;  %v8473_v18 = vpop.f32.mrb[62].mxu0  ;;  %v1697_v19 = vmax.f32 %v1582_v11, %v1646_v12 }
 0x158   :  { %2920 = vrot.lane.b32.xlu1 %v2849_v8, %s8921_s22  ;;  %2087 = vrot.lane.b32.xlu0 %v2463_v50, %s8920_s10  ;;  %v1364_v21 = vmax.f32 %v1040_v15, 0.0  ;;  %v1043_v22 = vadd.f32 %v9638_v63, %v8473_v18  ;;  %v1034_v23 = vpop.f32.mrb[63].mxu0  ;;  %1731 = vst.msk [vmem:[#allocation3 + $0xf0] sm:$0xff] %vm21_vm0, %v1698_v58  ;;  %v9696_v58 = vpop.permute.xlu0 %2774 }
 0x159   :  { %v1362_v25 = vmax.f32 %v1032_v36, 0.0  ;;  %v1035_v26 = vadd.f32 %v9638_v63, %v1034_v23  ;;  %1730 = vst.msk [vmem:[#allocation3 + $0xe8] sm:$0xff] %vm21_vm0, %v1697_v19 }
 0x15a   :  { %v1460_v27 = vmax.f32 %v1360_v14, %v1364_v21  ;;  %v1365_v28 = vmax.f32 %v1043_v22, 0.0 }
 0x15b   :  { %v1458_v31 = vmax.f32 %v1358_v17, %v1362_v25  ;;  %v1363_v32 = vmax.f32 %v1035_v26, 0.0 }
 0x15c   :  { %2539 = vrot.lane.b32.xlu1 %v2466_v29, %s8919_s30  ;;  %2726 = vrot.lane.b32.xlu0 %v2656_v30, %s8920_s10  ;;  %1524 = vst.msk [vmem:[#allocation2 + $0xf0] sm:$0xff] %vm21_vm0, %v1460_v27  ;;  %v1461_v33 = vmax.f32 %v1361_v20, %v1365_v28  ;;  %v2851_v20 = vld [vmem:[#allocation3 + $0xd0] sm:$0xff] }
 0x15d   :  { %1522 = vst.msk [vmem:[#allocation2 + $0xe0] sm:$0xff] %vm21_vm0, %v1458_v31  ;;  %v1459_v34 = vmax.f32 %v1359_v24, %v1363_v32  ;;  %v8476_v35 = vpop.f32.mrb[64].mxu0  ;;  %v2468_v31 = vld [vmem:[#allocation3 + $0xd1] sm:$0xff]  ;;  %v2658_v32 = vld [vmem:[#allocation3 + $0xc7] sm:$0xff] }
 0x15e   :  { %1525 = vst.msk [vmem:[#allocation2 + $0xf8] sm:$0xff] %vm21_vm0, %v1461_v33  ;;  %v1047_v37 = vpop.f32.mrb[65].mxu0  ;;  %v1056_v45 = vadd.f32 %v9638_v63, %v8476_v35 }
 0x15f   :  { %1523 = vst.msk [vmem:[#allocation2 + $0xe8] sm:$0xff] %vm21_vm0, %v1459_v34  ;;  %v8477_v39 = vpop.f32.mrb[66].mxu0  ;;  %v2406_v40 = vld [vmem:[#allocation3 + $0xf0] sm:$0xff]  ;;  %v1048_v49 = vadd.f32 %v9638_v63, %v1047_v37 }
 0x160   :  { %1900 = vrot.lane.b32.xlu1 %v2849_v8, %s8919_s30  ;;  %2918 = vrot.lane.b32.xlu0 %v2848_v38, %s8921_s22  ;;  %v1050_v41 = vpop.f32.mrb[67].mxu0  ;;  %2438 = vst.msk [vmem:[#allocation4 + $0x140] sm:$0xff] %vm21_vm0, %v2406_v40  ;;  %v9670_v42 = vld [vmem:[#allocation3 + $0xef] sm:$0xff]  ;;  %v1764_v44 = vld [vmem:[#allocation3 + $0xe7] sm:$0xff]  ;;  %v1059_v50 = vadd.f32 %v9638_v63, %v8477_v39  ;;  %v1368_v56 = vmax.f32 %v1056_v45, 0.0  ;;  %v9698_v8 = vpop.permute.xlu1 %2776 }
 0x161   :  { %v2405_v43 = vld [vmem:[#allocation3 + $0xe8] sm:$0xff]  ;;  %1797 = vst.msk [vmem:[#allocation4 + $0x168] sm:$0xff] %vm21_vm0, %v9670_v42  ;;  %1796 = vst.msk [vmem:[#allocation4 + $0x150] sm:$0xff] %vm21_vm0, %v1764_v44  ;;  %v3045_v47 = vld [vmem:[#allocation3 + $0xf1] sm:$0xff]  ;;  %v1051_v53 = vadd.f32 %v9638_v63, %v1050_v41  ;;  %v1366_v62 = vmax.f32 %v1048_v49, 0.0 }
 0x162   :  { %2437 = vst.msk [vmem:[#allocation4 + $0x128] sm:$0xff] %vm21_vm0, %v2405_v43  ;;  %v3044_v46 = vld [vmem:[#allocation3 + $0xe9] sm:$0xff]  ;;  %3077 = vst.msk [vmem:[#allocation4 + $0x118] sm:$0xff] %vm21_vm0, %v3045_v47  ;;  %v1369_v3 = vmax.f32 %v1059_v50, 0.0 }
 0x163   :  { %3076 = vst.msk [vmem:[#allocation4 + $0x100] sm:$0xff] %vm21_vm0, %v3044_v46  ;;  %v1367_v9 = vmax.f32 %v1051_v53, 0.0 }
 0x164   :  { %2093 = vrot.lane.b32.xlu1 %v2466_v29, %s8920_s10  ;;  %2537 = vrot.lane.b32.xlu0 %v2465_v48, %s8919_s30 }
 0x165   :  { %v1588_v51 = vld [vmem:[#allocation2 + $0xf0] ss:$2 sm:$0xff]  ;;  %v1652_v52 = vld [vmem:[#allocation2 + $0xf1] ss:$2 sm:$0xff]  ;;  %v8480_v54 = vpop.f32.mrb[68].mxu0 }
 0x166   :  { %v1586_v55 = vld [vmem:[#allocation2 + $0xe0] ss:$2 sm:$0xff]  ;;  %v1650_v7 = vld [vmem:[#allocation2 + $0xe1] ss:$2 sm:$0xff]  ;;  %v1072_v57 = vadd.f32 %v9638_v63, %v8480_v54  ;;  %v1063_v59 = vpop.f32.mrb[69].mxu0  ;;  %v1700_v61 = vmax.f32 %v1588_v51, %v1652_v52 }
 0x167   :  { %v1064_v0 = vadd.f32 %v9638_v63, %v1063_v59  ;;  %v8481_v1 = vpop.f32.mrb[70].mxu0  ;;  %v1699_v2 = vmax.f32 %v1586_v55, %v1650_v7 }
 0x168   :  { %2728 = vrot.lane.b32.xlu1 %v9601_v16, %s8920_s10  ;;  %2280 = vrot.lane.b32.xlu0 %v2656_v30, %s8921_s22  ;;  %v1372_v4 = vmax.f32 %v1072_v57, 0.0  ;;  %v1075_v5 = vadd.f32 %v9638_v63, %v8481_v1  ;;  %v1066_v6 = vpop.f32.mrb[71].mxu0  ;;  %1733 = vst.msk [vmem:[#allocation3 + $0x110] sm:$0xff] %vm21_vm0, %v1700_v61 }
 0x169   :  { %v1370_v10 = vmax.f32 %v1064_v0, 0.0  ;;  %v1067_v11 = vadd.f32 %v9638_v63, %v1066_v6  ;;  %1732 = vst.msk [vmem:[#allocation3 + $0x108] sm:$0xff] %vm21_vm0, %v1699_v2  ;;  %v2467_v2 = vld [vmem:[#allocation3 + $0xc9] sm:$0xff] }
 0x16a   :  { %v1464_v12 = vmax.f32 %v1368_v56, %v1372_v4  ;;  %v1373_v14 = vmax.f32 %v1075_v5, 0.0 }
 0x16b   :  { %v1462_v15 = vmax.f32 %v1366_v62, %v1370_v10  ;;  %v1371_v13 = vmax.f32 %v1067_v11, 0.0 }
 0x16c   :  { %2282 = vrot.lane.b32.xlu1 %v9601_v16, %s8921_s22  ;;  %1898 = vrot.lane.b32.xlu0 %v2848_v38, %s8919_s30  ;;  %1528 = vst.msk [vmem:[#allocation2 + $0x110] sm:$0xff] %vm21_vm0, %v1464_v12  ;;  %v1465_v17 = vmax.f32 %v1369_v3, %v1373_v14 }
 0x16d   :  { %1526 = vst.msk [vmem:[#allocation2 + $0x100] sm:$0xff] %vm21_vm0, %v1462_v15  ;;  %v1463_v36 = vmax.f32 %v1367_v9, %v1371_v13  ;;  %v8484_v18 = vpop.f32.mrb[72].mxu0 }
 0x16e   :  { %1529 = vst.msk [vmem:[#allocation2 + $0x118] sm:$0xff] %vm21_vm0, %v1465_v17  ;;  %v1079_v19 = vpop.f32.mrb[73].mxu0  ;;  %v1088_v29 = vadd.f32 %v9638_v63, %v8484_v18 }
 0x16f   :  { %1527 = vst.msk [vmem:[#allocation2 + $0x108] sm:$0xff] %vm21_vm0, %v1463_v36  ;;  %v9704_v16 = vld [vmem:[#allocation3 + $0x110] sm:$0xff]  ;;  %v8485_v21 = vpop.f32.mrb[74].mxu0  ;;  %v1080_v33 = vadd.f32 %v9638_v63, %v1079_v19 }
 0x170   :  { %v3047_v22 = vld [vmem:[#allocation3 + $0x111] sm:$0xff]  ;;  %2924 = vrot.lane.b32.xlu1 %v2851_v20, %s8921_s22  ;;  %2091 = vrot.lane.b32.xlu0 %v2465_v48, %s8920_s10  ;;  %v1082_v23 = vpop.f32.mrb[75].mxu0  ;;  %2440 = vst.msk [vmem:[#allocation4 + $0x170] sm:$0xff] %vm21_vm0, %v9704_v16  ;;  %v2407_v25 = vld [vmem:[#allocation3 + $0x108] sm:$0xff]  ;;  %v1091_v37 = vadd.f32 %v9638_v63, %v8485_v21  ;;  %v1376_v45 = vmax.f32 %v1088_v29, 0.0 }
 0x171   :  { %3079 = vst.msk [vmem:[#allocation4 + $0x148] sm:$0xff] %vm21_vm0, %v3047_v22  ;;  %v9711_v24 = vld [vmem:[#allocation3 + $0x10f] sm:$0xff]  ;;  %v1766_v26 = vld [vmem:[#allocation3 + $0x107] sm:$0xff]  ;;  %2439 = vst.msk [vmem:[#allocation4 + $0x158] sm:$0xff] %vm21_vm0, %v2407_v25  ;;  %v1083_v46 = vadd.f32 %v9638_v63, %v1082_v23  ;;  %v1374_v51 = vmax.f32 %v1080_v33, 0.0 }
 0x172   :  { %v2524_v27 = vpop.permute.xlu0 %2523  ;;  %1799 = vst.msk [vmem:[#allocation4 + $0x198] sm:$0xff] %vm21_vm0, %v9711_v24  ;;  %1798 = vst.msk [vmem:[#allocation4 + $0x180] sm:$0xff] %vm21_vm0, %v1766_v26  ;;  %v3046_v30 = vld [vmem:[#allocation3 + $0x109] sm:$0xff]  ;;  %v1377_v55 = vmax.f32 %v1091_v37, 0.0 }
 0x173   :  { %v1885_v28 = vpop.permute.xlu1 %1884  ;;  %2618 = vst.msk [vmem:[#allocation4 + $0x20] sm:$0xff] %vm1974_vm1, %v2524_v27  ;;  %v2850_v48 = vld [vmem:[#allocation3 + $0xc8] sm:$0xff]  ;;  %v1375_v61 = vmax.f32 %v1083_v46, 0.0 }
 0x174   :  { %1978 = vst.msk [vmem:[#allocation4 + $0x48] sm:$0xff] %vm1974_vm1, %v1885_v28  ;;  %2543 = vrot.lane.b32.xlu1 %v2468_v31, %s8919_s30  ;;  %2730 = vrot.lane.b32.xlu0 %v2658_v32, %s8920_s10 }
 0x175   :  { %3078 = vst.msk [vmem:[#allocation4 + $0x130] sm:$0xff] %vm21_vm0, %v3046_v30  ;;  %v1592_v34 = vld [vmem:[#allocation2 + $0x110] ss:$2 sm:$0xff]  ;;  %v1656_v35 = vld [vmem:[#allocation2 + $0x111] ss:$2 sm:$0xff]  ;;  %v8488_v38 = vpop.f32.mrb[76].mxu0 }
 0x176   :  { %v2522_v40 = vpop.permute.xlu0 %2521  ;;  %v1702_v41 = vmax.f32 %v1592_v34, %v1656_v35  ;;  %v1590_v43 = vld [vmem:[#allocation2 + $0x100] ss:$2 sm:$0xff]  ;;  %v1654_v44 = vld [vmem:[#allocation2 + $0x101] ss:$2 sm:$0xff]  ;;  %v1104_v47 = vadd.f32 %v9638_v63, %v8488_v38  ;;  %v1095_v50 = vpop.f32.mrb[77].mxu0 }
 0x177   :  { %v2078_v39 = vpop.permute.xlu1 %2077  ;;  %2617 = vst.msk [vmem:[#allocation4 + $0x8] sm:$0xff] %vm1974_vm1, %v2522_v40  ;;  %v1701_v49 = vmax.f32 %v1590_v43, %v1654_v44  ;;  %v1096_v53 = vadd.f32 %v9638_v63, %v1095_v50  ;;  %v8489_v54 = vpop.f32.mrb[78].mxu0 }
 0x178   :  { %2171 = vst.msk [vmem:[#allocation4 + $0x48] sm:$0xff] %vm2167_vm2, %v2078_v39  ;;  %1904 = vrot.lane.b32.xlu1 %v2851_v20, %s8919_s30  ;;  %2922 = vrot.lane.b32.xlu0 %v2850_v48, %s8921_s22  ;;  %v1380_v52 = vmax.f32 %v1104_v47, 0.0  ;;  %v1107_v7 = vadd.f32 %v9638_v63, %v8489_v54  ;;  %v1098_v56 = vpop.f32.mrb[79].mxu0 }
 0x179   :  { %1735 = vst.msk [vmem:[#allocation3 + $0x130] sm:$0xff] %vm21_vm0, %v1702_v41  ;;  %1734 = vst.msk [vmem:[#allocation3 + $0x128] sm:$0xff] %vm21_vm0, %v1701_v49  ;;  %v1378_v0 = vmax.f32 %v1096_v53, 0.0  ;;  %v1099_v1 = vadd.f32 %v9638_v63, %v1098_v56 }
 0x17a   :  { %v2265_v59 = vpop.permute.xlu0 %2264  ;;  %v1468_v62 = vmax.f32 %v1376_v45, %v1380_v52  ;;  %v1381_v3 = vmax.f32 %v1107_v7, 0.0  ;;  %v2660_v7 = vld [vmem:[#allocation3 + $0xe7] sm:$0xff] }
 0x17b   :  { %v2267_v57 = vpop.permute.xlu1 %2266  ;;  %2361 = vst.msk [vmem:[#allocation4] sm:$0xff] %vm2360_vm3, %v2265_v59  ;;  %v1466_v4 = vmax.f32 %v1374_v51, %v1378_v0  ;;  %v1379_v5 = vmax.f32 %v1099_v1, 0.0 }
 0x17c   :  { %2362 = vst.msk [vmem:[#allocation4 + $0x18] sm:$0xff] %vm2360_vm3, %v2267_v57  ;;  %2097 = vrot.lane.b32.xlu1 %v2468_v31, %s8920_s10  ;;  %2541 = vrot.lane.b32.xlu0 %v2467_v2, %s8919_s30  ;;  %v1469_v6 = vmax.f32 %v1377_v55, %v1381_v3  ;;  %v2470_v55 = vld [vmem:[#allocation3 + $0xf1] sm:$0xff]  ;;  %v9788_v3 = vld [vmem:[#allocation3 + $0xe8] sm:$0xff] }
 0x17d   :  { %1532 = vst.msk [vmem:[#allocation2 + $0x130] sm:$0xff] %vm21_vm0, %v1468_v62  ;;  %v8492_v9 = vpop.f32.mrb[80].mxu0  ;;  %1530 = vst.msk [vmem:[#allocation2 + $0x120] sm:$0xff] %vm21_vm0, %v1466_v4  ;;  %v1467_v11 = vmax.f32 %v1375_v61, %v1379_v5 }
 0x17e   :  { %v1883_v10 = vpop.permute.xlu0 %1882  ;;  %v1111_v12 = vpop.f32.mrb[81].mxu0  ;;  %1533 = vst.msk [vmem:[#allocation2 + $0x138] sm:$0xff] %vm21_vm0, %v1469_v6  ;;  %v1120_v22 = vadd.f32 %v9638_v63, %v8492_v9 }
 0x17f   :  { %1977 = vst.msk [vmem:[#allocation4 + $0x30] sm:$0xff] %vm1974_vm1, %v1883_v10  ;;  %v8493_v15 = vpop.f32.mrb[82].mxu0  ;;  %v1112_v25 = vadd.f32 %v9638_v63, %v1111_v12 }
 0x180   :  { %v9744_v14 = vld [vmem:[#allocation3 + $0x130] sm:$0xff]  ;;  %2732 = vrot.lane.b32.xlu1 %v9633_v60, %s8920_s10  ;;  %2284 = vrot.lane.b32.xlu0 %v2658_v32, %s8921_s22  ;;  %1531 = vst.msk [vmem:[#allocation2 + $0x128] sm:$0xff] %vm21_vm0, %v1467_v11  ;;  %v1114_v17 = vpop.f32.mrb[83].mxu0  ;;  %v2409_v18 = vld [vmem:[#allocation3 + $0x128] sm:$0xff]  ;;  %v1123_v26 = vadd.f32 %v9638_v63, %v8493_v15  ;;  %v1384_v32 = vmax.f32 %v1120_v22, 0.0 }
 0x181   :  { %v3049_v13 = vld [vmem:[#allocation3 + $0x131] sm:$0xff]  ;;  %2442 = vst.msk [vmem:[#allocation4 + $0x1a0] sm:$0xff] %vm21_vm0, %v9744_v14  ;;  %v1768_v19 = vld [vmem:[#allocation3 + $0x127] sm:$0xff]  ;;  %2441 = vst.msk [vmem:[#allocation4 + $0x188] sm:$0xff] %vm21_vm0, %v2409_v18  ;;  %v1115_v33 = vadd.f32 %v9638_v63, %v1114_v17  ;;  %v1382_v41 = vmax.f32 %v1112_v25, 0.0 }
 0x182   :  { %3081 = vst.msk [vmem:[#allocation4 + $0x178] sm:$0xff] %vm21_vm0, %v3049_v13  ;;  %v9753_v36 = vld [vmem:[#allocation3 + $0x12f] sm:$0xff]  ;;  %v9755_v20 = vpop.permute.xlu1 %2908  ;;  %v2076_v21 = vpop.permute.xlu0 %2075  ;;  %1800 = vst.msk [vmem:[#allocation4 + $0x1b0] sm:$0xff] %vm21_vm0, %v1768_v19  ;;  %v1385_v46 = vmax.f32 %v1123_v26, 0.0 }
 0x183   :  { %1801 = vst.msk [vmem:[#allocation4 + $0x1c8] sm:$0xff] %vm21_vm0, %v9753_v36  ;;  %v3048_v23 = vld [vmem:[#allocation3 + $0x129] sm:$0xff]  ;;  %v1383_v51 = vmax.f32 %v1115_v33, 0.0 }
 0x184   :  { %2170 = vst.msk [vmem:[#allocation4 + $0x30] sm:$0xff] %vm2167_vm2, %v2076_v21  ;;  %2286 = vrot.lane.b32.xlu1 %v9633_v60, %s8921_s22  ;;  %1902 = vrot.lane.b32.xlu0 %v2850_v48, %s8919_s30  ;;  %v2853_v60 = vld [vmem:[#allocation3 + $0xf0] sm:$0xff] }
 0x185   :  { %3080 = vst.msk [vmem:[#allocation4 + $0x160] sm:$0xff] %vm21_vm0, %v3048_v23  ;;  %v8496_v27 = vpop.f32.mrb[84].mxu0  ;;  %v1596_v30 = vld [vmem:[#allocation2 + $0x130] ss:$2 sm:$0xff]  ;;  %v1660_v31 = vld [vmem:[#allocation2 + $0x131] ss:$2 sm:$0xff] }
 0x186   :  { %v2528_v28 = vpop.permute.xlu1 %2527  ;;  %v2715_v29 = vpop.permute.xlu0 %2714  ;;  %v1136_v34 = vadd.f32 %v9638_v63, %v8496_v27  ;;  %v1704_v35 = vmax.f32 %v1596_v30, %v1660_v31  ;;  %v9805_v18 = vld [vmem:[#allocation3 + $0xe9] sm:$0xff] }
 0x187   :  { %2620 = vst.msk [vmem:[#allocation4 + $0x50] sm:$0xff] %vm1974_vm1, %v2528_v28  ;;  %v1594_v37 = vld [vmem:[#allocation2 + $0x120] ss:$2 sm:$0xff]  ;;  %v1658_v38 = vld [vmem:[#allocation2 + $0x121] ss:$2 sm:$0xff]  ;;  %v1127_v39 = vpop.f32.mrb[85].mxu0 }
 0x188   :  { %2810 = vst.msk [vmem:[#allocation4 + $0x8] sm:$0xff] %vm2167_vm2, %v2715_v29  ;;  %2928 = vrot.lane.b32.xlu1 %v2853_v60, %s8921_s22  ;;  %2095 = vrot.lane.b32.xlu0 %v2467_v2, %s8920_s10  ;;  %v1703_v40 = vmax.f32 %v1594_v37, %v1658_v38  ;;  %v1388_v43 = vmax.f32 %v1136_v34, 0.0  ;;  %v1128_v44 = vadd.f32 %v9638_v63, %v1127_v39  ;;  %v8497_v45 = vpop.f32.mrb[86].mxu0 }
 0x189   :  { %1737 = vst.msk [vmem:[#allocation3 + $0x150] sm:$0xff] %vm21_vm0, %v1704_v35  ;;  %v1139_v47 = vadd.f32 %v9638_v63, %v8497_v45  ;;  %v1130_v48 = vpop.f32.mrb[87].mxu0 }
 0x18a   :  { %v1889_v49 = vpop.permute.xlu1 %1888  ;;  %v2907_v50 = vpop.permute.xlu0 %2906  ;;  %1736 = vst.msk [vmem:[#allocation3 + $0x148] sm:$0xff] %vm21_vm0, %v1703_v40  ;;  %v1472_v52 = vmax.f32 %v1384_v32, %v1388_v43  ;;  %v1386_v53 = vmax.f32 %v1128_v44, 0.0  ;;  %v1131_v54 = vadd.f32 %v9638_v63, %v1130_v48  ;;  %v3101_v48 = vld [vmem:[#allocation4 + $0x18] sm:$0xff] }
 0x18b   :  { %1980 = vst.msk [vmem:[#allocation4 + $0x78] sm:$0xff] %vm1974_vm1, %v1889_v49  ;;  %v1389_v56 = vmax.f32 %v1139_v47, 0.0  ;;  %v3098_v47 = vld [vmem:[#allocation4] sm:$0xff] }
 0x18c   :  { %3002 = vst.msk [vmem:[#allocation4 + $0x8] sm:$0xff] %vm2360_vm3, %v2907_v50  ;;  %2547 = vrot.lane.b32.xlu1 %v2470_v55, %s8919_s30  ;;  %2734 = vrot.lane.b32.xlu0 %v2660_v7, %s8920_s10  ;;  %v1470_v57 = vmax.f32 %v1382_v41, %v1386_v53  ;;  %v1387_v59 = vmax.f32 %v1131_v54, 0.0 }
 0x18d   :  { %1536 = vst.msk [vmem:[#allocation2 + $0x150] sm:$0xff] %vm21_vm0, %v1472_v52  ;;  %v1473_v61 = vmax.f32 %v1385_v46, %v1389_v56  ;;  %v8500_v62 = vpop.f32.mrb[88].mxu0 }
 0x18e   :  { %v2082_v0 = vpop.permute.xlu1 %2081  ;;  %v2526_v1 = vpop.permute.xlu0 %2525  ;;  %1534 = vst.msk [vmem:[#allocation2 + $0x140] sm:$0xff] %vm21_vm0, %v1470_v57  ;;  %v1471_v2 = vmax.f32 %v1383_v51, %v1387_v59  ;;  %v1152_v15 = vadd.f32 %v9638_v63, %v8500_v62  ;;  %v3194_v59 = vpack.c.bf16 %v3101_v48, %v3098_v47 }
 0x18f   :  { %2173 = vst.msk [vmem:[#allocation4 + $0x78] sm:$0xff] %vm2167_vm2, %v2082_v0  ;;  %v1143_v4 = vpop.f32.mrb[89].mxu0 }
 0x190   :  { %2619 = vst.msk [vmem:[#allocation4 + $0x38] sm:$0xff] %vm1974_vm1, %v2526_v1  ;;  %1908 = vrot.lane.b32.xlu1 %v2853_v60, %s8919_s30  ;;  %2926 = vrot.lane.b32.xlu0 %v9788_v3, %s8921_s22  ;;  %v9795_v5 = vld [vmem:[#allocation3 + $0x150] sm:$0xff]  ;;  %v8501_v6 = vpop.f32.mrb[90].mxu0  ;;  %v1144_v22 = vadd.f32 %v9638_v63, %v1143_v4  ;;  %v1392_v30 = vmax.f32 %v1152_v15, 0.0 }
 0x191   :  { %1537 = vst.msk [vmem:[#allocation2 + $0x158] sm:$0xff] %vm21_vm0, %v1473_v61  ;;  %1535 = vst.msk [vmem:[#allocation2 + $0x148] sm:$0xff] %vm21_vm0, %v1471_v2  ;;  %v3051_v9 = vld [vmem:[#allocation3 + $0x151] sm:$0xff]  ;;  %v1146_v10 = vpop.f32.mrb[91].mxu0  ;;  %v2411_v17 = vld [vmem:[#allocation3 + $0x148] sm:$0xff]  ;;  %v1155_v23 = vadd.f32 %v9638_v63, %v8501_v6 }
 0x192   :  { %2444 = vst.msk [vmem:[#allocation4 + $0x1d0] sm:$0xff] %vm21_vm0, %v9795_v5  ;;  %3083 = vst.msk [vmem:[#allocation4 + $0x1a8] sm:$0xff] %vm21_vm0, %v3051_v9  ;;  %v2717_v11 = vpop.permute.xlu1 %2716  ;;  %v2269_v12 = vpop.permute.xlu0 %2268  ;;  %v9801_v13 = vld [vmem:[#allocation3 + $0x14f] sm:$0xff]  ;;  %v1770_v19 = vld [vmem:[#allocation3 + $0x147] sm:$0xff]  ;;  %v1390_v37 = vmax.f32 %v1144_v22, 0.0 }
 0x193   :  { %2811 = vst.msk [vmem:[#allocation4 + $0x20] sm:$0xff] %vm2167_vm2, %v2717_v11  ;;  %v3050_v21 = vld [vmem:[#allocation3 + $0x149] sm:$0xff]  ;;  %v1393_v41 = vmax.f32 %v1155_v23, 0.0 }
 0x194   :  { %2363 = vst.msk [vmem:[#allocation4 + $0x30] sm:$0xff] %vm2360_vm3, %v2269_v12  ;;  %3003 = vst.msk [vmem:[#allocation4 + $0x20] sm:$0xff] %vm2360_vm3, %v9755_v20  ;;  %2101 = vrot.lane.b32.xlu1 %v2470_v55, %s8920_s10  ;;  %2545 = vrot.lane.b32.xlu0 %v9805_v18, %s8919_s30  ;;  %v1147_v20 = vadd.f32 %v9638_v63, %v1146_v10  ;;  %v3099_v53 = vld [vmem:[#allocation4 + $0x8] sm:$0xff] }
 0x195   :  { %1803 = vst.msk [vmem:[#allocation4 + $0x1f8] sm:$0xff] %vm21_vm0, %v9801_v13  ;;  %2443 = vst.msk [vmem:[#allocation4 + $0x1b8] sm:$0xff] %vm21_vm0, %v2411_v17  ;;  %v8504_v25 = vpop.f32.mrb[92].mxu0  ;;  %v2662_v22 = vld [vmem:[#allocation3 + $0x107] sm:$0xff] }
 0x196   :  { %1802 = vst.msk [vmem:[#allocation4 + $0x1e0] sm:$0xff] %vm21_vm0, %v1770_v19  ;;  %3082 = vst.msk [vmem:[#allocation4 + $0x190] sm:$0xff] %vm21_vm0, %v3050_v21  ;;  %v2271_v26 = vpop.permute.xlu1 %2270  ;;  %v1887_v27 = vpop.permute.xlu0 %1886  ;;  %v1168_v31 = vadd.f32 %v9638_v63, %v8504_v25  ;;  %v1391_v49 = vmax.f32 %v1147_v20, 0.0  ;;  %v2472_v21 = vld [vmem:[#allocation3 + $0x111] sm:$0xff] }
 0x197   :  { %2364 = vst.msk [vmem:[#allocation4 + $0x48] sm:$0xff] %vm2360_vm3, %v2271_v26  ;;  %v1159_v60 = vpop.f32.mrb[93].mxu0 }
 0x198   :  { %v1600_v28 = vld [vmem:[#allocation2 + $0x150] ss:$2 sm:$0xff]  ;;  %v1664_v29 = vld [vmem:[#allocation2 + $0x151] ss:$2 sm:$0xff]  ;;  %1979 = vst.msk [vmem:[#allocation4 + $0x60] sm:$0xff] %vm1974_vm1, %v1887_v27  ;;  %2736 = vrot.lane.b32.xlu1 %v9670_v42, %s8920_s10  ;;  %2288 = vrot.lane.b32.xlu0 %v2660_v7, %s8921_s22  ;;  %v1396_v38 = vmax.f32 %v1168_v31, 0.0  ;;  %v1160_v39 = vadd.f32 %v9638_v63, %v1159_v60 }
 0x199   :  { %v1706_v32 = vmax.f32 %v1600_v28, %v1664_v29  ;;  %v1598_v33 = vld [vmem:[#allocation2 + $0x140] ss:$2 sm:$0xff]  ;;  %v1662_v34 = vld [vmem:[#allocation2 + $0x141] ss:$2 sm:$0xff]  ;;  %v8505_v40 = vpop.f32.mrb[94].mxu0 }
 0x19a   :  { %v1705_v35 = vmax.f32 %v1598_v33, %v1662_v34  ;;  %v1171_v43 = vadd.f32 %v9638_v63, %v8505_v40  ;;  %v1162_v44 = vpop.f32.mrb[95].mxu0  ;;  %v9829_v45 = vpop.permute.xlu1 %2912  ;;  %v1476_v50 = vmax.f32 %v1392_v30, %v1396_v38  ;;  %v1394_v51 = vmax.f32 %v1160_v39, 0.0  ;;  %v9877_v33 = vld [vmem:[#allocation3 + $0x108] sm:$0xff] }
 0x19b   :  { %1739 = vst.msk [vmem:[#allocation3 + $0x170] sm:$0xff] %vm21_vm0, %v1706_v32  ;;  %v2080_v46 = vpop.permute.xlu0 %2079  ;;  %v1163_v52 = vadd.f32 %v9638_v63, %v1162_v44  ;;  %v3102_v54 = vld [vmem:[#allocation4 + $0x20] sm:$0xff] }
 0x19c   :  { %1738 = vst.msk [vmem:[#allocation3 + $0x168] sm:$0xff] %vm21_vm0, %v1705_v35  ;;  %v1397_v55 = vmax.f32 %v1171_v43, 0.0  ;;  %2290 = vrot.lane.b32.xlu1 %v9670_v42, %s8921_s22  ;;  %1906 = vrot.lane.b32.xlu0 %v9788_v3, %s8919_s30  ;;  %v3195_v7 = vpack.c.bf16 %v3102_v54, %v3099_v53  ;;  %1540 = vst.msk [vmem:[#allocation2 + $0x170] sm:$0xff] %vm21_vm0, %v1476_v50  ;;  %v1474_v56 = vmax.f32 %v1390_v37, %v1394_v51  ;;  %v9890_v53 = vld [vmem:[#allocation3 + $0x109] sm:$0xff] }
 0x19d   :  { %2172 = vst.msk [vmem:[#allocation4 + $0x60] sm:$0xff] %vm2167_vm2, %v2080_v46  ;;  %v1395_v57 = vmax.f32 %v1163_v52, 0.0  ;;  %v8508_v62 = vpop.f32.mrb[96].mxu0 }
 0x19e   :  { %v1477_v61 = vmax.f32 %v1393_v41, %v1397_v55  ;;  %v2532_v0 = vpop.permute.xlu1 %2531  ;;  %3473 = vmatprep.mubr.bf16.mxu1 %v3195_v7  ;;  %1538 = vst.msk [vmem:[#allocation2 + $0x160] sm:$0xff] %vm21_vm0, %v1474_v56  ;;  %v1175_v42 = vpop.f32.mrb[97].mxu0  ;;  %v1184_v17 = vadd.f32 %v9638_v63, %v8508_v62 }
 0x19f   :  { %v2719_v1 = vpop.permute.xlu0 %2718  ;;  %v1475_v2 = vmax.f32 %v1391_v49, %v1395_v57  ;;  %2622 = vst.msk [vmem:[#allocation4 + $0x80] sm:$0xff] %vm1974_vm1, %v2532_v0  ;;  %3474 = vmatmul.mubr.bf16.vlgmr.msra.gmra.mrb[0].mxu1 %v3194_v59  ;;  %v8509_v4 = vpop.f32.mrb[98].mxu0  ;;  %v1176_v23 = vadd.f32 %v9638_v63, %v1175_v42 }
 0x1a0   :  { %2812 = vst.msk [vmem:[#allocation4 + $0x38] sm:$0xff] %vm2167_vm2, %v2719_v1  ;;  %2932 = vrot.lane.b32.xlu1 %v9704_v16, %s8921_s22  ;;  %2099 = vrot.lane.b32.xlu0 %v9805_v18, %s8920_s10  ;;  %v1178_v11 = vpop.f32.mrb[99].mxu0  ;;  %v1187_v25 = vadd.f32 %v9638_v63, %v8509_v4  ;;  %v1400_v20 = vmax.f32 %v1184_v17, 0.0 }
 0x1a1   :  { %1541 = vst.msk [vmem:[#allocation2 + $0x178] sm:$0xff] %vm21_vm0, %v1477_v61  ;;  %1539 = vst.msk [vmem:[#allocation2 + $0x168] sm:$0xff] %vm21_vm0, %v1475_v2  ;;  %v1179_v31 = vadd.f32 %v9638_v63, %v1178_v11  ;;  %v1398_v39 = vmax.f32 %v1176_v23, 0.0 }
 0x1a2   :  { %v9848_v3 = vld [vmem:[#allocation3 + $0x170] sm:$0xff]  ;;  %v1893_v12 = vpop.permute.xlu1 %1892  ;;  %v1401_v44 = vmax.f32 %v1187_v25, 0.0 }
 0x1a3   :  { %v3053_v6 = vld [vmem:[#allocation3 + $0x171] sm:$0xff]  ;;  %v9850_v9 = vld [vmem:[#allocation3 + $0x167] sm:$0xff]  ;;  %2446 = vst.msk [vmem:[#allocation4 + $0x200] sm:$0xff] %vm21_vm0, %v9848_v3  ;;  %v2911_v15 = vpop.permute.xlu0 %2910 }
 0x1a4   :  { %v9852_v10 = vld [vmem:[#allocation3 + $0x168] sm:$0xff]  ;;  %3085 = vst.msk [vmem:[#allocation4 + $0x1d8] sm:$0xff] %vm21_vm0, %v3053_v6  ;;  %1804 = vst.msk [vmem:[#allocation4 + $0x210] sm:$0xff] %vm21_vm0, %v9850_v9  ;;  %2551 = vrot.lane.b32.xlu1 %v2472_v21, %s8919_s30  ;;  %2738 = vrot.lane.b32.xlu0 %v2662_v22, %s8920_s10 }
 0x1a5   :  { %v9858_v18 = vld [vmem:[#allocation3 + $0x16f] sm:$0xff]  ;;  %2445 = vst.msk [vmem:[#allocation4 + $0x1e8] sm:$0xff] %vm21_vm0, %v9852_v10  ;;  %v8512_v26 = vpop.f32.mrb[100].mxu0 }
 0x1a6   :  { %v3052_v19 = vld [vmem:[#allocation3 + $0x169] sm:$0xff]  ;;  %1982 = vst.msk [vmem:[#allocation4 + $0xa8] sm:$0xff] %vm1974_vm1, %v1893_v12  ;;  %v2086_v27 = vpop.permute.xlu1 %2085  ;;  %v1200_v32 = vadd.f32 %v9638_v63, %v8512_v26  ;;  %v1191_v37 = vpop.f32.mrb[101].mxu0 }
 0x1a7   :  { %3004 = vst.msk [vmem:[#allocation4 + $0x38] sm:$0xff] %vm2360_vm3, %v2911_v15  ;;  %v2530_v28 = vpop.permute.xlu0 %2529  ;;  %v1192_v41 = vadd.f32 %v9638_v63, %v1191_v37  ;;  %v8513_v43 = vpop.f32.mrb[102].mxu0  ;;  %v3107_v15 = vld [vmem:[#allocation4 + $0x48] sm:$0xff]  ;;  %v3104_v26 = vld [vmem:[#allocation4 + $0x30] sm:$0xff] }
 0x1a8   :  { %1805 = vst.msk [vmem:[#allocation4 + $0x228] sm:$0xff] %vm21_vm0, %v9858_v18  ;;  %3084 = vst.msk [vmem:[#allocation4 + $0x1c0] sm:$0xff] %vm21_vm0, %v3052_v19  ;;  %v1604_v29 = vld [vmem:[#allocation2 + $0x170] ss:$2 sm:$0xff]  ;;  %v1668_v30 = vld [vmem:[#allocation2 + $0x171] ss:$2 sm:$0xff]  ;;  %1912 = vrot.lane.b32.xlu1 %v9704_v16, %s8919_s30  ;;  %2930 = vrot.lane.b32.xlu0 %v9877_v33, %s8921_s22  ;;  %v1203_v46 = vadd.f32 %v9638_v63, %v8513_v43 }
 0x1a9   :  { %2175 = vst.msk [vmem:[#allocation4 + $0xa8] sm:$0xff] %vm2167_vm2, %v2086_v27  ;;  %v1708_v34 = vmax.f32 %v1604_v29, %v1668_v30  ;;  %v1602_v60 = vld [vmem:[#allocation2 + $0x160] ss:$2 sm:$0xff]  ;;  %v1666_v35 = vld [vmem:[#allocation2 + $0x161] ss:$2 sm:$0xff]  ;;  %v1404_v40 = vmax.f32 %v1200_v32, 0.0 }
 0x1aa   :  { %2621 = vst.msk [vmem:[#allocation4 + $0x68] sm:$0xff] %vm1974_vm1, %v2530_v28  ;;  %v1707_v38 = vmax.f32 %v1602_v60, %v1666_v35  ;;  %v1194_v47 = vpop.f32.mrb[103].mxu0  ;;  %v2721_v48 = vpop.permute.xlu1 %2720  ;;  %v1399_v16 = vmax.f32 %v1179_v31, 0.0  ;;  %v1402_v51 = vmax.f32 %v1192_v41, 0.0  ;;  %v1405_v54 = vmax.f32 %v1203_v46, 0.0 }
 0x1ab   :  { %1741 = vst.msk [vmem:[#allocation3 + $0x190] sm:$0xff] %vm21_vm0, %v1708_v34  ;;  %v2273_v49 = vpop.permute.xlu0 %2272  ;;  %v1480_v50 = vmax.f32 %v1400_v20, %v1404_v40  ;;  %v1195_v52 = vadd.f32 %v9638_v63, %v1194_v47  ;;  %v3197_v28 = vpack.c.bf16 %v3107_v15, %v3104_v26  ;;  %v9975_v26 = vld [vmem:[%s12080_s2] ss:$0 sm:$0xff] }
 0x1ac   :  { %1740 = vst.msk [vmem:[#allocation3 + $0x188] sm:$0xff] %vm21_vm0, %v1707_v38  ;;  %2105 = vrot.lane.b32.xlu1 %v2472_v21, %s8920_s10  ;;  %2549 = vrot.lane.b32.xlu0 %v9890_v53, %s8919_s30  ;;  %v1478_v55 = vmax.f32 %v1398_v39, %v1402_v51  ;;  %v1481_v56 = vmax.f32 %v1401_v44, %v1405_v54 }
 0x1ad   :  { %2813 = vst.msk [vmem:[#allocation4 + $0x50] sm:$0xff] %vm2167_vm2, %v2721_v48  ;;  %v1403_v7 = vmax.f32 %v1195_v52, 0.0  ;;  %v8516_v57 = vpop.f32.mrb[104].mxu0 }
 0x1ae   :  { %2365 = vst.msk [vmem:[#allocation4 + $0x60] sm:$0xff] %vm2360_vm3, %v2273_v49  ;;  %3005 = vst.msk [vmem:[#allocation4 + $0x50] sm:$0xff] %vm2360_vm3, %v9829_v45  ;;  %v2275_v59 = vpop.permute.xlu1 %2274  ;;  %v1207_v45 = vpop.f32.mrb[105].mxu0  ;;  %v1216_v17 = vadd.f32 %v9638_v63, %v8516_v57 }
 0x1af   :  { %1544 = vst.msk [vmem:[#allocation2 + $0x190] sm:$0xff] %vm21_vm0, %v1480_v50  ;;  %v1891_v61 = vpop.permute.xlu0 %1890  ;;  %1542 = vst.msk [vmem:[#allocation2 + $0x180] sm:$0xff] %vm21_vm0, %v1478_v55  ;;  %v1479_v62 = vmax.f32 %v1399_v16, %v1403_v7  ;;  %v8517_v1 = vpop.f32.mrb[106].mxu0  ;;  %v1208_v27 = vadd.f32 %v9638_v63, %v1207_v45  ;;  %v2474_v55 = vld [vmem:[#allocation3 + $0x131] sm:$0xff]  ;;  %v2664_v7 = vld [vmem:[#allocation3 + $0x127] sm:$0xff] }
 0x1b0   :  { %2366 = vst.msk [vmem:[#allocation4 + $0x78] sm:$0xff] %vm2360_vm3, %v2275_v59  ;;  %2740 = vrot.lane.b32.xlu1 %v9711_v24, %s8920_s10  ;;  %2292 = vrot.lane.b32.xlu0 %v2662_v22, %s8921_s22  ;;  %v1210_v6 = vpop.f32.mrb[107].mxu0  ;;  %v3105_v22 = vld [vmem:[#allocation4 + $0x38] sm:$0xff]  ;;  %v1219_v29 = vadd.f32 %v9638_v63, %v8517_v1  ;;  %v1408_v60 = vmax.f32 %v1216_v17, 0.0 }
 0x1b1   :  { %1981 = vst.msk [vmem:[#allocation4 + $0x90] sm:$0xff] %vm1974_vm1, %v1891_v61  ;;  %v1211_v35 = vadd.f32 %v9638_v63, %v1210_v6  ;;  %v1406_v41 = vmax.f32 %v1208_v27, 0.0 }
 0x1b2   :  { %1545 = vst.msk [vmem:[#allocation2 + $0x198] sm:$0xff] %vm21_vm0, %v1481_v56  ;;  %1543 = vst.msk [vmem:[#allocation2 + $0x188] sm:$0xff] %vm21_vm0, %v1479_v62  ;;  %v9906_v0 = vld [vmem:[#allocation3 + $0x190] sm:$0xff]  ;;  %v9915_v11 = vpop.permute.xlu1 %2916  ;;  %v1409_v47 = vmax.f32 %v1219_v29, 0.0 }
 0x1b3   :  { %v3055_v2 = vld [vmem:[#allocation3 + $0x191] sm:$0xff]  ;;  %v9908_v42 = vld [vmem:[#allocation3 + $0x187] sm:$0xff]  ;;  %2448 = vst.msk [vmem:[#allocation4 + $0x230] sm:$0xff] %vm21_vm0, %v9906_v0  ;;  %v2084_v12 = vpop.permute.xlu0 %2083  ;;  %v1407_v51 = vmax.f32 %v1211_v35, 0.0 }
 0x1b4   :  { %v9910_v4 = vld [vmem:[#allocation3 + $0x188] sm:$0xff]  ;;  %3087 = vst.msk [vmem:[#allocation4 + $0x208] sm:$0xff] %vm21_vm0, %v3055_v2  ;;  %1806 = vst.msk [vmem:[#allocation4 + $0x240] sm:$0xff] %vm21_vm0, %v9908_v42  ;;  %2294 = vrot.lane.b32.xlu1 %v9711_v24, %s8921_s22  ;;  %1910 = vrot.lane.b32.xlu0 %v9877_v33, %s8919_s30 }
 0x1b5   :  { %v9918_v19 = vld [vmem:[#allocation3 + $0x18f] sm:$0xff]  ;;  %2447 = vst.msk [vmem:[#allocation4 + $0x218] sm:$0xff] %vm21_vm0, %v9910_v4  ;;  %v8520_v30 = vpop.f32.mrb[108].mxu0 }
 0x1b6   :  { %v3054_v21 = vld [vmem:[#allocation3 + $0x189] sm:$0xff]  ;;  %2174 = vst.msk [vmem:[#allocation4 + $0x90] sm:$0xff] %vm2167_vm2, %v2084_v12  ;;  %v2536_v20 = vpop.permute.xlu1 %2535  ;;  %v1232_v24 = vadd.f32 %v9638_v63, %v8520_v30  ;;  %v1223_v39 = vpop.f32.mrb[109].mxu0 }
 0x1b7   :  { %v3108_v23 = vld [vmem:[#allocation4 + $0x50] sm:$0xff]  ;;  %1807 = vst.msk [vmem:[#allocation4 + $0x258] sm:$0xff] %vm21_vm0, %v9918_v19  ;;  %3086 = vst.msk [vmem:[#allocation4 + $0x1f0] sm:$0xff] %vm21_vm0, %v3054_v21  ;;  %v2723_v31 = vpop.permute.xlu0 %2722  ;;  %v1224_v44 = vadd.f32 %v9638_v63, %v1223_v39  ;;  %v8521_v46 = vpop.f32.mrb[110].mxu0  ;;  %v9955_v2 = vld [vmem:[#allocation3 + $0x128] sm:$0xff] }
 0x1b8   :  { %v3198_v25 = vpack.c.bf16 %v3108_v23, %v3105_v22  ;;  %2624 = vst.msk [vmem:[#allocation4 + $0xb0] sm:$0xff] %vm1974_vm1, %v2536_v20  ;;  %2936 = vrot.lane.b32.xlu1 %v9744_v14, %s8921_s22  ;;  %2103 = vrot.lane.b32.xlu0 %v9890_v53, %s8920_s10  ;;  %v1412_v43 = vmax.f32 %v1232_v24, 0.0  ;;  %v1235_v48 = vadd.f32 %v9638_v63, %v8521_v46  ;;  %v1226_v49 = vpop.f32.mrb[111].mxu0  ;;  %v9986_v30 = vld [vmem:[#allocation3 + $0x129] sm:$0xff] }
 0x1b9   :  { %v1608_v32 = vld [vmem:[#allocation2 + $0x190] ss:$2 sm:$0xff]  ;;  %v1672_v34 = vld [vmem:[#allocation2 + $0x191] ss:$2 sm:$0xff]  ;;  %2814 = vst.msk [vmem:[#allocation4 + $0x68] sm:$0xff] %vm2167_vm2, %v2723_v31  ;;  %v1410_v54 = vmax.f32 %v1224_v44, 0.0  ;;  %v1227_v53 = vadd.f32 %v9638_v63, %v1226_v49 }
 0x1ba   :  { %3481 = vmatprep.mubr.bf16.mxu1 %v3198_v25  ;;  %v1710_v33 = vmax.f32 %v1608_v32, %v1672_v34  ;;  %v1606_v37 = vld [vmem:[#allocation2 + $0x180] ss:$2 sm:$0xff]  ;;  %v1670_v38 = vld [vmem:[#allocation2 + $0x181] ss:$2 sm:$0xff]  ;;  %v1897_v16 = vpop.permute.xlu1 %1896  ;;  %v1484_v52 = vmax.f32 %v1408_v60, %v1412_v43  ;;  %v1413_v56 = vmax.f32 %v1235_v48, 0.0 }
 0x1bb   :  { %3482 = vmatmul.mubr.bf16.gmra.mrb[4].mxu1 %v3197_v28  ;;  %v1709_v40 = vmax.f32 %v1606_v37, %v1670_v38  ;;  %v2915_v50 = vpop.permute.xlu0 %2914  ;;  %1984 = vst.msk [vmem:[#allocation4 + $0xd8] sm:$0xff] %vm1974_vm1, %v1897_v16  ;;  %v1482_v57 = vmax.f32 %v1406_v41, %v1410_v54  ;;  %v1411_v59 = vmax.f32 %v1227_v53, 0.0  ;;  %v3113_v54 = vld [vmem:[#allocation4 + $0x78] sm:$0xff] }
 0x1bc   :  { %1743 = vst.msk [vmem:[#allocation3 + $0x1b0] sm:$0xff] %vm21_vm0, %v1710_v33  ;;  %2555 = vrot.lane.b32.xlu1 %v2474_v55, %s8919_s30  ;;  %2742 = vrot.lane.b32.xlu0 %v2664_v7, %s8920_s10  ;;  %1548 = vst.msk [vmem:[#allocation2 + $0x1b0] sm:$0xff] %vm21_vm0, %v1484_v52  ;;  %v1485_v61 = vmax.f32 %v1409_v47, %v1413_v56 }
 0x1bd   :  { %1742 = vst.msk [vmem:[#allocation3 + $0x1a8] sm:$0xff] %vm21_vm0, %v1709_v40  ;;  %v8524_v62 = vpop.f32.mrb[112].mxu0  ;;  %1546 = vst.msk [vmem:[#allocation2 + $0x1a0] sm:$0xff] %vm21_vm0, %v1482_v57  ;;  %v1483_v63 = vmax.f32 %v1407_v51, %v1411_v59 }
 0x1be   :  { %3006 = vst.msk [vmem:[#allocation4 + $0x68] sm:$0xff] %vm2360_vm3, %v2915_v50  ;;  %v2090_v45 = vpop.permute.xlu1 %2089  ;;  %v1239_v6 = vpop.f32.mrb[113].mxu0  ;;  %v1248_v27 = vadd.f32 %v9975_v26, %v8524_v62 }
 0x1bf   :  { %v2534_v1 = vpop.permute.xlu0 %2533  ;;  %2177 = vst.msk [vmem:[#allocation4 + $0xd8] sm:$0xff] %vm2167_vm2, %v2090_v45  ;;  %v8525_v15 = vpop.f32.mrb[114].mxu0  ;;  %v1240_v20 = vadd.f32 %v9975_v26, %v1239_v6  ;;  %v3110_v45 = vld [vmem:[#allocation4 + $0x60] sm:$0xff] }
 0x1c0   :  { %2623 = vst.msk [vmem:[#allocation4 + $0x98] sm:$0xff] %vm1974_vm1, %v2534_v1  ;;  %1916 = vrot.lane.b32.xlu1 %v9744_v14, %s8919_s30  ;;  %2934 = vrot.lane.b32.xlu0 %v9955_v2, %s8921_s22  ;;  %v1242_v23 = vpop.f32.mrb[115].mxu0  ;;  %v1251_v31 = vadd.f32 %v9975_v26, %v8525_v15  ;;  %v1416_v33 = vmax.f32 %v1248_v27, 0.0  ;;  %v3200_v6 = vpack.c.bf16 %v3113_v54, %v3110_v45 }
 0x1c1   :  { %1549 = vst.msk [vmem:[#allocation2 + $0x1b8] sm:$0xff] %vm21_vm0, %v1485_v61  ;;  %1547 = vst.msk [vmem:[#allocation2 + $0x1a8] sm:$0xff] %vm21_vm0, %v1483_v63  ;;  %v1243_v37 = vadd.f32 %v9975_v26, %v1242_v23  ;;  %v1414_v44 = vmax.f32 %v1240_v20, 0.0 }
 0x1c2   :  { %v2725_v14 = vpop.permute.xlu1 %2724  ;;  %v1417_v49 = vmax.f32 %v1251_v31, 0.0 }
 0x1c3   :  { %v9963_v12 = vld [vmem:[#allocation3 + $0x1b0] sm:$0xff]  ;;  %v2277_v25 = vpop.permute.xlu0 %2276  ;;  %2815 = vst.msk [vmem:[#allocation4 + $0x80] sm:$0xff] %vm2167_vm2, %v2725_v14  ;;  %v1415_v53 = vmax.f32 %v1243_v37, 0.0  ;;  %v2666_v37 = vld [vmem:[#allocation3 + $0x147] sm:$0xff] }
 0x1c4   :  { %v3057_v17 = vld [vmem:[#allocation3 + $0x1b1] sm:$0xff]  ;;  %v9965_v21 = vld [vmem:[#allocation3 + $0x1a7] sm:$0xff]  ;;  %2450 = vst.msk [vmem:[#allocation4 + $0x260] sm:$0xff] %vm21_vm0, %v9963_v12  ;;  %2109 = vrot.lane.b32.xlu1 %v2474_v55, %s8920_s10  ;;  %2553 = vrot.lane.b32.xlu0 %v9986_v30, %s8919_s30 }
 0x1c5   :  { %v9967_v22 = vld [vmem:[#allocation3 + $0x1a8] sm:$0xff]  ;;  %3089 = vst.msk [vmem:[#allocation4 + $0x238] sm:$0xff] %vm21_vm0, %v3057_v17  ;;  %1808 = vst.msk [vmem:[#allocation4 + $0x270] sm:$0xff] %vm21_vm0, %v9965_v21  ;;  %v8528_v32 = vpop.f32.mrb[116].mxu0 }
 0x1c6   :  { %v9978_v28 = vld [vmem:[#allocation3 + $0x1af] sm:$0xff]  ;;  %2449 = vst.msk [vmem:[#allocation4 + $0x248] sm:$0xff] %vm21_vm0, %v9967_v22  ;;  %v2279_v34 = vpop.permute.xlu1 %2278  ;;  %v1264_v38 = vadd.f32 %v9975_v26, %v8528_v32  ;;  %v1255_v41 = vpop.f32.mrb[117].mxu0 }
 0x1c7   :  { %v3056_v29 = vld [vmem:[#allocation3 + $0x1a9] sm:$0xff]  ;;  %2367 = vst.msk [vmem:[#allocation4 + $0x90] sm:$0xff] %vm2360_vm3, %v2277_v25  ;;  %3007 = vst.msk [vmem:[#allocation4 + $0x80] sm:$0xff] %vm2360_vm3, %v9915_v11  ;;  %v1895_v60 = vpop.permute.xlu0 %1894  ;;  %v1256_v47 = vadd.f32 %v9975_v26, %v1255_v41  ;;  %v8529_v48 = vpop.f32.mrb[118].mxu0 }
 0x1c8   :  { %1809 = vst.msk [vmem:[#allocation4 + $0x288] sm:$0xff] %vm21_vm0, %v9978_v28  ;;  %3088 = vst.msk [vmem:[#allocation4 + $0x220] sm:$0xff] %vm21_vm0, %v3056_v29  ;;  %v1612_v35 = vld [vmem:[#allocation2 + $0x1b0] ss:$2 sm:$0xff]  ;;  %v1676_v24 = vld [vmem:[#allocation2 + $0x1b1] ss:$2 sm:$0xff]  ;;  %2744 = vrot.lane.b32.xlu1 %v9753_v36, %s8920_s10  ;;  %2296 = vrot.lane.b32.xlu0 %v2664_v7, %s8921_s22  ;;  %v1267_v16 = vadd.f32 %v9975_v26, %v8529_v48 }
 0x1c9   :  { %2368 = vst.msk [vmem:[#allocation4 + $0xa8] sm:$0xff] %vm2360_vm3, %v2279_v34  ;;  %v1712_v11 = vmax.f32 %v1612_v35, %v1676_v24  ;;  %v1610_v39 = vld [vmem:[#allocation2 + $0x1a0] ss:$2 sm:$0xff]  ;;  %v1674_v40 = vld [vmem:[#allocation2 + $0x1a1] ss:$2 sm:$0xff]  ;;  %v1420_v46 = vmax.f32 %v1264_v38, 0.0 }
 0x1ca   :  { %1983 = vst.msk [vmem:[#allocation4 + $0xc0] sm:$0xff] %vm1974_vm1, %v1895_v60  ;;  %v1711_v43 = vmax.f32 %v1610_v39, %v1674_v40  ;;  %v1258_v50 = vpop.f32.mrb[119].mxu0  ;;  %v10008_v51 = vpop.permute.xlu1 %2920  ;;  %v1418_v7 = vmax.f32 %v1256_v47, 0.0  ;;  %v3111_v57 = vld [vmem:[#allocation4 + $0x68] sm:$0xff]  ;;  %v1421_v61 = vmax.f32 %v1267_v16, 0.0 }
 0x1cb   :  { %1745 = vst.msk [vmem:[#allocation3 + $0x1d0] sm:$0xff] %vm21_vm0, %v1712_v11  ;;  %v2088_v52 = vpop.permute.xlu0 %2087  ;;  %v1488_v55 = vmax.f32 %v1416_v33, %v1420_v46  ;;  %v1259_v56 = vadd.f32 %v9975_v26, %v1258_v50  ;;  %v2476_v33 = vld [vmem:[#allocation3 + $0x151] sm:$0xff] }
 0x1cc   :  { %1744 = vst.msk [vmem:[#allocation3 + $0x1c8] sm:$0xff] %vm21_vm0, %v1711_v43  ;;  %2298 = vrot.lane.b32.xlu1 %v9753_v36, %s8921_s22  ;;  %1914 = vrot.lane.b32.xlu0 %v9955_v2, %s8919_s30  ;;  %v1486_v1 = vmax.f32 %v1414_v44, %v1418_v7  ;;  %v1489_v15 = vmax.f32 %v1417_v49, %v1421_v61  ;;  %v2858_v49 = vld [vmem:[#allocation3 + $0x148] sm:$0xff] }
 0x1cd   :  { %2176 = vst.msk [vmem:[#allocation4 + $0xc0] sm:$0xff] %vm2167_vm2, %v2088_v52  ;;  %v1419_v63 = vmax.f32 %v1259_v56, 0.0  ;;  %v8532_v17 = vpop.f32.mrb[120].mxu0 }
 0x1ce   :  { %v3114_v59 = vld [vmem:[#allocation4 + $0x80] sm:$0xff]  ;;  %1552 = vst.msk [vmem:[#allocation2 + $0x1d0] sm:$0xff] %vm21_vm0, %v1488_v55  ;;  %v2540_v23 = vpop.permute.xlu1 %2539  ;;  %1550 = vst.msk [vmem:[#allocation2 + $0x1c0] sm:$0xff] %vm21_vm0, %v1486_v1  ;;  %v1271_v36 = vpop.f32.mrb[121].mxu0 }
 0x1cf   :  { %v3201_v62 = vpack.c.bf16 %v3114_v59, %v3111_v57  ;;  %v2727_v14 = vpop.permute.xlu0 %2726  ;;  %v1487_v25 = vmax.f32 %v1415_v53, %v1419_v63  ;;  %2626 = vst.msk [vmem:[#allocation4 + $0xe0] sm:$0xff] %vm1974_vm1, %v2540_v23  ;;  %v8533_v27 = vpop.f32.mrb[122].mxu0  ;;  %v1272_v38 = vadd.f32 %v9975_v26, %v1271_v36 }
 0x1d0   :  { %2816 = vst.msk [vmem:[#allocation4 + $0x98] sm:$0xff] %vm2167_vm2, %v2727_v14  ;;  %2940 = vrot.lane.b32.xlu1 %v9795_v5, %s8921_s22  ;;  %2107 = vrot.lane.b32.xlu0 %v9986_v30, %s8920_s10  ;;  %v1274_v32 = vpop.f32.mrb[123].mxu0  ;;  %v1280_v30 = vadd.f32 %v9975_v26, %v8532_v17  ;;  %v1283_v11 = vadd.f32 %v9975_v26, %v8533_v27  ;;  %v2475_v17 = vld [vmem:[#allocation3 + $0x149] sm:$0xff] }
 0x1d1   :  { %3489 = vmatprep.mubr.bf16.mxu1 %v3201_v62  ;;  %1553 = vst.msk [vmem:[#allocation2 + $0x1d8] sm:$0xff] %vm21_vm0, %v1489_v15  ;;  %1551 = vst.msk [vmem:[#allocation2 + $0x1c8] sm:$0xff] %vm21_vm0, %v1487_v25  ;;  %v1275_v47 = vadd.f32 %v9975_v26, %v1274_v32  ;;  %v1422_v55 = vmax.f32 %v1272_v38, 0.0 }
 0x1d2   :  { %3490 = vmatmul.mubr.bf16.gmra.mrb[8].mxu1 %v3200_v6  ;;  %v10027_v2 = vld [vmem:[#allocation3 + $0x1d0] sm:$0xff]  ;;  %v1901_v34 = vpop.permute.xlu1 %1900  ;;  %v1424_v46 = vmax.f32 %v1280_v30, 0.0  ;;  %v1425_v59 = vmax.f32 %v1283_v11, 0.0 }
 0x1d3   :  { %v3059_v29 = vld [vmem:[#allocation3 + $0x1d1] sm:$0xff]  ;;  %v10029_v20 = vld [vmem:[#allocation3 + $0x1c7] sm:$0xff]  ;;  %2452 = vst.msk [vmem:[#allocation4 + $0x290] sm:$0xff] %vm21_vm0, %v10027_v2  ;;  %v2919_v60 = vpop.permute.xlu0 %2918  ;;  %v1423_v63 = vmax.f32 %v1275_v47, 0.0 }
 0x1d4   :  { %v10031_v31 = vld [vmem:[#allocation3 + $0x1c8] sm:$0xff]  ;;  %3091 = vst.msk [vmem:[#allocation4 + $0x268] sm:$0xff] %vm21_vm0, %v3059_v29  ;;  %1810 = vst.msk [vmem:[#allocation4 + $0x2a0] sm:$0xff] %vm21_vm0, %v10029_v20  ;;  %2559 = vrot.lane.b32.xlu1 %v2476_v33, %s8919_s30  ;;  %2746 = vrot.lane.b32.xlu0 %v2666_v37, %s8920_s10 }
 0x1d5   :  { %v10037_v35 = vld [vmem:[#allocation3 + $0x1cf] sm:$0xff]  ;;  %2451 = vst.msk [vmem:[#allocation4 + $0x278] sm:$0xff] %vm21_vm0, %v10031_v31  ;;  %v8536_v39 = vpop.f32.mrb[124].mxu0 }
 0x1d6   :  { %v3058_v24 = vld [vmem:[#allocation3 + $0x1c9] sm:$0xff]  ;;  %1986 = vst.msk [vmem:[#allocation4 + $0x108] sm:$0xff] %vm1974_vm1, %v1901_v34  ;;  %v2094_v40 = vpop.permute.xlu1 %2093  ;;  %v1296_v48 = vadd.f32 %v9975_v26, %v8536_v39  ;;  %v1287_v54 = vpop.f32.mrb[125].mxu0 }
 0x1d7   :  { %3008 = vst.msk [vmem:[#allocation4 + $0x98] sm:$0xff] %vm2360_vm3, %v2919_v60  ;;  %v2538_v41 = vpop.permute.xlu0 %2537  ;;  %v1288_v56 = vadd.f32 %v9975_v26, %v1287_v54  ;;  %v8537_v57 = vpop.f32.mrb[126].mxu0 }
 0x1d8   :  { %1811 = vst.msk [vmem:[#allocation4 + $0x2b8] sm:$0xff] %vm21_vm0, %v10037_v35  ;;  %3090 = vst.msk [vmem:[#allocation4 + $0x250] sm:$0xff] %vm21_vm0, %v3058_v24  ;;  %v1616_v43 = vld [vmem:[#allocation2 + $0x1d0] ss:$2 sm:$0xff]  ;;  %v1680_v44 = vld [vmem:[#allocation2 + $0x1d1] ss:$2 sm:$0xff]  ;;  %1920 = vrot.lane.b32.xlu1 %v9795_v5, %s8919_s30  ;;  %2938 = vrot.lane.b32.xlu0 %v2858_v49, %s8921_s22  ;;  %v1299_v61 = vadd.f32 %v9975_v26, %v8537_v57 }
 0x1d9   :  { %2179 = vst.msk [vmem:[#allocation4 + $0x108] sm:$0xff] %vm2167_vm2, %v2094_v40  ;;  %v1714_v16 = vmax.f32 %v1616_v43, %v1680_v44  ;;  %v1614_v50 = vld [vmem:[#allocation2 + $0x1c0] ss:$2 sm:$0xff]  ;;  %v1678_v52 = vld [vmem:[#allocation2 + $0x1c1] ss:$2 sm:$0xff]  ;;  %v1428_v7 = vmax.f32 %v1296_v48, 0.0 }
 0x1da   :  { %2625 = vst.msk [vmem:[#allocation4 + $0xc8] sm:$0xff] %vm1974_vm1, %v2538_v41  ;;  %v1713_v53 = vmax.f32 %v1614_v50, %v1678_v52  ;;  %v1290_v62 = vpop.f32.mrb[127].mxu0  ;;  %v2729_v45 = vpop.permute.xlu1 %2728  ;;  %v1426_v6 = vmax.f32 %v1288_v56, 0.0  ;;  %v1429_v23 = vmax.f32 %v1299_v61, 0.0  ;;  %v3116_v41 = vld [vmem:[#allocation4 + $0x90] sm:$0xff] }
 0x1db   :  { %1747 = vst.msk [vmem:[#allocation3 + $0x1f0] sm:$0xff] %vm21_vm0, %v1714_v16  ;;  %v2281_v1 = vpop.permute.xlu0 %2280  ;;  %v1492_v5 = vmax.f32 %v1424_v46, %v1428_v7  ;;  %v1291_v15 = vadd.f32 %v9975_v26, %v1290_v62 }
 0x1dc   :  { %1746 = vst.msk [vmem:[#allocation3 + $0x1e8] sm:$0xff] %vm21_vm0, %v1713_v53  ;;  %2113 = vrot.lane.b32.xlu1 %v2476_v33, %s8920_s10  ;;  %2557 = vrot.lane.b32.xlu0 %v2475_v17, %s8919_s30  ;;  %v1490_v14 = vmax.f32 %v1422_v55, %v1426_v6  ;;  %v1493_v36 = vmax.f32 %v1425_v59, %v1429_v23  ;;  %v2478_v53 = vld [vmem:[#allocation3 + $0x171] sm:$0xff] }
 0x1dd   :  { %2817 = vst.msk [vmem:[#allocation4 + $0xb0] sm:$0xff] %vm2167_vm2, %v2729_v45  ;;  %v1427_v25 = vmax.f32 %v1291_v15, 0.0 }
 0x1de   :  { %2369 = vst.msk [vmem:[#allocation4 + $0xc0] sm:$0xff] %vm2360_vm3, %v2281_v1  ;;  %3009 = vst.msk [vmem:[#allocation4 + $0xb0] sm:$0xff] %vm2360_vm3, %v10008_v51  ;;  %v2283_v27 = vpop.permute.xlu1 %2282  ;;  %v3117_v11 = vld [vmem:[#allocation4 + $0x98] sm:$0xff] }
 0x1df   :  { %1556 = vst.msk [vmem:[#allocation2 + $0x1f0] sm:$0xff] %vm21_vm0, %v1492_v5  ;;  %v1899_v26 = vpop.permute.xlu0 %1898  ;;  %1554 = vst.msk [vmem:[#allocation2 + $0x1e0] sm:$0xff] %vm21_vm0, %v1490_v14  ;;  %v1491_v29 = vmax.f32 %v1423_v63, %v1427_v25  ;;  %v8828_v5 = vld [vmem:[%s12081_s3 + $0x80] sm:$0xff]  }
 0x1e0   :  { %2370 = vst.msk [vmem:[#allocation4 + $0xd8] sm:$0xff] %vm2360_vm3, %v2283_v27  ;;  %2748 = vrot.lane.b32.xlu1 %v9801_v13, %s8920_s10  ;;  %2300 = vrot.lane.b32.xlu0 %v2666_v37, %s8921_s22  ;;  %v3119_v37 = vld [vmem:[#allocation4 + $0xa8] sm:$0xff] }
 0x1e1   :  { %1985 = vst.msk [vmem:[#allocation4 + $0xf0] sm:$0xff] %vm1974_vm1, %v1899_v26  ;;  %v3203_v43 = vpack.c.bf16 %v3119_v37, %v3116_v41  ;;  %8538 = vmatprep.subr.bf16.mxu1 %v8828_v5 }
 0x1e2   :  { %1557 = vst.msk [vmem:[#allocation2 + $0x1f8] sm:$0xff] %vm21_vm0, %v1493_v36  ;;  %1555 = vst.msk [vmem:[#allocation2 + $0x1e8] sm:$0xff] %vm21_vm0, %v1491_v29  ;;  %v10079_v51 = vld [vmem:[#allocation3 + $0x1f0] sm:$0xff]  ;;  %v2925_v24 = vpop.permute.xlu1 %2924  ;;  %8539 = vmatpush3.bf16.msra.mxu1 %v8828_v5 }
 0x1e3   :  { %v10081_v32 = vld [vmem:[#allocation3 + $0x1f1] sm:$0xff]  ;;  %v10083_v34 = vld [vmem:[#allocation3 + $0x1e7] sm:$0xff]  ;;  %2454 = vst.msk [vmem:[#allocation4 + $0x2c0] sm:$0xff] %vm21_vm0, %v10079_v51  ;;  %v2092_v33 = vpop.permute.xlu0 %2091 }
 0x1e4   :  { %v10085_v60 = vld [vmem:[#allocation3 + $0x1e8] sm:$0xff]  ;;  %3093 = vst.msk [vmem:[#allocation4 + $0x298] sm:$0xff] %vm21_vm0, %v10081_v32  ;;  %1812 = vst.msk [vmem:[#allocation4 + $0x2d0] sm:$0xff] %vm21_vm0, %v10083_v34  ;;  %2302 = vrot.lane.b32.xlu1 %v9801_v13, %s8921_s22  ;;  %1918 = vrot.lane.b32.xlu0 %v2858_v49, %s8919_s30 }
 0x1e5   :  { %v10087_v30 = vld [vmem:[#allocation3 + $0x1ef] sm:$0xff]  ;;  %2453 = vst.msk [vmem:[#allocation4 + $0x2a8] sm:$0xff] %vm21_vm0, %v10085_v60  ;;  %v3122_v25 = vld [vmem:[#allocation4 + $0xc0] sm:$0xff] }
 0x1e6   :  { %v10093_v38 = vld [vmem:[#allocation3 + $0x1e9] sm:$0xff]  ;;  %1813 = vst.msk [vmem:[#allocation4 + $0x2e8] sm:$0xff] %vm21_vm0, %v10087_v30  ;;  %v2544_v44 = vpop.permute.xlu1 %2543 }
 0x1e7   :  { %2178 = vst.msk [vmem:[#allocation4 + $0xf0] sm:$0xff] %vm2167_vm2, %v2092_v33  ;;  %v3120_v39 = vld [vmem:[#allocation4 + $0xb0] sm:$0xff]  ;;  %v2731_v46 = vpop.permute.xlu0 %2730 }
 0x1e8   :  { %3092 = vst.msk [vmem:[#allocation4 + $0x280] sm:$0xff] %vm21_vm0, %v10093_v38  ;;  %v3204_v40 = vpack.c.bf16 %v3120_v39, %v3117_v11  ;;  %2944 = vrot.lane.b32.xlu1 %v9848_v3, %s8921_s22  ;;  %2111 = vrot.lane.b32.xlu0 %v2475_v17, %s8920_s10  ;;  %v3125_v17 = vld [vmem:[#allocation4 + $0xd8] sm:$0xff]  ;;  %v2479_v39 = vld [vmem:[#allocation3 + $0x189] sm:$0xff] }
 0x1e9   :  { %v1620_v47 = vld [vmem:[#allocation2 + $0x1f0] ss:$2 sm:$0xff]  ;;  %v1684_v48 = vld [vmem:[#allocation2 + $0x1f1] ss:$2 sm:$0xff]  ;;  %2628 = vst.msk [vmem:[#allocation4 + $0x110] sm:$0xff] %vm1974_vm1, %v2544_v44  ;;  %v3206_v36 = vpack.c.bf16 %v3125_v17, %v3122_v25 }
 0x1ea   :  { %3497 = vmatprep.mubr.bf16.mxu1 %v3204_v40  ;;  %2818 = vst.msk [vmem:[#allocation4 + $0xc8] sm:$0xff] %vm2167_vm2, %v2731_v46  ;;  %v1716_v16 = vmax.f32 %v1620_v47, %v1684_v48  ;;  %v1618_v50 = vld [vmem:[#allocation2 + $0x1e0] ss:$2 sm:$0xff]  ;;  %v1682_v52 = vld [vmem:[#allocation2 + $0x1e1] ss:$2 sm:$0xff]  ;;  %v1905_v49 = vpop.permute.xlu1 %1904 }
 0x1eb   :  { %3498 = vmatmul.mubr.bf16.gmra.mrb[12].mxu1 %v3203_v43  ;;  %v1715_v13 = vmax.f32 %v1618_v50, %v1682_v52  ;;  %v2923_v54 = vpop.permute.xlu0 %2922  ;;  %1988 = vst.msk [vmem:[#allocation4 + $0x138] sm:$0xff] %vm1974_vm1, %v1905_v49 }
 0x1ec   :  { %1749 = vst.msk [vmem:[#allocation3 + $0x210] sm:$0xff] %vm21_vm0, %v1716_v16  ;;  %2563 = vrot.lane.b32.xlu1 %v2478_v53, %s8919_s30  ;;  %2750 = vrot.lane.b32.xlu0 %v9850_v9, %s8920_s10 }
 0x1ed   :  { %1748 = vst.msk [vmem:[#allocation3 + $0x208] sm:$0xff] %vm21_vm0, %v1715_v13 }
 0x1ee   :  { %3010 = vst.msk [vmem:[#allocation4 + $0xc8] sm:$0xff] %vm2360_vm3, %v2923_v54  ;;  %v2098_v55 = vpop.permute.xlu1 %2097 }
 0x1ef   :  { %v2542_v7 = vpop.permute.xlu0 %2541  ;;  %2181 = vst.msk [vmem:[#allocation4 + $0x138] sm:$0xff] %vm2167_vm2, %v2098_v55 }
 0x1f0   :  { %2627 = vst.msk [vmem:[#allocation4 + $0xf8] sm:$0xff] %vm1974_vm1, %v2542_v7  ;;  %1924 = vrot.lane.b32.xlu1 %v9848_v3, %s8919_s30  ;;  %2942 = vrot.lane.b32.xlu0 %v9852_v10, %s8921_s22  ;;  %v2477_v3 = vld [vmem:[#allocation3 + $0x169] sm:$0xff] }
 0x1f1   :  { %v2481_v7 = vld [vmem:[#allocation3 + $0x1a9] sm:$0xff] }
 0x1f2   :  { %v2733_v61 = vpop.permute.xlu1 %2732 }
 0x1f3   :  { %v10125_v56 = vld [vmem:[#allocation3 + $0x210] sm:$0xff]  ;;  %v2285_v62 = vpop.permute.xlu0 %2284  ;;  %2819 = vst.msk [vmem:[#allocation4 + $0xe0] sm:$0xff] %vm2167_vm2, %v2733_v61 }
 0x1f4   :  { %v10127_v57 = vld [vmem:[#allocation3 + $0x211] sm:$0xff]  ;;  %v10129_v59 = vld [vmem:[#allocation3 + $0x208] sm:$0xff]  ;;  %2456 = vst.msk [vmem:[#allocation4 + $0x2f0] sm:$0xff] %vm21_vm0, %v10125_v56  ;;  %2117 = vrot.lane.b32.xlu1 %v2478_v53, %s8920_s10  ;;  %2561 = vrot.lane.b32.xlu0 %v2477_v3, %s8919_s30 }
 0x1f5   :  { %3095 = vst.msk [vmem:[#allocation4 + $0x2c8] sm:$0xff] %vm21_vm0, %v10127_v57  ;;  %v10135_v45 = vld [vmem:[#allocation3 + $0x209] sm:$0xff]  ;;  %2455 = vst.msk [vmem:[#allocation4 + $0x2d8] sm:$0xff] %vm21_vm0, %v10129_v59 }
 0x1f6   :  { %2371 = vst.msk [vmem:[#allocation4 + $0xf0] sm:$0xff] %vm2360_vm3, %v2285_v62  ;;  %3011 = vst.msk [vmem:[#allocation4 + $0xe0] sm:$0xff] %vm2360_vm3, %v2925_v24  ;;  %v2287_v1 = vpop.permute.xlu1 %2286  ;;  %v3123_v23 = vld [vmem:[#allocation4 + $0xc8] sm:$0xff] }
 0x1f7   :  { %3094 = vst.msk [vmem:[#allocation4 + $0x2b0] sm:$0xff] %vm21_vm0, %v10135_v45  ;;  %v1903_v63 = vpop.permute.xlu0 %1902 }
 0x1f8   :  { %2372 = vst.msk [vmem:[#allocation4 + $0x108] sm:$0xff] %vm2360_vm3, %v2287_v1  ;;  %2752 = vrot.lane.b32.xlu1 %v9858_v18, %s8920_s10  ;;  %2304 = vrot.lane.b32.xlu0 %v9850_v9, %s8921_s22 }
 0x1f9   :  { %1987 = vst.msk [vmem:[#allocation4 + $0x120] sm:$0xff] %vm1974_vm1, %v1903_v63 }
 0x1fa   :  { %v2929_v6 = vpop.permute.xlu1 %2928 }
 0x1fb   :  { %v2096_v15 = vpop.permute.xlu0 %2095 }
 0x1fc   :  { %2180 = vst.msk [vmem:[#allocation4 + $0x120] sm:$0xff] %vm2167_vm2, %v2096_v15  ;;  %2306 = vrot.lane.b32.xlu1 %v9858_v18, %s8921_s22  ;;  %1922 = vrot.lane.b32.xlu0 %v9852_v10, %s8919_s30  ;;  %v2480_v10 = vld [vmem:[#allocation3 + $0x191] sm:$0xff] }
 0x1fd   :  { %v3126_v14 = vld [vmem:[#allocation4 + $0xe0] sm:$0xff]  ;;  %v3128_v16 = vld [vmem:[#allocation4 + $0xf0] sm:$0xff] }
 0x1fe   :  { %v3207_v9 = vpack.c.bf16 %v3126_v14, %v3123_v23  ;;  %v2548_v27 = vpop.permute.xlu1 %2547 }
 0x1ff   :  { %v2735_v26 = vpop.permute.xlu0 %2734  ;;  %2630 = vst.msk [vmem:[#allocation4 + $0x140] sm:$0xff] %vm1974_vm1, %v2548_v27  ;;  %v3131_v44 = vld [vmem:[#allocation4 + $0x108] sm:$0xff] }
 0x200   :  { %3505 = vmatprep.mubr.bf16.mxu1 %v3207_v9  ;;  %2820 = vst.msk [vmem:[#allocation4 + $0xf8] sm:$0xff] %vm2167_vm2, %v2735_v26  ;;  %2948 = vrot.lane.b32.xlu1 %v9906_v0, %s8921_s22  ;;  %v3209_v50 = vpack.c.bf16 %v3131_v44, %v3128_v16 }
 0x201   :  { %3506 = vmatmul.mubr.bf16.gmra.mrb[16].mxu1 %v3206_v36  ;;  %2115 = vrot.lane.b32.xlu0 %v2477_v3, %s8920_s10  ;;  %v8829_v36 = vld [vmem:[%s12081_s3 + $0x88] sm:$0xff]  }
 0x202   :  { %v1909_v18 = vpop.permute.xlu1 %1908  ;;  %8540 = vmatprep.subr.bf16.mxu1 %v8829_v36 }
 0x203   :  { %v2927_v29 = vpop.permute.xlu0 %2926  ;;  %1990 = vst.msk [vmem:[#allocation4 + $0x168] sm:$0xff] %vm1974_vm1, %v1909_v18  ;;  %v2483_v18 = vld [vmem:[#allocation3 + $0x1c9] sm:$0xff]  ;;  %8541 = vmatpush3.bf16.msra.mxu1 %v8829_v36 }
 0x204   :  { %3012 = vst.msk [vmem:[#allocation4 + $0xf8] sm:$0xff] %vm2360_vm3, %v2927_v29  ;;  %2567 = vrot.lane.b32.xlu1 %v2480_v10, %s8919_s30 }
 0x205   :  { %2754 = vrot.lane.b32.xlu0 %v9908_v42, %s8920_s10 }
 0x206   :  { %v2102_v24 = vpop.permute.xlu1 %2101 }
 0x207   :  { %v2546_v33 = vpop.permute.xlu0 %2545  ;;  %2183 = vst.msk [vmem:[#allocation4 + $0x168] sm:$0xff] %vm2167_vm2, %v2102_v24 }
 0x208   :  { %2629 = vst.msk [vmem:[#allocation4 + $0x128] sm:$0xff] %vm1974_vm1, %v2546_v33  ;;  %1928 = vrot.lane.b32.xlu1 %v9906_v0, %s8919_s30 }
 0x209   :  { %2946 = vrot.lane.b32.xlu0 %v9910_v4, %s8921_s22 }
 0x20a   :  { %v2737_v37 = vpop.permute.xlu1 %2736 }
 0x20b   :  { %v2289_v11 = vpop.permute.xlu0 %2288  ;;  %2821 = vst.msk [vmem:[#allocation4 + $0x110] sm:$0xff] %vm2167_vm2, %v2737_v37  ;;  %v3129_v46 = vld [vmem:[#allocation4 + $0xf8] sm:$0xff] }
 0x20c   :  { %2373 = vst.msk [vmem:[#allocation4 + $0x120] sm:$0xff] %vm2360_vm3, %v2289_v11  ;;  %3013 = vst.msk [vmem:[#allocation4 + $0x110] sm:$0xff] %vm2360_vm3, %v2929_v6  ;;  %2121 = vrot.lane.b32.xlu1 %v2480_v10, %s8920_s10 }
 0x20d   :  { %2565 = vrot.lane.b32.xlu0 %v2479_v39, %s8919_s30 }
 0x20e   :  { %v2291_v40 = vpop.permute.xlu1 %2290 }
 0x20f   :  { %v1907_v41 = vpop.permute.xlu0 %1906  ;;  %2374 = vst.msk [vmem:[#allocation4 + $0x138] sm:$0xff] %vm2360_vm3, %v2291_v40 }
 0x210   :  { %1989 = vst.msk [vmem:[#allocation4 + $0x150] sm:$0xff] %vm1974_vm1, %v1907_v41  ;;  %2756 = vrot.lane.b32.xlu1 %v9918_v19, %s8920_s10 }
 0x211   :  { %2308 = vrot.lane.b32.xlu0 %v9908_v42, %s8921_s22 }
 0x212   :  { %v2933_v0 = vpop.permute.xlu1 %2932 }
 0x213   :  { %v2100_v43 = vpop.permute.xlu0 %2099  ;;  %v3132_v47 = vld [vmem:[#allocation4 + $0x110] sm:$0xff]  ;;  %v3134_v15 = vld [vmem:[#allocation4 + $0x120] sm:$0xff] }
 0x214   :  { %2182 = vst.msk [vmem:[#allocation4 + $0x150] sm:$0xff] %vm2167_vm2, %v2100_v43  ;;  %2310 = vrot.lane.b32.xlu1 %v9918_v19, %s8921_s22  ;;  %v3210_v48 = vpack.c.bf16 %v3132_v47, %v3129_v46 }
 0x215   :  { %1926 = vrot.lane.b32.xlu0 %v9910_v4, %s8919_s30  ;;  %v2482_v4 = vld [vmem:[#allocation3 + $0x1b1] sm:$0xff] }
 0x216   :  { %v2552_v52 = vpop.permute.xlu1 %2551  ;;  %3513 = vmatprep.mubr.bf16.mxu1 %v3210_v48  ;;  %v3137_v1 = vld [vmem:[#allocation4 + $0x138] sm:$0xff] }
 0x217   :  { %v2739_v13 = vpop.permute.xlu0 %2738  ;;  %2632 = vst.msk [vmem:[#allocation4 + $0x170] sm:$0xff] %vm1974_vm1, %v2552_v52  ;;  %3514 = vmatmul.mubr.bf16.gmra.mrb[20].mxu1 %v3209_v50  ;;  %v3212_v17 = vpack.c.bf16 %v3137_v1, %v3134_v15 }
 0x218   :  { %2822 = vst.msk [vmem:[#allocation4 + $0x128] sm:$0xff] %vm2167_vm2, %v2739_v13  ;;  %2952 = vrot.lane.b32.xlu1 %v9963_v12, %s8921_s22 }
 0x219   :  { %2119 = vrot.lane.b32.xlu0 %v2479_v39, %s8920_s10 }
 0x21a   :  { %v1913_v42 = vpop.permute.xlu1 %1912 }
 0x21b   :  { %v2931_v19 = vpop.permute.xlu0 %2930  ;;  %1992 = vst.msk [vmem:[#allocation4 + $0x198] sm:$0xff] %vm1974_vm1, %v1913_v42 }
 0x21c   :  { %3014 = vst.msk [vmem:[#allocation4 + $0x128] sm:$0xff] %vm2360_vm3, %v2931_v19  ;;  %2571 = vrot.lane.b32.xlu1 %v2482_v4, %s8919_s30 }
 0x21d   :  { %2758 = vrot.lane.b32.xlu0 %v9965_v21, %s8920_s10 }
 0x21e   :  { %v2106_v49 = vpop.permute.xlu1 %2105 }
 0x21f   :  { %v2550_v54 = vpop.permute.xlu0 %2549  ;;  %2185 = vst.msk [vmem:[#allocation4 + $0x198] sm:$0xff] %vm2167_vm2, %v2106_v49 }
 0x220   :  { %2631 = vst.msk [vmem:[#allocation4 + $0x158] sm:$0xff] %vm1974_vm1, %v2550_v54  ;;  %1932 = vrot.lane.b32.xlu1 %v9963_v12, %s8919_s30 }
 0x221   :  { %2950 = vrot.lane.b32.xlu0 %v9967_v22, %s8921_s22 }
 0x222   :  { %v2741_v53 = vpop.permute.xlu1 %2740 }
 0x223   :  { %v2293_v55 = vpop.permute.xlu0 %2292  ;;  %2823 = vst.msk [vmem:[#allocation4 + $0x140] sm:$0xff] %vm2167_vm2, %v2741_v53  ;;  %v3135_v63 = vld [vmem:[#allocation4 + $0x128] sm:$0xff] }
 0x224   :  { %2375 = vst.msk [vmem:[#allocation4 + $0x150] sm:$0xff] %vm2360_vm3, %v2293_v55  ;;  %3015 = vst.msk [vmem:[#allocation4 + $0x140] sm:$0xff] %vm2360_vm3, %v2933_v0  ;;  %2125 = vrot.lane.b32.xlu1 %v2482_v4, %s8920_s10  ;;  %v2678_v53 = vld [vmem:[#allocation3 + $0x207] sm:$0xff] }
 0x225   :  { %2569 = vrot.lane.b32.xlu0 %v2481_v7, %s8919_s30 }
 0x226   :  { %v2295_v61 = vpop.permute.xlu1 %2294 }
 0x227   :  { %v1911_v62 = vpop.permute.xlu0 %1910  ;;  %2376 = vst.msk [vmem:[#allocation4 + $0x168] sm:$0xff] %vm2360_vm3, %v2295_v61 }
 0x228   :  { %1991 = vst.msk [vmem:[#allocation4 + $0x180] sm:$0xff] %vm1974_vm1, %v1911_v62  ;;  %2760 = vrot.lane.b32.xlu1 %v9978_v28, %s8920_s10 }
 0x229   :  { %2312 = vrot.lane.b32.xlu0 %v9965_v21, %s8921_s22 }
 0x22a   :  { %v2937_v12 = vpop.permute.xlu1 %2936 }
 0x22b   :  { %v2104_v3 = vpop.permute.xlu0 %2103  ;;  %v3138_v5 = vld [vmem:[#allocation4 + $0x140] sm:$0xff]  ;;  %v3140_v40 = vld [vmem:[#allocation4 + $0x150] sm:$0xff] }
 0x22c   :  { %2184 = vst.msk [vmem:[#allocation4 + $0x180] sm:$0xff] %vm2167_vm2, %v2104_v3  ;;  %2314 = vrot.lane.b32.xlu1 %v9978_v28, %s8921_s22  ;;  %v3213_v6 = vpack.c.bf16 %v3138_v5, %v3135_v63 }
 0x22d   :  { %1930 = vrot.lane.b32.xlu0 %v9967_v22, %s8919_s30  ;;  %v2484_v22 = vld [vmem:[#allocation3 + $0x1d1] sm:$0xff] }
 0x22e   :  { %v2556_v23 = vpop.permute.xlu1 %2555  ;;  %3521 = vmatprep.mubr.bf16.mxu1 %v3213_v6  ;;  %v3143_v33 = vld [vmem:[#allocation4 + $0x168] sm:$0xff] }
 0x22f   :  { %v2743_v14 = vpop.permute.xlu0 %2742  ;;  %2634 = vst.msk [vmem:[#allocation4 + $0x1a0] sm:$0xff] %vm1974_vm1, %v2556_v23  ;;  %3522 = vmatmul.mubr.bf16.gmra.mrb[24].mxu1 %v3212_v17  ;;  %v3215_v41 = vpack.c.bf16 %v3143_v33, %v3140_v40  ;;  %v10323_v17 = vld [vmem:[%s12078_s1] sm:$0xff]  }
 0x230   :  { %2824 = vst.msk [vmem:[#allocation4 + $0x158] sm:$0xff] %vm2167_vm2, %v2743_v14  ;;  %2956 = vrot.lane.b32.xlu1 %v10027_v2, %s8921_s22  ;;  %8574 = vmatprep.subr.bf16.mxu1 %v10323_v17 }
 0x231   :  { %2123 = vrot.lane.b32.xlu0 %v2481_v7, %s8920_s10 }
 0x232   :  { %v1917_v21 = vpop.permute.xlu1 %1916 }
 0x233   :  { %v2935_v28 = vpop.permute.xlu0 %2934  ;;  %1994 = vst.msk [vmem:[#allocation4 + $0x1c8] sm:$0xff] %vm1974_vm1, %v1917_v21 }
 0x234   :  { %3016 = vst.msk [vmem:[#allocation4 + $0x158] sm:$0xff] %vm2360_vm3, %v2935_v28  ;;  %2575 = vrot.lane.b32.xlu1 %v2484_v22, %s8919_s30 }
 0x235   :  { %2762 = vrot.lane.b32.xlu0 %v10029_v20, %s8920_s10 }
 0x236   :  { %v2110_v9 = vpop.permute.xlu1 %2109 }
 0x237   :  { %v2554_v25 = vpop.permute.xlu0 %2553  ;;  %2187 = vst.msk [vmem:[#allocation4 + $0x1c8] sm:$0xff] %vm2167_vm2, %v2110_v9 }
 0x238   :  { %2633 = vst.msk [vmem:[#allocation4 + $0x188] sm:$0xff] %vm1974_vm1, %v2554_v25  ;;  %1936 = vrot.lane.b32.xlu1 %v10027_v2, %s8919_s30 }
 0x239   :  { %2954 = vrot.lane.b32.xlu0 %v10031_v31, %s8921_s22 }
 0x23a   :  { %v2745_v27 = vpop.permute.xlu1 %2744 }
 0x23b   :  { %v2297_v26 = vpop.permute.xlu0 %2296  ;;  %2825 = vst.msk [vmem:[#allocation4 + $0x170] sm:$0xff] %vm2167_vm2, %v2745_v27  ;;  %v3141_v37 = vld [vmem:[#allocation4 + $0x158] sm:$0xff] }
 0x23c   :  { %2377 = vst.msk [vmem:[#allocation4 + $0x180] sm:$0xff] %vm2360_vm3, %v2297_v26  ;;  %3017 = vst.msk [vmem:[#allocation4 + $0x170] sm:$0xff] %vm2360_vm3, %v2937_v12  ;;  %2129 = vrot.lane.b32.xlu1 %v2484_v22, %s8920_s10 }
 0x23d   :  { %2573 = vrot.lane.b32.xlu0 %v2483_v18, %s8919_s30 }
 0x23e   :  { %v2299_v2 = vpop.permute.xlu1 %2298 }
 0x23f   :  { %v1915_v29 = vpop.permute.xlu0 %1914  ;;  %2378 = vst.msk [vmem:[#allocation4 + $0x198] sm:$0xff] %vm2360_vm3, %v2299_v2 }
 0x240   :  { %1993 = vst.msk [vmem:[#allocation4 + $0x1b0] sm:$0xff] %vm1974_vm1, %v1915_v29  ;;  %2764 = vrot.lane.b32.xlu1 %v10037_v35, %s8920_s10 }
 0x241   :  { %2316 = vrot.lane.b32.xlu0 %v10029_v20, %s8921_s22 }
 0x242   :  { %v2941_v10 = vpop.permute.xlu1 %2940 }
 0x243   :  { %v2108_v24 = vpop.permute.xlu0 %2107  ;;  %v3144_v11 = vld [vmem:[#allocation4 + $0x170] sm:$0xff]  ;;  %v3146_v4 = vld [vmem:[#allocation4 + $0x180] sm:$0xff] }
 0x244   :  { %2186 = vst.msk [vmem:[#allocation4 + $0x1b0] sm:$0xff] %vm2167_vm2, %v2108_v24  ;;  %2318 = vrot.lane.b32.xlu1 %v10037_v35, %s8921_s22  ;;  %v3216_v39 = vpack.c.bf16 %v3144_v11, %v3141_v37 }
 0x245   :  { %1934 = vrot.lane.b32.xlu0 %v10031_v31, %s8919_s30 }
 0x246   :  { %v2560_v0 = vpop.permute.xlu1 %2559  ;;  %3529 = vmatprep.mubr.bf16.mxu1 %v3216_v39  ;;  %v3149_v52 = vld [vmem:[#allocation4 + $0x198] sm:$0xff] }
 0x247   :  { %v2747_v43 = vpop.permute.xlu0 %2746  ;;  %2636 = vst.msk [vmem:[#allocation4 + $0x1d0] sm:$0xff] %vm1974_vm1, %v2560_v0  ;;  %3530 = vmatmul.mubr.bf16.gmra.mrb[28].mxu1 %v3215_v41  ;;  %v3218_v49 = vpack.c.bf16 %v3149_v52, %v3146_v4 }
 0x248   :  { %2826 = vst.msk [vmem:[#allocation4 + $0x188] sm:$0xff] %vm2167_vm2, %v2747_v43  ;;  %2960 = vrot.lane.b32.xlu1 %v10079_v51, %s8921_s22 }
 0x249   :  { %2127 = vrot.lane.b32.xlu0 %v2483_v18, %s8920_s10 }
 0x24a   :  { %v1921_v20 = vpop.permute.xlu1 %1920 }
 0x24b   :  { %v2939_v35 = vpop.permute.xlu0 %2938  ;;  %1996 = vst.msk [vmem:[#allocation4 + $0x1f8] sm:$0xff] %vm1974_vm1, %v1921_v20 }
 0x24c   :  { %3018 = vst.msk [vmem:[#allocation4 + $0x188] sm:$0xff] %vm2360_vm3, %v2939_v35  ;;  %2579 = vrot.lane.b32.xlu1 %v10081_v32, %s8919_s30 }
 0x24d   :  { %2766 = vrot.lane.b32.xlu0 %v10083_v34, %s8920_s10 }
 0x24e   :  { %v2114_v31 = vpop.permute.xlu1 %2113 }
 0x24f   :  { %v2558_v44 = vpop.permute.xlu0 %2557  ;;  %2189 = vst.msk [vmem:[#allocation4 + $0x1f8] sm:$0xff] %vm2167_vm2, %v2114_v31 }
 0x250   :  { %2635 = vst.msk [vmem:[#allocation4 + $0x1b8] sm:$0xff] %vm1974_vm1, %v2558_v44  ;;  %1940 = vrot.lane.b32.xlu1 %v10079_v51, %s8919_s30 }
 0x251   :  { %2958 = vrot.lane.b32.xlu0 %v10085_v60, %s8921_s22 }
 0x252   :  { %v2749_v46 = vpop.permute.xlu1 %2748 }
 0x253   :  { %v2301_v47 = vpop.permute.xlu0 %2300  ;;  %2827 = vst.msk [vmem:[#allocation4 + $0x1a0] sm:$0xff] %vm2167_vm2, %v2749_v46  ;;  %v3147_v13 = vld [vmem:[#allocation4 + $0x188] sm:$0xff] }
 0x254   :  { %2379 = vst.msk [vmem:[#allocation4 + $0x1b0] sm:$0xff] %vm2360_vm3, %v2301_v47  ;;  %3019 = vst.msk [vmem:[#allocation4 + $0x1a0] sm:$0xff] %vm2360_vm3, %v2941_v10  ;;  %2768 = vrot.lane.b32.xlu1 %v10087_v30, %s8920_s10 }
 0x255   :  { %2577 = vrot.lane.b32.xlu0 %v10093_v38, %s8919_s30 }
 0x256   :  { %v2303_v48 = vpop.permute.xlu1 %2302 }
 0x257   :  { %v1919_v16 = vpop.permute.xlu0 %1918  ;;  %2380 = vst.msk [vmem:[#allocation4 + $0x1c8] sm:$0xff] %vm2360_vm3, %v2303_v48 }
 0x258   :  { %1995 = vst.msk [vmem:[#allocation4 + $0x1e0] sm:$0xff] %vm1974_vm1, %v1919_v16  ;;  %2322 = vrot.lane.b32.xlu1 %v10087_v30, %s8921_s22 }
 0x259   :  { %2320 = vrot.lane.b32.xlu0 %v10083_v34, %s8921_s22 }
 0x25a   :  { %v2945_v51 = vpop.permute.xlu1 %2944 }
 0x25b   :  { %v2112_v50 = vpop.permute.xlu0 %2111  ;;  %v3150_v42 = vld [vmem:[#allocation4 + $0x1a0] sm:$0xff]  ;;  %v3152_v21 = vld [vmem:[#allocation4 + $0x1b0] sm:$0xff] }
 0x25c   :  { %2188 = vst.msk [vmem:[#allocation4 + $0x1e0] sm:$0xff] %vm2167_vm2, %v2112_v50  ;;  %2964 = vrot.lane.b32.xlu1 %v10125_v56, %s8921_s22  ;;  %v3219_v19 = vpack.c.bf16 %v3150_v42, %v3147_v13 }
 0x25d   :  { %1938 = vrot.lane.b32.xlu0 %v10085_v60, %s8919_s30  ;;  %v2679_v60 = vld [vmem:[#allocation3 + $0x20f] sm:$0xff] }
 0x25e   :  { %v2564_v30 = vpop.permute.xlu1 %2563  ;;  %3537 = vmatprep.mubr.bf16.mxu1 %v3219_v19  ;;  %v3155_v1 = vld [vmem:[#allocation4 + $0x1c8] sm:$0xff] }
 0x25f   :  { %v2751_v54 = vpop.permute.xlu0 %2750  ;;  %2638 = vst.msk [vmem:[#allocation4 + $0x200] sm:$0xff] %vm1974_vm1, %v2564_v30  ;;  %3538 = vmatmul.mubr.bf16.gmra.mrb[32].mxu1 %v3218_v49  ;;  %v3221_v22 = vpack.c.bf16 %v3155_v1, %v3152_v21 }
 0x260   :  { %2828 = vst.msk [vmem:[#allocation4 + $0x1b8] sm:$0xff] %vm2167_vm2, %v2751_v54  ;;  %2583 = vrot.lane.b32.xlu1 %v10127_v57, %s8919_s30  ;;  %v2872_v57 = vld [vmem:[#allocation3 + $0x228] sm:$0xff] }
 0x261   :  { %2131 = vrot.lane.b32.xlu0 %v10093_v38, %s8920_s10  ;;  %v2873_v38 = vld [vmem:[#allocation3 + $0x230] sm:$0xff] }
 0x262   :  { %v1925_v34 = vpop.permute.xlu1 %1924 }
 0x263   :  { %v2943_v56 = vpop.permute.xlu0 %2942  ;;  %1998 = vst.msk [vmem:[#allocation4 + $0x228] sm:$0xff] %vm1974_vm1, %v1925_v34 }
 0x264   :  { %3020 = vst.msk [vmem:[#allocation4 + $0x1b8] sm:$0xff] %vm2360_vm3, %v2943_v56  ;;  %2772 = vrot.lane.b32.xlu1 %v2679_v60, %s8920_s10 }
 0x265   :  { %2770 = vrot.lane.b32.xlu0 %v2678_v53, %s8920_s10 }
 0x266   :  { %v2118_v55 = vpop.permute.xlu1 %2117 }
 0x267   :  { %v2562_v7 = vpop.permute.xlu0 %2561  ;;  %2191 = vst.msk [vmem:[#allocation4 + $0x228] sm:$0xff] %vm2167_vm2, %v2118_v55 }
 0x268   :  { %2637 = vst.msk [vmem:[#allocation4 + $0x1e8] sm:$0xff] %vm1974_vm1, %v2562_v7  ;;  %2133 = vrot.lane.b32.xlu1 %v10081_v32, %s8920_s10 }
 0x269   :  { %2962 = vrot.lane.b32.xlu0 %v10129_v59, %s8921_s22 }
 0x26a   :  { %v2753_v61 = vpop.permute.xlu1 %2752 }
 0x26b   :  { %v2305_v62 = vpop.permute.xlu0 %2304  ;;  %2829 = vst.msk [vmem:[#allocation4 + $0x1d0] sm:$0xff] %vm2167_vm2, %v2753_v61  ;;  %v3153_v6 = vld [vmem:[#allocation4 + $0x1b8] sm:$0xff] }
 0x26c   :  { %2381 = vst.msk [vmem:[#allocation4 + $0x1e0] sm:$0xff] %vm2360_vm3, %v2305_v62  ;;  %3021 = vst.msk [vmem:[#allocation4 + $0x1d0] sm:$0xff] %vm2360_vm3, %v2945_v51  ;;  %2968 = vrot.lane.b32.xlu1 %v2873_v38, %s8921_s22 }
 0x26d   :  { %2966 = vrot.lane.b32.xlu0 %v2872_v57, %s8921_s22 }
 0x26e   :  { %v2307_v12 = vpop.permute.xlu1 %2306 }
 0x26f   :  { %v1923_v3 = vpop.permute.xlu0 %1922  ;;  %2382 = vst.msk [vmem:[#allocation4 + $0x1f8] sm:$0xff] %vm2360_vm3, %v2307_v12 }
 0x270   :  { %1997 = vst.msk [vmem:[#allocation4 + $0x210] sm:$0xff] %vm1974_vm1, %v1923_v3  ;;  %2326 = vrot.lane.b32.xlu1 %v2679_v60, %s8921_s22 }
 0x271   :  { %2581 = vrot.lane.b32.xlu0 %v10135_v45, %s8919_s30 }
 0x272   :  { %v2949_v32 = vpop.permute.xlu1 %2948  ;;  %v8096_v59 = vpop.f32.mrb[0].mxu1 }
 0x273   :  { %v2116_v63 = vpop.permute.xlu0 %2115  ;;  %v8097_v5 = vpop.f32.mrb[1].mxu1  ;;  %v3156_v15 = vld [vmem:[#allocation4 + $0x1d0] sm:$0xff]  ;;  %v3158_v44 = vld [vmem:[#allocation4 + $0x1e0] sm:$0xff] }
 0x274   :  { %2190 = vst.msk [vmem:[#allocation4 + $0x210] sm:$0xff] %vm2167_vm2, %v2116_v63  ;;  %v10326_v23 = vadd.f32 %v8097_v5, %v8096_v59  ;;  %v8099_v14 = vpop.f32.mrb[2].mxu1  ;;  %v3222_v45 = vpack.c.bf16 %v3156_v15, %v3153_v6  ;;  %v3064_v6 = vld [vmem:[#allocation3 + $0x229] sm:$0xff]  ;;  %v3065_v15 = vld [vmem:[#allocation3 + $0x231] sm:$0xff] }
 0x275   :  { %2324 = vrot.lane.b32.xlu0 %v2678_v53, %s8921_s22  ;;  %v8100_v28 = vpop.f32.mrb[3].mxu1  ;;  %3096 = vst.msk [vmem:[#allocation4 + $0x2e0] sm:$0xff] %vm21_vm0, %v3064_v6  ;;  %3097 = vst.msk [vmem:[#allocation4 + $0x2f8] sm:$0xff] %vm21_vm0, %v3065_v15 }
 0x276   :  { %v10330_v9 = vadd.f32 %v8100_v28, %v8099_v14  ;;  %v2568_v25 = vpop.permute.xlu1 %2567  ;;  %3545 = vmatprep.mubr.bf16.mxu1 %v3222_v45  ;;  %v3161_v39 = vld [vmem:[#allocation4 + $0x1f8] sm:$0xff] }
 0x277   :  { %2640 = vst.msk [vmem:[#allocation4 + $0x230] sm:$0xff] %vm1974_vm1, %v2568_v25  ;;  %v2755_v36 = vpop.permute.xlu0 %2754  ;;  %3546 = vmatmul.mubr.bf16.gmra.mrb[36].mxu1 %v3221_v22  ;;  %v3224_v47 = vpack.c.bf16 %v3161_v39, %v3158_v44 }
 0x278   :  { %2830 = vst.msk [vmem:[#allocation4 + $0x1e8] sm:$0xff] %vm2167_vm2, %v2755_v36 }
 0x27a   :  { %v1929_v27 = vpop.permute.xlu1 %1928 }
 0x27b   :  { %2000 = vst.msk [vmem:[#allocation4 + $0x258] sm:$0xff] %vm1974_vm1, %v1929_v27  ;;  %v2947_v26 = vpop.permute.xlu0 %2946 }
 0x27c   :  { %3022 = vst.msk [vmem:[#allocation4 + $0x1e8] sm:$0xff] %vm2360_vm3, %v2947_v26  ;;  %v10373_v22 = vld [vmem:[#allocation4 + $0x2e0] sm:$0xff]  ;;  %v10375_v25 = vld [vmem:[#allocation4 + $0x2f8] sm:$0xff] }
 0x27d   :  { %v3241_v36 = vpack.c.bf16 %v10375_v25, %v10373_v22  ;;  %6842 = vst.msk [vmem:[#allocation4 + $0x2e0] sm:$0xff] %vm21_vm0, %v3064_v6  ;;  %6843 = vst.msk [vmem:[#allocation4 + $0x2f8] sm:$0xff] %vm21_vm0, %v3065_v15  ;;  %v8834_v22 = vld [vmem:[%s12079_s0 + $0x210] sm:$0xff]   ;;  %v8835_v25 = vld [vmem:[%s12079_s0 + $0x218] sm:$0xff]  }
 0x27e   :  { %v2122_v18 = vpop.permute.xlu1 %2121 }
 0x27f   :  { %2193 = vst.msk [vmem:[#allocation4 + $0x258] sm:$0xff] %vm2167_vm2, %v2122_v18  ;;  %v2566_v2 = vpop.permute.xlu0 %2565 }
 0x280   :  { %2639 = vst.msk [vmem:[#allocation4 + $0x218] sm:$0xff] %vm1974_vm1, %v2566_v2 }
 0x282   :  { %v2757_v29 = vpop.permute.xlu1 %2756 }
 0x283   :  { %2831 = vst.msk [vmem:[#allocation4 + $0x200] sm:$0xff] %vm2167_vm2, %v2757_v29  ;;  %v2309_v10 = vpop.permute.xlu0 %2308  ;;  %v3159_v0 = vld [vmem:[#allocation4 + $0x1e8] sm:$0xff] }
 0x284   :  { %3023 = vst.msk [vmem:[#allocation4 + $0x200] sm:$0xff] %vm2360_vm3, %v2949_v32  ;;  %2383 = vst.msk [vmem:[#allocation4 + $0x210] sm:$0xff] %vm2360_vm3, %v2309_v10 }
 0x286   :  { %v2311_v24 = vpop.permute.xlu1 %2310 }
 0x287   :  { %2384 = vst.msk [vmem:[#allocation4 + $0x228] sm:$0xff] %vm2360_vm3, %v2311_v24  ;;  %v1927_v33 = vpop.permute.xlu0 %1926 }
 0x288   :  { %1999 = vst.msk [vmem:[#allocation4 + $0x240] sm:$0xff] %vm1974_vm1, %v1927_v33 }
 0x28a   :  { %v2953_v37 = vpop.permute.xlu1 %2952 }
 0x28b   :  { %v2120_v40 = vpop.permute.xlu0 %2119  ;;  %v3162_v43 = vld [vmem:[#allocation4 + $0x200] sm:$0xff]  ;;  %v3164_v62 = vld [vmem:[#allocation4 + $0x210] sm:$0xff] }
 0x28c   :  { %2192 = vst.msk [vmem:[#allocation4 + $0x240] sm:$0xff] %vm2167_vm2, %v2120_v40  ;;  %v3225_v31 = vpack.c.bf16 %v3162_v43, %v3159_v0 }
 0x28e   :  { %v8102_v11 = vpop.f32.mrb[4].mxu1  ;;  %v2572_v16 = vpop.permute.xlu1 %2571  ;;  %3553 = vmatprep.mubr.bf16.mxu1 %v3225_v31  ;;  %v3167_v56 = vld [vmem:[#allocation4 + $0x228] sm:$0xff] }
 0x28f   :  { %v8103_v41 = vpop.f32.mrb[5].mxu1  ;;  %2642 = vst.msk [vmem:[#allocation4 + $0x260] sm:$0xff] %vm1974_vm1, %v2572_v16  ;;  %v2759_v51 = vpop.permute.xlu0 %2758  ;;  %3554 = vmatmul.mubr.bf16.gmra.mrb[40].mxu1 %v3224_v47  ;;  %v3227_v3 = vpack.c.bf16 %v3167_v56, %v3164_v62 }
 0x290   :  { %v10344_v20 = vadd.f32 %v8103_v41, %v8102_v11  ;;  %v8105_v35 = vpop.f32.mrb[6].mxu1  ;;  %2832 = vst.msk [vmem:[#allocation4 + $0x218] sm:$0xff] %vm2167_vm2, %v2759_v51 }
 0x291   :  { %v8106_v46 = vpop.f32.mrb[7].mxu1 }
 0x292   :  { %v10346_v48 = vadd.f32 %v8106_v46, %v8105_v35  ;;  %v1933_v50 = vpop.permute.xlu1 %1932 }
 0x293   :  { %2002 = vst.msk [vmem:[#allocation4 + $0x288] sm:$0xff] %vm1974_vm1, %v1933_v50  ;;  %v2951_v52 = vpop.permute.xlu0 %2950 }
 0x294   :  { %3024 = vst.msk [vmem:[#allocation4 + $0x218] sm:$0xff] %vm2360_vm3, %v2951_v52 }
 0x296   :  { %v2126_v13 = vpop.permute.xlu1 %2125 }
 0x297   :  { %2195 = vst.msk [vmem:[#allocation4 + $0x288] sm:$0xff] %vm2167_vm2, %v2126_v13  ;;  %v2570_v42 = vpop.permute.xlu0 %2569 }
 0x298   :  { %2641 = vst.msk [vmem:[#allocation4 + $0x248] sm:$0xff] %vm1974_vm1, %v2570_v42 }
 0x29a   :  { %v2761_v19 = vpop.permute.xlu1 %2760 }
 0x29b   :  { %2833 = vst.msk [vmem:[#allocation4 + $0x230] sm:$0xff] %vm2167_vm2, %v2761_v19  ;;  %v2313_v4 = vpop.permute.xlu0 %2312  ;;  %v3165_v55 = vld [vmem:[#allocation4 + $0x218] sm:$0xff] }
 0x29c   :  { %3025 = vst.msk [vmem:[#allocation4 + $0x230] sm:$0xff] %vm2360_vm3, %v2953_v37  ;;  %2385 = vst.msk [vmem:[#allocation4 + $0x240] sm:$0xff] %vm2360_vm3, %v2313_v4 }
 0x29e   :  { %v2315_v49 = vpop.permute.xlu1 %2314 }
 0x29f   :  { %2386 = vst.msk [vmem:[#allocation4 + $0x258] sm:$0xff] %vm2360_vm3, %v2315_v49  ;;  %v1931_v30 = vpop.permute.xlu0 %1930 }
 0x2a0   :  { %2001 = vst.msk [vmem:[#allocation4 + $0x270] sm:$0xff] %vm1974_vm1, %v1931_v30 }
 0x2a2   :  { %v2957_v54 = vpop.permute.xlu1 %2956 }
 0x2a3   :  { %v2124_v60 = vpop.permute.xlu0 %2123  ;;  %v3168_v7 = vld [vmem:[#allocation4 + $0x230] sm:$0xff]  ;;  %v3170_v41 = vld [vmem:[#allocation4 + $0x240] sm:$0xff] }
 0x2a4   :  { %2194 = vst.msk [vmem:[#allocation4 + $0x270] sm:$0xff] %vm2167_vm2, %v2124_v60  ;;  %v3228_v61 = vpack.c.bf16 %v3168_v7, %v3165_v55 }
 0x2a5   :  { %v8108_v34 = vpop.f32.mrb[8].mxu1 }
 0x2a6   :  { %v8109_v53 = vpop.f32.mrb[9].mxu1  ;;  %v2576_v59 = vpop.permute.xlu1 %2575  ;;  %3561 = vmatprep.mubr.bf16.mxu1 %v3228_v61  ;;  %v3173_v29 = vld [vmem:[#allocation4 + $0x258] sm:$0xff] }
 0x2a7   :  { %v10360_v38 = vadd.f32 %v8109_v53, %v8108_v34  ;;  %v8111_v57 = vpop.f32.mrb[10].mxu1  ;;  %2644 = vst.msk [vmem:[#allocation4 + $0x290] sm:$0xff] %vm1974_vm1, %v2576_v59  ;;  %v2763_v1 = vpop.permute.xlu0 %2762  ;;  %3562 = vmatmul.mubr.bf16.gmra.mrb[44].mxu1 %v3227_v3  ;;  %v3230_v43 = vpack.c.bf16 %v3173_v29, %v3170_v41  ;;  %v3103_v41 = vld [vmem:[#allocation4 + $0x28] sm:$0xff] }
 0x2a8   :  { %v8112_v12 = vpop.f32.mrb[11].mxu1  ;;  %2834 = vst.msk [vmem:[#allocation4 + $0x248] sm:$0xff] %vm2167_vm2, %v2763_v1 }
 0x2a9   :  { %v10362_v32 = vadd.f32 %v8112_v12, %v8111_v57 }
 0x2aa   :  { %v1937_v63 = vpop.permute.xlu1 %1936 }
 0x2ab   :  { %2004 = vst.msk [vmem:[#allocation4 + $0x2b8] sm:$0xff] %vm1974_vm1, %v1937_v63  ;;  %v2955_v5 = vpop.permute.xlu0 %2954 }
 0x2ac   :  { %3026 = vst.msk [vmem:[#allocation4 + $0x248] sm:$0xff] %vm2360_vm3, %v2955_v5 }
 0x2ae   :  { %v2130_v14 = vpop.permute.xlu1 %2129 }
 0x2af   :  { %2197 = vst.msk [vmem:[#allocation4 + $0x2b8] sm:$0xff] %vm2167_vm2, %v2130_v14  ;;  %v2574_v45 = vpop.permute.xlu0 %2573 }
 0x2b0   :  { %2643 = vst.msk [vmem:[#allocation4 + $0x278] sm:$0xff] %vm1974_vm1, %v2574_v45 }
 0x2b2   :  { %v2765_v21 = vpop.permute.xlu1 %2764 }
 0x2b3   :  { %2835 = vst.msk [vmem:[#allocation4 + $0x260] sm:$0xff] %vm2167_vm2, %v2765_v21  ;;  %v2317_v28 = vpop.permute.xlu0 %2316  ;;  %v3171_v33 = vld [vmem:[#allocation4 + $0x248] sm:$0xff] }
 0x2b4   :  { %3027 = vst.msk [vmem:[#allocation4 + $0x260] sm:$0xff] %vm2360_vm3, %v2957_v54  ;;  %2387 = vst.msk [vmem:[#allocation4 + $0x270] sm:$0xff] %vm2360_vm3, %v2317_v28 }
 0x2b6   :  { %v2319_v27 = vpop.permute.xlu1 %2318 }
 0x2b7   :  { %2388 = vst.msk [vmem:[#allocation4 + $0x288] sm:$0xff] %vm2360_vm3, %v2319_v27  ;;  %v1935_v26 = vpop.permute.xlu0 %1934 }
 0x2b8   :  { %2003 = vst.msk [vmem:[#allocation4 + $0x2a0] sm:$0xff] %vm1974_vm1, %v1935_v26 }
 0x2ba   :  { %v2961_v18 = vpop.permute.xlu1 %2960 }
 0x2bb   :  { %v2128_v10 = vpop.permute.xlu0 %2127  ;;  %v3174_v37 = vld [vmem:[#allocation4 + $0x260] sm:$0xff]  ;;  %v3176_v54 = vld [vmem:[#allocation4 + $0x270] sm:$0xff] }
 0x2bc   :  { %2196 = vst.msk [vmem:[#allocation4 + $0x2a0] sm:$0xff] %vm2167_vm2, %v2128_v10  ;;  %v3231_v40 = vpack.c.bf16 %v3174_v37, %v3171_v33 }
 0x2be   :  { %v8114_v2 = vpop.f32.mrb[12].mxu1  ;;  %v2580_v31 = vpop.permute.xlu1 %2579  ;;  %3569 = vmatprep.mubr.bf16.mxu1 %v3231_v40  ;;  %v3179_v42 = vld [vmem:[#allocation4 + $0x288] sm:$0xff] }
 0x2bf   :  { %v8115_v24 = vpop.f32.mrb[13].mxu1  ;;  %2646 = vst.msk [vmem:[#allocation4 + $0x2c0] sm:$0xff] %vm1974_vm1, %v2580_v31  ;;  %v2767_v44 = vpop.permute.xlu0 %2766  ;;  %3570 = vmatmul.mubr.bf16.gmra.mrb[48].mxu1 %v3230_v43  ;;  %v3233_v34 = vpack.c.bf16 %v3179_v42, %v3176_v54  ;;  %v3118_v42 = vld [vmem:[#allocation4 + $0xa0] sm:$0xff] }
 0x2c0   :  { %v10386_v11 = vadd.f32 %v8115_v24, %v8114_v2  ;;  %v8117_v39 = vpop.f32.mrb[14].mxu1  ;;  %2836 = vst.msk [vmem:[#allocation4 + $0x278] sm:$0xff] %vm2167_vm2, %v2767_v44 }
 0x2c1   :  { %v8118_v0 = vpop.f32.mrb[15].mxu1 }
 0x2c2   :  { %v10388_v35 = vadd.f32 %v8118_v0, %v8117_v39  ;;  %v1941_v46 = vpop.permute.xlu1 %1940 }
 0x2c3   :  { %2006 = vst.msk [vmem:[#allocation4 + $0x2e8] sm:$0xff] %vm1974_vm1, %v1941_v46  ;;  %v2959_v47 = vpop.permute.xlu0 %2958  ;;  %v3106_v46 = vld [vmem:[#allocation4 + $0x40] sm:$0xff] }
 0x2c4   :  { %3028 = vst.msk [vmem:[#allocation4 + $0x278] sm:$0xff] %vm2360_vm3, %v2959_v47  ;;  %v3109_v47 = vld [vmem:[#allocation4 + $0x58] sm:$0xff] }
 0x2c6   :  { %v2769_v16 = vpop.permute.xlu1 %2768 }
 0x2c7   :  { %2837 = vst.msk [vmem:[#allocation4 + $0x290] sm:$0xff] %vm2167_vm2, %v2769_v16  ;;  %v2578_v51 = vpop.permute.xlu0 %2577  ;;  %v3112_v16 = vld [vmem:[#allocation4 + $0x70] sm:$0xff] }
 0x2c8   :  { %3029 = vst.msk [vmem:[#allocation4 + $0x290] sm:$0xff] %vm2360_vm3, %v2961_v18 }
 0x2c9   :  { %2645 = vst.msk [vmem:[#allocation4 + $0x2a8] sm:$0xff] %vm1974_vm1, %v2578_v51  ;;  %v3115_v51 = vld [vmem:[#allocation4 + $0x88] sm:$0xff] }
 0x2ca   :  { %v2323_v50 = vpop.permute.xlu1 %2322 }
 0x2cb   :  { %2390 = vst.msk [vmem:[#allocation4 + $0x2b8] sm:$0xff] %vm2360_vm3, %v2323_v50  ;;  %v2321_v52 = vpop.permute.xlu0 %2320  ;;  %v3177_v4 = vld [vmem:[#allocation4 + $0x278] sm:$0xff]  ;;  %v3199_v50 = vpack.c.bf16 %v3109_v47, %v3106_v46  ;;  %v3178_v46 = vld [vmem:[#allocation4 + $0x280] sm:$0xff] }
 0x2cc   :  { %2389 = vst.msk [vmem:[#allocation4 + $0x2a0] sm:$0xff] %vm2360_vm3, %v2321_v52  ;;  %v8831_v52 = vld [vmem:[%s12078_s1 + $0x8] sm:$0xff]   ;;  %v3181_v47 = vld [vmem:[#allocation4 + $0x298] sm:$0xff] }
 0x2ce   :  { %v2965_v13 = vpop.permute.xlu1 %2964 }
 0x2cf   :  { %v1939_v19 = vpop.permute.xlu0 %1938  ;;  %v3180_v49 = vld [vmem:[#allocation4 + $0x290] sm:$0xff] }
 0x2d0   :  { %2005 = vst.msk [vmem:[#allocation4 + $0x2d0] sm:$0xff] %vm1974_vm1, %v1939_v19  ;;  %v3234_v30 = vpack.c.bf16 %v3180_v49, %v3177_v4  ;;  %v3121_v19 = vld [vmem:[#allocation4 + $0xb8] sm:$0xff]  ;;  %v3124_v4 = vld [vmem:[#allocation4 + $0xd0] sm:$0xff]  ;;  %v3127_v49 = vld [vmem:[#allocation4 + $0xe8] sm:$0xff] }
 0x2d1   :  { %v3208_v54 = vpack.c.bf16 %v3127_v49, %v3124_v4 }
 0x2d2   :  { %v2584_v56 = vpop.permute.xlu1 %2583  ;;  %3577 = vmatprep.mubr.bf16.mxu1 %v3234_v30  ;;  %v3185_v15 = vld [vmem:[#allocation4 + $0x2b8] sm:$0xff]  ;;  %v3205_v30 = vpack.c.bf16 %v3121_v19, %v3118_v42 }
 0x2d3   :  { %2648 = vst.msk [vmem:[#allocation4 + $0x2f0] sm:$0xff] %vm1974_vm1, %v2584_v56  ;;  %v2132_v53 = vpop.permute.xlu0 %2131  ;;  %3578 = vmatmul.mubr.bf16.gmra.mrb[52].mxu1 %v3233_v34  ;;  %v3182_v6 = vld [vmem:[#allocation4 + $0x2a0] sm:$0xff] }
 0x2d4   :  { %v8120_v60 = vpop.f32.mrb[16].mxu1  ;;  %2841 = vst.msk [vmem:[#allocation4 + $0x2f0] sm:$0xff] %vm2167_vm2, %v9698_v8  ;;  %2198 = vst.msk [vmem:[#allocation4 + $0x2d0] sm:$0xff] %vm2167_vm2, %v2132_v53  ;;  %v3236_v27 = vpack.c.bf16 %v3185_v15, %v3182_v6  ;;  %v3151_v6 = vld [vmem:[#allocation4 + $0x1a8] sm:$0xff] }
 0x2d5   :  { %v8121_v55 = vpop.f32.mrb[17].mxu1 }
 0x2d6   :  { %v10404_v7 = vadd.f32 %v8121_v55, %v8120_v60  ;;  %v8123_v57 = vpop.f32.mrb[18].mxu1  ;;  %v2773_v12 = vpop.permute.xlu1 %2772  ;;  %v3130_v55 = vld [vmem:[#allocation4 + $0x100] sm:$0xff] }
 0x2d7   :  { %v8124_v61 = vpop.f32.mrb[19].mxu1  ;;  %2839 = vst.msk [vmem:[#allocation4 + $0x2c0] sm:$0xff] %vm2167_vm2, %v2773_v12  ;;  %v2771_v3 = vpop.permute.xlu0 %2770  ;;  %v3136_v12 = vld [vmem:[#allocation4 + $0x130] sm:$0xff] }
 0x2d8   :  { %v10406_v62 = vadd.f32 %v8124_v61, %v8123_v57  ;;  %3031 = vst.msk [vmem:[#allocation4 + $0x2c0] sm:$0xff] %vm2360_vm3, %v2965_v13  ;;  %v3202_v13 = vpack.c.bf16 %v3115_v51, %v3112_v16  ;;  %v3133_v57 = vld [vmem:[#allocation4 + $0x118] sm:$0xff]  ;;  %v3184_v16 = vld [vmem:[#allocation4 + $0x2b0] sm:$0xff]  ;;  %v3187_v51 = vld [vmem:[#allocation4 + $0x2c8] sm:$0xff] }
 0x2d9   :  { %2838 = vst.msk [vmem:[#allocation4 + $0x2a8] sm:$0xff] %vm2167_vm2, %v2771_v3  ;;  %v3139_v3 = vld [vmem:[#allocation4 + $0x148] sm:$0xff] }
 0x2da   :  { %v2134_v59 = vpop.permute.xlu1 %2133 }
 0x2db   :  { %2199 = vst.msk [vmem:[#allocation4 + $0x2e8] sm:$0xff] %vm2167_vm2, %v2134_v59  ;;  %v2963_v8 = vpop.permute.xlu0 %2962  ;;  %v3211_v59 = vpack.c.bf16 %v3133_v57, %v3130_v55 }
 0x2dc   :  { %3030 = vst.msk [vmem:[#allocation4 + $0x2a8] sm:$0xff] %vm2360_vm3, %v2963_v8  ;;  %v3214_v8 = vpack.c.bf16 %v3139_v3, %v3136_v12 }
 0x2de   :  { %v2969_v1 = vpop.permute.xlu1 %2968 }
 0x2df   :  { %3033 = vst.msk [vmem:[#allocation4 + $0x2f0] sm:$0xff] %vm2360_vm3, %v2969_v1  ;;  %v2967_v63 = vpop.permute.xlu0 %2966  ;;  %v3186_v21 = vld [vmem:[#allocation4 + $0x2c0] sm:$0xff] }
 0x2e0   :  { %v3142_v1 = vld [vmem:[#allocation4 + $0x160] sm:$0xff] }
 0x2e2   :  { %v2327_v5 = vpop.permute.xlu1 %2326 }
 0x2e3   :  { %2392 = vst.msk [vmem:[#allocation4 + $0x2e8] sm:$0xff] %vm2360_vm3, %v2327_v5  ;;  %v2582_v14 = vpop.permute.xlu0 %2581  ;;  %v3183_v45 = vld [vmem:[#allocation4 + $0x2a8] sm:$0xff]  ;;  %v3148_v5 = vld [vmem:[#allocation4 + $0x190] sm:$0xff] }
 0x2e4   :  { %2647 = vst.msk [vmem:[#allocation4 + $0x2d8] sm:$0xff] %vm1974_vm1, %v2582_v14  ;;  %v3237_v28 = vpack.c.bf16 %v3186_v21, %v3183_v45  ;;  %v3220_v14 = vpack.c.bf16 %v3151_v6, %v3148_v5  ;;  %v3154_v45 = vld [vmem:[#allocation4 + $0x1c0] sm:$0xff]  ;;  %v3157_v21 = vld [vmem:[#allocation4 + $0x1d8] sm:$0xff]  ;;  %v8842_v5 = vld [vmem:[%s12079_s0 + $0x250] sm:$0xff]  }
 0x2e5   :  { %2840 = vst.msk [vmem:[#allocation4 + $0x2d8] sm:$0xff] %vm2167_vm2, %v9696_v58  ;;  %v3100_v58 = vld [vmem:[#allocation4 + $0x10] sm:$0xff]  ;;  %v8843_v6 = vld [vmem:[%s12079_s0 + $0x258] sm:$0xff]  }
 0x2e6   :  { %3032 = vst.msk [vmem:[#allocation4 + $0x2d8] sm:$0xff] %vm2360_vm3, %v2967_v63  ;;  %3585 = vmatprep.mubr.bf16.mxu1 %v3237_v28  ;;  %v3192_v37 = vld [vmem:[#allocation4 + $0x2f0] sm:$0xff]  ;;  %v3196_v44 = vpack.c.bf16 %v3103_v41, %v3100_v58  ;;  %v3145_v63 = vld [vmem:[#allocation4 + $0x178] sm:$0xff] }
 0x2e7   :  { %v2325_v26 = vpop.permute.xlu0 %2324  ;;  %3586 = vmatmul.mubr.bf16.gmra.mrb[56].mxu1 %v3236_v27  ;;  %v3217_v15 = vpack.c.bf16 %v3145_v63, %v3142_v1  ;;  %v3160_v28 = vld [vmem:[#allocation4 + $0x1f0] sm:$0xff]  ;;  %v3163_v27 = vld [vmem:[#allocation4 + $0x208] sm:$0xff]  ;;  %v3169_v58 = vld [vmem:[#allocation4 + $0x238] sm:$0xff] }
 0x2e8   :  { %2391 = vst.msk [vmem:[#allocation4 + $0x2d0] sm:$0xff] %vm2360_vm3, %v2325_v26  ;;  %v3223_v26 = vpack.c.bf16 %v3157_v21, %v3154_v45  ;;  %v8840_v1 = vld [vmem:[%s12079_s0 + $0x240] sm:$0xff]   ;;  %v8841_v63 = vld [vmem:[%s12079_s0 + $0x248] sm:$0xff]  }
 0x2ea   :  { %v8126_v18 = vpop.f32.mrb[20].mxu1  ;;  %v3191_v43 = vld [vmem:[#allocation4 + $0x2e8] sm:$0xff] }
 0x2eb   :  { %v8127_v2 = vpop.f32.mrb[21].mxu1 }
 0x2ec   :  { %v10420_v29 = vadd.f32 %v8127_v2, %v8126_v18  ;;  %v8129_v10 = vpop.f32.mrb[22].mxu1  ;;  %v3226_v18 = vpack.c.bf16 %v3163_v27, %v3160_v28 }
 0x2ed   :  { %v8130_v24 = vpop.f32.mrb[23].mxu1  ;;  %v3189_v33 = vld [vmem:[#allocation4 + $0x2d8] sm:$0xff] }
 0x2ee   :  { %v10422_v39 = vadd.f32 %v8130_v24, %v8129_v10  ;;  %v3240_v40 = vpack.c.bf16 %v3192_v37, %v3189_v33 }
 0x2ef   :  { %v3188_v0 = vld [vmem:[#allocation4 + $0x2d0] sm:$0xff] }
 0x2f0   :  { %3593 = vmatprep.mubr.bf16.mxu1 %v3240_v40  ;;  %v3239_v31 = vpack.c.bf16 %v3191_v43, %v3188_v0  ;;  %v3166_v40 = vld [vmem:[#allocation4 + $0x220] sm:$0xff]  ;;  %v3172_v0 = vld [vmem:[#allocation4 + $0x250] sm:$0xff]  ;;  %v3175_v43 = vld [vmem:[#allocation4 + $0x268] sm:$0xff] }
 0x2f2   :  { %3594 = vmatmul.mubr.bf16.gmra.mrb[60].mxu1 %v3239_v31  ;;  %v3229_v31 = vpack.c.bf16 %v3169_v58, %v3166_v40  ;;  %v8850_v40 = vld [vmem:[%s12079_s0 + $0x290] sm:$0xff]  }
 0x2f3   :  { %8542 = vmatprep.mubr.msk.bf16.mxu1 %vm21_vm0, %v3196_v44  ;;  %v3232_v44 = vpack.c.bf16 %v3175_v43, %v3172_v0 }
 0x2fa   :  { %8543 = vmatmul.mubr.msk.bf16.vlgmr.msra.gmra.mrb[64].mxu1 %vm21_vm0, %v3199_v50  ;;  %v3235_v50 = vpack.c.bf16 %v3181_v47, %v3178_v46  ;;  %v8851_v47 = vld [vmem:[%s12079_s0 + $0x298] sm:$0xff]  }
 0x2fb   :  { %8575 = vmatpush3.bf16.msra.mxu1 %v10323_v17  ;;  %8546 = vmatprep.mubr.msk.bf16.mxu1 %vm21_vm0, %v3202_v13  ;;  %v8832_v13 = vld [vmem:[%s12079_s0 + $0x200] sm:$0xff]  }
 0x2fc   :  { %8576 = vmatprep.subr.bf16.mxu1 %v8831_v52 }
 0x2ff   :  { %8577 = vmatpush3.bf16.msra.mxu1 %v8831_v52  ;;  %v3238_v52 = vpack.c.bf16 %v3187_v51, %v3184_v16  ;;  %v8852_v16 = vld [vmem:[%s12079_s0 + $0x2a0] sm:$0xff]   ;;  %v8853_v51 = vld [vmem:[%s12079_s0 + $0x2a8] sm:$0xff]  }
 0x302   :  { %8547 = vmatmul.mubr.msk.bf16.gmra.mrb[68].mxu1 %vm21_vm0, %v3205_v30  ;;  %v8132_v34 = vpop.f32.mrb[24].mxu1 }
 0x303   :  { %8550 = vmatprep.mubr.msk.bf16.mxu1 %vm21_vm0, %v3208_v54  ;;  %v8133_v56 = vpop.f32.mrb[25].mxu1 }
 0x304   :  { %v10433_v60 = vadd.f32 %v8133_v56, %v8132_v34  ;;  %v8135_v53 = vpop.f32.mrb[26].mxu1  ;;  %v8833_v34 = vld [vmem:[%s12079_s0 + $0x208] sm:$0xff]  }
 0x305   :  { %v8136_v17 = vpop.f32.mrb[27].mxu1  ;;  %v8837_v56 = vld [vmem:[%s12079_s0 + $0x228] sm:$0xff]  }
 0x306   :  { %v10435_v61 = vadd.f32 %v8136_v17, %v8135_v53  ;;  %v8838_v53 = vld [vmem:[%s12079_s0 + $0x230] sm:$0xff]  }
 0x30a   :  { %8551 = vmatmul.mubr.msk.bf16.gmra.mrb[72].mxu1 %vm21_vm0, %v3211_v59 }
 0x30b   :  { %8554 = vmatprep.mubr.msk.bf16.mxu1 %vm21_vm0, %v3214_v8  ;;  %v8839_v8 = vld [vmem:[%s12079_s0 + $0x238] sm:$0xff]  }
 0x312   :  { %8555 = vmatmul.mubr.msk.bf16.gmra.mrb[76].mxu1 %vm21_vm0, %v3217_v15  ;;  %v8844_v15 = vld [vmem:[%s12079_s0 + $0x260] sm:$0xff]  }
 0x313   :  { %8558 = vmatprep.mubr.msk.bf16.mxu1 %vm21_vm0, %v3220_v14 }
 0x31a   :  { %8559 = vmatmul.mubr.msk.bf16.gmra.mrb[80].mxu1 %vm21_vm0, %v3223_v26  ;;  %v8138_v2 = vpop.f32.mrb[28].mxu1 }
 0x31b   :  { %8562 = vmatprep.mubr.msk.bf16.mxu1 %vm21_vm0, %v3226_v18  ;;  %v8139_v10 = vpop.f32.mrb[29].mxu1  ;;  %v8845_v18 = vld [vmem:[%s12079_s0 + $0x268] sm:$0xff]  }
 0x31c   :  { %v10443_v24 = vadd.f32 %v8139_v10, %v8138_v2  ;;  %v8141_v33 = vpop.f32.mrb[30].mxu1  ;;  %v8846_v2 = vld [vmem:[%s12079_s0 + $0x270] sm:$0xff]   ;;  %v8847_v10 = vld [vmem:[%s12079_s0 + $0x278] sm:$0xff]  }
 0x31d   :  { %v8142_v37 = vpop.f32.mrb[31].mxu1 }
 0x31e   :  { %v10445_v41 = vadd.f32 %v8142_v37, %v8141_v33  ;;  %v8848_v33 = vld [vmem:[%s12079_s0 + $0x280] sm:$0xff]   ;;  %v8849_v37 = vld [vmem:[%s12079_s0 + $0x288] sm:$0xff]  }
 0x322   :  { %8563 = vmatmul.mubr.msk.bf16.gmra.mrb[84].mxu1 %vm21_vm0, %v3229_v31 }
 0x323   :  { %8566 = vmatprep.mubr.msk.bf16.mxu1 %vm21_vm0, %v3232_v44 }
 0x32a   :  { %8567 = vmatmul.mubr.msk.bf16.gmra.mrb[88].mxu1 %vm21_vm0, %v3235_v50  ;;  %v8854_v50 = vld [vmem:[%s12079_s0 + $0x2b0] sm:$0xff]  }
 0x32b   :  { %8570 = vmatprep.mubr.msk.bf16.mxu1 %vm21_vm0, %v3238_v52  ;;  %v8855_v52 = vld [vmem:[%s12079_s0 + $0x2b8] sm:$0xff]  }
 0x332   :  { %8571 = vmatmul.mubr.msk.bf16.gmra.mrb[92].mxu1 %vm21_vm0, %v3241_v36  ;;  %v8144_v42 = vpop.f32.mrb[32].mxu1  ;;  %v8836_v36 = vld [vmem:[%s12079_s0 + $0x220] sm:$0xff]  }
 0x333   :  { %v8145_v19 = vpop.f32.mrb[33].mxu1  ;;  %8578 = vmatprep.mubr.msk.bf16.mxu1 %vm21_vm0, %v8832_v13  ;;  %v8856_v13 = vld [vmem:[%s12079_s0 + $0x2c0] sm:$0xff]  }
 0x334   :  { %v10459_v4 = vadd.f32 %v8145_v19, %v8144_v42  ;;  %v8147_v49 = vpop.f32.mrb[34].mxu1 }
 0x335   :  { %v8148_v30 = vpop.f32.mrb[35].mxu1 }
 0x336   :  { %v10461_v54 = vadd.f32 %v8148_v30, %v8147_v49 }
 0x33a   :  { %8579 = vmatmul.mubr.msk.bf16.vlgmr.msra.gmra.mrb[96].mxu1 %vm21_vm0, %v8833_v34 }
 0x33b   :  { %8582 = vmatprep.mubr.msk.bf16.mxu1 %vm21_vm0, %v8834_v22 }
 0x342   :  { %8583 = vmatmul.mubr.msk.bf16.gmra.mrb[100].mxu1 %vm21_vm0, %v8835_v25  ;;  %v8857_v25 = vld [vmem:[%s12079_s0 + $0x2c8] sm:$0xff]  }
 0x343   :  { %8586 = vmatprep.mubr.msk.bf16.mxu1 %vm21_vm0, %v8836_v36  ;;  %v8858_v36 = vld [vmem:[%s12079_s0 + $0x2d0] sm:$0xff]  }
 0x34a   :  { %8587 = vmatmul.mubr.msk.bf16.gmra.mrb[104].mxu1 %vm21_vm0, %v8837_v56  ;;  %v8150_v17 = vpop.f32.mrb[36].mxu1  ;;  %v8859_v56 = vld [vmem:[%s12079_s0 + $0x2d8] sm:$0xff]  }
 0x34b   :  { %v8151_v55 = vpop.f32.mrb[37].mxu1  ;;  %8590 = vmatprep.mubr.msk.bf16.mxu1 %vm21_vm0, %v8838_v53  ;;  %v8860_v53 = vld [vmem:[%s12079_s0 + $0x2e0] sm:$0xff]  }
 0x34c   :  { %v10487_v57 = vadd.f32 %v8151_v55, %v8150_v17  ;;  %v8153_v12 = vpop.f32.mrb[38].mxu1  ;;  %v8861_v55 = vld [vmem:[%s12079_s0 + $0x2e8] sm:$0xff]  }
 0x34d   :  { %v8154_v3 = vpop.f32.mrb[39].mxu1 }
 0x34e   :  { %v10489_v59 = vadd.f32 %v8154_v3, %v8153_v12  ;;  %v8862_v3 = vld [vmem:[%s12079_s0 + $0x2f0] sm:$0xff]  }
 0x352   :  { %8591 = vmatmul.mubr.msk.bf16.gmra.mrb[108].mxu1 %vm21_vm0, %v8839_v8 }
 0x353   :  { %8594 = vmatprep.mubr.msk.bf16.mxu1 %vm21_vm0, %v8840_v1 }
 0x35a   :  { %8595 = vmatmul.mubr.msk.bf16.gmra.mrb[112].mxu1 %vm21_vm0, %v8841_v63  ;;  %v5565_v63 = vld [vmem:[#allocation3 + $0x10] sm:$0xff] }
 0x35b   :  { %8598 = vmatprep.mubr.msk.bf16.mxu1 %vm21_vm0, %v8842_v5  ;;  %5630 = vrot.lane.b32.xlu1 %v5565_v63, %s8919_s30 }
 0x362   :  { %8599 = vmatmul.mubr.msk.bf16.gmra.mrb[116].mxu1 %vm21_vm0, %v8843_v6  ;;  %v8156_v14 = vpop.f32.mrb[40].mxu1  ;;  %v5564_v6 = vld [vmem:[#allocation3 + $0x8] sm:$0xff] }
 0x363   :  { %v8157_v45 = vpop.f32.mrb[41].mxu1  ;;  %8602 = vmatprep.mubr.msk.bf16.mxu1 %vm21_vm0, %v8844_v15  ;;  %5628 = vrot.lane.b32.xlu0 %v5564_v6, %s8919_s30 }
 0x364   :  { %v10515_v21 = vadd.f32 %v8157_v45, %v8156_v14  ;;  %v8159_v28 = vpop.f32.mrb[42].mxu1  ;;  %v5757_v14 = vld [vmem:[#allocation3 + $0x11] sm:$0xff]  ;;  %v5756_v45 = vld [vmem:[#allocation3 + $0x9] sm:$0xff] }
 0x365   :  { %v8160_v27 = vpop.f32.mrb[43].mxu1  ;;  %5822 = vrot.lane.b32.xlu1 %v5757_v14, %s8920_s10 }
 0x366   :  { %v10517_v26 = vadd.f32 %v8160_v27, %v8159_v28  ;;  %v8863_v28 = vld [vmem:[%s12079_s0 + $0x2f8] sm:$0xff]   ;;  %v8864_v27 = vld [vmem:[%s12079_s0 + $0x300] sm:$0xff]  }
 0x367   :  { %5820 = vrot.lane.b32.xlu0 %v5756_v45, %s8920_s10 }
 0x36a   :  { %8603 = vmatmul.mubr.msk.bf16.gmra.mrb[120].mxu1 %vm21_vm0, %v8845_v18  ;;  %v6427_v18 = vld [vmem:[#allocation3 + $0x22f] sm:$0xff] }
 0x36b   :  { %8606 = vmatprep.mubr.msk.bf16.mxu1 %vm21_vm0, %v8846_v2  ;;  %6522 = vrot.lane.b32.xlu1 %v6427_v18, %s8920_s10  ;;  %v6426_v2 = vld [vmem:[#allocation3 + $0x227] sm:$0xff] }
 0x36c   :  { %6520 = vrot.lane.b32.xlu0 %v6426_v2, %s8920_s10 }
 0x372   :  { %8607 = vmatmul.mubr.msk.bf16.gmra.mrb[124].mxu1 %vm21_vm0, %v8847_v10  ;;  %v8865_v10 = vld [vmem:[%s12079_s0 + $0x308] sm:$0xff]  }
 0x373   :  { %8610 = vmatprep.mubr.msk.bf16.mxu1 %vm21_vm0, %v8848_v33  ;;  %v8866_v33 = vld [vmem:[%s12079_s0 + $0x310] sm:$0xff]  }
 0x37a   :  { %v8162_v58 = vpop.f32.mrb[44].mxu1  ;;  %8611 = vmatmul.mubr.msk.bf16.gmra.mrb[128].mxu1 %vm21_vm0, %v8849_v37 }
 0x37b   :  { %v8163_v0 = vpop.f32.mrb[45].mxu1  ;;  %8614 = vmatprep.mubr.msk.bf16.mxu1 %vm21_vm0, %v8850_v40 }
 0x37c   :  { %v10543_v43 = vadd.f32 %v8163_v0, %v8162_v58  ;;  %v8165_v31 = vpop.f32.mrb[46].mxu1 }
 0x37d   :  { %v8166_v44 = vpop.f32.mrb[47].mxu1 }
 0x37e   :  { %v10545_v46 = vadd.f32 %v8166_v44, %v8165_v31 }
 0x382   :  { %8615 = vmatmul.mubr.msk.bf16.gmra.mrb[132].mxu1 %vm21_vm0, %v8851_v47  ;;  %v8867_v47 = vld [vmem:[%s12079_s0 + $0x318] sm:$0xff]  }
 0x383   :  { %8618 = vmatprep.mubr.msk.bf16.mxu1 %vm21_vm0, %v8852_v16  ;;  %v8868_v16 = vld [vmem:[%s12079_s0 + $0x320] sm:$0xff]  }
 0x38a   :  { %8619 = vmatmul.mubr.msk.bf16.gmra.mrb[136].mxu1 %vm21_vm0, %v8853_v51 }
 0x38b   :  { %8622 = vmatprep.mubr.msk.bf16.mxu1 %vm21_vm0, %v8854_v50 }
 0x392   :  { %v8168_v42 = vpop.f32.mrb[48].mxu1  ;;  %8623 = vmatmul.mubr.msk.bf16.gmra.mrb[140].mxu1 %vm21_vm0, %v8855_v52  ;;  %v8869_v52 = vld [vmem:[%s12079_s0 + $0x328] sm:$0xff]  }
 0x393   :  { %v8169_v19 = vpop.f32.mrb[49].mxu1  ;;  %8626 = vmatprep.mubr.msk.bf16.mxu1 %vm21_vm0, %v8856_v13 }
 0x394   :  { %v10571_v49 = vadd.f32 %v8169_v19, %v8168_v42  ;;  %v8171_v30 = vpop.f32.mrb[50].mxu1  ;;  %v8870_v19 = vld [vmem:[%s12079_s0 + $0x330] sm:$0xff]  }
 0x395   :  { %v8172_v34 = vpop.f32.mrb[51].mxu1 }
 0x396   :  { %v10573_v22 = vadd.f32 %v8172_v34, %v8171_v30 }
 0x39a   :  { %8627 = vmatmul.mubr.msk.bf16.gmra.mrb[144].mxu1 %vm21_vm0, %v8857_v25  ;;  %v10650_v25 = vld [vmem:[%s12082_s4] ss:$0 sm:$0xff] }
 0x39b   :  { %8630 = vmatprep.mubr.msk.bf16.mxu1 %vm21_vm0, %v8858_v36  ;;  %v3484_v36 = vadd.f32 %v10344_v20, %v10650_v25  ;;  %v8872_v20 = vld [vmem:[%s12079_s0 + $0x340] sm:$0xff]  }
 0x3a2   :  { %8631 = vmatmul.mubr.msk.bf16.gmra.mrb[148].mxu1 %vm21_vm0, %v8859_v56 }
 0x3a3   :  { %8634 = vmatprep.mubr.msk.bf16.mxu1 %vm21_vm0, %v8860_v53  ;;  %v3476_v53 = vadd.f32 %v10326_v23, %v10650_v25 }
 0x3a6   :  { %v8174_v17 = vpop.f32.mrb[52].mxu1 }
 0x3a7   :  { %v8175_v12 = vpop.f32.mrb[53].mxu1 }
 0x3a8   :  { %v10597_v8 = vadd.f32 %v8175_v12, %v8174_v17  ;;  %v8177_v1 = vpop.f32.mrb[54].mxu1  ;;  %v3487_v12 = vadd.f32 %v10346_v48, %v10650_v25 }
 0x3a9   :  { %v8178_v5 = vpop.f32.mrb[55].mxu1 }
 0x3aa   :  { %v10600_v15 = vadd.f32 %v8178_v5, %v8177_v1  ;;  %8635 = vmatmul.mubr.msk.bf16.gmra.mrb[152].mxu1 %vm21_vm0, %v8861_v55  ;;  %v3479_v5 = vadd.f32 %v10330_v9, %v10650_v25  ;;  %v3500_v9 = vadd.f32 %v10386_v11, %v10650_v25 }
 0x3ab   :  { %8638 = vmatprep.mubr.msk.bf16.mxu1 %vm21_vm0, %v8862_v3  ;;  %v8871_v3 = vld [vmem:[%s12079_s0 + $0x338] sm:$0xff]  }
 0x3b2   :  { %8639 = vmatmul.mubr.msk.bf16.gmra.mrb[156].mxu1 %vm21_vm0, %v8863_v28 }
 0x3b3   :  { %8642 = vmatprep.mubr.msk.bf16.mxu1 %vm21_vm0, %v8864_v27 }
 0x3ba   :  { %v8180_v37 = vpop.f32.mrb[56].mxu1  ;;  %8643 = vmatmul.mubr.msk.bf16.gmra.mrb[160].mxu1 %vm21_vm0, %v8865_v10 }
 0x3bb   :  { %v8181_v40 = vpop.f32.mrb[57].mxu1  ;;  %8646 = vmatprep.mubr.msk.bf16.mxu1 %vm21_vm0, %v8866_v33  ;;  %v3492_v33 = vadd.f32 %v10360_v38, %v10650_v25  ;;  %v8874_v38 = vld [vmem:[%s12079_s0 + $0x350] sm:$0xff]  }
 0x3bc   :  { %v10625_v58 = vadd.f32 %v8181_v40, %v8180_v37  ;;  %v8183_v0 = vpop.f32.mrb[58].mxu1 }
 0x3bd   :  { %v8184_v31 = vpop.f32.mrb[59].mxu1 }
 0x3be   :  { %v10627_v44 = vadd.f32 %v8184_v31, %v8183_v0  ;;  %v3503_v0 = vadd.f32 %v10388_v35, %v10650_v25  ;;  %v8873_v31 = vld [vmem:[%s12079_s0 + $0x348] sm:$0xff]  }
 0x3c2   :  { %8647 = vmatmul.mubr.msk.bf16.gmra.mrb[164].mxu1 %vm21_vm0, %v8867_v47 }
 0x3c3   :  { %8650 = vmatprep.mubr.msk.bf16.mxu1 %vm21_vm0, %v8868_v16  ;;  %v3495_v16 = vadd.f32 %v10362_v32, %v10650_v25 }
 0x3c5   :  { %v8186_v51 = vpop.f32.mrb[60].mxu1 }
 0x3c6   :  { %v8187_v50 = vpop.f32.mrb[61].mxu1 }
 0x3c7   :  { %v10640_v13 = vadd.f32 %v8187_v50, %v8186_v51  ;;  %v8189_v42 = vpop.f32.mrb[62].mxu1 }
 0x3c8   :  { %v8190_v30 = vpop.f32.mrb[63].mxu1 }
 0x3c9   :  { %v10645_v34 = vadd.f32 %v8190_v30, %v8189_v42 }
 0x3ca   :  { %8651 = vmatmul.mubr.msk.bf16.gmra.mrb[168].mxu1 %vm21_vm0, %v8869_v52 }
 0x3cb   :  { %8654 = vmatprep.mubr.msk.bf16.mxu1 %vm21_vm0, %v8870_v19 }
 0x3cd   :  { %v8544_v56 = vpop.f32.mrb[64].mxu1 }
 0x3ce   :  { %v3645_v17 = vadd.f32 %v8544_v56, %v3484_v36  ;;  %v3636_v55 = vpop.f32.mrb[65].mxu1  ;;  %v3516_v56 = vadd.f32 %v10420_v29, %v10650_v25 }
 0x3cf   :  { %v3637_v1 = vadd.f32 %v3636_v55, %v3476_v53  ;;  %v8545_v63 = vpop.f32.mrb[66].mxu1 }
 0x3d0   :  { %v3765_v6 = vmax.f32 %v3645_v17, 0.0  ;;  %v3648_v23 = vadd.f32 %v8545_v63, %v3487_v12  ;;  %v3639_v14 = vpop.f32.mrb[67].mxu1  ;;  %v3508_v17 = vadd.f32 %v10404_v7, %v10650_v25  ;;  %v8876_v7 = vld [vmem:[%s12079_s0 + $0x360] sm:$0xff]  }
 0x3d1   :  { %v3763_v45 = vmax.f32 %v3637_v1, 0.0  ;;  %v3640_v28 = vadd.f32 %v3639_v14, %v3479_v5  ;;  %v8875_v1 = vld [vmem:[%s12079_s0 + $0x358] sm:$0xff]  }
 0x3d2   :  { %v3766_v48 = vmax.f32 %v3648_v23, 0.0  ;;  %8655 = vmatmul.mubr.msk.bf16.gmra.mrb[172].mxu1 %vm21_vm0, %v8871_v3  ;;  %v3519_v3 = vadd.f32 %v10422_v39, %v10650_v25 }
 0x3d3   :  { %v3795_v27 = vmax.f32 %v3763_v45, %v3765_v6  ;;  %v3764_v18 = vmax.f32 %v3640_v28, 0.0  ;;  %8658 = vmatprep.mubr.msk.bf16.mxu1 %vm21_vm0, %v8872_v20  ;;  %v3511_v6 = vadd.f32 %v10406_v62, %v10650_v25  ;;  %v3532_v62 = vadd.f32 %v10443_v24, %v10650_v25 }
 0x3d5   :  { %3812 = vst.msk [vmem:[#allocation5] sm:$0xff] %vm3811_vm4, %v3795_v27  ;;  %v3796_v2 = vmax.f32 %v3764_v18, %v3766_v48  ;;  %v8548_v10 = vpop.f32.mrb[68].mxu1 }
 0x3d6   :  { %v3661_v37 = vadd.f32 %v8548_v10, %v3500_v9  ;;  %v3652_v40 = vpop.f32.mrb[69].mxu1 }
 0x3d7   :  { %3813 = vst.msk [vmem:[#allocation5 + $0x8] sm:$0xff] %vm3811_vm4, %v3796_v2  ;;  %v3653_v47 = vadd.f32 %v3652_v40, %v3492_v33  ;;  %v8549_v11 = vpop.f32.mrb[70].mxu1 }
 0x3d8   :  { %v3769_v51 = vmax.f32 %v3661_v37, 0.0  ;;  %v3664_v50 = vadd.f32 %v8549_v11, %v3503_v0  ;;  %v3655_v52 = vpop.f32.mrb[71].mxu1  ;;  %v3524_v37 = vadd.f32 %v10433_v60, %v10650_v25  ;;  %v8878_v60 = vld [vmem:[%s12079_s0 + $0x370] sm:$0xff]  }
 0x3d9   :  { %v3767_v42 = vmax.f32 %v3653_v47, 0.0  ;;  %v3656_v35 = vadd.f32 %v3655_v52, %v3495_v16  ;;  %v8877_v47 = vld [vmem:[%s12079_s0 + $0x368] sm:$0xff]  }
 0x3da   :  { %v3770_v19 = vmax.f32 %v3664_v50, 0.0  ;;  %8659 = vmatmul.mubr.msk.bf16.gmra.mrb[176].mxu1 %vm21_vm0, %v8873_v31  ;;  %v3535_v31 = vadd.f32 %v10445_v41, %v10650_v25 }
 0x3db   :  { %v3797_v30 = vmax.f32 %v3767_v42, %v3769_v51  ;;  %v3768_v36 = vmax.f32 %v3656_v35, 0.0  ;;  %8662 = vmatprep.mubr.msk.bf16.mxu1 %vm21_vm0, %v8874_v38  ;;  %v3527_v51 = vadd.f32 %v10435_v61, %v10650_v25  ;;  %v3548_v61 = vadd.f32 %v10487_v57, %v10650_v25 }
 0x3dd   :  { %3814 = vst.msk [vmem:[#allocation5 + $0x10] sm:$0xff] %vm3811_vm4, %v3797_v30  ;;  %v3798_v32 = vmax.f32 %v3768_v36, %v3770_v19  ;;  %v8552_v53 = vpop.f32.mrb[72].mxu1 }
 0x3de   :  { %v3677_v55 = vadd.f32 %v8552_v53, %v3516_v56  ;;  %v3668_v12 = vpop.f32.mrb[73].mxu1  ;;  %v3828_v63 = vld [vmem:[#allocation5] ss:$2 sm:$0xff]  ;;  %v3844_v5 = vld [vmem:[#allocation5 + $0x1] ss:$2 sm:$0xff] }
 0x3df   :  { %3815 = vst.msk [vmem:[#allocation5 + $0x18] sm:$0xff] %vm3811_vm4, %v3798_v32  ;;  %v3669_v29 = vadd.f32 %v3668_v12, %v3508_v17  ;;  %v8553_v20 = vpop.f32.mrb[74].mxu1  ;;  %v3859_v23 = vmax.f32 %v3828_v63, %v3844_v5  ;;  %v8879_v63 = vld [vmem:[%s12079_s0 + $0x378] sm:$0xff]  }
 0x3e0   :  { %v3773_v14 = vmax.f32 %v3677_v55, 0.0  ;;  %v3680_v39 = vadd.f32 %v8553_v20, %v3519_v3  ;;  %v3671_v45 = vpop.f32.mrb[75].mxu1  ;;  %v3540_v55 = vadd.f32 %v10459_v4, %v10650_v25  ;;  %v8880_v4 = vld [vmem:[%s12079_s0 + $0x380] sm:$0xff]  }
 0x3e1   :  { %v3771_v28 = vmax.f32 %v3669_v29, 0.0  ;;  %v3672_v48 = vadd.f32 %v3671_v45, %v3511_v6  ;;  %v7998_v27 = vpack.c.bf16 %v3859_v23, %v3859_v23  ;;  %v3543_v6 = vadd.f32 %v10461_v54, %v10650_v25 }
 0x3e2   :  { %v3774_v18 = vmax.f32 %v3680_v39, 0.0  ;;  %8663 = vmatmul.mubr.msk.bf16.gmra.mrb[180].mxu1 %vm21_vm0, %v8875_v1  ;;  %v3551_v1 = vadd.f32 %v10489_v59, %v10650_v25  ;;  %v3564_v54 = vadd.f32 %v10543_v43, %v10650_v25 }
 0x3e3   :  { %v3799_v9 = vmax.f32 %v3771_v28, %v3773_v14  ;;  %v3772_v2 = vmax.f32 %v3672_v48, 0.0  ;;  %8666 = vmatprep.mubr.msk.bf16.mxu1 %vm21_vm0, %v8876_v7  ;;  %3900 = vst.msk [vmem:[%s12083_s5] sm:$0xf] %vm3899_vm5, %v7998_v27 }
 0x3e5   :  { %3816 = vst.msk [vmem:[#allocation5 + $0x20] sm:$0xff] %vm3811_vm4, %v3799_v9  ;;  %v3800_v10 = vmax.f32 %v3772_v2, %v3774_v18  ;;  %v8556_v33 = vpop.f32.mrb[76].mxu1 }
 0x3e6   :  { %v3693_v40 = vadd.f32 %v8556_v33, %v3532_v62  ;;  %v3684_v0 = vpop.f32.mrb[77].mxu1  ;;  %v3830_v11 = vld [vmem:[#allocation5 + $0x10] ss:$2 sm:$0xff]  ;;  %v3846_v16 = vld [vmem:[#allocation5 + $0x11] ss:$2 sm:$0xff]  ;;  %v3556_v62 = vadd.f32 %v10515_v21, %v10650_v25 }
 0x3e7   :  { %3817 = vst.msk [vmem:[#allocation5 + $0x28] sm:$0xff] %vm3811_vm4, %v3800_v10  ;;  %v3685_v24 = vadd.f32 %v3684_v0, %v3524_v37  ;;  %v8557_v38 = vpop.f32.mrb[78].mxu1  ;;  %v3860_v50 = vmax.f32 %v3830_v11, %v3846_v16  ;;  %v3567_v37 = vadd.f32 %v10545_v46, %v10650_v25  ;;  %v3559_v11 = vadd.f32 %v10517_v26, %v10650_v25  ;;  %v8882_v21 = vld [vmem:[%s12079_s0 + $0x390] sm:$0xff]  }
 0x3e8   :  { %v3777_v52 = vmax.f32 %v3693_v40, 0.0  ;;  %v3696_v41 = vadd.f32 %v8557_v38, %v3535_v31  ;;  %v3687_v42 = vpop.f32.mrb[79].mxu1  ;;  %v8881_v40 = vld [vmem:[%s12079_s0 + $0x388] sm:$0xff]   ;;  %v3580_v26 = vadd.f32 %v10597_v8, %v10650_v25 }
 0x3e9   :  { %v3775_v35 = vmax.f32 %v3685_v24, 0.0  ;;  %v3688_v19 = vadd.f32 %v3687_v42, %v3527_v51  ;;  %v7999_v30 = vpack.c.bf16 %v3860_v50, %v3860_v50 }
 0x3ea   :  { %v3778_v36 = vmax.f32 %v3696_v41, 0.0  ;;  %8667 = vmatmul.mubr.msk.bf16.gmra.mrb[184].mxu1 %vm21_vm0, %v8877_v47 }
 0x3eb   :  { %v3801_v56 = vmax.f32 %v3775_v35, %v3777_v52  ;;  %v3776_v32 = vmax.f32 %v3688_v19, 0.0  ;;  %8670 = vmatprep.mubr.msk.bf16.mxu1 %vm21_vm0, %v8878_v60  ;;  %3901 = vst.msk [vmem:[%s12083_s5 + $0x4] sm:$0xf] %vm3899_vm5, %v7999_v30  ;;  %v3572_v30 = vadd.f32 %v10571_v49, %v10650_v25  ;;  %v8884_v49 = vld [vmem:[%s12079_s0 + $0x3a0] sm:$0xff]  }
 0x3ed   :  { %3818 = vst.msk [vmem:[#allocation5 + $0x30] sm:$0xff] %vm3811_vm4, %v3801_v56  ;;  %v3802_v53 = vmax.f32 %v3776_v32, %v3778_v36  ;;  %v8560_v17 = vpop.f32.mrb[80].mxu1  ;;  %v3583_v32 = vadd.f32 %v10600_v15, %v10650_v25 }
 0x3ee   :  { %v3709_v12 = vadd.f32 %v8560_v17, %v3548_v61  ;;  %v3700_v3 = vpop.f32.mrb[81].mxu1  ;;  %v3832_v5 = vld [vmem:[#allocation5 + $0x20] ss:$2 sm:$0xff]  ;;  %v3848_v29 = vld [vmem:[#allocation5 + $0x21] ss:$2 sm:$0xff]  ;;  %v8883_v61 = vld [vmem:[%s12079_s0 + $0x398] sm:$0xff]  }
 0x3ef   :  { %3819 = vst.msk [vmem:[#allocation5 + $0x38] sm:$0xff] %vm3811_vm4, %v3802_v53  ;;  %v3701_v57 = vadd.f32 %v3700_v3, %v3540_v55  ;;  %v8561_v20 = vpop.f32.mrb[82].mxu1  ;;  %v3861_v7 = vmax.f32 %v3832_v5, %v3848_v29 }
 0x3f0   :  { %v3781_v23 = vmax.f32 %v3709_v12, 0.0  ;;  %v3712_v59 = vadd.f32 %v8561_v20, %v3551_v1  ;;  %v3703_v14 = vpop.f32.mrb[83].mxu1  ;;  %v3575_v12 = vadd.f32 %v10573_v22, %v10650_v25  ;;  %v3596_v22 = vadd.f32 %v10640_v13, %v10650_v25 }
 0x3f1   :  { %v3779_v39 = vmax.f32 %v3701_v57, 0.0  ;;  %v3704_v45 = vadd.f32 %v3703_v14, %v3543_v6  ;;  %v8000_v28 = vpack.c.bf16 %v3861_v7, %v3861_v7 }
 0x3f2   :  { %v3782_v48 = vmax.f32 %v3712_v59, 0.0  ;;  %8671 = vmatmul.mubr.msk.bf16.gmra.mrb[188].mxu1 %vm21_vm0, %v8879_v63  ;;  %v3588_v59 = vadd.f32 %v10625_v58, %v10650_v25  ;;  %v8886_v58 = vld [vmem:[%s12079_s0 + $0x3b0] sm:$0xff]  }
 0x3f3   :  { %v3803_v27 = vmax.f32 %v3779_v39, %v3781_v23  ;;  %v3780_v18 = vmax.f32 %v3704_v45, 0.0  ;;  %8674 = vmatprep.mubr.msk.bf16.mxu1 %vm21_vm0, %v8880_v4  ;;  %3902 = vst.msk [vmem:[%s12083_s5 + $0x8] sm:$0xf] %vm3899_vm5, %v8000_v28  ;;  %v3599_v45 = vadd.f32 %v10645_v34, %v10650_v25  ;;  %v8885_v28 = vld [vmem:[%s12079_s0 + $0x3a8] sm:$0xff]  }
 0x3f5   :  { %3820 = vst.msk [vmem:[#allocation5 + $0x40] sm:$0xff] %vm3811_vm4, %v3803_v27  ;;  %v3804_v9 = vmax.f32 %v3780_v18, %v3782_v48  ;;  %v8564_v2 = vpop.f32.mrb[84].mxu1 }
 0x3f6   :  { %v3725_v10 = vadd.f32 %v8564_v2, %v3564_v54  ;;  %v3716_v33 = vpop.f32.mrb[85].mxu1  ;;  %v3834_v0 = vld [vmem:[#allocation5 + $0x30] ss:$2 sm:$0xff]  ;;  %v3850_v31 = vld [vmem:[#allocation5 + $0x31] ss:$2 sm:$0xff]  ;;  %v3591_v54 = vadd.f32 %v10627_v44, %v10650_v25 }
 0x3f7   :  { %3821 = vst.msk [vmem:[#allocation5 + $0x48] sm:$0xff] %vm3811_vm4, %v3804_v9  ;;  %v3717_v43 = vadd.f32 %v3716_v33, %v3556_v62  ;;  %v8565_v47 = vpop.f32.mrb[86].mxu1  ;;  %v3862_v16 = vmax.f32 %v3834_v0, %v3850_v31 }
 0x3f8   :  { %v3785_v24 = vmax.f32 %v3725_v10, 0.0  ;;  %v3728_v46 = vadd.f32 %v8565_v47, %v3567_v37  ;;  %v3719_v38 = vpop.f32.mrb[87].mxu1  ;;  %v8887_v47 = vld [vmem:[%s12079_s0 + $0x3b8] sm:$0xff]  }
 0x3f9   :  { %v3783_v51 = vmax.f32 %v3717_v43, 0.0  ;;  %v3720_v60 = vadd.f32 %v3719_v38, %v3559_v11  ;;  %v8001_v50 = vpack.c.bf16 %v3862_v16, %v3862_v16 }
 0x3fa   :  { %v3786_v52 = vmax.f32 %v3728_v46, 0.0  ;;  %8675 = vmatmul.mubr.msk.bf16.gmra.mrb[192].mxu1 %vm21_vm0, %v8881_v40 }
 0x3fb   :  { %v3805_v41 = vmax.f32 %v3783_v51, %v3785_v24  ;;  %v3784_v42 = vmax.f32 %v3720_v60, 0.0  ;;  %8678 = vmatprep.mubr.msk.bf16.mxu1 %vm21_vm0, %v8882_v21  ;;  %3903 = vst.msk [vmem:[%s12083_s5 + $0xc] sm:$0xf] %vm3899_vm5, %v8001_v50  ;;  %v8888_v24 = vld [vmem:[%s12079_s0 + $0x3c0] sm:$0xff]  }
 0x3fc   :  { %v10831_v51 = vld [vmem:[%s12080_s2] ss:$0 sm:$0xff] }
 0x3fd   :  { %3822 = vst.msk [vmem:[#allocation5 + $0x50] sm:$0xff] %vm3811_vm4, %v3805_v41  ;;  %v3806_v35 = vmax.f32 %v3784_v42, %v3786_v52  ;;  %v8568_v19 = vpop.f32.mrb[88].mxu1  ;;  %v5501_v42 = vld [vmem:[#allocation3 + $0xf] sm:$0xff] }
 0x3fe   :  { %v3741_v36 = vadd.f32 %v8568_v19, %v3580_v26  ;;  %v3732_v56 = vpop.f32.mrb[89].mxu1  ;;  %v3836_v53 = vld [vmem:[#allocation5 + $0x40] ss:$2 sm:$0xff]  ;;  %v3852_v17 = vld [vmem:[#allocation5 + $0x41] ss:$2 sm:$0xff]  ;;  %5533 = vst.msk [vmem:[#allocation4 + $0x18] sm:$0xff] %vm21_vm0, %v5501_v42 }
 0x3ff   :  { %3823 = vst.msk [vmem:[#allocation5 + $0x58] sm:$0xff] %vm3811_vm4, %v3806_v35  ;;  %v3733_v8 = vadd.f32 %v3732_v56, %v3572_v30  ;;  %v8569_v55 = vpop.f32.mrb[90].mxu1  ;;  %v3863_v3 = vmax.f32 %v3836_v53, %v3852_v17  ;;  %v5500_v26 = vld [vmem:[#allocation3 + $0x7] sm:$0xff] }
 0x400   :  { %v3789_v1 = vmax.f32 %v3741_v36, 0.0  ;;  %v3744_v15 = vadd.f32 %v8569_v55, %v3583_v32  ;;  %v3735_v63 = vpop.f32.mrb[91].mxu1  ;;  %v8889_v36 = vld [vmem:[%s12079_s0 + $0x3c8] sm:$0xff]   ;;  %5532 = vst.msk [vmem:[#allocation4] sm:$0xff] %vm21_vm0, %v5500_v26 }
 0x401   :  { %v3787_v5 = vmax.f32 %v3733_v8, 0.0  ;;  %v3736_v29 = vadd.f32 %v3735_v63, %v3575_v12  ;;  %v8002_v57 = vpack.c.bf16 %v3863_v3, %v3863_v3  ;;  %v8890_v8 = vld [vmem:[%s12079_s0 + $0x3d0] sm:$0xff]  }
 0x402   :  { %v3790_v20 = vmax.f32 %v3744_v15, 0.0  ;;  %8679 = vmatmul.mubr.msk.bf16.gmra.mrb[196].mxu1 %vm21_vm0, %v8883_v61 }
 0x403   :  { %v3807_v6 = vmax.f32 %v3787_v5, %v3789_v1  ;;  %v3788_v4 = vmax.f32 %v3736_v29, 0.0  ;;  %8682 = vmatprep.mubr.msk.bf16.mxu1 %vm21_vm0, %v8884_v49  ;;  %3904 = vst.msk [vmem:[%s12083_s5 + $0x10] sm:$0xf] %vm3899_vm5, %v8002_v57 }
 0x405   :  { %3824 = vst.msk [vmem:[#allocation5 + $0x60] sm:$0xff] %vm3811_vm4, %v3807_v6  ;;  %v3808_v7 = vmax.f32 %v3788_v4, %v3790_v20  ;;  %v8572_v23 = vpop.f32.mrb[92].mxu1 }
 0x406   :  { %v3757_v14 = vadd.f32 %v8572_v23, %v3596_v22  ;;  %v3748_v39 = vpop.f32.mrb[93].mxu1  ;;  %v3838_v48 = vld [vmem:[#allocation5 + $0x50] ss:$2 sm:$0xff]  ;;  %v3854_v27 = vld [vmem:[#allocation5 + $0x51] ss:$2 sm:$0xff]  ;;  %v5631_v23 = vpop.permute.xlu1 %5630 }
 0x407   :  { %3825 = vst.msk [vmem:[#allocation5 + $0x68] sm:$0xff] %vm3811_vm4, %v3808_v7  ;;  %v3749_v13 = vadd.f32 %v3748_v39, %v3588_v59  ;;  %v8573_v18 = vpop.f32.mrb[94].mxu1  ;;  %v3864_v9 = vmax.f32 %v3838_v48, %v3854_v27  ;;  %v8891_v48 = vld [vmem:[%s12079_s0 + $0x3d8] sm:$0xff]  }
 0x408   :  { %v3793_v2 = vmax.f32 %v3757_v14, 0.0  ;;  %v3760_v34 = vadd.f32 %v8573_v18, %v3599_v45  ;;  %v3751_v62 = vpop.f32.mrb[95].mxu1  ;;  %5725 = vst.msk [vmem:[#allocation4 + $0x18] sm:$0xff] %vm1974_vm1, %v5631_v23  ;;  %v5629_v14 = vpop.permute.xlu0 %5628 }
 0x409   :  { %v3791_v10 = vmax.f32 %v3749_v13, 0.0  ;;  %v3752_v33 = vadd.f32 %v3751_v62, %v3591_v54  ;;  %v8003_v37 = vpack.c.bf16 %v3864_v9, %v3864_v9  ;;  %5724 = vst.msk [vmem:[#allocation4] sm:$0xff] %vm1974_vm1, %v5629_v14  ;;  %v8892_v13 = vld [vmem:[%s12079_s0 + $0x3e0] sm:$0xff]  }
 0x40a   :  { %v3794_v40 = vmax.f32 %v3760_v34, 0.0  ;;  %8683 = vmatmul.mubr.msk.bf16.gmra.mrb[200].mxu1 %vm21_vm0, %v8885_v28  ;;  %v5823_v18 = vpop.permute.xlu1 %5822 }
 0x40b   :  { %v3809_v0 = vmax.f32 %v3791_v10, %v3793_v2  ;;  %v3792_v31 = vmax.f32 %v3752_v33, 0.0  ;;  %8686 = vmatprep.mubr.msk.bf16.mxu1 %vm21_vm0, %v8886_v58  ;;  %3905 = vst.msk [vmem:[%s12083_s5 + $0x14] sm:$0xf] %vm3899_vm5, %v8003_v37  ;;  %v8896_v2 = vld [vmem:[%s12081_s3 + $0x40] sm:$0xff]  }
 0x40c   :  { %5917 = vst.msk [vmem:[#allocation4 + $0x18] sm:$0xff] %vm2167_vm2, %v5823_v18  ;;  %v5821_v58 = vpop.permute.xlu0 %5820  ;;  %v8897_v37 = vld [vmem:[%s12081_s3] sm:$0xff]   ;;  %8276 = vmatprep.subr.bf16.mxu0 %v8896_v2  ;;  %v8900_v2 = vld [vmem:[%s12081_s3 + $0x50] sm:$0xff]  }
 0x40d   :  { %3826 = vst.msk [vmem:[#allocation5 + $0x70] sm:$0xff] %vm3811_vm4, %v3809_v0  ;;  %v3810_v44 = vmax.f32 %v3792_v31, %v3794_v40  ;;  %v8580_v25 = vpop.f32.mrb[96].mxu1  ;;  %8277 = vmatpush3.bf16.msra.mxu0 %v8897_v37 }
 0x40e   :  { %v4605_v43 = vpop.f32.mrb[97].mxu1  ;;  %v3840_v11 = vld [vmem:[#allocation5 + $0x60] ss:$2 sm:$0xff]  ;;  %v3856_v21 = vld [vmem:[#allocation5 + $0x61] ss:$2 sm:$0xff]  ;;  %v4614_v50 = vadd.f32 %v8580_v25, %v10831_v51  ;;  %5916 = vst.msk [vmem:[#allocation4] sm:$0xff] %vm2167_vm2, %v5821_v58 }
 0x40f   :  { %3827 = vst.msk [vmem:[#allocation5 + $0x78] sm:$0xff] %vm3811_vm4, %v3810_v44  ;;  %v8581_v16 = vpop.f32.mrb[98].mxu1  ;;  %v3865_v46 = vmax.f32 %v3840_v11, %v3856_v21  ;;  %v4606_v52 = vadd.f32 %v10831_v51, %v4605_v43 }
 0x410   :  { %v4608_v38 = vpop.f32.mrb[99].mxu1  ;;  %v4617_v35 = vadd.f32 %v8581_v16, %v10831_v51  ;;  %v5118_v12 = vmax.f32 %v4614_v50, 0.0 }
 0x411   :  { %v8004_v60 = vpack.c.bf16 %v3865_v46, %v3865_v46  ;;  %v4609_v61 = vadd.f32 %v10831_v51, %v4608_v38  ;;  %v5116_v15 = vmax.f32 %v4606_v52, 0.0  ;;  %v8894_v46 = vld [vmem:[%s12079_s0 + $0x3f0] sm:$0xff]  }
 0x412   :  { %8687 = vmatmul.mubr.msk.bf16.gmra.mrb[204].mxu1 %vm21_vm0, %v8887_v47  ;;  %v5119_v57 = vmax.f32 %v4617_v35, 0.0  ;;  %v8893_v47 = vld [vmem:[%s12079_s0 + $0x3e8] sm:$0xff]  }
 0x413   :  { %8690 = vmatprep.mubr.msk.bf16.mxu1 %vm21_vm0, %v8888_v24  ;;  %3906 = vst.msk [vmem:[%s12083_s5 + $0x18] sm:$0xf] %vm3899_vm5, %v8004_v60  ;;  %v5117_v4 = vmax.f32 %v4609_v61, 0.0 }
 0x415   :  { %v8584_v41 = vpop.f32.mrb[100].mxu1 }
 0x416   :  { %v4630_v19 = vadd.f32 %v8584_v41, %v10831_v51  ;;  %v4621_v30 = vpop.f32.mrb[101].mxu1  ;;  %v3842_v56 = vld [vmem:[#allocation5 + $0x70] ss:$2 sm:$0xff]  ;;  %v3858_v32 = vld [vmem:[#allocation5 + $0x71] ss:$2 sm:$0xff] }
 0x417   :  { %v4622_v53 = vadd.f32 %v10831_v51, %v4621_v30  ;;  %v8585_v17 = vpop.f32.mrb[102].mxu1  ;;  %v3866_v55 = vmax.f32 %v3842_v56, %v3858_v32 }
 0x418   :  { %v5122_v49 = vmax.f32 %v4630_v19, 0.0  ;;  %v4633_v3 = vadd.f32 %v8585_v17, %v10831_v51  ;;  %v4624_v1 = vpop.f32.mrb[103].mxu1 }
 0x419   :  { %v5120_v63 = vmax.f32 %v4622_v53, 0.0  ;;  %v4625_v5 = vadd.f32 %v10831_v51, %v4624_v1  ;;  %v8005_v29 = vpack.c.bf16 %v3866_v55, %v3866_v55  ;;  %v8895_v55 = vld [vmem:[%s12079_s0 + $0x3f8] sm:$0xff]  }
 0x41a   :  { %v5246_v20 = vmax.f32 %v5118_v12, %v5122_v49  ;;  %v5123_v6 = vmax.f32 %v4633_v3, 0.0  ;;  %8691 = vmatmul.mubr.msk.bf16.gmra.mrb[208].mxu1 %vm21_vm0, %v8889_v36 }
 0x41b   :  { %v5244_v22 = vmax.f32 %v5116_v15, %v5120_v63  ;;  %v5121_v7 = vmax.f32 %v4625_v5, 0.0  ;;  %8694 = vmatprep.mubr.msk.bf16.mxu1 %vm21_vm0, %v8890_v8  ;;  %3907 = vst.msk [vmem:[%s12083_s5 + $0x1c] sm:$0xf] %vm3899_vm5, %v8005_v29 }
 0x41c   :  { %5310 = vst.msk [vmem:[#allocation2 + $0x10] sm:$0xff] %vm21_vm0, %v5246_v20  ;;  %v5247_v59 = vmax.f32 %v5119_v57, %v5123_v6  ;;  %v8898_v20 = vld [vmem:[%s12081_s3 + $0x48] sm:$0xff]  }
 0x41d   :  { %5308 = vst.msk [vmem:[#allocation2] sm:$0xff] %vm21_vm0, %v5244_v22  ;;  %v5245_v39 = vmax.f32 %v5117_v4, %v5121_v7  ;;  %v8588_v45 = vpop.f32.mrb[104].mxu1  ;;  %8278 = vmatprep.subr.bf16.mxu0 %v8898_v20  ;;  %v8899_v4 = vld [vmem:[%s12081_s3 + $0x8] sm:$0xff]  }
 0x41e   :  { %5311 = vst.msk [vmem:[#allocation2 + $0x18] sm:$0xff] %vm21_vm0, %v5247_v59  ;;  %v4637_v28 = vpop.f32.mrb[105].mxu1  ;;  %v4646_v9 = vadd.f32 %v8588_v45, %v10831_v51  ;;  %8279 = vmatpush3.bf16.msra.mxu0 %v8899_v4 }
 0x41f   :  { %5309 = vst.msk [vmem:[#allocation2 + $0x8] sm:$0xff] %vm21_vm0, %v5245_v39  ;;  %v8589_v27 = vpop.f32.mrb[106].mxu1  ;;  %v4638_v10 = vadd.f32 %v10831_v51, %v4637_v28  ;;  %8280 = vmatprep.subr.bf16.mxu0 %v8900_v2 }
 0x420   :  { %v4640_v54 = vpop.f32.mrb[107].mxu1  ;;  %v4649_v44 = vadd.f32 %v8589_v27, %v10831_v51  ;;  %v5126_v38 = vmax.f32 %v4646_v9, 0.0 }
 0x421   :  { %v4641_v21 = vadd.f32 %v10831_v51, %v4640_v54  ;;  %v5124_v41 = vmax.f32 %v4638_v10, 0.0 }
 0x422   :  { %8695 = vmatmul.mubr.msk.bf16.gmra.mrb[212].mxu1 %vm21_vm0, %v8891_v48  ;;  %v5127_v35 = vmax.f32 %v4649_v44, 0.0 }
 0x423   :  { %8698 = vmatprep.mubr.msk.bf16.mxu1 %vm21_vm0, %v8892_v13  ;;  %v5125_v36 = vmax.f32 %v4641_v21, 0.0 }
 0x425   :  { %v5373_v34 = vld [vmem:[#allocation2 + $0x10] ss:$2 sm:$0xff]  ;;  %v5405_v62 = vld [vmem:[#allocation2 + $0x11] ss:$2 sm:$0xff]  ;;  %v8592_v33 = vpop.f32.mrb[108].mxu1 }
 0x426   :  { %v5437_v40 = vmax.f32 %v5373_v34, %v5405_v62  ;;  %v5372_v0 = vld [vmem:[#allocation2] ss:$2 sm:$0xff]  ;;  %v5404_v31 = vld [vmem:[#allocation2 + $0x1] ss:$2 sm:$0xff]  ;;  %v4662_v25 = vadd.f32 %v8592_v33, %v10831_v51  ;;  %v4653_v43 = vpop.f32.mrb[109].mxu1  ;;  %v8901_v33 = vld [vmem:[%s12081_s3 + $0x10] sm:$0xff]  }
 0x427   :  { %v5436_v11 = vmax.f32 %v5372_v0, %v5404_v31  ;;  %v4654_v16 = vadd.f32 %v10831_v51, %v4653_v43  ;;  %v8593_v24 = vpop.f32.mrb[110].mxu1  ;;  %8281 = vmatpush3.bf16.msra.mxu0 %v8901_v33 }
 0x428   :  { %5469 = vst.msk [vmem:[#allocation3 + $0x30] sm:$0xff] %vm21_vm0, %v5437_v40  ;;  %v5130_v60 = vmax.f32 %v4662_v25, 0.0  ;;  %v4665_v50 = vadd.f32 %v8593_v24, %v10831_v51  ;;  %v4656_v52 = vpop.f32.mrb[111].mxu1 }
 0x429   :  { %5468 = vst.msk [vmem:[#allocation3 + $0x28] sm:$0xff] %vm21_vm0, %v5436_v11  ;;  %v5128_v42 = vmax.f32 %v4654_v16, 0.0  ;;  %v4657_v26 = vadd.f32 %v10831_v51, %v4656_v52  ;;  %v8902_v11 = vld [vmem:[%s12081_s3 + $0x58] sm:$0xff]   ;;  %v8904_v52 = vld [vmem:[%s12081_s3 + $0x60] sm:$0xff]  }
 0x42a   :  { %v5250_v19 = vmax.f32 %v5126_v38, %v5130_v60  ;;  %v5131_v30 = vmax.f32 %v4665_v50, 0.0  ;;  %8699 = vmatmul.mubr.msk.bf16.gmra.mrb[216].mxu1 %vm21_vm0, %v8893_v47  ;;  %v8903_v16 = vld [vmem:[%s12081_s3 + $0x18] sm:$0xff]   ;;  %8282 = vmatprep.subr.bf16.mxu0 %v8902_v11 }
 0x42b   :  { %v5248_v56 = vmax.f32 %v5124_v41, %v5128_v42  ;;  %v5129_v32 = vmax.f32 %v4657_v26, 0.0  ;;  %8702 = vmatprep.mubr.msk.bf16.mxu1 %vm21_vm0, %v8894_v46  ;;  %8283 = vmatpush3.bf16.msra.mxu0 %v8903_v16 }
 0x42c   :  { %5314 = vst.msk [vmem:[#allocation2 + $0x30] sm:$0xff] %vm21_vm0, %v5250_v19  ;;  %v5251_v61 = vmax.f32 %v5127_v35, %v5131_v30  ;;  %8284 = vmatprep.subr.bf16.mxu0 %v8904_v52  ;;  %v8905_v19 = vld [vmem:[%s12081_s3 + $0x20] sm:$0xff]  }
 0x42d   :  { %5312 = vst.msk [vmem:[#allocation2 + $0x20] sm:$0xff] %vm21_vm0, %v5248_v56  ;;  %v5249_v53 = vmax.f32 %v5125_v36, %v5129_v32  ;;  %v8596_v17 = vpop.f32.mrb[112].mxu1 }
 0x42e   :  { %5315 = vst.msk [vmem:[#allocation2 + $0x38] sm:$0xff] %vm21_vm0, %v5251_v61  ;;  %v4669_v8 = vpop.f32.mrb[113].mxu1  ;;  %v4678_v57 = vadd.f32 %v8596_v17, %v10831_v51 }
 0x42f   :  { %5313 = vst.msk [vmem:[#allocation2 + $0x28] sm:$0xff] %vm21_vm0, %v5249_v53  ;;  %v6205_v12 = vld [vmem:[#allocation3 + $0x31] sm:$0xff]  ;;  %v8597_v49 = vpop.f32.mrb[114].mxu1  ;;  %v4670_v6 = vadd.f32 %v10831_v51, %v4669_v8  ;;  %8285 = vmatpush3.bf16.msra.mxu0 %v8905_v19  ;;  %v8906_v8 = vld [vmem:[%s12081_s3 + $0x68] sm:$0xff]  }
 0x430   :  { %v5567_v3 = vld [vmem:[#allocation3 + $0x30] sm:$0xff]  ;;  %6270 = vrot.lane.b32.xlu1 %v6205_v12, %s8919_s30  ;;  %v4672_v15 = vpop.f32.mrb[115].mxu1  ;;  %v5948_v63 = vld [vmem:[#allocation3 + $0x27] sm:$0xff]  ;;  %v5134_v45 = vmax.f32 %v4678_v57, 0.0  ;;  %v4681_v28 = vadd.f32 %v8597_v49, %v10831_v51  ;;  %8286 = vmatprep.subr.bf16.mxu0 %v8906_v8 }
 0x431   :  { %v6204_v1 = vld [vmem:[#allocation3 + $0x29] sm:$0xff]  ;;  %6173 = vst.msk [vmem:[#allocation4 + $0x20] sm:$0xff] %vm21_vm0, %v5567_v3  ;;  %5534 = vst.msk [vmem:[#allocation4 + $0x30] sm:$0xff] %vm21_vm0, %v5948_v63  ;;  %v5132_v18 = vmax.f32 %v4670_v6, 0.0  ;;  %v4673_v54 = vadd.f32 %v10831_v51, %v4672_v15 }
 0x432   :  { %v5566_v5 = vld [vmem:[#allocation3 + $0x28] sm:$0xff]  ;;  %6268 = vrot.lane.b32.xlu0 %v6204_v1, %s8919_s30  ;;  %8703 = vmatmul.mubr.msk.bf16.gmra.mrb[220].mxu1 %vm21_vm0, %v8895_v55  ;;  %v5135_v0 = vmax.f32 %v4681_v28, 0.0 }
 0x433   :  { %v5949_v29 = vld [vmem:[#allocation3 + $0x2f] sm:$0xff]  ;;  %6172 = vst.msk [vmem:[#allocation4 + $0x8] sm:$0xff] %vm21_vm0, %v5566_v5  ;;  %v5133_v25 = vmax.f32 %v4673_v54, 0.0 }
 0x434   :  { %5535 = vst.msk [vmem:[#allocation4 + $0x48] sm:$0xff] %vm21_vm0, %v5949_v29  ;;  %5634 = vrot.lane.b32.xlu1 %v5567_v3, %s8919_s30  ;;  %v8907_v55 = vld [vmem:[%s12081_s3 + $0x28] sm:$0xff]  }
 0x435   :  { %v5375_v22 = vld [vmem:[#allocation2 + $0x30] ss:$2 sm:$0xff]  ;;  %v5407_v7 = vld [vmem:[#allocation2 + $0x31] ss:$2 sm:$0xff]  ;;  %v8600_v23 = vpop.f32.mrb[116].mxu1  ;;  %8287 = vmatpush3.bf16.msra.mxu0 %v8907_v55 }
 0x436   :  { %6012 = vrot.lane.b32.xlu0 %v5948_v63, %s8921_s22  ;;  %v5439_v59 = vmax.f32 %v5375_v22, %v5407_v7  ;;  %v5374_v14 = vld [vmem:[#allocation2 + $0x20] ss:$2 sm:$0xff]  ;;  %v5406_v39 = vld [vmem:[#allocation2 + $0x21] ss:$2 sm:$0xff]  ;;  %v4694_v48 = vadd.f32 %v8600_v23, %v10831_v51  ;;  %v4685_v27 = vpop.f32.mrb[117].mxu1  ;;  %v8908_v23 = vld [vmem:[%s12081_s3 + $0x70] sm:$0xff]  }
 0x437   :  { %v5438_v13 = vmax.f32 %v5374_v14, %v5406_v39  ;;  %v4686_v58 = vadd.f32 %v10831_v51, %v4685_v27  ;;  %v8601_v9 = vpop.f32.mrb[118].mxu1  ;;  %8288 = vmatprep.subr.bf16.mxu0 %v8908_v23 }
 0x438   :  { %5471 = vst.msk [vmem:[#allocation3 + $0x50] sm:$0xff] %vm21_vm0, %v5439_v59  ;;  %v5138_v34 = vmax.f32 %v4694_v48, 0.0  ;;  %v4697_v62 = vadd.f32 %v8601_v9, %v10831_v51  ;;  %5826 = vrot.lane.b32.xlu1 %v6205_v12, %s8920_s10  ;;  %v4688_v10 = vpop.f32.mrb[119].mxu1  ;;  %v8909_v48 = vld [vmem:[%s12081_s3 + $0x30] sm:$0xff]   ;;  %v8910_v9 = vld [vmem:[%s12081_s3 + $0x78] sm:$0xff]  }
 0x439   :  { %5470 = vst.msk [vmem:[#allocation3 + $0x48] sm:$0xff] %vm21_vm0, %v5438_v13  ;;  %v5136_v37 = vmax.f32 %v4686_v58, 0.0  ;;  %v4689_v40 = vadd.f32 %v10831_v51, %v4688_v10  ;;  %8289 = vmatpush3.bf16.msra.mxu0 %v8909_v48  ;;  %v8911_v10 = vld [vmem:[%s12081_s3 + $0x38] sm:$0xff]  }
 0x43a   :  { %5632 = vrot.lane.b32.xlu0 %v5566_v5, %s8919_s30  ;;  %v5254_v31 = vmax.f32 %v5134_v45, %v5138_v34  ;;  %v5139_v44 = vmax.f32 %v4697_v62, 0.0  ;;  %8290 = vmatprep.subr.bf16.mxu0 %v8910_v9 }
 0x43b   :  { %v5252_v43 = vmax.f32 %v5132_v18, %v5136_v37  ;;  %v5137_v47 = vmax.f32 %v4689_v40, 0.0 }
 0x43c   :  { %5318 = vst.msk [vmem:[#allocation2 + $0x50] sm:$0xff] %vm21_vm0, %v5254_v31  ;;  %v5255_v21 = vmax.f32 %v5135_v0, %v5139_v44  ;;  %6014 = vrot.lane.b32.xlu1 %v5949_v29, %s8921_s22 }
 0x43d   :  { %5316 = vst.msk [vmem:[#allocation2 + $0x40] sm:$0xff] %vm21_vm0, %v5252_v43  ;;  %v5253_v24 = vmax.f32 %v5133_v25, %v5137_v47  ;;  %v8604_v46 = vpop.f32.mrb[120].mxu1  ;;  %8291 = vmatpush3.bf16.msra.mxu0 %v8911_v10 }
 0x43e   :  { %5824 = vrot.lane.b32.xlu0 %v6204_v1, %s8920_s10  ;;  %5319 = vst.msk [vmem:[#allocation2 + $0x58] sm:$0xff] %vm21_vm0, %v5255_v21  ;;  %v4701_v38 = vpop.f32.mrb[121].mxu1  ;;  %v4710_v36 = vadd.f32 %v8604_v46, %v10831_v51 }
 0x43f   :  { %5317 = vst.msk [vmem:[#allocation2 + $0x48] sm:$0xff] %vm21_vm0, %v5253_v24  ;;  %v6589_v60 = vld [vmem:[#allocation3 + $0x50] sm:$0xff]  ;;  %v8605_v50 = vpop.f32.mrb[122].mxu1  ;;  %v4702_v53 = vadd.f32 %v10831_v51, %v4701_v38 }
 0x440   :  { %6654 = vrot.lane.b32.xlu1 %v6589_v60, %s8921_s22  ;;  %v10957_v41 = vld [vmem:[#allocation3 + $0x47] sm:$0xff]  ;;  %v4704_v26 = vpop.f32.mrb[123].mxu1  ;;  %6175 = vst.msk [vmem:[#allocation4 + $0x50] sm:$0xff] %vm21_vm0, %v6589_v60  ;;  %v10964_v35 = vld [vmem:[#allocation3 + $0x4f] sm:$0xff]  ;;  %v4713_v17 = vadd.f32 %v8605_v50, %v10831_v51  ;;  %v5142_v29 = vmax.f32 %v4710_v36, 0.0 }
 0x441   :  { %v10959_v42 = vld [vmem:[#allocation3 + $0x48] sm:$0xff]  ;;  %5537 = vst.msk [vmem:[#allocation4 + $0x78] sm:$0xff] %vm21_vm0, %v10964_v35  ;;  %v6781_v32 = vld [vmem:[#allocation3 + $0x51] sm:$0xff]  ;;  %v4705_v3 = vadd.f32 %v10831_v51, %v4704_v26  ;;  %v5140_v4 = vmax.f32 %v4702_v53, 0.0 }
 0x442   :  { %6460 = vrot.lane.b32.xlu0 %v10957_v41, %s8920_s10  ;;  %6174 = vst.msk [vmem:[#allocation4 + $0x38] sm:$0xff] %vm21_vm0, %v10959_v42  ;;  %v5504_v30 = vld [vmem:[#allocation3 + $0x47] sm:$0xff]  ;;  %v6207_v61 = vld [vmem:[#allocation3 + $0x51] sm:$0xff]  ;;  %6813 = vst.msk [vmem:[#allocation4 + $0x28] sm:$0xff] %vm21_vm0, %v6781_v32  ;;  %v5143_v59 = vmax.f32 %v4713_v17, 0.0 }
 0x443   :  { %5536 = vst.msk [vmem:[#allocation4 + $0x60] sm:$0xff] %vm21_vm0, %v5504_v30  ;;  %v6780_v56 = vld [vmem:[#allocation3 + $0x49] sm:$0xff]  ;;  %v5141_v27 = vmax.f32 %v4705_v3, 0.0 }
 0x444   :  { %6812 = vst.msk [vmem:[#allocation4 + $0x10] sm:$0xff] %vm21_vm0, %v6780_v56  ;;  %6274 = vrot.lane.b32.xlu1 %v6207_v61, %s8919_s30  ;;  %v6206_v14 = vld [vmem:[#allocation3 + $0x49] sm:$0xff] }
 0x445   :  { %v5377_v12 = vld [vmem:[#allocation2 + $0x50] ss:$2 sm:$0xff]  ;;  %v5409_v49 = vld [vmem:[#allocation2 + $0x51] ss:$2 sm:$0xff]  ;;  %v8608_v1 = vpop.f32.mrb[124].mxu1 }
 0x446   :  { %6652 = vrot.lane.b32.xlu0 %v10959_v42, %s8921_s22  ;;  %v5441_v15 = vmax.f32 %v5377_v12, %v5409_v49  ;;  %v5376_v63 = vld [vmem:[#allocation2 + $0x40] ss:$2 sm:$0xff]  ;;  %v5408_v5 = vld [vmem:[#allocation2 + $0x41] ss:$2 sm:$0xff]  ;;  %v4726_v57 = vadd.f32 %v8608_v1, %v10831_v51  ;;  %v4717_v20 = vpop.f32.mrb[125].mxu1 }
 0x447   :  { %v5440_v6 = vmax.f32 %v5376_v63, %v5408_v5  ;;  %v4718_v22 = vadd.f32 %v10831_v51, %v4717_v20  ;;  %v8609_v7 = vpop.f32.mrb[126].mxu1 }
 0x448   :  { %5473 = vst.msk [vmem:[#allocation3 + $0x70] sm:$0xff] %vm21_vm0, %v5441_v15  ;;  %5638 = vrot.lane.b32.xlu1 %v6589_v60, %s8919_s30  ;;  %v5146_v39 = vmax.f32 %v4726_v57, 0.0  ;;  %v4729_v45 = vadd.f32 %v8609_v7, %v10831_v51  ;;  %v4720_v28 = vpop.f32.mrb[127].mxu1 }
 0x449   :  { %5472 = vst.msk [vmem:[#allocation3 + $0x68] sm:$0xff] %vm21_vm0, %v5440_v6  ;;  %v5144_v13 = vmax.f32 %v4718_v22, 0.0  ;;  %v4721_v18 = vadd.f32 %v10831_v51, %v4720_v28 }
 0x44a   :  { %6272 = vrot.lane.b32.xlu0 %v6206_v14, %s8919_s30  ;;  %v5258_v54 = vmax.f32 %v5142_v29, %v5146_v39  ;;  %v5147_v58 = vmax.f32 %v4729_v45, 0.0 }
 0x44b   :  { %v5256_v2 = vmax.f32 %v5140_v4, %v5144_v13  ;;  %v5145_v34 = vmax.f32 %v4721_v18, 0.0 }
 0x44c   :  { %5322 = vst.msk [vmem:[#allocation2 + $0x70] sm:$0xff] %vm21_vm0, %v5258_v54  ;;  %v5259_v62 = vmax.f32 %v5143_v59, %v5147_v58  ;;  %5830 = vrot.lane.b32.xlu1 %v6207_v61, %s8920_s10 }
 0x44d   :  { %5320 = vst.msk [vmem:[#allocation2 + $0x60] sm:$0xff] %vm21_vm0, %v5256_v2  ;;  %v5257_v33 = vmax.f32 %v5141_v27, %v5145_v34  ;;  %v8612_v37 = vpop.f32.mrb[128].mxu1 }
 0x44e   :  { %6016 = vrot.lane.b32.xlu0 %v10957_v41, %s8921_s22  ;;  %5323 = vst.msk [vmem:[#allocation2 + $0x78] sm:$0xff] %vm21_vm0, %v5259_v62  ;;  %v4733_v40 = vpop.f32.mrb[129].mxu1  ;;  %v4742_v21 = vadd.f32 %v8612_v37, %v10831_v51 }
 0x44f   :  { %5321 = vst.msk [vmem:[#allocation2 + $0x68] sm:$0xff] %vm21_vm0, %v5257_v33  ;;  %v11016_v0 = vld [vmem:[#allocation3 + $0x70] sm:$0xff]  ;;  %v8613_v31 = vpop.f32.mrb[130].mxu1  ;;  %v4734_v24 = vadd.f32 %v10831_v51, %v4733_v40 }
 0x450   :  { %v6783_v44 = vld [vmem:[#allocation3 + $0x71] sm:$0xff]  ;;  %6462 = vrot.lane.b32.xlu1 %v10964_v35, %s8920_s10  ;;  %v4736_v25 = vpop.f32.mrb[131].mxu1  ;;  %6177 = vst.msk [vmem:[#allocation4 + $0x80] sm:$0xff] %vm21_vm0, %v11016_v0  ;;  %v6144_v47 = vld [vmem:[#allocation3 + $0x68] sm:$0xff]  ;;  %v4745_v46 = vadd.f32 %v8613_v31, %v10831_v51  ;;  %v5150_v19 = vmax.f32 %v4742_v21, 0.0 }
 0x451   :  { %6815 = vst.msk [vmem:[#allocation4 + $0x58] sm:$0xff] %vm21_vm0, %v6783_v44  ;;  %v11025_v43 = vld [vmem:[#allocation3 + $0x6f] sm:$0xff]  ;;  %v5506_v11 = vld [vmem:[#allocation3 + $0x67] sm:$0xff]  ;;  %6176 = vst.msk [vmem:[#allocation4 + $0x68] sm:$0xff] %vm21_vm0, %v6144_v47  ;;  %v4737_v50 = vadd.f32 %v10831_v51, %v4736_v25  ;;  %v5148_v32 = vmax.f32 %v4734_v24, 0.0 }
 0x452   :  { %5636 = vrot.lane.b32.xlu0 %v10959_v42, %s8919_s30  ;;  %5539 = vst.msk [vmem:[#allocation4 + $0xa8] sm:$0xff] %vm21_vm0, %v11025_v43  ;;  %5538 = vst.msk [vmem:[#allocation4 + $0x90] sm:$0xff] %vm21_vm0, %v5506_v11  ;;  %v6782_v16 = vld [vmem:[#allocation3 + $0x69] sm:$0xff]  ;;  %v5151_v17 = vmax.f32 %v4745_v46, 0.0  ;;  %v6209_v5 = vld [vmem:[#allocation3 + $0x71] sm:$0xff] }
 0x453   :  { %6814 = vst.msk [vmem:[#allocation4 + $0x40] sm:$0xff] %vm21_vm0, %v6782_v16  ;;  %v6398_v53 = vld [vmem:[#allocation3 + $0x67] sm:$0xff]  ;;  %v5149_v49 = vmax.f32 %v4737_v50, 0.0 }
 0x454   :  { %6018 = vrot.lane.b32.xlu1 %v10964_v35, %s8921_s22  ;;  %v6590_v20 = vld [vmem:[#allocation3 + $0x68] sm:$0xff] }
 0x455   :  { %v5379_v38 = vld [vmem:[#allocation2 + $0x70] ss:$2 sm:$0xff]  ;;  %v5411_v60 = vld [vmem:[#allocation2 + $0x71] ss:$2 sm:$0xff]  ;;  %v8616_v52 = vpop.f32.mrb[132].mxu1 }
 0x456   :  { %5828 = vrot.lane.b32.xlu0 %v6206_v14, %s8920_s10  ;;  %v5443_v41 = vmax.f32 %v5379_v38, %v5411_v60  ;;  %v5378_v42 = vld [vmem:[#allocation2 + $0x60] ss:$2 sm:$0xff]  ;;  %v5410_v26 = vld [vmem:[#allocation2 + $0x61] ss:$2 sm:$0xff]  ;;  %v4758_v30 = vadd.f32 %v8616_v52, %v10831_v51  ;;  %v4749_v36 = vpop.f32.mrb[133].mxu1 }
 0x457   :  { %v5442_v56 = vmax.f32 %v5378_v42, %v5410_v26  ;;  %v4750_v35 = vadd.f32 %v10831_v51, %v4749_v36  ;;  %v8617_v61 = vpop.f32.mrb[134].mxu1  ;;  %v6208_v14 = vld [vmem:[#allocation3 + $0x69] sm:$0xff] }
 0x458   :  { %5475 = vst.msk [vmem:[#allocation3 + $0x90] sm:$0xff] %vm21_vm0, %v5443_v41  ;;  %6658 = vrot.lane.b32.xlu1 %v11016_v0, %s8921_s22  ;;  %v5154_v8 = vmax.f32 %v4758_v30, 0.0  ;;  %v4761_v55 = vadd.f32 %v8617_v61, %v10831_v51  ;;  %v4752_v12 = vpop.f32.mrb[135].mxu1 }
 0x459   :  { %5474 = vst.msk [vmem:[#allocation3 + $0x88] sm:$0xff] %vm21_vm0, %v5442_v56  ;;  %v5152_v3 = vmax.f32 %v4750_v35, 0.0  ;;  %v4753_v1 = vadd.f32 %v10831_v51, %v4752_v12 }
 0x45a   :  { %6464 = vrot.lane.b32.xlu0 %v6398_v53, %s8920_s10  ;;  %v5262_v15 = vmax.f32 %v5150_v19, %v5154_v8  ;;  %v5155_v63 = vmax.f32 %v4761_v55, 0.0 }
 0x45b   :  { %v5260_v29 = vmax.f32 %v5148_v32, %v5152_v3  ;;  %v5153_v57 = vmax.f32 %v4753_v1, 0.0 }
 0x45c   :  { %6278 = vrot.lane.b32.xlu1 %v6209_v5, %s8919_s30  ;;  %5326 = vst.msk [vmem:[#allocation2 + $0x90] sm:$0xff] %vm21_vm0, %v5262_v15  ;;  %v5263_v6 = vmax.f32 %v5151_v17, %v5155_v63 }
 0x45d   :  { %5324 = vst.msk [vmem:[#allocation2 + $0x80] sm:$0xff] %vm21_vm0, %v5260_v29  ;;  %v5261_v4 = vmax.f32 %v5149_v49, %v5153_v57  ;;  %v8620_v22 = vpop.f32.mrb[136].mxu1 }
 0x45e   :  { %6656 = vrot.lane.b32.xlu0 %v6590_v20, %s8921_s22  ;;  %5327 = vst.msk [vmem:[#allocation2 + $0x98] sm:$0xff] %vm21_vm0, %v5263_v6  ;;  %v4765_v7 = vpop.f32.mrb[137].mxu1  ;;  %v4774_v27 = vadd.f32 %v8620_v22, %v10831_v51 }
 0x45f   :  { %5325 = vst.msk [vmem:[#allocation2 + $0x88] sm:$0xff] %vm21_vm0, %v5261_v4  ;;  %v8621_v23 = vpop.f32.mrb[138].mxu1  ;;  %v6147_v59 = vld [vmem:[#allocation3 + $0x90] sm:$0xff]  ;;  %v4766_v54 = vadd.f32 %v10831_v51, %v4765_v7 }
 0x460   :  { %5642 = vrot.lane.b32.xlu1 %v11016_v0, %s8919_s30  ;;  %v4768_v39 = vpop.f32.mrb[139].mxu1  ;;  %6179 = vst.msk [vmem:[#allocation4 + $0xb0] sm:$0xff] %vm21_vm0, %v6147_v59  ;;  %v11058_v45 = vld [vmem:[#allocation3 + $0x8f] sm:$0xff]  ;;  %v5508_v48 = vld [vmem:[#allocation3 + $0x87] sm:$0xff]  ;;  %v4777_v58 = vadd.f32 %v8621_v23, %v10831_v51  ;;  %v5158_v40 = vmax.f32 %v4774_v27, 0.0 }
 0x461   :  { %v6146_v28 = vld [vmem:[#allocation3 + $0x88] sm:$0xff]  ;;  %5541 = vst.msk [vmem:[#allocation4 + $0xd8] sm:$0xff] %vm21_vm0, %v11058_v45  ;;  %5540 = vst.msk [vmem:[#allocation4 + $0xc0] sm:$0xff] %vm21_vm0, %v5508_v48  ;;  %v6785_v18 = vld [vmem:[#allocation3 + $0x91] sm:$0xff]  ;;  %v4769_v34 = vadd.f32 %v10831_v51, %v4768_v39  ;;  %v5156_v25 = vmax.f32 %v4766_v54, 0.0 }
 0x462   :  { %6276 = vrot.lane.b32.xlu0 %v6208_v14, %s8919_s30  ;;  %6178 = vst.msk [vmem:[#allocation4 + $0x98] sm:$0xff] %vm21_vm0, %v6146_v28  ;;  %v6784_v13 = vld [vmem:[#allocation3 + $0x89] sm:$0xff]  ;;  %6817 = vst.msk [vmem:[#allocation4 + $0x88] sm:$0xff] %vm21_vm0, %v6785_v18  ;;  %v5159_v21 = vmax.f32 %v4777_v58, 0.0  ;;  %v6211_v1 = vld [vmem:[#allocation3 + $0x91] sm:$0xff] }
 0x463   :  { %6816 = vst.msk [vmem:[#allocation4 + $0x70] sm:$0xff] %vm21_vm0, %v6784_v13  ;;  %v5157_v38 = vmax.f32 %v4769_v34, 0.0  ;;  %v6593_v32 = vld [vmem:[#allocation3 + $0x90] sm:$0xff]  ;;  %v6592_v63 = vld [vmem:[#allocation3 + $0x88] sm:$0xff] }
 0x464   :  { %5834 = vrot.lane.b32.xlu1 %v6209_v5, %s8920_s10  ;;  %v6210_v13 = vld [vmem:[#allocation3 + $0x89] sm:$0xff] }
 0x465   :  { %v5381_v9 = vld [vmem:[#allocation2 + $0x90] ss:$2 sm:$0xff]  ;;  %v5413_v2 = vld [vmem:[#allocation2 + $0x91] ss:$2 sm:$0xff]  ;;  %v8624_v62 = vpop.f32.mrb[140].mxu1 }
 0x466   :  { %6020 = vrot.lane.b32.xlu0 %v6398_v53, %s8921_s22  ;;  %v5445_v10 = vmax.f32 %v5381_v9, %v5413_v2  ;;  %v5380_v33 = vld [vmem:[#allocation2 + $0x80] ss:$2 sm:$0xff]  ;;  %v5412_v37 = vld [vmem:[#allocation2 + $0x81] ss:$2 sm:$0xff]  ;;  %v4790_v0 = vadd.f32 %v8624_v62, %v10831_v51  ;;  %v4781_v31 = vpop.f32.mrb[141].mxu1 }
 0x467   :  { %v5444_v44 = vmax.f32 %v5380_v33, %v5412_v37  ;;  %v4782_v47 = vadd.f32 %v10831_v51, %v4781_v31  ;;  %v8625_v11 = vpop.f32.mrb[142].mxu1 }
 0x468   :  { %5477 = vst.msk [vmem:[#allocation3 + $0xb0] sm:$0xff] %vm21_vm0, %v5445_v10  ;;  %6466 = vrot.lane.b32.xlu1 %v11025_v43, %s8920_s10  ;;  %v5162_v16 = vmax.f32 %v4790_v0, 0.0  ;;  %v4793_v24 = vadd.f32 %v8625_v11, %v10831_v51  ;;  %v4784_v46 = vpop.f32.mrb[143].mxu1 }
 0x469   :  { %5476 = vst.msk [vmem:[#allocation3 + $0xa8] sm:$0xff] %vm21_vm0, %v5444_v44  ;;  %v5160_v60 = vmax.f32 %v4782_v47, 0.0  ;;  %v4785_v50 = vadd.f32 %v10831_v51, %v4784_v46 }
 0x46a   :  { %5640 = vrot.lane.b32.xlu0 %v6590_v20, %s8919_s30  ;;  %v5266_v52 = vmax.f32 %v5158_v40, %v5162_v16  ;;  %v5163_v41 = vmax.f32 %v4793_v24, 0.0 }
 0x46b   :  { %v5264_v42 = vmax.f32 %v5156_v25, %v5160_v60  ;;  %v5161_v26 = vmax.f32 %v4785_v50, 0.0 }
 0x46c   :  { %6022 = vrot.lane.b32.xlu1 %v11025_v43, %s8921_s22  ;;  %5330 = vst.msk [vmem:[#allocation2 + $0xb0] sm:$0xff] %vm21_vm0, %v5266_v52  ;;  %v5267_v19 = vmax.f32 %v5159_v21, %v5163_v41  ;;  %v6400_v43 = vld [vmem:[#allocation3 + $0x87] sm:$0xff] }
 0x46d   :  { %5328 = vst.msk [vmem:[#allocation2 + $0xa0] sm:$0xff] %vm21_vm0, %v5264_v42  ;;  %v5265_v30 = vmax.f32 %v5157_v38, %v5161_v26  ;;  %v8628_v36 = vpop.f32.mrb[144].mxu1 }
 0x46e   :  { %5832 = vrot.lane.b32.xlu0 %v6208_v14, %s8920_s10  ;;  %5331 = vst.msk [vmem:[#allocation2 + $0xb8] sm:$0xff] %vm21_vm0, %v5267_v19  ;;  %v4797_v56 = vpop.f32.mrb[145].mxu1  ;;  %v4806_v12 = vadd.f32 %v8628_v36, %v10831_v51 }
 0x46f   :  { %5329 = vst.msk [vmem:[#allocation2 + $0xa8] sm:$0xff] %vm21_vm0, %v5265_v30  ;;  %v8629_v35 = vpop.f32.mrb[146].mxu1  ;;  %v6149_v61 = vld [vmem:[#allocation3 + $0xb0] sm:$0xff]  ;;  %v4798_v15 = vadd.f32 %v10831_v51, %v4797_v56 }
 0x470   :  { %6662 = vrot.lane.b32.xlu1 %v6593_v32, %s8921_s22  ;;  %v4800_v53 = vpop.f32.mrb[147].mxu1  ;;  %6181 = vst.msk [vmem:[#allocation4 + $0xe0] sm:$0xff] %vm21_vm0, %v6149_v61  ;;  %v11091_v17 = vld [vmem:[#allocation3 + $0xaf] sm:$0xff]  ;;  %v5510_v55 = vld [vmem:[#allocation3 + $0xa7] sm:$0xff]  ;;  %v4809_v5 = vadd.f32 %v8629_v35, %v10831_v51  ;;  %v5166_v23 = vmax.f32 %v4806_v12, 0.0 }
 0x471   :  { %v6148_v8 = vld [vmem:[#allocation3 + $0xa8] sm:$0xff]  ;;  %5543 = vst.msk [vmem:[#allocation4 + $0x108] sm:$0xff] %vm21_vm0, %v11091_v17  ;;  %5542 = vst.msk [vmem:[#allocation4 + $0xf0] sm:$0xff] %vm21_vm0, %v5510_v55  ;;  %v6787_v3 = vld [vmem:[#allocation3 + $0xb1] sm:$0xff]  ;;  %v4801_v20 = vadd.f32 %v10831_v51, %v4800_v53  ;;  %v5164_v28 = vmax.f32 %v4798_v15, 0.0 }
 0x472   :  { %6468 = vrot.lane.b32.xlu0 %v6400_v43, %s8920_s10  ;;  %6180 = vst.msk [vmem:[#allocation4 + $0xc8] sm:$0xff] %vm21_vm0, %v6148_v8  ;;  %v6786_v49 = vld [vmem:[#allocation3 + $0xa9] sm:$0xff]  ;;  %6819 = vst.msk [vmem:[#allocation4 + $0xb8] sm:$0xff] %vm21_vm0, %v6787_v3  ;;  %v5167_v18 = vmax.f32 %v4809_v5, 0.0 }
 0x473   :  { %6818 = vst.msk [vmem:[#allocation4 + $0xa0] sm:$0xff] %vm21_vm0, %v6786_v49  ;;  %v5165_v2 = vmax.f32 %v4801_v20, 0.0  ;;  %v6595_v53 = vld [vmem:[#allocation3 + $0xb0] sm:$0xff]  ;;  %v6402_v49 = vld [vmem:[#allocation3 + $0xa7] sm:$0xff] }
 0x474   :  { %6282 = vrot.lane.b32.xlu1 %v6211_v1, %s8919_s30 }
 0x475   :  { %v5383_v29 = vld [vmem:[#allocation2 + $0xb0] ss:$2 sm:$0xff]  ;;  %v5415_v57 = vld [vmem:[#allocation2 + $0xb1] ss:$2 sm:$0xff]  ;;  %v8632_v6 = vpop.f32.mrb[148].mxu1 }
 0x476   :  { %6660 = vrot.lane.b32.xlu0 %v6592_v63, %s8921_s22  ;;  %v5447_v4 = vmax.f32 %v5383_v29, %v5415_v57  ;;  %v5382_v22 = vld [vmem:[#allocation2 + $0xa0] ss:$2 sm:$0xff]  ;;  %v5414_v7 = vld [vmem:[#allocation2 + $0xa1] ss:$2 sm:$0xff]  ;;  %v4822_v59 = vadd.f32 %v8632_v6, %v10831_v51  ;;  %v4813_v14 = vpop.f32.mrb[149].mxu1 }
 0x477   :  { %v5446_v39 = vmax.f32 %v5382_v22, %v5414_v7  ;;  %v4814_v48 = vadd.f32 %v10831_v51, %v4813_v14  ;;  %v8633_v27 = vpop.f32.mrb[150].mxu1 }
 0x478   :  { %5646 = vrot.lane.b32.xlu1 %v6593_v32, %s8919_s30  ;;  %5479 = vst.msk [vmem:[#allocation3 + $0xd0] sm:$0xff] %vm21_vm0, %v5447_v4  ;;  %v5170_v54 = vmax.f32 %v4822_v59, 0.0  ;;  %v4825_v58 = vadd.f32 %v8633_v27, %v10831_v51  ;;  %v4816_v9 = vpop.f32.mrb[151].mxu1  ;;  %v6213_v4 = vld [vmem:[#allocation3 + $0xb1] sm:$0xff]  ;;  %v6212_v27 = vld [vmem:[#allocation3 + $0xa9] sm:$0xff] }
 0x479   :  { %5478 = vst.msk [vmem:[#allocation3 + $0xc8] sm:$0xff] %vm21_vm0, %v5446_v39  ;;  %v5168_v34 = vmax.f32 %v4814_v48, 0.0  ;;  %v4817_v62 = vadd.f32 %v10831_v51, %v4816_v9  ;;  %v11160_v9 = vld [vmem:[%s12080_s2] ss:$0 sm:$0xff] }
 0x47a   :  { %6280 = vrot.lane.b32.xlu0 %v6210_v13, %s8919_s30  ;;  %v5270_v10 = vmax.f32 %v5166_v23, %v5170_v54  ;;  %v5171_v33 = vmax.f32 %v4825_v58, 0.0  ;;  %v6594_v23 = vld [vmem:[#allocation3 + $0xa8] sm:$0xff] }
 0x47b   :  { %v5268_v37 = vmax.f32 %v5164_v28, %v5168_v34  ;;  %v5169_v40 = vmax.f32 %v4817_v62, 0.0 }
 0x47c   :  { %5838 = vrot.lane.b32.xlu1 %v6211_v1, %s8920_s10  ;;  %5334 = vst.msk [vmem:[#allocation2 + $0xd0] sm:$0xff] %vm21_vm0, %v5270_v10  ;;  %v5271_v0 = vmax.f32 %v5167_v18, %v5171_v33 }
 0x47d   :  { %5332 = vst.msk [vmem:[#allocation2 + $0xc0] sm:$0xff] %vm21_vm0, %v5268_v37  ;;  %v5269_v31 = vmax.f32 %v5165_v2, %v5169_v40  ;;  %v8636_v44 = vpop.f32.mrb[152].mxu1 }
 0x47e   :  { %6024 = vrot.lane.b32.xlu0 %v6400_v43, %s8921_s22  ;;  %5335 = vst.msk [vmem:[#allocation2 + $0xd8] sm:$0xff] %vm21_vm0, %v5271_v0  ;;  %v4829_v25 = vpop.f32.mrb[153].mxu1  ;;  %v4838_v38 = vadd.f32 %v8636_v44, %v10831_v51 }
 0x47f   :  { %5333 = vst.msk [vmem:[#allocation2 + $0xc8] sm:$0xff] %vm21_vm0, %v5269_v31  ;;  %v8637_v47 = vpop.f32.mrb[154].mxu1  ;;  %v6151_v11 = vld [vmem:[#allocation3 + $0xd0] sm:$0xff]  ;;  %v4830_v52 = vadd.f32 %v10831_v51, %v4829_v25 }
 0x480   :  { %6470 = vrot.lane.b32.xlu1 %v11058_v45, %s8920_s10  ;;  %v4832_v21 = vpop.f32.mrb[155].mxu1  ;;  %6183 = vst.msk [vmem:[#allocation4 + $0x110] sm:$0xff] %vm21_vm0, %v6151_v11  ;;  %v11123_v16 = vld [vmem:[#allocation3 + $0xcf] sm:$0xff]  ;;  %v5512_v46 = vld [vmem:[#allocation3 + $0xc7] sm:$0xff]  ;;  %v4841_v41 = vadd.f32 %v8637_v47, %v10831_v51  ;;  %v5174_v35 = vmax.f32 %v4838_v38, 0.0 }
 0x481   :  { %v6150_v24 = vld [vmem:[#allocation3 + $0xc8] sm:$0xff]  ;;  %5545 = vst.msk [vmem:[#allocation4 + $0x138] sm:$0xff] %vm21_vm0, %v11123_v16  ;;  %5544 = vst.msk [vmem:[#allocation4 + $0x120] sm:$0xff] %vm21_vm0, %v5512_v46  ;;  %v6789_v50 = vld [vmem:[#allocation3 + $0xd1] sm:$0xff]  ;;  %v4833_v19 = vadd.f32 %v10831_v51, %v4832_v21  ;;  %v5172_v55 = vmax.f32 %v4830_v52, 0.0 }
 0x482   :  { %5644 = vrot.lane.b32.xlu0 %v6592_v63, %s8919_s30  ;;  %6182 = vst.msk [vmem:[#allocation4 + $0xf8] sm:$0xff] %vm21_vm0, %v6150_v24  ;;  %v6788_v60 = vld [vmem:[#allocation3 + $0xc9] sm:$0xff]  ;;  %6821 = vst.msk [vmem:[#allocation4 + $0xe8] sm:$0xff] %vm21_vm0, %v6789_v50  ;;  %v5175_v3 = vmax.f32 %v4841_v41, 0.0 }
 0x483   :  { %6820 = vst.msk [vmem:[#allocation4 + $0xd0] sm:$0xff] %vm21_vm0, %v6788_v60  ;;  %v5173_v5 = vmax.f32 %v4833_v19, 0.0 }
 0x484   :  { %6026 = vrot.lane.b32.xlu1 %v11058_v45, %s8921_s22 }
 0x485   :  { %v5385_v42 = vld [vmem:[#allocation2 + $0xd0] ss:$2 sm:$0xff]  ;;  %v5417_v26 = vld [vmem:[#allocation2 + $0xd1] ss:$2 sm:$0xff]  ;;  %v8640_v30 = vpop.f32.mrb[156].mxu1 }
 0x486   :  { %5836 = vrot.lane.b32.xlu0 %v6210_v13, %s8920_s10  ;;  %v5449_v36 = vmax.f32 %v5385_v42, %v5417_v26  ;;  %v5384_v56 = vld [vmem:[#allocation2 + $0xc0] ss:$2 sm:$0xff]  ;;  %v5416_v32 = vld [vmem:[#allocation2 + $0xc1] ss:$2 sm:$0xff]  ;;  %v4854_v61 = vadd.f32 %v8640_v30, %v10831_v51  ;;  %v4845_v43 = vpop.f32.mrb[157].mxu1 }
 0x487   :  { %v5448_v8 = vmax.f32 %v5384_v56, %v5416_v32  ;;  %v4846_v45 = vadd.f32 %v10831_v51, %v4845_v43  ;;  %v8641_v12 = vpop.f32.mrb[158].mxu1  ;;  %v11185_v43 = vpop.permute.xlu1 %6522 }
 0x488   :  { %6666 = vrot.lane.b32.xlu1 %v6595_v53, %s8921_s22  ;;  %5481 = vst.msk [vmem:[#allocation3 + $0xf0] sm:$0xff] %vm21_vm0, %v5449_v36  ;;  %v5178_v1 = vmax.f32 %v4854_v61, 0.0  ;;  %v4857_v15 = vadd.f32 %v8641_v12, %v10831_v51  ;;  %v4848_v63 = vpop.f32.mrb[159].mxu1 }
 0x489   :  { %5480 = vst.msk [vmem:[#allocation3 + $0xe8] sm:$0xff] %vm21_vm0, %v5448_v8  ;;  %v5176_v29 = vmax.f32 %v4846_v45, 0.0  ;;  %v4849_v57 = vadd.f32 %v10831_v51, %v4848_v63  ;;  %v11189_v8 = vpop.permute.xlu0 %6520 }
 0x48a   :  { %6472 = vrot.lane.b32.xlu0 %v6402_v49, %s8920_s10  ;;  %v5274_v20 = vmax.f32 %v5174_v35, %v5178_v1  ;;  %v5179_v6 = vmax.f32 %v4857_v15, 0.0  ;;  %v11197_v15 = vld [vmem:[#allocation3 + $0xc7] sm:$0xff] }
 0x48b   :  { %v5272_v22 = vmax.f32 %v5172_v55, %v5176_v29  ;;  %v5177_v7 = vmax.f32 %v4849_v57, 0.0 }
 0x48c   :  { %6286 = vrot.lane.b32.xlu1 %v6213_v4, %s8919_s30  ;;  %5338 = vst.msk [vmem:[#allocation2 + $0xf0] sm:$0xff] %vm21_vm0, %v5274_v20  ;;  %v5275_v59 = vmax.f32 %v5175_v3, %v5179_v6 }
 0x48d   :  { %5336 = vst.msk [vmem:[#allocation2 + $0xe0] sm:$0xff] %vm21_vm0, %v5272_v22  ;;  %v5273_v14 = vmax.f32 %v5173_v5, %v5177_v7  ;;  %v8644_v39 = vpop.f32.mrb[160].mxu1  ;;  %v6215_v7 = vld [vmem:[#allocation3 + $0xd1] sm:$0xff] }
 0x48e   :  { %6664 = vrot.lane.b32.xlu0 %v6594_v23, %s8921_s22  ;;  %5339 = vst.msk [vmem:[#allocation2 + $0xf8] sm:$0xff] %vm21_vm0, %v5275_v59  ;;  %v4861_v51 = vpop.f32.mrb[161].mxu1  ;;  %v4870_v2 = vadd.f32 %v11160_v9, %v8644_v39  ;;  %v6596_v59 = vld [vmem:[#allocation3 + $0xc8] sm:$0xff] }
 0x48f   :  { %5337 = vst.msk [vmem:[#allocation2 + $0xe8] sm:$0xff] %vm21_vm0, %v5273_v14  ;;  %v8645_v28 = vpop.f32.mrb[162].mxu1  ;;  %v6153_v48 = vld [vmem:[#allocation3 + $0xf0] sm:$0xff]  ;;  %v4862_v10 = vadd.f32 %v11160_v9, %v4861_v51 }
 0x490   :  { %5650 = vrot.lane.b32.xlu1 %v6595_v53, %s8919_s30  ;;  %v4864_v13 = vpop.f32.mrb[163].mxu1  ;;  %6185 = vst.msk [vmem:[#allocation4 + $0x140] sm:$0xff] %vm21_vm0, %v6153_v48  ;;  %v11155_v18 = vld [vmem:[#allocation3 + $0xef] sm:$0xff]  ;;  %v5514_v58 = vld [vmem:[#allocation3 + $0xe7] sm:$0xff]  ;;  %v4873_v33 = vadd.f32 %v11160_v9, %v8645_v28  ;;  %v5182_v11 = vmax.f32 %v4870_v2, 0.0 }
 0x491   :  { %v6152_v54 = vld [vmem:[#allocation3 + $0xe8] sm:$0xff]  ;;  %5547 = vst.msk [vmem:[#allocation4 + $0x168] sm:$0xff] %vm21_vm0, %v11155_v18  ;;  %5546 = vst.msk [vmem:[#allocation4 + $0x150] sm:$0xff] %vm21_vm0, %v5514_v58  ;;  %v6791_v62 = vld [vmem:[#allocation3 + $0xf1] sm:$0xff]  ;;  %v4865_v0 = vadd.f32 %v11160_v9, %v4864_v13  ;;  %v5180_v38 = vmax.f32 %v4862_v10, 0.0 }
 0x492   :  { %6284 = vrot.lane.b32.xlu0 %v6212_v27, %s8919_s30  ;;  %6184 = vst.msk [vmem:[#allocation4 + $0x128] sm:$0xff] %vm21_vm0, %v6152_v54  ;;  %v6790_v34 = vld [vmem:[#allocation3 + $0xe9] sm:$0xff]  ;;  %6823 = vst.msk [vmem:[#allocation4 + $0x118] sm:$0xff] %vm21_vm0, %v6791_v62  ;;  %v5183_v52 = vmax.f32 %v4873_v33, 0.0 }
 0x493   :  { %6822 = vst.msk [vmem:[#allocation4 + $0x100] sm:$0xff] %vm21_vm0, %v6790_v34  ;;  %v5181_v19 = vmax.f32 %v4865_v0, 0.0 }
 0x494   :  { %5842 = vrot.lane.b32.xlu1 %v6213_v4, %s8920_s10 }
 0x495   :  { %v5387_v37 = vld [vmem:[#allocation2 + $0xf0] ss:$2 sm:$0xff]  ;;  %v5419_v40 = vld [vmem:[#allocation2 + $0xf1] ss:$2 sm:$0xff]  ;;  %v8648_v31 = vpop.f32.mrb[164].mxu1 }
 0x496   :  { %6028 = vrot.lane.b32.xlu0 %v6402_v49, %s8921_s22  ;;  %v5451_v44 = vmax.f32 %v5387_v37, %v5419_v40  ;;  %v5386_v25 = vld [vmem:[#allocation2 + $0xe0] ss:$2 sm:$0xff]  ;;  %v5418_v47 = vld [vmem:[#allocation2 + $0xe1] ss:$2 sm:$0xff]  ;;  %v4886_v21 = vadd.f32 %v11160_v9, %v8648_v31  ;;  %v4877_v24 = vpop.f32.mrb[165].mxu1  ;;  %v6597_v49 = vld [vmem:[#allocation3 + $0xd0] sm:$0xff] }
 0x497   :  { %v5450_v46 = vmax.f32 %v5386_v25, %v5418_v47  ;;  %v4878_v60 = vadd.f32 %v11160_v9, %v4877_v24  ;;  %v8649_v50 = vpop.f32.mrb[166].mxu1  ;;  %v6214_v31 = vld [vmem:[#allocation3 + $0xc9] sm:$0xff] }
 0x498   :  { %6474 = vrot.lane.b32.xlu1 %v11091_v17, %s8920_s10  ;;  %5483 = vst.msk [vmem:[#allocation3 + $0x110] sm:$0xff] %vm21_vm0, %v5451_v44  ;;  %v5186_v41 = vmax.f32 %v4886_v21, 0.0  ;;  %v4889_v42 = vadd.f32 %v11160_v9, %v8649_v50  ;;  %v4880_v26 = vpop.f32.mrb[167].mxu1 }
 0x499   :  { %5482 = vst.msk [vmem:[#allocation3 + $0x108] sm:$0xff] %vm21_vm0, %v5450_v46  ;;  %v5184_v30 = vmax.f32 %v4878_v60, 0.0  ;;  %v4881_v36 = vadd.f32 %v11160_v9, %v4880_v26 }
 0x49a   :  { %5648 = vrot.lane.b32.xlu0 %v6594_v23, %s8919_s30  ;;  %v5278_v56 = vmax.f32 %v5182_v11, %v5186_v41  ;;  %v5187_v32 = vmax.f32 %v4889_v42, 0.0 }
 0x49b   :  { %v5276_v35 = vmax.f32 %v5180_v38, %v5184_v30  ;;  %v5185_v61 = vmax.f32 %v4881_v36, 0.0 }
 0x49c   :  { %6030 = vrot.lane.b32.xlu1 %v11091_v17, %s8921_s22  ;;  %5342 = vst.msk [vmem:[#allocation2 + $0x110] sm:$0xff] %vm21_vm0, %v5278_v56  ;;  %v5279_v53 = vmax.f32 %v5183_v52, %v5187_v32 }
 0x49d   :  { %5340 = vst.msk [vmem:[#allocation2 + $0x100] sm:$0xff] %vm21_vm0, %v5276_v35  ;;  %v5277_v55 = vmax.f32 %v5181_v19, %v5185_v61  ;;  %v8652_v45 = vpop.f32.mrb[168].mxu1 }
 0x49e   :  { %5840 = vrot.lane.b32.xlu0 %v6212_v27, %s8920_s10  ;;  %5343 = vst.msk [vmem:[#allocation2 + $0x118] sm:$0xff] %vm21_vm0, %v5279_v53  ;;  %v4893_v12 = vpop.f32.mrb[169].mxu1  ;;  %v4902_v6 = vadd.f32 %v11160_v9, %v8652_v45 }
 0x49f   :  { %5341 = vst.msk [vmem:[#allocation2 + $0x108] sm:$0xff] %vm21_vm0, %v5277_v55  ;;  %v11194_v17 = vld [vmem:[#allocation3 + $0x110] sm:$0xff]  ;;  %v8653_v3 = vpop.f32.mrb[170].mxu1  ;;  %v4894_v23 = vadd.f32 %v11160_v9, %v4893_v12 }
 0x4a0   :  { %v6793_v1 = vld [vmem:[#allocation3 + $0x111] sm:$0xff]  ;;  %6670 = vrot.lane.b32.xlu1 %v6597_v49, %s8921_s22  ;;  %v4896_v63 = vpop.f32.mrb[171].mxu1  ;;  %6187 = vst.msk [vmem:[#allocation4 + $0x170] sm:$0xff] %vm21_vm0, %v11194_v17  ;;  %v6154_v29 = vld [vmem:[#allocation3 + $0x108] sm:$0xff]  ;;  %v4905_v14 = vadd.f32 %v11160_v9, %v8653_v3  ;;  %v5190_v2 = vmax.f32 %v4902_v6, 0.0 }
 0x4a1   :  { %6825 = vst.msk [vmem:[#allocation4 + $0x148] sm:$0xff] %vm21_vm0, %v6793_v1  ;;  %v11204_v5 = vld [vmem:[#allocation3 + $0x10f] sm:$0xff]  ;;  %v5516_v57 = vld [vmem:[#allocation3 + $0x107] sm:$0xff]  ;;  %6186 = vst.msk [vmem:[#allocation4 + $0x158] sm:$0xff] %vm21_vm0, %v6154_v29  ;;  %v4897_v28 = vadd.f32 %v11160_v9, %v4896_v63  ;;  %v5188_v37 = vmax.f32 %v4894_v23, 0.0 }
 0x4a2   :  { %6476 = vrot.lane.b32.xlu0 %v11197_v15, %s8920_s10  ;;  %v6271_v20 = vpop.permute.xlu1 %6270  ;;  %5549 = vst.msk [vmem:[#allocation4 + $0x198] sm:$0xff] %vm21_vm0, %v11204_v5  ;;  %5548 = vst.msk [vmem:[#allocation4 + $0x180] sm:$0xff] %vm21_vm0, %v5516_v57  ;;  %v6792_v4 = vld [vmem:[#allocation3 + $0x109] sm:$0xff]  ;;  %v5191_v44 = vmax.f32 %v4905_v14, 0.0 }
 0x4a3   :  { %6365 = vst.msk [vmem:[#allocation4 + $0x20] sm:$0xff] %vm1974_vm1, %v6271_v20  ;;  %v5189_v21 = vmax.f32 %v4897_v28, 0.0 }
 0x4a4   :  { %v6269_v22 = vpop.permute.xlu0 %6268  ;;  %6824 = vst.msk [vmem:[#allocation4 + $0x130] sm:$0xff] %vm21_vm0, %v6792_v4  ;;  %6290 = vrot.lane.b32.xlu1 %v6215_v7, %s8919_s30 }
 0x4a5   :  { %6364 = vst.msk [vmem:[#allocation4 + $0x8] sm:$0xff] %vm1974_vm1, %v6269_v22  ;;  %v5389_v39 = vld [vmem:[#allocation2 + $0x110] ss:$2 sm:$0xff]  ;;  %v5421_v51 = vld [vmem:[#allocation2 + $0x111] ss:$2 sm:$0xff]  ;;  %v8656_v48 = vpop.f32.mrb[172].mxu1 }
 0x4a6   :  { %6668 = vrot.lane.b32.xlu0 %v6596_v59, %s8921_s22  ;;  %v5635_v27 = vpop.permute.xlu1 %5634  ;;  %v5453_v13 = vmax.f32 %v5389_v39, %v5421_v51  ;;  %v5388_v54 = vld [vmem:[#allocation2 + $0x100] ss:$2 sm:$0xff]  ;;  %v5420_v58 = vld [vmem:[#allocation2 + $0x101] ss:$2 sm:$0xff]  ;;  %v4918_v34 = vadd.f32 %v11160_v9, %v8656_v48  ;;  %v4909_v62 = vpop.f32.mrb[173].mxu1  ;;  %v6599_v48 = vld [vmem:[#allocation3 + $0xf0] sm:$0xff] }
 0x4a7   :  { %5727 = vst.msk [vmem:[#allocation4 + $0x48] sm:$0xff] %vm1974_vm1, %v5635_v27  ;;  %v5452_v33 = vmax.f32 %v5388_v54, %v5420_v58  ;;  %v4910_v40 = vadd.f32 %v11160_v9, %v4909_v62  ;;  %v8657_v0 = vpop.f32.mrb[174].mxu1 }
 0x4a8   :  { %v6013_v10 = vpop.permute.xlu0 %6012  ;;  %5654 = vrot.lane.b32.xlu1 %v6597_v49, %s8919_s30  ;;  %5485 = vst.msk [vmem:[#allocation3 + $0x130] sm:$0xff] %vm21_vm0, %v5453_v13  ;;  %v5194_v25 = vmax.f32 %v4918_v34, 0.0  ;;  %v4921_v47 = vadd.f32 %v11160_v9, %v8657_v0  ;;  %v4912_v11 = vpop.f32.mrb[175].mxu1 }
 0x4a9   :  { %6108 = vst.msk [vmem:[#allocation4] sm:$0xff] %vm2360_vm3, %v6013_v10  ;;  %v5192_v24 = vmax.f32 %v4910_v40, 0.0  ;;  %v4913_v46 = vadd.f32 %v11160_v9, %v4912_v11  ;;  %v6217_v11 = vld [vmem:[#allocation3 + $0xf1] sm:$0xff] }
 0x4aa   :  { %6288 = vrot.lane.b32.xlu0 %v6214_v31, %s8919_s30  ;;  %5484 = vst.msk [vmem:[#allocation3 + $0x128] sm:$0xff] %vm21_vm0, %v5452_v33  ;;  %v5827_v38 = vpop.permute.xlu1 %5826  ;;  %v5282_v60 = vmax.f32 %v5190_v2, %v5194_v25  ;;  %v5195_v50 = vmax.f32 %v4921_v47, 0.0  ;;  %v6406_v2 = vld [vmem:[#allocation3 + $0xe7] sm:$0xff] }
 0x4ab   :  { %5919 = vst.msk [vmem:[#allocation4 + $0x48] sm:$0xff] %vm2167_vm2, %v5827_v38  ;;  %v5280_v41 = vmax.f32 %v5188_v37, %v5192_v24  ;;  %v5193_v42 = vmax.f32 %v4913_v46, 0.0  ;;  %v11278_v46 = vld [vmem:[#allocation3 + $0xe8] sm:$0xff] }
 0x4ac   :  { %v5633_v52 = vpop.permute.xlu0 %5632  ;;  %5846 = vrot.lane.b32.xlu1 %v6215_v7, %s8920_s10  ;;  %5346 = vst.msk [vmem:[#allocation2 + $0x130] sm:$0xff] %vm21_vm0, %v5282_v60  ;;  %v5283_v26 = vmax.f32 %v5191_v44, %v5195_v50 }
 0x4ad   :  { %5726 = vst.msk [vmem:[#allocation4 + $0x30] sm:$0xff] %vm1974_vm1, %v5633_v52  ;;  %v5281_v19 = vmax.f32 %v5189_v21, %v5193_v42  ;;  %v8660_v30 = vpop.f32.mrb[176].mxu1 }
 0x4ae   :  { %6032 = vrot.lane.b32.xlu0 %v11197_v15, %s8921_s22  ;;  %5344 = vst.msk [vmem:[#allocation2 + $0x120] sm:$0xff] %vm21_vm0, %v5280_v41  ;;  %v6015_v36 = vpop.permute.xlu1 %6014  ;;  %5347 = vst.msk [vmem:[#allocation2 + $0x138] sm:$0xff] %vm21_vm0, %v5283_v26  ;;  %v4925_v56 = vpop.f32.mrb[177].mxu1  ;;  %v4934_v3 = vadd.f32 %v11160_v9, %v8660_v30  ;;  %v11291_v30 = vld [vmem:[#allocation3 + $0xe9] sm:$0xff] }
 0x4af   :  { %6109 = vst.msk [vmem:[#allocation4 + $0x18] sm:$0xff] %vm2360_vm3, %v6015_v36  ;;  %v11239_v35 = vld [vmem:[#allocation3 + $0x130] sm:$0xff]  ;;  %v8661_v61 = vpop.f32.mrb[178].mxu1  ;;  %v4926_v29 = vadd.f32 %v11160_v9, %v4925_v56 }
 0x4b0   :  { %v5825_v32 = vpop.permute.xlu0 %5824  ;;  %5345 = vst.msk [vmem:[#allocation2 + $0x128] sm:$0xff] %vm21_vm0, %v5281_v19  ;;  %6478 = vrot.lane.b32.xlu1 %v11123_v16, %s8920_s10  ;;  %v4928_v53 = vpop.f32.mrb[179].mxu1  ;;  %6189 = vst.msk [vmem:[#allocation4 + $0x1a0] sm:$0xff] %vm21_vm0, %v11239_v35  ;;  %v6795_v15 = vld [vmem:[#allocation3 + $0x131] sm:$0xff]  ;;  %v4937_v57 = vadd.f32 %v11160_v9, %v8661_v61  ;;  %v5198_v39 = vmax.f32 %v4934_v3, 0.0 }
 0x4b1   :  { %5918 = vst.msk [vmem:[#allocation4 + $0x30] sm:$0xff] %vm2167_vm2, %v5825_v32  ;;  %v11247_v55 = vld [vmem:[#allocation3 + $0x12f] sm:$0xff]  ;;  %v5518_v12 = vld [vmem:[#allocation3 + $0x127] sm:$0xff]  ;;  %v4929_v4 = vadd.f32 %v11160_v9, %v4928_v53  ;;  %v5196_v13 = vmax.f32 %v4926_v29, 0.0 }
 0x4b2   :  { %5652 = vrot.lane.b32.xlu0 %v6596_v59, %s8919_s30  ;;  %v6156_v45 = vld [vmem:[#allocation3 + $0x128] sm:$0xff]  ;;  %v11249_v49 = vpop.permute.xlu1 %6654  ;;  %5551 = vst.msk [vmem:[#allocation4 + $0x1c8] sm:$0xff] %vm21_vm0, %v11247_v55  ;;  %5550 = vst.msk [vmem:[#allocation4 + $0x1b0] sm:$0xff] %vm21_vm0, %v5518_v12  ;;  %v5199_v34 = vmax.f32 %v4937_v57, 0.0 }
 0x4b3   :  { %6188 = vst.msk [vmem:[#allocation4 + $0x188] sm:$0xff] %vm21_vm0, %v6156_v45  ;;  %v6794_v1 = vld [vmem:[#allocation3 + $0x129] sm:$0xff]  ;;  %6827 = vst.msk [vmem:[#allocation4 + $0x178] sm:$0xff] %vm21_vm0, %v6795_v15  ;;  %v5197_v37 = vmax.f32 %v4929_v4, 0.0 }
 0x4b4   :  { %v6461_v63 = vpop.permute.xlu0 %6460  ;;  %6826 = vst.msk [vmem:[#allocation4 + $0x160] sm:$0xff] %vm21_vm0, %v6794_v1  ;;  %6034 = vrot.lane.b32.xlu1 %v11123_v16, %s8921_s22 }
 0x4b5   :  { %6556 = vst.msk [vmem:[#allocation4 + $0x8] sm:$0xff] %vm2167_vm2, %v6461_v63  ;;  %v5391_v20 = vld [vmem:[#allocation2 + $0x130] ss:$2 sm:$0xff]  ;;  %v5423_v6 = vld [vmem:[#allocation2 + $0x131] ss:$2 sm:$0xff]  ;;  %v8664_v22 = vpop.f32.mrb[180].mxu1 }
 0x4b6   :  { %5844 = vrot.lane.b32.xlu0 %v6214_v31, %s8920_s10  ;;  %v6275_v7 = vpop.permute.xlu1 %6274  ;;  %v5455_v23 = vmax.f32 %v5391_v20, %v5423_v6  ;;  %v4950_v51 = vadd.f32 %v11160_v9, %v8664_v22  ;;  %v4941_v28 = vpop.f32.mrb[181].mxu1 }
 0x4b7   :  { %v5390_v59 = vld [vmem:[#allocation2 + $0x120] ss:$2 sm:$0xff]  ;;  %v5422_v14 = vld [vmem:[#allocation2 + $0x121] ss:$2 sm:$0xff]  ;;  %6367 = vst.msk [vmem:[#allocation4 + $0x50] sm:$0xff] %vm1974_vm1, %v6275_v7  ;;  %v4942_v54 = vadd.f32 %v11160_v9, %v4941_v28  ;;  %v8665_v58 = vpop.f32.mrb[182].mxu1 }
 0x4b8   :  { %v6653_v16 = vpop.permute.xlu0 %6652  ;;  %v5454_v27 = vmax.f32 %v5390_v59, %v5422_v14  ;;  %6674 = vrot.lane.b32.xlu1 %v6599_v48, %s8921_s22  ;;  %5487 = vst.msk [vmem:[#allocation3 + $0x150] sm:$0xff] %vm21_vm0, %v5455_v23  ;;  %v5202_v62 = vmax.f32 %v4950_v51, 0.0  ;;  %v4953_v10 = vadd.f32 %v11160_v9, %v8665_v58  ;;  %v4944_v33 = vpop.f32.mrb[183].mxu1 }
 0x4b9   :  { %6748 = vst.msk [vmem:[#allocation4 + $0x8] sm:$0xff] %vm2360_vm3, %v6653_v16  ;;  %v5200_v40 = vmax.f32 %v4942_v54, 0.0  ;;  %v4945_v0 = vadd.f32 %v11160_v9, %v4944_v33  ;;  %v6847_v33 = vld [vmem:[#allocation4 + $0x18] sm:$0xff] }
 0x4ba   :  { %6480 = vrot.lane.b32.xlu0 %v6406_v2, %s8920_s10  ;;  %5486 = vst.msk [vmem:[#allocation3 + $0x148] sm:$0xff] %vm21_vm0, %v5454_v27  ;;  %v5639_v31 = vpop.permute.xlu1 %5638  ;;  %v5286_v44 = vmax.f32 %v5198_v39, %v5202_v62  ;;  %v5203_v25 = vmax.f32 %v4953_v10, 0.0 }
 0x4bb   :  { %5729 = vst.msk [vmem:[#allocation4 + $0x78] sm:$0xff] %vm1974_vm1, %v5639_v31  ;;  %v5284_v21 = vmax.f32 %v5196_v13, %v5200_v40  ;;  %v5201_v24 = vmax.f32 %v4945_v0, 0.0 }
 0x4bc   :  { %v6273_v47 = vpop.permute.xlu0 %6272  ;;  %6294 = vrot.lane.b32.xlu1 %v6217_v11, %s8919_s30  ;;  %5350 = vst.msk [vmem:[#allocation2 + $0x150] sm:$0xff] %vm21_vm0, %v5286_v44  ;;  %v5287_v38 = vmax.f32 %v5199_v34, %v5203_v25 }
 0x4bd   :  { %6366 = vst.msk [vmem:[#allocation4 + $0x38] sm:$0xff] %vm1974_vm1, %v6273_v47  ;;  %v5285_v60 = vmax.f32 %v5197_v37, %v5201_v24  ;;  %v8668_v50 = vpop.f32.mrb[184].mxu1 }
 0x4be   :  { %6672 = vrot.lane.b32.xlu0 %v11278_v46, %s8921_s22  ;;  %5348 = vst.msk [vmem:[#allocation2 + $0x140] sm:$0xff] %vm21_vm0, %v5284_v21  ;;  %v5831_v52 = vpop.permute.xlu1 %5830  ;;  %5351 = vst.msk [vmem:[#allocation2 + $0x158] sm:$0xff] %vm21_vm0, %v5287_v38  ;;  %v4957_v41 = vpop.f32.mrb[185].mxu1  ;;  %v4966_v45 = vadd.f32 %v11160_v9, %v8668_v50  ;;  %v6844_v21 = vld [vmem:[#allocation4] sm:$0xff] }
 0x4bf   :  { %5921 = vst.msk [vmem:[#allocation4 + $0x78] sm:$0xff] %vm2167_vm2, %v5831_v52  ;;  %v11287_v26 = vld [vmem:[#allocation3 + $0x150] sm:$0xff]  ;;  %v8669_v19 = vpop.f32.mrb[186].mxu1  ;;  %v4958_v15 = vadd.f32 %v11160_v9, %v4957_v41 }
 0x4c0   :  { %v6017_v42 = vpop.permute.xlu0 %6016  ;;  %5349 = vst.msk [vmem:[#allocation2 + $0x148] sm:$0xff] %vm21_vm0, %v5285_v60  ;;  %5658 = vrot.lane.b32.xlu1 %v6599_v48, %s8919_s30  ;;  %v4960_v36 = vpop.f32.mrb[187].mxu1  ;;  %6191 = vst.msk [vmem:[#allocation4 + $0x1d0] sm:$0xff] %vm21_vm0, %v11287_v26  ;;  %v6797_v3 = vld [vmem:[#allocation3 + $0x151] sm:$0xff]  ;;  %v4969_v63 = vadd.f32 %v11160_v9, %v8669_v19  ;;  %v5206_v59 = vmax.f32 %v4966_v45, 0.0  ;;  %v6845_v31 = vld [vmem:[#allocation4 + $0x8] sm:$0xff] }
 0x4c1   :  { %6110 = vst.msk [vmem:[#allocation4 + $0x30] sm:$0xff] %vm2360_vm3, %v6017_v42  ;;  %v11297_v56 = vld [vmem:[#allocation3 + $0x14f] sm:$0xff]  ;;  %v5520_v61 = vld [vmem:[#allocation3 + $0x147] sm:$0xff]  ;;  %v4961_v20 = vadd.f32 %v11160_v9, %v4960_v36  ;;  %v5204_v28 = vmax.f32 %v4958_v15, 0.0 }
 0x4c2   :  { %6292 = vrot.lane.b32.xlu0 %v11291_v30, %s8919_s30  ;;  %v6158_v32 = vld [vmem:[#allocation3 + $0x148] sm:$0xff]  ;;  %v6463_v53 = vpop.permute.xlu1 %6462  ;;  %5553 = vst.msk [vmem:[#allocation4 + $0x1f8] sm:$0xff] %vm21_vm0, %v11297_v56  ;;  %5552 = vst.msk [vmem:[#allocation4 + $0x1e0] sm:$0xff] %vm21_vm0, %v5520_v61  ;;  %v5207_v27 = vmax.f32 %v4969_v63, 0.0  ;;  %v6219_v15 = vld [vmem:[#allocation3 + $0x111] sm:$0xff] }
 0x4c3   :  { %6190 = vst.msk [vmem:[#allocation4 + $0x1b8] sm:$0xff] %vm21_vm0, %v6158_v32  ;;  %v6796_v12 = vld [vmem:[#allocation3 + $0x149] sm:$0xff]  ;;  %6829 = vst.msk [vmem:[#allocation4 + $0x1a8] sm:$0xff] %vm21_vm0, %v6797_v3 }
 0x4c4   :  { %6557 = vst.msk [vmem:[#allocation4 + $0x20] sm:$0xff] %vm2167_vm2, %v6463_v53  ;;  %v5637_v1 = vpop.permute.xlu0 %5636  ;;  %5850 = vrot.lane.b32.xlu1 %v6217_v11, %s8920_s10 }
 0x4c5   :  { %6828 = vst.msk [vmem:[#allocation4 + $0x190] sm:$0xff] %vm21_vm0, %v6796_v12  ;;  %v5393_v29 = vld [vmem:[#allocation2 + $0x150] ss:$2 sm:$0xff]  ;;  %v5425_v57 = vld [vmem:[#allocation2 + $0x151] ss:$2 sm:$0xff]  ;;  %v8672_v6 = vpop.f32.mrb[188].mxu1 }
 0x4c6   :  { %6749 = vst.msk [vmem:[#allocation4 + $0x20] sm:$0xff] %vm2360_vm3, %v11249_v49  ;;  %6036 = vrot.lane.b32.xlu0 %v6406_v2, %s8921_s22  ;;  %v6019_v4 = vpop.permute.xlu1 %6018  ;;  %v5457_v22 = vmax.f32 %v5393_v29, %v5425_v57  ;;  %v4982_v49 = vadd.f32 %v11160_v9, %v8672_v6  ;;  %v4973_v14 = vpop.f32.mrb[189].mxu1  ;;  %v5205_v2 = vmax.f32 %v4961_v20, 0.0  ;;  %v11369_v29 = vld [vmem:[#allocation3 + $0x108] sm:$0xff] }
 0x4c7   :  { %5728 = vst.msk [vmem:[#allocation4 + $0x60] sm:$0xff] %vm1974_vm1, %v5637_v1  ;;  %v5392_v7 = vld [vmem:[#allocation2 + $0x140] ss:$2 sm:$0xff]  ;;  %v5424_v23 = vld [vmem:[#allocation2 + $0x141] ss:$2 sm:$0xff]  ;;  %v4974_v16 = vadd.f32 %v11160_v9, %v4973_v14  ;;  %v8673_v48 = vpop.f32.mrb[190].mxu1 }
 0x4c8   :  { %6111 = vst.msk [vmem:[#allocation4 + $0x48] sm:$0xff] %vm2360_vm3, %v6019_v4  ;;  %v5829_v39 = vpop.permute.xlu0 %5828  ;;  %v5456_v51 = vmax.f32 %v5392_v7, %v5424_v23  ;;  %6482 = vrot.lane.b32.xlu1 %v11155_v18, %s8920_s10  ;;  %v5210_v13 = vmax.f32 %v4982_v49, 0.0  ;;  %v4985_v54 = vadd.f32 %v11160_v9, %v8673_v48  ;;  %v4976_v58 = vpop.f32.mrb[191].mxu1 }
 0x4c9   :  { %5920 = vst.msk [vmem:[#allocation4 + $0x60] sm:$0xff] %vm2167_vm2, %v5829_v39  ;;  %v5208_v34 = vmax.f32 %v4974_v16, 0.0  ;;  %v4977_v62 = vadd.f32 %v11160_v9, %v4976_v58 }
 0x4ca   :  { %5489 = vst.msk [vmem:[#allocation3 + $0x170] sm:$0xff] %vm21_vm0, %v5457_v22  ;;  %5656 = vrot.lane.b32.xlu0 %v11278_v46, %s8919_s30  ;;  %5488 = vst.msk [vmem:[#allocation3 + $0x168] sm:$0xff] %vm21_vm0, %v5456_v51  ;;  %v11327_v10 = vpop.permute.xlu1 %6658  ;;  %v5290_v37 = vmax.f32 %v5206_v59, %v5210_v13  ;;  %v5211_v40 = vmax.f32 %v4985_v54, 0.0  ;;  %v6940_v46 = vpack.c.bf16 %v6847_v33, %v6844_v21  ;;  %v6218_v54 = vld [vmem:[#allocation3 + $0x109] sm:$0xff] }
 0x4cb   :  { %v5288_v25 = vmax.f32 %v5204_v28, %v5208_v34  ;;  %v5209_v47 = vmax.f32 %v4977_v62, 0.0 }
 0x4cc   :  { %v6465_v0 = vpop.permute.xlu0 %6464  ;;  %6038 = vrot.lane.b32.xlu1 %v11155_v18, %s8921_s22  ;;  %5354 = vst.msk [vmem:[#allocation2 + $0x170] sm:$0xff] %vm21_vm0, %v5290_v37  ;;  %v5291_v24 = vmax.f32 %v5207_v27, %v5211_v40 }
 0x4cd   :  { %v6848_v44 = vld [vmem:[#allocation4 + $0x20] sm:$0xff]  ;;  %6558 = vst.msk [vmem:[#allocation4 + $0x38] sm:$0xff] %vm2167_vm2, %v6465_v0  ;;  %v5289_v38 = vmax.f32 %v5205_v2, %v5209_v47  ;;  %v8676_v60 = vpop.f32.mrb[192].mxu1 }
 0x4ce   :  { %v6941_v11 = vpack.c.bf16 %v6848_v44, %v6845_v31  ;;  %5848 = vrot.lane.b32.xlu0 %v11291_v30, %s8920_s10  ;;  %5352 = vst.msk [vmem:[#allocation2 + $0x160] sm:$0xff] %vm21_vm0, %v5288_v25  ;;  %v6279_v50 = vpop.permute.xlu1 %6278  ;;  %5355 = vst.msk [vmem:[#allocation2 + $0x178] sm:$0xff] %vm21_vm0, %v5291_v24  ;;  %v4989_v52 = vpop.f32.mrb[193].mxu1  ;;  %v11344_v30 = vld [vmem:[#allocation3 + $0x107] sm:$0xff]  ;;  %v4998_v3 = vadd.f32 %v11160_v9, %v8676_v60 }
 0x4cf   :  { %6369 = vst.msk [vmem:[#allocation4 + $0x80] sm:$0xff] %vm1974_vm1, %v6279_v50  ;;  %v8677_v42 = vpop.f32.mrb[194].mxu1  ;;  %v4990_v63 = vadd.f32 %v11160_v9, %v4989_v52 }
 0x4d0   :  { %7219 = vmatprep.mubr.bf16.mxu0 %v6941_v11  ;;  %v6657_v18 = vpop.permute.xlu0 %6656  ;;  %5353 = vst.msk [vmem:[#allocation2 + $0x168] sm:$0xff] %vm21_vm0, %v5289_v38  ;;  %6678 = vrot.lane.b32.xlu1 %v11194_v17, %s8921_s22  ;;  %v4992_v61 = vpop.f32.mrb[195].mxu1  ;;  %v5001_v57 = vadd.f32 %v11160_v9, %v8677_v42  ;;  %v5214_v14 = vmax.f32 %v4998_v3, 0.0 }
 0x4d1   :  { %7220 = vmatmul.mubr.bf16.vlgmr.msra.gmra.mrb[128].mxu0 %v6940_v46  ;;  %v11339_v41 = vld [vmem:[#allocation3 + $0x170] sm:$0xff]  ;;  %6750 = vst.msk [vmem:[#allocation4 + $0x38] sm:$0xff] %vm2360_vm3, %v6657_v18  ;;  %v11346_v36 = vld [vmem:[#allocation3 + $0x167] sm:$0xff]  ;;  %v4993_v4 = vadd.f32 %v11160_v9, %v4992_v61  ;;  %v5212_v48 = vmax.f32 %v4990_v63, 0.0 }
 0x4d2   :  { %v6799_v19 = vld [vmem:[#allocation3 + $0x171] sm:$0xff]  ;;  %v11348_v32 = vld [vmem:[#allocation3 + $0x168] sm:$0xff]  ;;  %6193 = vst.msk [vmem:[#allocation4 + $0x200] sm:$0xff] %vm21_vm0, %v11339_v41  ;;  %6484 = vrot.lane.b32.xlu0 %v11344_v30, %s8920_s10  ;;  %5554 = vst.msk [vmem:[#allocation4 + $0x210] sm:$0xff] %vm21_vm0, %v11346_v36  ;;  %v5643_v12 = vpop.permute.xlu1 %5642  ;;  %v5215_v58 = vmax.f32 %v5001_v57, 0.0 }
 0x4d3   :  { %6831 = vst.msk [vmem:[#allocation4 + $0x1d8] sm:$0xff] %vm21_vm0, %v6799_v19  ;;  %v11355_v53 = vld [vmem:[#allocation3 + $0x16f] sm:$0xff]  ;;  %6192 = vst.msk [vmem:[#allocation4 + $0x1e8] sm:$0xff] %vm21_vm0, %v11348_v32  ;;  %v5213_v33 = vmax.f32 %v4993_v4, 0.0 }
 0x4d4   :  { %v6798_v45 = vld [vmem:[#allocation3 + $0x169] sm:$0xff]  ;;  %5555 = vst.msk [vmem:[#allocation4 + $0x228] sm:$0xff] %vm21_vm0, %v11355_v53  ;;  %v6277_v1 = vpop.permute.xlu0 %6276  ;;  %6298 = vrot.lane.b32.xlu1 %v6219_v15, %s8919_s30 }
 0x4d5   :  { %6830 = vst.msk [vmem:[#allocation4 + $0x1c0] sm:$0xff] %vm21_vm0, %v6798_v45  ;;  %v5395_v20 = vld [vmem:[#allocation2 + $0x170] ss:$2 sm:$0xff]  ;;  %v5427_v6 = vld [vmem:[#allocation2 + $0x171] ss:$2 sm:$0xff]  ;;  %v8680_v22 = vpop.f32.mrb[196].mxu1 }
 0x4d6   :  { %5731 = vst.msk [vmem:[#allocation4 + $0xa8] sm:$0xff] %vm1974_vm1, %v5643_v12  ;;  %6368 = vst.msk [vmem:[#allocation4 + $0x68] sm:$0xff] %vm1974_vm1, %v6277_v1  ;;  %6676 = vrot.lane.b32.xlu0 %v11369_v29, %s8921_s22  ;;  %v5835_v7 = vpop.permute.xlu1 %5834  ;;  %v5459_v23 = vmax.f32 %v5395_v20, %v5427_v6  ;;  %v5014_v39 = vadd.f32 %v11160_v9, %v8680_v22  ;;  %v5005_v51 = vpop.f32.mrb[197].mxu1  ;;  %v6853_v12 = vld [vmem:[#allocation4 + $0x48] sm:$0xff]  ;;  %v6850_v20 = vld [vmem:[#allocation4 + $0x30] sm:$0xff] }
 0x4d7   :  { %v5394_v59 = vld [vmem:[#allocation2 + $0x160] ss:$2 sm:$0xff]  ;;  %v5426_v49 = vld [vmem:[#allocation2 + $0x161] ss:$2 sm:$0xff]  ;;  %5923 = vst.msk [vmem:[#allocation4 + $0xa8] sm:$0xff] %vm2167_vm2, %v5835_v7  ;;  %v5006_v27 = vadd.f32 %v11160_v9, %v5005_v51  ;;  %v8681_v13 = vpop.f32.mrb[198].mxu1  ;;  %v6943_v4 = vpack.c.bf16 %v6853_v12, %v6850_v20 }
 0x4d8   :  { %v6021_v28 = vpop.permute.xlu0 %6020  ;;  %v5458_v16 = vmax.f32 %v5394_v59, %v5426_v49  ;;  %5662 = vrot.lane.b32.xlu1 %v11194_v17, %s8919_s30  ;;  %5491 = vst.msk [vmem:[#allocation3 + $0x190] sm:$0xff] %vm21_vm0, %v5459_v23  ;;  %v5218_v2 = vmax.f32 %v5014_v39, 0.0  ;;  %v5017_v34 = vadd.f32 %v11160_v9, %v8681_v13  ;;  %v5008_v62 = vpop.f32.mrb[199].mxu1 }
 0x4d9   :  { %6112 = vst.msk [vmem:[#allocation4 + $0x60] sm:$0xff] %vm2360_vm3, %v6021_v28  ;;  %v5216_v37 = vmax.f32 %v5006_v27, 0.0  ;;  %v5009_v40 = vadd.f32 %v11160_v9, %v5008_v62 }
 0x4da   :  { %6296 = vrot.lane.b32.xlu0 %v6218_v54, %s8919_s30  ;;  %5490 = vst.msk [vmem:[#allocation3 + $0x188] sm:$0xff] %vm21_vm0, %v5458_v16  ;;  %v6467_v0 = vpop.permute.xlu1 %6466  ;;  %v5294_v31 = vmax.f32 %v5214_v14, %v5218_v2  ;;  %v5219_v44 = vmax.f32 %v5017_v34, 0.0  ;;  %v6410_v2 = vld [vmem:[#allocation3 + $0x127] sm:$0xff] }
 0x4db   :  { %6559 = vst.msk [vmem:[#allocation4 + $0x50] sm:$0xff] %vm2167_vm2, %v6467_v0  ;;  %v5292_v25 = vmax.f32 %v5212_v48, %v5216_v37  ;;  %v5217_v47 = vmax.f32 %v5009_v40, 0.0 }
 0x4dc   :  { %v5641_v17 = vpop.permute.xlu0 %5640  ;;  %6751 = vst.msk [vmem:[#allocation4 + $0x50] sm:$0xff] %vm2360_vm3, %v11327_v10  ;;  %5854 = vrot.lane.b32.xlu1 %v6219_v15, %s8920_s10  ;;  %v5295_v11 = vmax.f32 %v5215_v58, %v5219_v44  ;;  %v6851_v15 = vld [vmem:[#allocation4 + $0x38] sm:$0xff] }
 0x4dd   :  { %5730 = vst.msk [vmem:[#allocation4 + $0x90] sm:$0xff] %vm1974_vm1, %v5641_v17  ;;  %v5293_v21 = vmax.f32 %v5213_v33, %v5217_v47  ;;  %v8684_v24 = vpop.f32.mrb[200].mxu1 }
 0x4de   :  { %5358 = vst.msk [vmem:[#allocation2 + $0x190] sm:$0xff] %vm21_vm0, %v5294_v31  ;;  %6040 = vrot.lane.b32.xlu0 %v11344_v30, %s8921_s22  ;;  %5356 = vst.msk [vmem:[#allocation2 + $0x180] sm:$0xff] %vm21_vm0, %v5292_v25  ;;  %v6023_v46 = vpop.permute.xlu1 %6022  ;;  %v5021_v38 = vpop.f32.mrb[201].mxu1  ;;  %v5030_v3 = vadd.f32 %v11160_v9, %v8684_v24 }
 0x4df   :  { %5359 = vst.msk [vmem:[#allocation2 + $0x198] sm:$0xff] %vm21_vm0, %v5295_v11  ;;  %5357 = vst.msk [vmem:[#allocation2 + $0x188] sm:$0xff] %vm21_vm0, %v5293_v21  ;;  %v11398_v60 = vld [vmem:[#allocation3 + $0x190] sm:$0xff]  ;;  %v8685_v50 = vpop.f32.mrb[202].mxu1 }
 0x4e0   :  { %6113 = vst.msk [vmem:[#allocation4 + $0x78] sm:$0xff] %vm2360_vm3, %v6023_v46  ;;  %v5833_v10 = vpop.permute.xlu0 %5832  ;;  %6486 = vrot.lane.b32.xlu1 %v11204_v5, %s8920_s10  ;;  %v5024_v42 = vpop.f32.mrb[203].mxu1  ;;  %v6801_v61 = vld [vmem:[#allocation3 + $0x191] sm:$0xff]  ;;  %v5033_v6 = vadd.f32 %v11160_v9, %v8685_v50  ;;  %v5222_v28 = vmax.f32 %v5030_v3, 0.0  ;;  %v11445_v46 = vld [vmem:[#allocation3 + $0x128] sm:$0xff] }
 0x4e1   :  { %5922 = vst.msk [vmem:[#allocation4 + $0x90] sm:$0xff] %vm2167_vm2, %v5833_v10  ;;  %v11403_v52 = vld [vmem:[#allocation3 + $0x187] sm:$0xff]  ;;  %v11411_v19 = vld [vmem:[#allocation3 + $0x18f] sm:$0xff]  ;;  %v5025_v23 = vadd.f32 %v11160_v9, %v5024_v42 }
 0x4e2   :  { %v11405_v18 = vld [vmem:[#allocation3 + $0x188] sm:$0xff]  ;;  %6195 = vst.msk [vmem:[#allocation4 + $0x230] sm:$0xff] %vm21_vm0, %v11398_v60  ;;  %5660 = vrot.lane.b32.xlu0 %v11369_v29, %s8919_s30  ;;  %5556 = vst.msk [vmem:[#allocation4 + $0x240] sm:$0xff] %vm21_vm0, %v11403_v52  ;;  %v11417_v45 = vpop.permute.xlu1 %6662  ;;  %v5022_v29 = vadd.f32 %v11160_v9, %v5021_v38  ;;  %v5223_v34 = vmax.f32 %v5033_v6, 0.0  ;;  %v6221_v11 = vld [vmem:[#allocation3 + $0x131] sm:$0xff] }
 0x4e3   :  { %6194 = vst.msk [vmem:[#allocation4 + $0x218] sm:$0xff] %vm21_vm0, %v11405_v18  ;;  %v6800_v30 = vld [vmem:[#allocation3 + $0x189] sm:$0xff]  ;;  %5557 = vst.msk [vmem:[#allocation4 + $0x258] sm:$0xff] %vm21_vm0, %v11411_v19  ;;  %v5221_v40 = vmax.f32 %v5025_v23, 0.0 }
 0x4e4   :  { %6832 = vst.msk [vmem:[#allocation4 + $0x1f0] sm:$0xff] %vm21_vm0, %v6800_v30  ;;  %6833 = vst.msk [vmem:[#allocation4 + $0x208] sm:$0xff] %vm21_vm0, %v6801_v61  ;;  %v6469_v1 = vpop.permute.xlu0 %6468  ;;  %v6854_v63 = vld [vmem:[#allocation4 + $0x50] sm:$0xff]  ;;  %6042 = vrot.lane.b32.xlu1 %v11204_v5, %s8921_s22  ;;  %v5220_v13 = vmax.f32 %v5022_v29, 0.0 }
 0x4e5   :  { %6560 = vst.msk [vmem:[#allocation4 + $0x68] sm:$0xff] %vm2167_vm2, %v6469_v1  ;;  %v6944_v57 = vpack.c.bf16 %v6854_v63, %v6851_v15  ;;  %v8688_v59 = vpop.f32.mrb[204].mxu1  ;;  %v11459_v1 = vld [vmem:[#allocation3 + $0x129] sm:$0xff] }
 0x4e6   :  { %5852 = vrot.lane.b32.xlu0 %v6218_v54, %s8920_s10  ;;  %v5397_v22 = vld [vmem:[#allocation2 + $0x190] ss:$2 sm:$0xff]  ;;  %v5429_v7 = vld [vmem:[#allocation2 + $0x191] ss:$2 sm:$0xff]  ;;  %v6283_v49 = vpop.permute.xlu1 %6282  ;;  %v5396_v39 = vld [vmem:[#allocation2 + $0x180] ss:$2 sm:$0xff]  ;;  %v5046_v5 = vadd.f32 %v11160_v9, %v8688_v59 }
 0x4e7   :  { %7227 = vmatprep.mubr.bf16.mxu0 %v6944_v57  ;;  %v5461_v14 = vmax.f32 %v5397_v22, %v5429_v7  ;;  %v5428_v51 = vld [vmem:[#allocation2 + $0x181] ss:$2 sm:$0xff]  ;;  %v5037_v16 = vpop.f32.mrb[205].mxu1  ;;  %6371 = vst.msk [vmem:[#allocation4 + $0xb0] sm:$0xff] %vm1974_vm1, %v6283_v49 }
 0x4e8   :  { %v6661_v48 = vpop.permute.xlu0 %6660  ;;  %7228 = vmatmul.mubr.bf16.gmra.mrb[132].mxu0 %v6943_v4  ;;  %v5460_v27 = vmax.f32 %v5396_v39, %v5428_v51  ;;  %v5038_v54 = vadd.f32 %v11160_v9, %v5037_v16  ;;  %v8689_v58 = vpop.f32.mrb[206].mxu1  ;;  %6682 = vrot.lane.b32.xlu1 %v11239_v35, %s8921_s22  ;;  %v5226_v62 = vmax.f32 %v5046_v5, 0.0 }
 0x4e9   :  { %6752 = vst.msk [vmem:[#allocation4 + $0x68] sm:$0xff] %vm2360_vm3, %v6661_v48  ;;  %v5049_v33 = vadd.f32 %v11160_v9, %v8689_v58  ;;  %v5040_v37 = vpop.f32.mrb[207].mxu1 }
 0x4ea   :  { %5493 = vst.msk [vmem:[#allocation3 + $0x1b0] sm:$0xff] %vm21_vm0, %v5461_v14  ;;  %6488 = vrot.lane.b32.xlu0 %v6410_v2, %s8920_s10  ;;  %5492 = vst.msk [vmem:[#allocation3 + $0x1a8] sm:$0xff] %vm21_vm0, %v5460_v27  ;;  %v5224_v0 = vmax.f32 %v5038_v54, 0.0  ;;  %v5041_v31 = vadd.f32 %v11160_v9, %v5040_v37  ;;  %v5647_v44 = vpop.permute.xlu1 %5646  ;;  %v5298_v17 = vmax.f32 %v5222_v28, %v5226_v62  ;;  %v11499_v37 = vld [vmem:[%s12080_s2] ss:$0 sm:$0xff] }
 0x4eb   :  { %v5227_v25 = vmax.f32 %v5049_v33, 0.0  ;;  %5733 = vst.msk [vmem:[#allocation4 + $0xd8] sm:$0xff] %vm1974_vm1, %v5647_v44 }
 0x4ec   :  { %v6281_v47 = vpop.permute.xlu0 %6280  ;;  %v5296_v21 = vmax.f32 %v5220_v13, %v5224_v0  ;;  %v5225_v24 = vmax.f32 %v5041_v31, 0.0  ;;  %6302 = vrot.lane.b32.xlu1 %v6221_v11, %s8919_s30  ;;  %5362 = vst.msk [vmem:[#allocation2 + $0x1b0] sm:$0xff] %vm21_vm0, %v5298_v17 }
 0x4ed   :  { %6370 = vst.msk [vmem:[#allocation4 + $0x98] sm:$0xff] %vm1974_vm1, %v6281_v47  ;;  %v5299_v38 = vmax.f32 %v5223_v34, %v5227_v25  ;;  %v8692_v50 = vpop.f32.mrb[208].mxu1  ;;  %v6859_v25 = vld [vmem:[#allocation4 + $0x78] sm:$0xff] }
 0x4ee   :  { %6680 = vrot.lane.b32.xlu0 %v11445_v46, %s8921_s22  ;;  %5360 = vst.msk [vmem:[#allocation2 + $0x1a0] sm:$0xff] %vm21_vm0, %v5296_v21  ;;  %v5297_v10 = vmax.f32 %v5221_v40, %v5225_v24  ;;  %v5839_v42 = vpop.permute.xlu1 %5838  ;;  %v5053_v30 = vpop.f32.mrb[209].mxu1  ;;  %v5062_v4 = vadd.f32 %v11160_v9, %v8692_v50 }
 0x4ef   :  { %5363 = vst.msk [vmem:[#allocation2 + $0x1b8] sm:$0xff] %vm21_vm0, %v5299_v38  ;;  %v8693_v3 = vpop.f32.mrb[210].mxu1  ;;  %v5054_v7 = vadd.f32 %v11160_v9, %v5053_v30 }
 0x4f0   :  { %5925 = vst.msk [vmem:[#allocation4 + $0xd8] sm:$0xff] %vm2167_vm2, %v5839_v42  ;;  %v6025_v61 = vpop.permute.xlu0 %6024  ;;  %5666 = vrot.lane.b32.xlu1 %v11239_v35, %s8919_s30  ;;  %v5056_v29 = vpop.f32.mrb[211].mxu1  ;;  %v5065_v23 = vadd.f32 %v11160_v9, %v8693_v3  ;;  %v5230_v48 = vmax.f32 %v5062_v4, 0.0  ;;  %v6857_v24 = vld [vmem:[#allocation4 + $0x68] sm:$0xff]  ;;  %v6856_v42 = vld [vmem:[#allocation4 + $0x60] sm:$0xff] }
 0x4f1   :  { %5361 = vst.msk [vmem:[#allocation2 + $0x1a8] sm:$0xff] %vm21_vm0, %v5297_v10  ;;  %v11454_v12 = vld [vmem:[#allocation3 + $0x1b0] sm:$0xff]  ;;  %v11461_v15 = vld [vmem:[#allocation3 + $0x1a7] sm:$0xff]  ;;  %v5057_v14 = vadd.f32 %v11160_v9, %v5056_v29  ;;  %v5228_v58 = vmax.f32 %v5054_v7, 0.0 }
 0x4f2   :  { %6114 = vst.msk [vmem:[#allocation4 + $0x90] sm:$0xff] %vm2360_vm3, %v6025_v61  ;;  %v11463_v63 = vld [vmem:[#allocation3 + $0x1a8] sm:$0xff]  ;;  %6300 = vrot.lane.b32.xlu0 %v11459_v1, %s8919_s30  ;;  %v6803_v20 = vld [vmem:[#allocation3 + $0x1b1] sm:$0xff]  ;;  %v6471_v6 = vpop.permute.xlu1 %6470  ;;  %v5231_v62 = vmax.f32 %v5065_v23, 0.0  ;;  %v6946_v61 = vpack.c.bf16 %v6859_v25, %v6856_v42 }
 0x4f3   :  { %6197 = vst.msk [vmem:[#allocation4 + $0x260] sm:$0xff] %vm21_vm0, %v11454_v12  ;;  %v11469_v57 = vld [vmem:[#allocation3 + $0x1af] sm:$0xff]  ;;  %6196 = vst.msk [vmem:[#allocation4 + $0x248] sm:$0xff] %vm21_vm0, %v11463_v63 }
 0x4f4   :  { %5558 = vst.msk [vmem:[#allocation4 + $0x270] sm:$0xff] %vm21_vm0, %v11461_v15  ;;  %v6802_v35 = vld [vmem:[#allocation3 + $0x1a9] sm:$0xff]  ;;  %5559 = vst.msk [vmem:[#allocation4 + $0x288] sm:$0xff] %vm21_vm0, %v11469_v57  ;;  %v5645_v22 = vpop.permute.xlu0 %5644  ;;  %5858 = vrot.lane.b32.xlu1 %v6221_v11, %s8920_s10 }
 0x4f5   :  { %6834 = vst.msk [vmem:[#allocation4 + $0x220] sm:$0xff] %vm21_vm0, %v6802_v35  ;;  %6835 = vst.msk [vmem:[#allocation4 + $0x238] sm:$0xff] %vm21_vm0, %v6803_v20  ;;  %v8696_v39 = vpop.f32.mrb[212].mxu1 }
 0x4f6   :  { %6561 = vst.msk [vmem:[#allocation4 + $0x80] sm:$0xff] %vm2167_vm2, %v6471_v6  ;;  %6044 = vrot.lane.b32.xlu0 %v6410_v2, %s8921_s22  ;;  %v5399_v59 = vld [vmem:[#allocation2 + $0x1b0] ss:$2 sm:$0xff]  ;;  %v5431_v49 = vld [vmem:[#allocation2 + $0x1b1] ss:$2 sm:$0xff]  ;;  %v6027_v51 = vpop.permute.xlu1 %6026  ;;  %v5069_v27 = vpop.f32.mrb[213].mxu1 }
 0x4f7   :  { %6753 = vst.msk [vmem:[#allocation4 + $0x80] sm:$0xff] %vm2360_vm3, %v11417_v45  ;;  %v5463_v28 = vmax.f32 %v5399_v59, %v5431_v49  ;;  %v5078_v45 = vadd.f32 %v11160_v9, %v8696_v39  ;;  %6115 = vst.msk [vmem:[#allocation4 + $0xa8] sm:$0xff] %vm2360_vm3, %v6027_v51  ;;  %v5070_v2 = vadd.f32 %v11160_v9, %v5069_v27  ;;  %v8697_v34 = vpop.f32.mrb[214].mxu1  ;;  %v5229_v9 = vmax.f32 %v5057_v14, 0.0 }
 0x4f8   :  { %5732 = vst.msk [vmem:[#allocation4 + $0xc0] sm:$0xff] %vm1974_vm1, %v5645_v22  ;;  %v5398_v5 = vld [vmem:[#allocation2 + $0x1a0] ss:$2 sm:$0xff]  ;;  %v5430_v16 = vld [vmem:[#allocation2 + $0x1a1] ss:$2 sm:$0xff]  ;;  %v5837_v13 = vpop.permute.xlu0 %5836  ;;  %6490 = vrot.lane.b32.xlu1 %v11247_v55, %s8920_s10  ;;  %v5081_v40 = vadd.f32 %v11499_v37, %v8697_v34  ;;  %v5072_v0 = vpop.f32.mrb[215].mxu1 }
 0x4f9   :  { %v5462_v54 = vmax.f32 %v5398_v5, %v5430_v16  ;;  %5924 = vst.msk [vmem:[#allocation4 + $0xc0] sm:$0xff] %vm2167_vm2, %v5837_v13  ;;  %v5234_v33 = vmax.f32 %v5078_v45, 0.0  ;;  %v5232_v31 = vmax.f32 %v5070_v2, 0.0  ;;  %v5073_v44 = vadd.f32 %v11499_v37, %v5072_v0  ;;  %v11523_v22 = vld [vmem:[#allocation3 + $0x147] sm:$0xff]  ;;  %v6223_v5 = vld [vmem:[#allocation3 + $0x151] sm:$0xff] }
 0x4fa   :  { %5495 = vst.msk [vmem:[#allocation3 + $0x1d0] sm:$0xff] %vm21_vm0, %v5463_v28  ;;  %5664 = vrot.lane.b32.xlu0 %v11445_v46, %s8919_s30  ;;  %v11506_v17 = vpop.permute.xlu1 %6666  ;;  %v5235_v11 = vmax.f32 %v5081_v40, 0.0 }
 0x4fb   :  { %5494 = vst.msk [vmem:[#allocation3 + $0x1c8] sm:$0xff] %vm21_vm0, %v5462_v54  ;;  %v5302_v47 = vmax.f32 %v5230_v48, %v5234_v33  ;;  %v5300_v10 = vmax.f32 %v5228_v58, %v5232_v31  ;;  %v5233_v50 = vmax.f32 %v5073_v44, 0.0  ;;  %v6604_v48 = vld [vmem:[#allocation3 + $0x148] sm:$0xff] }
 0x4fc   :  { %v6473_v21 = vpop.permute.xlu0 %6472  ;;  %6046 = vrot.lane.b32.xlu1 %v11247_v55, %s8921_s22  ;;  %v5303_v30 = vmax.f32 %v5231_v62, %v5235_v11 }
 0x4fd   :  { %6562 = vst.msk [vmem:[#allocation4 + $0x98] sm:$0xff] %vm2167_vm2, %v6473_v21  ;;  %v5301_v3 = vmax.f32 %v5229_v9, %v5233_v50  ;;  %v8700_v29 = vpop.f32.mrb[216].mxu1  ;;  %v6222_v21 = vld [vmem:[#allocation3 + $0x149] sm:$0xff] }
 0x4fe   :  { %v6860_v38 = vld [vmem:[#allocation4 + $0x80] sm:$0xff]  ;;  %5366 = vst.msk [vmem:[#allocation2 + $0x1d0] sm:$0xff] %vm21_vm0, %v5302_v47  ;;  %5856 = vrot.lane.b32.xlu0 %v11459_v1, %s8920_s10  ;;  %5364 = vst.msk [vmem:[#allocation2 + $0x1c0] sm:$0xff] %vm21_vm0, %v5300_v10  ;;  %v6287_v35 = vpop.permute.xlu1 %6286  ;;  %v5085_v20 = vpop.f32.mrb[217].mxu1  ;;  %v5094_v51 = vadd.f32 %v11499_v37, %v8700_v29 }
 0x4ff   :  { %v6947_v46 = vpack.c.bf16 %v6860_v38, %v6857_v24  ;;  %5367 = vst.msk [vmem:[#allocation2 + $0x1d8] sm:$0xff] %vm21_vm0, %v5303_v30  ;;  %5365 = vst.msk [vmem:[#allocation2 + $0x1c8] sm:$0xff] %vm21_vm0, %v5301_v3  ;;  %v8701_v4 = vpop.f32.mrb[218].mxu1  ;;  %v5086_v16 = vadd.f32 %v11499_v37, %v5085_v20 }
 0x500   :  { %6373 = vst.msk [vmem:[#allocation4 + $0xe0] sm:$0xff] %vm1974_vm1, %v6287_v35  ;;  %v6665_v55 = vpop.permute.xlu0 %6664  ;;  %6686 = vrot.lane.b32.xlu1 %v11287_v26, %s8921_s22  ;;  %v5088_v59 = vpop.f32.mrb[219].mxu1  ;;  %v5097_v45 = vadd.f32 %v11499_v37, %v8701_v4  ;;  %v5238_v40 = vmax.f32 %v5094_v51, 0.0 }
 0x501   :  { %7235 = vmatprep.mubr.bf16.mxu0 %v6947_v46  ;;  %v11518_v6 = vld [vmem:[#allocation3 + $0x1d0] sm:$0xff]  ;;  %6754 = vst.msk [vmem:[#allocation4 + $0x98] sm:$0xff] %vm2360_vm3, %v6665_v55  ;;  %v5089_v54 = vadd.f32 %v11499_v37, %v5088_v59  ;;  %v5236_v25 = vmax.f32 %v5086_v16, 0.0 }
 0x502   :  { %7236 = vmatmul.mubr.bf16.gmra.mrb[136].mxu0 %v6946_v61  ;;  %v6805_v1 = vld [vmem:[#allocation3 + $0x1d1] sm:$0xff]  ;;  %v11525_v7 = vld [vmem:[#allocation3 + $0x1c7] sm:$0xff]  ;;  %6199 = vst.msk [vmem:[#allocation4 + $0x290] sm:$0xff] %vm21_vm0, %v11518_v6  ;;  %6492 = vrot.lane.b32.xlu0 %v11523_v22, %s8920_s10  ;;  %v5651_v39 = vpop.permute.xlu1 %5650  ;;  %v5239_v24 = vmax.f32 %v5097_v45, 0.0 }
 0x503   :  { %v11527_v23 = vld [vmem:[#allocation3 + $0x1c8] sm:$0xff]  ;;  %6837 = vst.msk [vmem:[#allocation4 + $0x268] sm:$0xff] %vm21_vm0, %v6805_v1  ;;  %5560 = vst.msk [vmem:[#allocation4 + $0x2a0] sm:$0xff] %vm21_vm0, %v11525_v7  ;;  %v5237_v46 = vmax.f32 %v5089_v54, 0.0 }
 0x504   :  { %v11534_v49 = vld [vmem:[#allocation3 + $0x1cf] sm:$0xff]  ;;  %6198 = vst.msk [vmem:[#allocation4 + $0x278] sm:$0xff] %vm21_vm0, %v11527_v23  ;;  %v6285_v28 = vpop.permute.xlu0 %6284  ;;  %6306 = vrot.lane.b32.xlu1 %v6223_v5, %s8919_s30 }
 0x505   :  { %v6804_v14 = vld [vmem:[#allocation3 + $0x1c9] sm:$0xff]  ;;  %5561 = vst.msk [vmem:[#allocation4 + $0x2b8] sm:$0xff] %vm21_vm0, %v11534_v49  ;;  %v8704_v58 = vpop.f32.mrb[220].mxu1 }
 0x506   :  { %6836 = vst.msk [vmem:[#allocation4 + $0x250] sm:$0xff] %vm21_vm0, %v6804_v14  ;;  %6684 = vrot.lane.b32.xlu0 %v6604_v48, %s8921_s22  ;;  %v5401_v27 = vld [vmem:[#allocation2 + $0x1d0] ss:$2 sm:$0xff]  ;;  %v5433_v13 = vld [vmem:[#allocation2 + $0x1d1] ss:$2 sm:$0xff]  ;;  %v5843_v2 = vpop.permute.xlu1 %5842  ;;  %v5110_v0 = vadd.f32 %v11499_v37, %v8704_v58  ;;  %v5101_v9 = vpop.f32.mrb[221].mxu1 }
 0x507   :  { %5735 = vst.msk [vmem:[#allocation4 + $0x108] sm:$0xff] %vm1974_vm1, %v5651_v39  ;;  %6372 = vst.msk [vmem:[#allocation4 + $0xc8] sm:$0xff] %vm1974_vm1, %v6285_v28  ;;  %v5465_v34 = vmax.f32 %v5401_v27, %v5433_v13  ;;  %v5400_v62 = vld [vmem:[#allocation2 + $0x1c0] ss:$2 sm:$0xff]  ;;  %v5432_v33 = vld [vmem:[#allocation2 + $0x1c1] ss:$2 sm:$0xff]  ;;  %v5102_v47 = vadd.f32 %v11499_v37, %v5101_v9 }
 0x508   :  { %5927 = vst.msk [vmem:[#allocation4 + $0x108] sm:$0xff] %vm2167_vm2, %v5843_v2  ;;  %v6029_v31 = vpop.permute.xlu0 %6028  ;;  %v5464_v44 = vmax.f32 %v5400_v62, %v5432_v33  ;;  %v8705_v11 = vpop.f32.mrb[222].mxu1  ;;  %5670 = vrot.lane.b32.xlu1 %v11287_v26, %s8919_s30  ;;  %v5242_v38 = vmax.f32 %v5110_v0, 0.0  ;;  %v6863_v45 = vld [vmem:[#allocation4 + $0x98] sm:$0xff]  ;;  %v6862_v13 = vld [vmem:[#allocation4 + $0x90] sm:$0xff] }
 0x509   :  { %6116 = vst.msk [vmem:[#allocation4 + $0xc0] sm:$0xff] %vm2360_vm3, %v6029_v31  ;;  %v5113_v10 = vadd.f32 %v11499_v37, %v8705_v11  ;;  %v5104_v50 = vpop.f32.mrb[223].mxu1  ;;  %v5240_v42 = vmax.f32 %v5102_v47, 0.0 }
 0x50a   :  { %5497 = vst.msk [vmem:[#allocation3 + $0x1f0] sm:$0xff] %vm21_vm0, %v5465_v34  ;;  %6304 = vrot.lane.b32.xlu0 %v6222_v21, %s8919_s30  ;;  %5496 = vst.msk [vmem:[#allocation3 + $0x1e8] sm:$0xff] %vm21_vm0, %v5464_v44  ;;  %v5105_v30 = vadd.f32 %v11499_v37, %v5104_v50  ;;  %v6475_v61 = vpop.permute.xlu1 %6474  ;;  %v5306_v3 = vmax.f32 %v5238_v40, %v5242_v38  ;;  %v6225_v44 = vld [vmem:[#allocation3 + $0x171] sm:$0xff] }
 0x50b   :  { %v5243_v29 = vmax.f32 %v5113_v10, 0.0  ;;  %6563 = vst.msk [vmem:[#allocation4 + $0xb0] sm:$0xff] %vm2167_vm2, %v6475_v61  ;;  %v5304_v35 = vmax.f32 %v5236_v25, %v5240_v42  ;;  %v8912_v42 = vld [vmem:[%s12081_s3 + $0x80] sm:$0xff]  }
 0x50c   :  { %v5649_v26 = vpop.permute.xlu0 %5648  ;;  %v5241_v20 = vmax.f32 %v5105_v30, 0.0  ;;  %6755 = vst.msk [vmem:[#allocation4 + $0xb0] sm:$0xff] %vm2360_vm3, %v11506_v17  ;;  %5862 = vrot.lane.b32.xlu1 %v6223_v5, %s8920_s10  ;;  %v6865_v5 = vld [vmem:[#allocation4 + $0xa8] sm:$0xff]  ;;  %8706 = vmatprep.subr.bf16.mxu0 %v8912_v42 }
 0x50d   :  { %5734 = vst.msk [vmem:[#allocation4 + $0xf0] sm:$0xff] %vm1974_vm1, %v5649_v26  ;;  %v5307_v55 = vmax.f32 %v5239_v24, %v5243_v29  ;;  %v6949_v54 = vpack.c.bf16 %v6865_v5, %v6862_v13  ;;  %v6224_v24 = vld [vmem:[#allocation3 + $0x169] sm:$0xff]  ;;  %8707 = vmatpush3.bf16.msra.mxu0 %v8912_v42 }
 0x50e   :  { %5370 = vst.msk [vmem:[#allocation2 + $0x1f0] sm:$0xff] %vm21_vm0, %v5306_v3  ;;  %6048 = vrot.lane.b32.xlu0 %v11523_v22, %s8921_s22  ;;  %5368 = vst.msk [vmem:[#allocation2 + $0x1e0] sm:$0xff] %vm21_vm0, %v5304_v35  ;;  %v5305_v37 = vmax.f32 %v5237_v46, %v5241_v20  ;;  %v6031_v4 = vpop.permute.xlu1 %6030 }
 0x50f   :  { %5371 = vst.msk [vmem:[#allocation2 + $0x1f8] sm:$0xff] %vm21_vm0, %v5307_v55 }
 0x510   :  { %6117 = vst.msk [vmem:[#allocation4 + $0xd8] sm:$0xff] %vm2360_vm3, %v6031_v4  ;;  %v5841_v1 = vpop.permute.xlu0 %5840  ;;  %6494 = vrot.lane.b32.xlu1 %v11297_v56, %s8920_s10  ;;  %v6868_v20 = vld [vmem:[#allocation4 + $0xc0] sm:$0xff] }
 0x511   :  { %5369 = vst.msk [vmem:[#allocation2 + $0x1e8] sm:$0xff] %vm21_vm0, %v5305_v37  ;;  %v11574_v17 = vld [vmem:[#allocation3 + $0x1f0] sm:$0xff]  ;;  %v11581_v22 = vld [vmem:[#allocation3 + $0x1e7] sm:$0xff] }
 0x512   :  { %v11576_v59 = vld [vmem:[#allocation3 + $0x1f1] sm:$0xff]  ;;  %5926 = vst.msk [vmem:[#allocation4 + $0xf0] sm:$0xff] %vm2167_vm2, %v5841_v1  ;;  %v11583_v14 = vld [vmem:[#allocation3 + $0x1e8] sm:$0xff]  ;;  %5668 = vrot.lane.b32.xlu0 %v6604_v48, %s8919_s30  ;;  %v6671_v28 = vpop.permute.xlu1 %6670 }
 0x513   :  { %v11585_v39 = vld [vmem:[#allocation3 + $0x1e9] sm:$0xff]  ;;  %6201 = vst.msk [vmem:[#allocation4 + $0x2c0] sm:$0xff] %vm21_vm0, %v11574_v17  ;;  %6839 = vst.msk [vmem:[#allocation4 + $0x298] sm:$0xff] %vm21_vm0, %v11576_v59  ;;  %v6227_v1 = vld [vmem:[#allocation3 + $0x191] sm:$0xff] }
 0x514   :  { %v11592_v51 = vld [vmem:[#allocation3 + $0x1ef] sm:$0xff]  ;;  %6200 = vst.msk [vmem:[#allocation4 + $0x2a8] sm:$0xff] %vm21_vm0, %v11583_v14  ;;  %5562 = vst.msk [vmem:[#allocation4 + $0x2d0] sm:$0xff] %vm21_vm0, %v11581_v22  ;;  %v6477_v16 = vpop.permute.xlu0 %6476  ;;  %6050 = vrot.lane.b32.xlu1 %v11297_v56, %s8921_s22 }
 0x515   :  { %6838 = vst.msk [vmem:[#allocation4 + $0x280] sm:$0xff] %vm21_vm0, %v11585_v39  ;;  %5563 = vst.msk [vmem:[#allocation4 + $0x2e8] sm:$0xff] %vm21_vm0, %v11592_v51  ;;  %v6866_v27 = vld [vmem:[#allocation4 + $0xb0] sm:$0xff] }
 0x516   :  { %6564 = vst.msk [vmem:[#allocation4 + $0xc8] sm:$0xff] %vm2167_vm2, %v6477_v16  ;;  %v6950_v48 = vpack.c.bf16 %v6866_v27, %v6863_v45  ;;  %5860 = vrot.lane.b32.xlu0 %v6222_v21, %s8920_s10  ;;  %v5403_v58 = vld [vmem:[#allocation2 + $0x1f0] ss:$2 sm:$0xff]  ;;  %v5435_v2 = vld [vmem:[#allocation2 + $0x1f1] ss:$2 sm:$0xff]  ;;  %v6291_v34 = vpop.permute.xlu1 %6290 }
 0x517   :  { %v5467_v62 = vmax.f32 %v5403_v58, %v5435_v2  ;;  %6375 = vst.msk [vmem:[#allocation4 + $0x110] sm:$0xff] %vm1974_vm1, %v6291_v34  ;;  %v6226_v16 = vld [vmem:[#allocation3 + $0x189] sm:$0xff] }
 0x518   :  { %7243 = vmatprep.mubr.bf16.mxu0 %v6950_v48  ;;  %v5402_v33 = vld [vmem:[#allocation2 + $0x1e0] ss:$2 sm:$0xff]  ;;  %v5434_v40 = vld [vmem:[#allocation2 + $0x1e1] ss:$2 sm:$0xff]  ;;  %v6669_v0 = vpop.permute.xlu0 %6668  ;;  %6690 = vrot.lane.b32.xlu1 %v11339_v41, %s8921_s22 }
 0x519   :  { %7244 = vmatmul.mubr.bf16.gmra.mrb[140].mxu0 %v6949_v54  ;;  %v5466_v9 = vmax.f32 %v5402_v33, %v5434_v40  ;;  %6756 = vst.msk [vmem:[#allocation4 + $0xc8] sm:$0xff] %vm2360_vm3, %v6669_v0 }
 0x51a   :  { %5499 = vst.msk [vmem:[#allocation3 + $0x210] sm:$0xff] %vm21_vm0, %v5467_v62  ;;  %6496 = vrot.lane.b32.xlu0 %v11346_v36, %s8920_s10  ;;  %v5655_v56 = vpop.permute.xlu1 %5654 }
 0x51b   :  { %5498 = vst.msk [vmem:[#allocation3 + $0x208] sm:$0xff] %vm21_vm0, %v5466_v9  ;;  %v6229_v9 = vld [vmem:[#allocation3 + $0x1b1] sm:$0xff] }
 0x51c   :  { %5737 = vst.msk [vmem:[#allocation4 + $0x138] sm:$0xff] %vm1974_vm1, %v5655_v56  ;;  %v6289_v31 = vpop.permute.xlu0 %6288  ;;  %6310 = vrot.lane.b32.xlu1 %v6225_v44, %s8919_s30 }
 0x51d   :  { %6374 = vst.msk [vmem:[#allocation4 + $0xf8] sm:$0xff] %vm1974_vm1, %v6289_v31 }
 0x51e   :  { %6688 = vrot.lane.b32.xlu0 %v11348_v32, %s8921_s22  ;;  %v5847_v25 = vpop.permute.xlu1 %5846 }
 0x51f   :  { %5929 = vst.msk [vmem:[#allocation4 + $0x138] sm:$0xff] %vm2167_vm2, %v5847_v25 }
 0x520   :  { %v6033_v47 = vpop.permute.xlu0 %6032  ;;  %5674 = vrot.lane.b32.xlu1 %v11339_v41, %s8919_s30  ;;  %v6869_v29 = vld [vmem:[#allocation4 + $0xc8] sm:$0xff] }
 0x521   :  { %v11620_v11 = vld [vmem:[#allocation3 + $0x210] sm:$0xff]  ;;  %6118 = vst.msk [vmem:[#allocation4 + $0xf0] sm:$0xff] %vm2360_vm3, %v6033_v47 }
 0x522   :  { %v11622_v21 = vld [vmem:[#allocation3 + $0x211] sm:$0xff]  ;;  %v11627_v38 = vld [vmem:[#allocation3 + $0x208] sm:$0xff]  ;;  %6203 = vst.msk [vmem:[#allocation4 + $0x2f0] sm:$0xff] %vm21_vm0, %v11620_v11  ;;  %6308 = vrot.lane.b32.xlu0 %v6224_v24, %s8919_s30  ;;  %v6479_v50 = vpop.permute.xlu1 %6478 }
 0x523   :  { %6841 = vst.msk [vmem:[#allocation4 + $0x2c8] sm:$0xff] %vm21_vm0, %v11622_v21  ;;  %v11634_v10 = vld [vmem:[#allocation3 + $0x209] sm:$0xff]  ;;  %6202 = vst.msk [vmem:[#allocation4 + $0x2d8] sm:$0xff] %vm21_vm0, %v11627_v38 }
 0x524   :  { %6840 = vst.msk [vmem:[#allocation4 + $0x2b0] sm:$0xff] %vm21_vm0, %v11634_v10  ;;  %v5653_v41 = vpop.permute.xlu0 %5652  ;;  %5866 = vrot.lane.b32.xlu1 %v6225_v44, %s8920_s10  ;;  %v6228_v44 = vld [vmem:[#allocation3 + $0x1a9] sm:$0xff] }
 0x525   :  { %6565 = vst.msk [vmem:[#allocation4 + $0xe0] sm:$0xff] %vm2167_vm2, %v6479_v50 }
 0x526   :  { %6757 = vst.msk [vmem:[#allocation4 + $0xe0] sm:$0xff] %vm2360_vm3, %v6671_v28  ;;  %6052 = vrot.lane.b32.xlu0 %v11346_v36, %s8921_s22  ;;  %v6035_v46 = vpop.permute.xlu1 %6034  ;;  %v6871_v36 = vld [vmem:[#allocation4 + $0xd8] sm:$0xff] }
 0x527   :  { %5736 = vst.msk [vmem:[#allocation4 + $0x120] sm:$0xff] %vm1974_vm1, %v5653_v41  ;;  %v6952_v55 = vpack.c.bf16 %v6871_v36, %v6868_v20 }
 0x528   :  { %6119 = vst.msk [vmem:[#allocation4 + $0x108] sm:$0xff] %vm2360_vm3, %v6035_v46  ;;  %v5845_v30 = vpop.permute.xlu0 %5844  ;;  %6498 = vrot.lane.b32.xlu1 %v11355_v53, %s8920_s10  ;;  %v6874_v62 = vld [vmem:[#allocation4 + $0xf0] sm:$0xff] }
 0x529   :  { %5928 = vst.msk [vmem:[#allocation4 + $0x120] sm:$0xff] %vm2167_vm2, %v5845_v30 }
 0x52a   :  { %5672 = vrot.lane.b32.xlu0 %v11348_v32, %s8919_s30  ;;  %v6675_v61 = vpop.permute.xlu1 %6674 }
 0x52c   :  { %v6481_v3 = vpop.permute.xlu0 %6480  ;;  %6054 = vrot.lane.b32.xlu1 %v11355_v53, %s8921_s22 }
 0x52d   :  { %v6872_v26 = vld [vmem:[#allocation4 + $0xe0] sm:$0xff]  ;;  %6566 = vst.msk [vmem:[#allocation4 + $0xf8] sm:$0xff] %vm2167_vm2, %v6481_v3 }
 0x52e   :  { %v6953_v35 = vpack.c.bf16 %v6872_v26, %v6869_v29  ;;  %5864 = vrot.lane.b32.xlu0 %v6224_v24, %s8920_s10  ;;  %v6295_v37 = vpop.permute.xlu1 %6294  ;;  %v6231_v26 = vld [vmem:[#allocation3 + $0x1d1] sm:$0xff] }
 0x52f   :  { %6377 = vst.msk [vmem:[#allocation4 + $0x140] sm:$0xff] %vm1974_vm1, %v6295_v37  ;;  %v6877_v54 = vld [vmem:[#allocation4 + $0x108] sm:$0xff] }
 0x530   :  { %7251 = vmatprep.mubr.bf16.mxu0 %v6953_v35  ;;  %v6673_v32 = vpop.permute.xlu0 %6672  ;;  %6694 = vrot.lane.b32.xlu1 %v11398_v60, %s8921_s22  ;;  %v6955_v33 = vpack.c.bf16 %v6877_v54, %v6874_v62  ;;  %v8913_v35 = vld [vmem:[%s12081_s3 + $0x88] sm:$0xff]  }
 0x531   :  { %7252 = vmatmul.mubr.bf16.gmra.mrb[144].mxu0 %v6952_v55  ;;  %6758 = vst.msk [vmem:[#allocation4 + $0xf8] sm:$0xff] %vm2360_vm3, %v6673_v32  ;;  %8708 = vmatprep.subr.bf16.mxu0 %v8913_v35  ;;  %v6230_v37 = vld [vmem:[#allocation3 + $0x1c9] sm:$0xff] }
 0x532   :  { %6500 = vrot.lane.b32.xlu0 %v11403_v52, %s8920_s10  ;;  %v5659_v53 = vpop.permute.xlu1 %5658  ;;  %8709 = vmatpush3.bf16.msra.mxu0 %v8913_v35 }
 0x533   :  { %5739 = vst.msk [vmem:[#allocation4 + $0x168] sm:$0xff] %vm1974_vm1, %v5659_v53 }
 0x534   :  { %v6293_v4 = vpop.permute.xlu0 %6292  ;;  %6314 = vrot.lane.b32.xlu1 %v6227_v1, %s8919_s30 }
 0x535   :  { %6376 = vst.msk [vmem:[#allocation4 + $0x128] sm:$0xff] %vm1974_vm1, %v6293_v4 }
 0x536   :  { %6692 = vrot.lane.b32.xlu0 %v11405_v18, %s8921_s22  ;;  %v5851_v28 = vpop.permute.xlu1 %5850 }
 0x537   :  { %5931 = vst.msk [vmem:[#allocation4 + $0x168] sm:$0xff] %vm2167_vm2, %v5851_v28 }
 0x538   :  { %v6037_v5 = vpop.permute.xlu0 %6036  ;;  %5678 = vrot.lane.b32.xlu1 %v11398_v60, %s8919_s30  ;;  %v6875_v2 = vld [vmem:[#allocation4 + $0xf8] sm:$0xff] }
 0x539   :  { %6120 = vst.msk [vmem:[#allocation4 + $0x120] sm:$0xff] %vm2360_vm3, %v6037_v5 }
 0x53a   :  { %6312 = vrot.lane.b32.xlu0 %v6226_v16, %s8919_s30  ;;  %v6483_v45 = vpop.permute.xlu1 %6482 }
 0x53b   :  { %6567 = vst.msk [vmem:[#allocation4 + $0x110] sm:$0xff] %vm2167_vm2, %v6483_v45 }
 0x53c   :  { %v5657_v27 = vpop.permute.xlu0 %5656  ;;  %6759 = vst.msk [vmem:[#allocation4 + $0x110] sm:$0xff] %vm2360_vm3, %v6675_v61  ;;  %5870 = vrot.lane.b32.xlu1 %v6227_v1, %s8920_s10 }
 0x53d   :  { %5738 = vst.msk [vmem:[#allocation4 + $0x150] sm:$0xff] %vm1974_vm1, %v5657_v27 }
 0x53e   :  { %6056 = vrot.lane.b32.xlu0 %v11403_v52, %s8921_s22  ;;  %v6039_v48 = vpop.permute.xlu1 %6038 }
 0x53f   :  { %6121 = vst.msk [vmem:[#allocation4 + $0x138] sm:$0xff] %vm2360_vm3, %v6039_v48 }
 0x540   :  { %v5849_v60 = vpop.permute.xlu0 %5848  ;;  %6502 = vrot.lane.b32.xlu1 %v11411_v19, %s8920_s10  ;;  %v6880_v61 = vld [vmem:[#allocation4 + $0x120] sm:$0xff] }
 0x541   :  { %5930 = vst.msk [vmem:[#allocation4 + $0x150] sm:$0xff] %vm2167_vm2, %v5849_v60 }
 0x542   :  { %5676 = vrot.lane.b32.xlu0 %v11405_v18, %s8919_s30  ;;  %v6679_v13 = vpop.permute.xlu1 %6678 }
 0x543   :  { %v6878_v34 = vld [vmem:[#allocation4 + $0x110] sm:$0xff] }
 0x544   :  { %v6485_v58 = vpop.permute.xlu0 %6484  ;;  %6058 = vrot.lane.b32.xlu1 %v11411_v19, %s8921_s22  ;;  %v6956_v52 = vpack.c.bf16 %v6878_v34, %v6875_v2 }
 0x545   :  { %6568 = vst.msk [vmem:[#allocation4 + $0x128] sm:$0xff] %vm2167_vm2, %v6485_v58 }
 0x546   :  { %5868 = vrot.lane.b32.xlu0 %v6226_v16, %s8920_s10  ;;  %v6299_v40 = vpop.permute.xlu1 %6298  ;;  %7259 = vmatprep.mubr.bf16.mxu0 %v6956_v52  ;;  %v6883_v41 = vld [vmem:[#allocation4 + $0x138] sm:$0xff] }
 0x547   :  { %6379 = vst.msk [vmem:[#allocation4 + $0x170] sm:$0xff] %vm1974_vm1, %v6299_v40  ;;  %7260 = vmatmul.mubr.bf16.gmra.mrb[148].mxu0 %v6955_v33  ;;  %v6958_v36 = vpack.c.bf16 %v6883_v41, %v6880_v61 }
 0x548   :  { %v6677_v18 = vpop.permute.xlu0 %6676  ;;  %6698 = vrot.lane.b32.xlu1 %v11454_v12, %s8921_s22 }
 0x549   :  { %6760 = vst.msk [vmem:[#allocation4 + $0x128] sm:$0xff] %vm2360_vm3, %v6677_v18 }
 0x54a   :  { %6504 = vrot.lane.b32.xlu0 %v11461_v15, %s8920_s10  ;;  %v5663_v19 = vpop.permute.xlu1 %5662 }
 0x54b   :  { %5741 = vst.msk [vmem:[#allocation4 + $0x198] sm:$0xff] %vm1974_vm1, %v5663_v19 }
 0x54c   :  { %v6297_v0 = vpop.permute.xlu0 %6296  ;;  %6318 = vrot.lane.b32.xlu1 %v6229_v9, %s8919_s30 }
 0x54d   :  { %6378 = vst.msk [vmem:[#allocation4 + $0x158] sm:$0xff] %vm1974_vm1, %v6297_v0 }
 0x54e   :  { %6696 = vrot.lane.b32.xlu0 %v11463_v63, %s8921_s22  ;;  %v5855_v56 = vpop.permute.xlu1 %5854 }
 0x54f   :  { %5933 = vst.msk [vmem:[#allocation4 + $0x198] sm:$0xff] %vm2167_vm2, %v5855_v56  ;;  %v6424_v56 = vld [vmem:[#allocation3 + $0x207] sm:$0xff] }
 0x550   :  { %v6041_v31 = vpop.permute.xlu0 %6040  ;;  %5682 = vrot.lane.b32.xlu1 %v11454_v12, %s8919_s30  ;;  %v6881_v42 = vld [vmem:[#allocation4 + $0x128] sm:$0xff] }
 0x551   :  { %6122 = vst.msk [vmem:[#allocation4 + $0x150] sm:$0xff] %vm2360_vm3, %v6041_v31 }
 0x552   :  { %6316 = vrot.lane.b32.xlu0 %v6228_v44, %s8919_s30  ;;  %v6487_v25 = vpop.permute.xlu1 %6486 }
 0x553   :  { %6569 = vst.msk [vmem:[#allocation4 + $0x140] sm:$0xff] %vm2167_vm2, %v6487_v25  ;;  %v6618_v25 = vld [vmem:[#allocation3 + $0x228] sm:$0xff] }
 0x554   :  { %v5661_v47 = vpop.permute.xlu0 %5660  ;;  %6761 = vst.msk [vmem:[#allocation4 + $0x140] sm:$0xff] %vm2360_vm3, %v6679_v13  ;;  %5874 = vrot.lane.b32.xlu1 %v6229_v9, %s8920_s10 }
 0x555   :  { %5740 = vst.msk [vmem:[#allocation4 + $0x180] sm:$0xff] %vm1974_vm1, %v5661_v47  ;;  %v6619_v47 = vld [vmem:[#allocation3 + $0x230] sm:$0xff] }
 0x556   :  { %6060 = vrot.lane.b32.xlu0 %v11461_v15, %s8921_s22  ;;  %v6043_v24 = vpop.permute.xlu1 %6042 }
 0x557   :  { %6123 = vst.msk [vmem:[#allocation4 + $0x168] sm:$0xff] %vm2360_vm3, %v6043_v24 }
 0x558   :  { %v5853_v12 = vpop.permute.xlu0 %5852  ;;  %6506 = vrot.lane.b32.xlu1 %v11469_v57, %s8920_s10  ;;  %v6886_v27 = vld [vmem:[#allocation4 + $0x150] sm:$0xff] }
 0x559   :  { %5932 = vst.msk [vmem:[#allocation4 + $0x180] sm:$0xff] %vm2167_vm2, %v5853_v12 }
 0x55a   :  { %5680 = vrot.lane.b32.xlu0 %v11463_v63, %s8919_s30  ;;  %v6683_v50 = vpop.permute.xlu1 %6682 }
 0x55b   :  { %v6884_v30 = vld [vmem:[#allocation4 + $0x140] sm:$0xff] }
 0x55c   :  { %v6489_v46 = vpop.permute.xlu0 %6488  ;;  %6062 = vrot.lane.b32.xlu1 %v11469_v57, %s8921_s22  ;;  %v6959_v15 = vpack.c.bf16 %v6884_v30, %v6881_v42 }
 0x55d   :  { %6570 = vst.msk [vmem:[#allocation4 + $0x158] sm:$0xff] %vm2167_vm2, %v6489_v46 }
 0x55e   :  { %5872 = vrot.lane.b32.xlu0 %v6228_v44, %s8920_s10  ;;  %v6303_v3 = vpop.permute.xlu1 %6302  ;;  %7267 = vmatprep.mubr.bf16.mxu0 %v6959_v15  ;;  %v6889_v28 = vld [vmem:[#allocation4 + $0x168] sm:$0xff] }
 0x55f   :  { %6381 = vst.msk [vmem:[#allocation4 + $0x1a0] sm:$0xff] %vm1974_vm1, %v6303_v3  ;;  %7268 = vmatmul.mubr.bf16.gmra.mrb[152].mxu0 %v6958_v36  ;;  %v6961_v48 = vpack.c.bf16 %v6889_v28, %v6886_v27 }
 0x560   :  { %v6681_v63 = vpop.permute.xlu0 %6680  ;;  %6702 = vrot.lane.b32.xlu1 %v11518_v6, %s8921_s22 }
 0x561   :  { %6762 = vst.msk [vmem:[#allocation4 + $0x158] sm:$0xff] %vm2360_vm3, %v6681_v63 }
 0x562   :  { %6508 = vrot.lane.b32.xlu0 %v11525_v7, %s8920_s10  ;;  %v5667_v57 = vpop.permute.xlu1 %5666 }
 0x563   :  { %5743 = vst.msk [vmem:[#allocation4 + $0x1c8] sm:$0xff] %vm1974_vm1, %v5667_v57 }
 0x564   :  { %v6301_v29 = vpop.permute.xlu0 %6300  ;;  %6322 = vrot.lane.b32.xlu1 %v6231_v26, %s8919_s30 }
 0x565   :  { %6380 = vst.msk [vmem:[#allocation4 + $0x188] sm:$0xff] %vm1974_vm1, %v6301_v29 }
 0x566   :  { %6700 = vrot.lane.b32.xlu0 %v11527_v23, %s8921_s22  ;;  %v5859_v20 = vpop.permute.xlu1 %5858 }
 0x567   :  { %5935 = vst.msk [vmem:[#allocation4 + $0x1c8] sm:$0xff] %vm2167_vm2, %v5859_v20 }
 0x568   :  { %v6045_v55 = vpop.permute.xlu0 %6044  ;;  %5686 = vrot.lane.b32.xlu1 %v11518_v6, %s8919_s30  ;;  %v6887_v16 = vld [vmem:[#allocation4 + $0x158] sm:$0xff] }
 0x569   :  { %6124 = vst.msk [vmem:[#allocation4 + $0x180] sm:$0xff] %vm2360_vm3, %v6045_v55 }
 0x56a   :  { %6320 = vrot.lane.b32.xlu0 %v6230_v37, %s8919_s30  ;;  %v6491_v32 = vpop.permute.xlu1 %6490 }
 0x56b   :  { %6571 = vst.msk [vmem:[#allocation4 + $0x170] sm:$0xff] %vm2167_vm2, %v6491_v32 }
 0x56c   :  { %v5665_v53 = vpop.permute.xlu0 %5664  ;;  %6763 = vst.msk [vmem:[#allocation4 + $0x170] sm:$0xff] %vm2360_vm3, %v6683_v50  ;;  %5878 = vrot.lane.b32.xlu1 %v6231_v26, %s8920_s10 }
 0x56d   :  { %5742 = vst.msk [vmem:[#allocation4 + $0x1b0] sm:$0xff] %vm1974_vm1, %v5665_v53 }
 0x56e   :  { %6064 = vrot.lane.b32.xlu0 %v11525_v7, %s8921_s22  ;;  %v6047_v4 = vpop.permute.xlu1 %6046 }
 0x56f   :  { %6125 = vst.msk [vmem:[#allocation4 + $0x198] sm:$0xff] %vm2360_vm3, %v6047_v4 }
 0x570   :  { %v5857_v6 = vpop.permute.xlu0 %5856  ;;  %6510 = vrot.lane.b32.xlu1 %v11534_v49, %s8920_s10  ;;  %v6892_v0 = vld [vmem:[#allocation4 + $0x180] sm:$0xff] }
 0x571   :  { %5934 = vst.msk [vmem:[#allocation4 + $0x1b0] sm:$0xff] %vm2167_vm2, %v5857_v6 }
 0x572   :  { %5684 = vrot.lane.b32.xlu0 %v11527_v23, %s8919_s30  ;;  %v6687_v1 = vpop.permute.xlu1 %6686 }
 0x573   :  { %v6890_v45 = vld [vmem:[#allocation4 + $0x170] sm:$0xff] }
 0x574   :  { %v6493_v5 = vpop.permute.xlu0 %6492  ;;  %6066 = vrot.lane.b32.xlu1 %v11534_v49, %s8921_s22  ;;  %v6962_v7 = vpack.c.bf16 %v6890_v45, %v6887_v16 }
 0x575   :  { %6572 = vst.msk [vmem:[#allocation4 + $0x188] sm:$0xff] %vm2167_vm2, %v6493_v5 }
 0x576   :  { %5876 = vrot.lane.b32.xlu0 %v6230_v37, %s8920_s10  ;;  %v6307_v60 = vpop.permute.xlu1 %6306  ;;  %7275 = vmatprep.mubr.bf16.mxu0 %v6962_v7  ;;  %v6895_v33 = vld [vmem:[#allocation4 + $0x198] sm:$0xff] }
 0x577   :  { %6383 = vst.msk [vmem:[#allocation4 + $0x1d0] sm:$0xff] %vm1974_vm1, %v6307_v60  ;;  %7276 = vmatmul.mubr.bf16.gmra.mrb[156].mxu0 %v6961_v48  ;;  %v6964_v9 = vpack.c.bf16 %v6895_v33, %v6892_v0 }
 0x578   :  { %v6685_v23 = vpop.permute.xlu0 %6684  ;;  %6706 = vrot.lane.b32.xlu1 %v11574_v17, %s8921_s22 }
 0x579   :  { %6764 = vst.msk [vmem:[#allocation4 + $0x188] sm:$0xff] %vm2360_vm3, %v6685_v23 }
 0x57a   :  { %6512 = vrot.lane.b32.xlu0 %v11581_v22, %s8920_s10  ;;  %v5671_v49 = vpop.permute.xlu1 %5670 }
 0x57b   :  { %5745 = vst.msk [vmem:[#allocation4 + $0x1f8] sm:$0xff] %vm1974_vm1, %v5671_v49 }
 0x57c   :  { %v6305_v13 = vpop.permute.xlu0 %6304  ;;  %6326 = vrot.lane.b32.xlu1 %v11576_v59, %s8919_s30 }
 0x57d   :  { %6382 = vst.msk [vmem:[#allocation4 + $0x1b8] sm:$0xff] %vm1974_vm1, %v6305_v13 }
 0x57e   :  { %6704 = vrot.lane.b32.xlu0 %v11583_v14, %s8921_s22  ;;  %v5863_v54 = vpop.permute.xlu1 %5862 }
 0x57f   :  { %5937 = vst.msk [vmem:[#allocation4 + $0x1f8] sm:$0xff] %vm2167_vm2, %v5863_v54 }
 0x580   :  { %v6049_v58 = vpop.permute.xlu0 %6048  ;;  %5690 = vrot.lane.b32.xlu1 %v11574_v17, %s8919_s30  ;;  %v6893_v18 = vld [vmem:[#allocation4 + $0x188] sm:$0xff] }
 0x581   :  { %6126 = vst.msk [vmem:[#allocation4 + $0x1b0] sm:$0xff] %vm2360_vm3, %v6049_v58 }
 0x582   :  { %6324 = vrot.lane.b32.xlu0 %v11585_v39, %s8919_s30  ;;  %v6495_v2 = vpop.permute.xlu1 %6494 }
 0x583   :  { %6573 = vst.msk [vmem:[#allocation4 + $0x1a0] sm:$0xff] %vm2167_vm2, %v6495_v2 }
 0x584   :  { %v5669_v34 = vpop.permute.xlu0 %5668  ;;  %6765 = vst.msk [vmem:[#allocation4 + $0x1a0] sm:$0xff] %vm2360_vm3, %v6687_v1  ;;  %6514 = vrot.lane.b32.xlu1 %v11592_v51, %s8920_s10 }
 0x585   :  { %5744 = vst.msk [vmem:[#allocation4 + $0x1e0] sm:$0xff] %vm1974_vm1, %v5669_v34 }
 0x586   :  { %6068 = vrot.lane.b32.xlu0 %v11581_v22, %s8921_s22  ;;  %v6051_v52 = vpop.permute.xlu1 %6050 }
 0x587   :  { %6127 = vst.msk [vmem:[#allocation4 + $0x1c8] sm:$0xff] %vm2360_vm3, %v6051_v52 }
 0x588   :  { %v5861_v17 = vpop.permute.xlu0 %5860  ;;  %6070 = vrot.lane.b32.xlu1 %v11592_v51, %s8921_s22  ;;  %v6898_v63 = vld [vmem:[#allocation4 + $0x1b0] sm:$0xff] }
 0x589   :  { %5936 = vst.msk [vmem:[#allocation4 + $0x1e0] sm:$0xff] %vm2167_vm2, %v5861_v17 }
 0x58a   :  { %5688 = vrot.lane.b32.xlu0 %v11583_v14, %s8919_s30  ;;  %v6691_v62 = vpop.permute.xlu1 %6690 }
 0x58b   :  { %v6896_v19 = vld [vmem:[#allocation4 + $0x1a0] sm:$0xff] }
 0x58c   :  { %v6497_v40 = vpop.permute.xlu0 %6496  ;;  %6710 = vrot.lane.b32.xlu1 %v11620_v11, %s8921_s22  ;;  %v6965_v22 = vpack.c.bf16 %v6896_v19, %v6893_v18 }
 0x58d   :  { %6574 = vst.msk [vmem:[#allocation4 + $0x1b8] sm:$0xff] %vm2167_vm2, %v6497_v40 }
 0x58e   :  { %5880 = vrot.lane.b32.xlu0 %v11585_v39, %s8920_s10  ;;  %v6311_v51 = vpop.permute.xlu1 %6310  ;;  %7283 = vmatprep.mubr.bf16.mxu0 %v6965_v22  ;;  %v6425_v39 = vld [vmem:[#allocation3 + $0x20f] sm:$0xff] }
 0x58f   :  { %6385 = vst.msk [vmem:[#allocation4 + $0x200] sm:$0xff] %vm1974_vm1, %v6311_v51  ;;  %7284 = vmatmul.mubr.bf16.gmra.mrb[160].mxu0 %v6964_v9  ;;  %v6901_v46 = vld [vmem:[#allocation4 + $0x1c8] sm:$0xff] }
 0x590   :  { %v6689_v14 = vpop.permute.xlu0 %6688  ;;  %6330 = vrot.lane.b32.xlu1 %v11622_v21, %s8919_s30  ;;  %v6967_v29 = vpack.c.bf16 %v6901_v46, %v6898_v63 }
 0x591   :  { %6766 = vst.msk [vmem:[#allocation4 + $0x1b8] sm:$0xff] %vm2360_vm3, %v6689_v14 }
 0x592   :  { %6516 = vrot.lane.b32.xlu0 %v6424_v56, %s8920_s10  ;;  %v5675_v11 = vpop.permute.xlu1 %5674 }
 0x593   :  { %5747 = vst.msk [vmem:[#allocation4 + $0x228] sm:$0xff] %vm1974_vm1, %v5675_v11 }
 0x594   :  { %v6309_v31 = vpop.permute.xlu0 %6308  ;;  %6518 = vrot.lane.b32.xlu1 %v6425_v39, %s8920_s10 }
 0x595   :  { %6384 = vst.msk [vmem:[#allocation4 + $0x1e8] sm:$0xff] %vm1974_vm1, %v6309_v31 }
 0x596   :  { %6708 = vrot.lane.b32.xlu0 %v11627_v38, %s8921_s22  ;;  %v5867_v44 = vpop.permute.xlu1 %5866 }
 0x597   :  { %5939 = vst.msk [vmem:[#allocation4 + $0x228] sm:$0xff] %vm2167_vm2, %v5867_v44 }
 0x598   :  { %v6053_v21 = vpop.permute.xlu0 %6052  ;;  %5882 = vrot.lane.b32.xlu1 %v11576_v59, %s8920_s10  ;;  %v6899_v15 = vld [vmem:[#allocation4 + $0x1b8] sm:$0xff] }
 0x599   :  { %6128 = vst.msk [vmem:[#allocation4 + $0x1e0] sm:$0xff] %vm2360_vm3, %v6053_v21 }
 0x59a   :  { %6712 = vrot.lane.b32.xlu0 %v6618_v25, %s8921_s22  ;;  %v6499_v24 = vpop.permute.xlu1 %6498 }
 0x59b   :  { %6575 = vst.msk [vmem:[#allocation4 + $0x1d0] sm:$0xff] %vm2167_vm2, %v6499_v24 }
 0x59c   :  { %v5673_v12 = vpop.permute.xlu0 %5672  ;;  %6767 = vst.msk [vmem:[#allocation4 + $0x1d0] sm:$0xff] %vm2360_vm3, %v6691_v62  ;;  %6714 = vrot.lane.b32.xlu1 %v6619_v47, %s8921_s22 }
 0x59d   :  { %5746 = vst.msk [vmem:[#allocation4 + $0x210] sm:$0xff] %vm1974_vm1, %v5673_v12 }
 0x59e   :  { %6328 = vrot.lane.b32.xlu0 %v11634_v10, %s8919_s30  ;;  %v6055_v38 = vpop.permute.xlu1 %6054 }
 0x59f   :  { %6129 = vst.msk [vmem:[#allocation4 + $0x1f8] sm:$0xff] %vm2360_vm3, %v6055_v38 }
 0x5a0   :  { %v5865_v59 = vpop.permute.xlu0 %5864  ;;  %6074 = vrot.lane.b32.xlu1 %v6425_v39, %s8921_s22  ;;  %v6904_v54 = vld [vmem:[#allocation4 + $0x1e0] sm:$0xff] }
 0x5a1   :  { %5938 = vst.msk [vmem:[#allocation4 + $0x210] sm:$0xff] %vm2167_vm2, %v5865_v59 }
 0x5a2   :  { %6072 = vrot.lane.b32.xlu0 %v6424_v56, %s8921_s22  ;;  %v6695_v50 = vpop.permute.xlu1 %6694 }
 0x5a3   :  { %v6902_v61 = vld [vmem:[#allocation4 + $0x1d0] sm:$0xff] }
 0x5a4   :  { %v8292_v41 = vpop.f32.mrb[128].mxu0  ;;  %v6501_v30 = vpop.permute.xlu0 %6500  ;;  %v6968_v3 = vpack.c.bf16 %v6902_v61, %v6899_v15 }
 0x5a5   :  { %v8293_v42 = vpop.f32.mrb[129].mxu0  ;;  %6576 = vst.msk [vmem:[#allocation4 + $0x1e8] sm:$0xff] %vm2167_vm2, %v6501_v30 }
 0x5a6   :  { %v11819_v36 = vadd.f32 %v8293_v42, %v8292_v41  ;;  %v8295_v10 = vpop.f32.mrb[130].mxu0  ;;  %v6315_v35 = vpop.permute.xlu1 %6314  ;;  %7291 = vmatprep.mubr.bf16.mxu0 %v6968_v3  ;;  %v6907_v45 = vld [vmem:[#allocation4 + $0x1f8] sm:$0xff] }
 0x5a7   :  { %v8296_v57 = vpop.f32.mrb[131].mxu0  ;;  %6387 = vst.msk [vmem:[#allocation4 + $0x230] sm:$0xff] %vm1974_vm1, %v6315_v35  ;;  %7292 = vmatmul.mubr.bf16.gmra.mrb[164].mxu0 %v6967_v29  ;;  %v6970_v2 = vpack.c.bf16 %v6907_v45, %v6904_v54 }
 0x5a8   :  { %v11822_v26 = vadd.f32 %v8296_v57, %v8295_v10  ;;  %v6693_v20 = vpop.permute.xlu0 %6692 }
 0x5a9   :  { %6768 = vst.msk [vmem:[#allocation4 + $0x1e8] sm:$0xff] %vm2360_vm3, %v6693_v20 }
 0x5aa   :  { %v5679_v55 = vpop.permute.xlu1 %5678 }
 0x5ab   :  { %5749 = vst.msk [vmem:[#allocation4 + $0x258] sm:$0xff] %vm1974_vm1, %v5679_v55 }
 0x5ac   :  { %v6313_v37 = vpop.permute.xlu0 %6312 }
 0x5ad   :  { %6386 = vst.msk [vmem:[#allocation4 + $0x218] sm:$0xff] %vm1974_vm1, %v6313_v37 }
 0x5ae   :  { %v5871_v32 = vpop.permute.xlu1 %5870 }
 0x5af   :  { %5941 = vst.msk [vmem:[#allocation4 + $0x258] sm:$0xff] %vm2167_vm2, %v5871_v32 }
 0x5b0   :  { %v6057_v53 = vpop.permute.xlu0 %6056  ;;  %v6905_v48 = vld [vmem:[#allocation4 + $0x1e8] sm:$0xff] }
 0x5b1   :  { %6130 = vst.msk [vmem:[#allocation4 + $0x210] sm:$0xff] %vm2360_vm3, %v6057_v53 }
 0x5b2   :  { %v6503_v4 = vpop.permute.xlu1 %6502 }
 0x5b3   :  { %6577 = vst.msk [vmem:[#allocation4 + $0x200] sm:$0xff] %vm2167_vm2, %v6503_v4 }
 0x5b4   :  { %v5677_v6 = vpop.permute.xlu0 %5676  ;;  %6769 = vst.msk [vmem:[#allocation4 + $0x200] sm:$0xff] %vm2360_vm3, %v6695_v50 }
 0x5b5   :  { %5748 = vst.msk [vmem:[#allocation4 + $0x240] sm:$0xff] %vm1974_vm1, %v5677_v6 }
 0x5b6   :  { %v6059_v1 = vpop.permute.xlu1 %6058 }
 0x5b7   :  { %6131 = vst.msk [vmem:[#allocation4 + $0x228] sm:$0xff] %vm2360_vm3, %v6059_v1 }
 0x5b8   :  { %v5869_v28 = vpop.permute.xlu0 %5868  ;;  %v6910_v24 = vld [vmem:[#allocation4 + $0x210] sm:$0xff] }
 0x5b9   :  { %5940 = vst.msk [vmem:[#allocation4 + $0x240] sm:$0xff] %vm2167_vm2, %v5869_v28 }
 0x5ba   :  { %v6699_v5 = vpop.permute.xlu1 %6698 }
 0x5bb   :  { %v8298_v16 = vpop.f32.mrb[132].mxu0  ;;  %v6908_v60 = vld [vmem:[#allocation4 + $0x200] sm:$0xff] }
 0x5bc   :  { %v6505_v7 = vpop.permute.xlu0 %6504  ;;  %v8299_v27 = vpop.f32.mrb[133].mxu0  ;;  %v6971_v13 = vpack.c.bf16 %v6908_v60, %v6905_v48 }
 0x5bd   :  { %6578 = vst.msk [vmem:[#allocation4 + $0x218] sm:$0xff] %vm2167_vm2, %v6505_v7  ;;  %v11836_v23 = vadd.f32 %v8299_v27, %v8298_v16  ;;  %v8301_v49 = vpop.f32.mrb[134].mxu0 }
 0x5be   :  { %v8302_v58 = vpop.f32.mrb[135].mxu0  ;;  %v6319_v52 = vpop.permute.xlu1 %6318  ;;  %7299 = vmatprep.mubr.bf16.mxu0 %v6971_v13  ;;  %v6913_v56 = vld [vmem:[#allocation4 + $0x228] sm:$0xff] }
 0x5bf   :  { %v11838_v34 = vadd.f32 %v8302_v58, %v8301_v49  ;;  %6389 = vst.msk [vmem:[#allocation4 + $0x260] sm:$0xff] %vm1974_vm1, %v6319_v52  ;;  %7300 = vmatmul.mubr.bf16.gmra.mrb[168].mxu0 %v6970_v2  ;;  %v6973_v38 = vpack.c.bf16 %v6913_v56, %v6910_v24 }
 0x5c0   :  { %v6697_v17 = vpop.permute.xlu0 %6696 }
 0x5c1   :  { %6770 = vst.msk [vmem:[#allocation4 + $0x218] sm:$0xff] %vm2360_vm3, %v6697_v17 }
 0x5c2   :  { %v5683_v62 = vpop.permute.xlu1 %5682 }
 0x5c3   :  { %5751 = vst.msk [vmem:[#allocation4 + $0x288] sm:$0xff] %vm1974_vm1, %v5683_v62 }
 0x5c4   :  { %v6317_v33 = vpop.permute.xlu0 %6316 }
 0x5c5   :  { %6388 = vst.msk [vmem:[#allocation4 + $0x248] sm:$0xff] %vm1974_vm1, %v6317_v33 }
 0x5c6   :  { %v5875_v40 = vpop.permute.xlu1 %5874 }
 0x5c7   :  { %5943 = vst.msk [vmem:[#allocation4 + $0x288] sm:$0xff] %vm2167_vm2, %v5875_v40 }
 0x5c8   :  { %v6061_v18 = vpop.permute.xlu0 %6060  ;;  %v6911_v39 = vld [vmem:[#allocation4 + $0x218] sm:$0xff] }
 0x5c9   :  { %6132 = vst.msk [vmem:[#allocation4 + $0x240] sm:$0xff] %vm2360_vm3, %v6061_v18 }
 0x5ca   :  { %v6507_v19 = vpop.permute.xlu1 %6506 }
 0x5cb   :  { %6579 = vst.msk [vmem:[#allocation4 + $0x230] sm:$0xff] %vm2167_vm2, %v6507_v19 }
 0x5cc   :  { %v5681_v22 = vpop.permute.xlu0 %5680  ;;  %6771 = vst.msk [vmem:[#allocation4 + $0x230] sm:$0xff] %vm2360_vm3, %v6699_v5 }
 0x5cd   :  { %5750 = vst.msk [vmem:[#allocation4 + $0x270] sm:$0xff] %vm1974_vm1, %v5681_v22 }
 0x5ce   :  { %v6063_v0 = vpop.permute.xlu1 %6062 }
 0x5cf   :  { %6133 = vst.msk [vmem:[#allocation4 + $0x258] sm:$0xff] %vm2360_vm3, %v6063_v0 }
 0x5d0   :  { %v5873_v9 = vpop.permute.xlu0 %5872  ;;  %v6916_v1 = vld [vmem:[#allocation4 + $0x240] sm:$0xff] }
 0x5d1   :  { %5942 = vst.msk [vmem:[#allocation4 + $0x270] sm:$0xff] %vm2167_vm2, %v5873_v9 }
 0x5d2   :  { %v6703_v51 = vpop.permute.xlu1 %6702 }
 0x5d3   :  { %v6914_v44 = vld [vmem:[#allocation4 + $0x230] sm:$0xff] }
 0x5d4   :  { %v6509_v11 = vpop.permute.xlu0 %6508  ;;  %v6974_v47 = vpack.c.bf16 %v6914_v44, %v6911_v39 }
 0x5d5   :  { %v8304_v14 = vpop.f32.mrb[136].mxu0  ;;  %6580 = vst.msk [vmem:[#allocation4 + $0x248] sm:$0xff] %vm2167_vm2, %v6509_v11 }
 0x5d6   :  { %v8305_v31 = vpop.f32.mrb[137].mxu0  ;;  %v6323_v50 = vpop.permute.xlu1 %6322  ;;  %7307 = vmatprep.mubr.bf16.mxu0 %v6974_v47  ;;  %v6919_v35 = vld [vmem:[#allocation4 + $0x258] sm:$0xff] }
 0x5d7   :  { %v11852_v25 = vadd.f32 %v8305_v31, %v8304_v14  ;;  %v8307_v21 = vpop.f32.mrb[138].mxu0  ;;  %6391 = vst.msk [vmem:[#allocation4 + $0x290] sm:$0xff] %vm1974_vm1, %v6323_v50  ;;  %7308 = vmatmul.mubr.bf16.gmra.mrb[172].mxu0 %v6973_v38  ;;  %v6976_v5 = vpack.c.bf16 %v6919_v35, %v6916_v1  ;;  %v6852_v1 = vld [vmem:[#allocation4 + $0x40] sm:$0xff] }
 0x5d8   :  { %v8308_v12 = vpop.f32.mrb[139].mxu0  ;;  %v6701_v41 = vpop.permute.xlu0 %6700 }
 0x5d9   :  { %v11854_v59 = vadd.f32 %v8308_v12, %v8307_v21  ;;  %6772 = vst.msk [vmem:[#allocation4 + $0x248] sm:$0xff] %vm2360_vm3, %v6701_v41 }
 0x5da   :  { %v5687_v46 = vpop.permute.xlu1 %5686 }
 0x5db   :  { %5753 = vst.msk [vmem:[#allocation4 + $0x2b8] sm:$0xff] %vm1974_vm1, %v5687_v46 }
 0x5dc   :  { %v6321_v42 = vpop.permute.xlu0 %6320 }
 0x5dd   :  { %6390 = vst.msk [vmem:[#allocation4 + $0x278] sm:$0xff] %vm1974_vm1, %v6321_v42 }
 0x5de   :  { %v5879_v30 = vpop.permute.xlu1 %5878 }
 0x5df   :  { %5945 = vst.msk [vmem:[#allocation4 + $0x2b8] sm:$0xff] %vm2167_vm2, %v5879_v30 }
 0x5e0   :  { %v6065_v15 = vpop.permute.xlu0 %6064  ;;  %v6917_v37 = vld [vmem:[#allocation4 + $0x248] sm:$0xff] }
 0x5e1   :  { %6134 = vst.msk [vmem:[#allocation4 + $0x270] sm:$0xff] %vm2360_vm3, %v6065_v15 }
 0x5e2   :  { %v6511_v61 = vpop.permute.xlu1 %6510 }
 0x5e3   :  { %6581 = vst.msk [vmem:[#allocation4 + $0x260] sm:$0xff] %vm2167_vm2, %v6511_v61 }
 0x5e4   :  { %v5685_v10 = vpop.permute.xlu0 %5684  ;;  %6773 = vst.msk [vmem:[#allocation4 + $0x260] sm:$0xff] %vm2360_vm3, %v6703_v51 }
 0x5e5   :  { %5752 = vst.msk [vmem:[#allocation4 + $0x2a0] sm:$0xff] %vm1974_vm1, %v5685_v10 }
 0x5e6   :  { %v6067_v3 = vpop.permute.xlu1 %6066 }
 0x5e7   :  { %6135 = vst.msk [vmem:[#allocation4 + $0x288] sm:$0xff] %vm2360_vm3, %v6067_v3 }
 0x5e8   :  { %v5877_v63 = vpop.permute.xlu0 %5876  ;;  %v6922_v40 = vld [vmem:[#allocation4 + $0x270] sm:$0xff] }
 0x5e9   :  { %5944 = vst.msk [vmem:[#allocation4 + $0x2a0] sm:$0xff] %vm2167_vm2, %v5877_v63 }
 0x5ea   :  { %v6707_v57 = vpop.permute.xlu1 %6706 }
 0x5eb   :  { %v6920_v32 = vld [vmem:[#allocation4 + $0x260] sm:$0xff] }
 0x5ec   :  { %v8310_v29 = vpop.f32.mrb[140].mxu0  ;;  %v6513_v20 = vpop.permute.xlu0 %6512  ;;  %v6977_v6 = vpack.c.bf16 %v6920_v32, %v6917_v37 }
 0x5ed   :  { %v8311_v55 = vpop.f32.mrb[141].mxu0  ;;  %6582 = vst.msk [vmem:[#allocation4 + $0x278] sm:$0xff] %vm2167_vm2, %v6513_v20 }
 0x5ee   :  { %v11868_v53 = vadd.f32 %v8311_v55, %v8310_v29  ;;  %v8313_v4 = vpop.f32.mrb[142].mxu0  ;;  %v6327_v45 = vpop.permute.xlu1 %6326  ;;  %7315 = vmatprep.mubr.bf16.mxu0 %v6977_v6  ;;  %v6925_v2 = vld [vmem:[#allocation4 + $0x288] sm:$0xff] }
 0x5ef   :  { %v8314_v28 = vpop.f32.mrb[143].mxu0  ;;  %6393 = vst.msk [vmem:[#allocation4 + $0x2c0] sm:$0xff] %vm1974_vm1, %v6327_v45  ;;  %7316 = vmatmul.mubr.bf16.gmra.mrb[176].mxu0 %v6976_v5  ;;  %v6979_v18 = vpack.c.bf16 %v6925_v2, %v6922_v40  ;;  %v6849_v29 = vld [vmem:[#allocation4 + $0x28] sm:$0xff]  ;;  %v6858_v5 = vld [vmem:[#allocation4 + $0x70] sm:$0xff]  ;;  %v6876_v2 = vld [vmem:[#allocation4 + $0x100] sm:$0xff] }
 0x5f0   :  { %v11870_v16 = vadd.f32 %v8314_v28, %v8313_v4  ;;  %v6705_v7 = vpop.permute.xlu0 %6704  ;;  %v6855_v28 = vld [vmem:[#allocation4 + $0x58] sm:$0xff]  ;;  %v6861_v45 = vld [vmem:[#allocation4 + $0x88] sm:$0xff] }
 0x5f1   :  { %6774 = vst.msk [vmem:[#allocation4 + $0x278] sm:$0xff] %vm2360_vm3, %v6705_v7  ;;  %v6945_v7 = vpack.c.bf16 %v6855_v28, %v6852_v1 }
 0x5f2   :  { %v5691_v27 = vpop.permute.xlu1 %5690 }
 0x5f3   :  { %5755 = vst.msk [vmem:[#allocation4 + $0x2e8] sm:$0xff] %vm1974_vm1, %v5691_v27  ;;  %v6948_v27 = vpack.c.bf16 %v6861_v45, %v6858_v5  ;;  %v6936_v5 = vld [vmem:[#allocation4 + $0x2e0] sm:$0xff]  ;;  %v6939_v45 = vld [vmem:[#allocation4 + $0x2f8] sm:$0xff] }
 0x5f4   :  { %v6325_v48 = vpop.permute.xlu0 %6324 }
 0x5f5   :  { %6392 = vst.msk [vmem:[#allocation4 + $0x2a8] sm:$0xff] %vm1974_vm1, %v6325_v48  ;;  %v6864_v48 = vld [vmem:[#allocation4 + $0xa0] sm:$0xff] }
 0x5f6   :  { %v6515_v60 = vpop.permute.xlu1 %6514 }
 0x5f7   :  { %6583 = vst.msk [vmem:[#allocation4 + $0x290] sm:$0xff] %vm2167_vm2, %v6515_v60  ;;  %v6867_v60 = vld [vmem:[#allocation4 + $0xb8] sm:$0xff] }
 0x5f8   :  { %v6069_v49 = vpop.permute.xlu0 %6068  ;;  %6775 = vst.msk [vmem:[#allocation4 + $0x290] sm:$0xff] %vm2360_vm3, %v6707_v57  ;;  %v6923_v17 = vld [vmem:[#allocation4 + $0x278] sm:$0xff]  ;;  %v6846_v57 = vld [vmem:[#allocation4 + $0x10] sm:$0xff] }
 0x5f9   :  { %6136 = vst.msk [vmem:[#allocation4 + $0x2a0] sm:$0xff] %vm2360_vm3, %v6069_v49  ;;  %v6942_v4 = vpack.c.bf16 %v6849_v29, %v6846_v57  ;;  %v6870_v49 = vld [vmem:[#allocation4 + $0xd0] sm:$0xff] }
 0x5fa   :  { %v6071_v13 = vpop.permute.xlu1 %6070 }
 0x5fb   :  { %6137 = vst.msk [vmem:[#allocation4 + $0x2b8] sm:$0xff] %vm2360_vm3, %v6071_v13  ;;  %v6873_v13 = vld [vmem:[#allocation4 + $0xe8] sm:$0xff] }
 0x5fc   :  { %v5689_v54 = vpop.permute.xlu0 %5688 }
 0x5fd   :  { %5754 = vst.msk [vmem:[#allocation4 + $0x2d0] sm:$0xff] %vm1974_vm1, %v5689_v54  ;;  %v6951_v54 = vpack.c.bf16 %v6867_v60, %v6864_v48 }
 0x5fe   :  { %v6711_v58 = vpop.permute.xlu1 %6710 }
 0x5ff   :  { %v6926_v62 = vld [vmem:[#allocation4 + $0x290] sm:$0xff] }
 0x600   :  { %v5881_v52 = vpop.permute.xlu0 %5880  ;;  %v6980_v33 = vpack.c.bf16 %v6926_v62, %v6923_v17  ;;  %v6928_v41 = vld [vmem:[#allocation4 + $0x2a0] sm:$0xff]  ;;  %v6882_v62 = vld [vmem:[#allocation4 + $0x130] sm:$0xff] }
 0x601   :  { %5946 = vst.msk [vmem:[#allocation4 + $0x2d0] sm:$0xff] %vm2167_vm2, %v5881_v52  ;;  %v6879_v52 = vld [vmem:[#allocation4 + $0x118] sm:$0xff] }
 0x602   :  { %v6331_v19 = vpop.permute.xlu1 %6330  ;;  %7323 = vmatprep.mubr.bf16.mxu0 %v6980_v33  ;;  %v6931_v47 = vld [vmem:[#allocation4 + $0x2b8] sm:$0xff]  ;;  %v6885_v33 = vld [vmem:[#allocation4 + $0x148] sm:$0xff] }
 0x603   :  { %6395 = vst.msk [vmem:[#allocation4 + $0x2f0] sm:$0xff] %vm1974_vm1, %v6331_v19  ;;  %7324 = vmatmul.mubr.bf16.gmra.mrb[180].mxu0 %v6979_v18  ;;  %v6982_v46 = vpack.c.bf16 %v6931_v47, %v6928_v41  ;;  %v6900_v47 = vld [vmem:[#allocation4 + $0x1c0] sm:$0xff] }
 0x604   :  { %v8316_v22 = vpop.f32.mrb[144].mxu0  ;;  %v6517_v0 = vpop.permute.xlu0 %6516  ;;  %6587 = vst.msk [vmem:[#allocation4 + $0x2f0] sm:$0xff] %vm2167_vm2, %v11185_v43 }
 0x605   :  { %v8317_v9 = vpop.f32.mrb[145].mxu0  ;;  %6584 = vst.msk [vmem:[#allocation4 + $0x2a8] sm:$0xff] %vm2167_vm2, %v6517_v0 }
 0x606   :  { %v11886_v51 = vadd.f32 %v8317_v9, %v8316_v22  ;;  %v8319_v14 = vpop.f32.mrb[146].mxu0  ;;  %v6519_v31 = vpop.permute.xlu1 %6518  ;;  %v6957_v22 = vpack.c.bf16 %v6879_v52, %v6876_v2  ;;  %v6960_v9 = vpack.c.bf16 %v6885_v33, %v6882_v62 }
 0x607   :  { %v8320_v56 = vpop.f32.mrb[147].mxu0  ;;  %6585 = vst.msk [vmem:[#allocation4 + $0x2c0] sm:$0xff] %vm2167_vm2, %v6519_v31  ;;  %v6891_v31 = vld [vmem:[#allocation4 + $0x178] sm:$0xff] }
 0x608   :  { %v11888_v11 = vadd.f32 %v8320_v56, %v8319_v14  ;;  %v6709_v39 = vpop.permute.xlu0 %6708  ;;  %6777 = vst.msk [vmem:[#allocation4 + $0x2c0] sm:$0xff] %vm2360_vm3, %v6711_v58  ;;  %v6954_v58 = vpack.c.bf16 %v6873_v13, %v6870_v49  ;;  %v6888_v56 = vld [vmem:[#allocation4 + $0x160] sm:$0xff] }
 0x609   :  { %6776 = vst.msk [vmem:[#allocation4 + $0x2a8] sm:$0xff] %vm2360_vm3, %v6709_v39  ;;  %v6894_v39 = vld [vmem:[#allocation4 + $0x190] sm:$0xff] }
 0x60a   :  { %v5883_v44 = vpop.permute.xlu1 %5882 }
 0x60b   :  { %5947 = vst.msk [vmem:[#allocation4 + $0x2e8] sm:$0xff] %vm2167_vm2, %v5883_v44  ;;  %v6897_v44 = vld [vmem:[#allocation4 + $0x1a8] sm:$0xff] }
 0x60c   :  { %v6713_v43 = vpop.permute.xlu0 %6712 }
 0x60e   :  { %v6715_v21 = vpop.permute.xlu1 %6714 }
 0x60f   :  { %6779 = vst.msk [vmem:[#allocation4 + $0x2f0] sm:$0xff] %vm2360_vm3, %v6715_v21  ;;  %v6932_v38 = vld [vmem:[#allocation4 + $0x2c0] sm:$0xff]  ;;  %v6966_v21 = vpack.c.bf16 %v6897_v44, %v6894_v39 }
 0x610   :  { %v6329_v24 = vpop.permute.xlu0 %6328  ;;  %v6929_v12 = vld [vmem:[#allocation4 + $0x2a8] sm:$0xff] }
 0x611   :  { %6394 = vst.msk [vmem:[#allocation4 + $0x2d8] sm:$0xff] %vm1974_vm1, %v6329_v24  ;;  %v6983_v50 = vpack.c.bf16 %v6932_v38, %v6929_v12  ;;  %v6903_v24 = vld [vmem:[#allocation4 + $0x1d8] sm:$0xff]  ;;  %v6906_v12 = vld [vmem:[#allocation4 + $0x1f0] sm:$0xff]  ;;  %v6909_v38 = vld [vmem:[#allocation4 + $0x208] sm:$0xff] }
 0x612   :  { %6586 = vst.msk [vmem:[#allocation4 + $0x2d8] sm:$0xff] %vm2167_vm2, %v11189_v8  ;;  %v6075_v42 = vpop.permute.xlu1 %6074  ;;  %v6972_v41 = vpack.c.bf16 %v6909_v38, %v6906_v12 }
 0x613   :  { %6778 = vst.msk [vmem:[#allocation4 + $0x2d8] sm:$0xff] %vm2360_vm3, %v6713_v43  ;;  %7331 = vmatprep.mubr.bf16.mxu0 %v6983_v50  ;;  %6139 = vst.msk [vmem:[#allocation4 + $0x2e8] sm:$0xff] %vm2360_vm3, %v6075_v42  ;;  %v6963_v43 = vpack.c.bf16 %v6891_v31, %v6888_v56  ;;  %v6969_v50 = vpack.c.bf16 %v6903_v24, %v6900_v47  ;;  %v6915_v42 = vld [vmem:[#allocation4 + $0x238] sm:$0xff] }
 0x614   :  { %v6073_v30 = vpop.permute.xlu0 %6072  ;;  %7332 = vmatmul.mubr.bf16.gmra.mrb[184].mxu0 %v6982_v46  ;;  %v6912_v46 = vld [vmem:[#allocation4 + $0x220] sm:$0xff] }
 0x615   :  { %6138 = vst.msk [vmem:[#allocation4 + $0x2d0] sm:$0xff] %vm2360_vm3, %v6073_v30  ;;  %v6975_v57 = vpack.c.bf16 %v6915_v42, %v6912_v46 }
 0x616   :  { %v6938_v61 = vld [vmem:[#allocation4 + $0x2f0] sm:$0xff] }
 0x61a   :  { %v6935_v15 = vld [vmem:[#allocation4 + $0x2d8] sm:$0xff]  ;;  %v8322_v10 = vpop.f32.mrb[148].mxu0  ;;  %v6937_v63 = vld [vmem:[#allocation4 + $0x2e8] sm:$0xff] }
 0x61b   :  { %v6986_v3 = vpack.c.bf16 %v6938_v61, %v6935_v15  ;;  %v8323_v35 = vpop.f32.mrb[149].mxu0  ;;  %v6918_v15 = vld [vmem:[#allocation4 + $0x250] sm:$0xff]  ;;  %v6921_v61 = vld [vmem:[#allocation4 + $0x268] sm:$0xff] }
 0x61c   :  { %v6934_v8 = vld [vmem:[#allocation4 + $0x2d0] sm:$0xff]  ;;  %v11901_v20 = vadd.f32 %v8323_v35, %v8322_v10  ;;  %v8325_v55 = vpop.f32.mrb[150].mxu0  ;;  %v6978_v35 = vpack.c.bf16 %v6921_v61, %v6918_v15 }
 0x61d   :  { %7339 = vmatprep.mubr.bf16.mxu0 %v6986_v3  ;;  %v6985_v37 = vpack.c.bf16 %v6937_v63, %v6934_v8  ;;  %v8326_v32 = vpop.f32.mrb[151].mxu0 }
 0x61e   :  { %v11903_v6 = vadd.f32 %v8326_v32, %v8325_v55  ;;  %v6924_v55 = vld [vmem:[#allocation4 + $0x280] sm:$0xff]  ;;  %v6930_v32 = vld [vmem:[#allocation4 + $0x2b0] sm:$0xff] }
 0x61f   :  { %7340 = vmatmul.mubr.bf16.gmra.mrb[188].mxu0 %v6985_v37  ;;  %v6927_v37 = vld [vmem:[#allocation4 + $0x298] sm:$0xff] }
 0x620   :  { %8710 = vmatprep.mubr.msk.bf16.mxu0 %vm21_vm0, %v6942_v4  ;;  %v6933_v4 = vld [vmem:[#allocation4 + $0x2c8] sm:$0xff]  ;;  %v6981_v1 = vpack.c.bf16 %v6927_v37, %v6924_v55 }
 0x621   :  { %v6984_v28 = vpack.c.bf16 %v6933_v4, %v6930_v32 }
 0x627   :  { %8711 = vmatmul.mubr.msk.bf16.vlgmr.msra.gmra.mrb[192].mxu0 %vm21_vm0, %v6945_v7  ;;  %v6987_v7 = vpack.c.bf16 %v6939_v45, %v6936_v5 }
 0x628   :  { %8714 = vmatprep.mubr.msk.bf16.mxu0 %vm21_vm0, %v6948_v27 }
 0x62f   :  { %8715 = vmatmul.mubr.msk.bf16.gmra.mrb[196].mxu0 %vm21_vm0, %v6951_v54 }
 0x630   :  { %8718 = vmatprep.mubr.msk.bf16.mxu0 %vm21_vm0, %v6954_v58 }
 0x632   :  { %v8328_v17 = vpop.f32.mrb[152].mxu0 }
 0x633   :  { %v8329_v40 = vpop.f32.mrb[153].mxu0 }
 0x634   :  { %v11910_v18 = vadd.f32 %v8329_v40, %v8328_v17  ;;  %v8331_v19 = vpop.f32.mrb[154].mxu0 }
 0x635   :  { %v8332_v0 = vpop.f32.mrb[155].mxu0 }
 0x636   :  { %v11912_v14 = vadd.f32 %v8332_v0, %v8331_v19 }
 0x637   :  { %8719 = vmatmul.mubr.msk.bf16.gmra.mrb[200].mxu0 %vm21_vm0, %v6957_v22 }
 0x638   :  { %8722 = vmatprep.mubr.msk.bf16.mxu0 %vm21_vm0, %v6960_v9 }
 0x63f   :  { %8723 = vmatmul.mubr.msk.bf16.gmra.mrb[204].mxu0 %vm21_vm0, %v6963_v43 }
 0x640   :  { %8726 = vmatprep.mubr.msk.bf16.mxu0 %vm21_vm0, %v6966_v21 }
 0x647   :  { %8727 = vmatmul.mubr.msk.bf16.gmra.mrb[208].mxu0 %vm21_vm0, %v6969_v50 }
 0x648   :  { %8730 = vmatprep.mubr.msk.bf16.mxu0 %vm21_vm0, %v6972_v41 }
 0x64a   :  { %v8334_v30 = vpop.f32.mrb[156].mxu0 }
 0x64b   :  { %v8335_v10 = vpop.f32.mrb[157].mxu0 }
 0x64c   :  { %v11920_v3 = vadd.f32 %v8335_v10, %v8334_v30  ;;  %v8337_v63 = vpop.f32.mrb[158].mxu0 }
 0x64d   :  { %v8338_v29 = vpop.f32.mrb[159].mxu0 }
 0x64e   :  { %v11922_v8 = vadd.f32 %v8338_v29, %v8337_v63 }
 0x64f   :  { %8731 = vmatmul.mubr.msk.bf16.gmra.mrb[212].mxu0 %vm21_vm0, %v6975_v57 }
 0x650   :  { %8734 = vmatprep.mubr.msk.bf16.mxu0 %vm21_vm0, %v6978_v35 }
 0x657   :  { %8735 = vmatmul.mubr.msk.bf16.gmra.mrb[216].mxu0 %vm21_vm0, %v6981_v1 }
 0x658   :  { %8738 = vmatprep.mubr.msk.bf16.mxu0 %vm21_vm0, %v6984_v28 }
 0x65f   :  { %8739 = vmatmul.mubr.msk.bf16.gmra.mrb[220].mxu0 %vm21_vm0, %v6987_v7 }
 0x662   :  { %v8340_v27 = vpop.f32.mrb[160].mxu0 }
 0x663   :  { %v8341_v48 = vpop.f32.mrb[161].mxu0 }
 0x664   :  { %v11929_v60 = vadd.f32 %v8341_v48, %v8340_v27  ;;  %v8343_v49 = vpop.f32.mrb[162].mxu0  ;;  %v11964_v27 = vld [vmem:[%s12082_s4] ss:$0 sm:$0xff] }
 0x665   :  { %v8344_v13 = vpop.f32.mrb[163].mxu0  ;;  %v7230_v48 = vadd.f32 %v11836_v23, %v11964_v27 }
 0x666   :  { %v11931_v54 = vadd.f32 %v8344_v13, %v8343_v49  ;;  %v7222_v13 = vadd.f32 %v11819_v36, %v11964_v27  ;;  %v7246_v36 = vadd.f32 %v11868_v53, %v11964_v27 }
 0x67a   :  { %v8346_v58 = vpop.f32.mrb[164].mxu0 }
 0x67b   :  { %v8347_v2 = vpop.f32.mrb[165].mxu0 }
 0x67c   :  { %v11933_v52 = vadd.f32 %v8347_v2, %v8346_v58  ;;  %v8349_v17 = vpop.f32.mrb[166].mxu0 }
 0x67d   :  { %v8350_v62 = vpop.f32.mrb[167].mxu0 }
 0x67e   :  { %v11935_v33 = vadd.f32 %v8350_v62, %v8349_v17  ;;  %v7233_v17 = vadd.f32 %v11838_v34, %v11964_v27 }
 0x692   :  { %v8352_v40 = vpop.f32.mrb[168].mxu0 }
 0x693   :  { %v8353_v19 = vpop.f32.mrb[169].mxu0 }
 0x694   :  { %v11937_v22 = vadd.f32 %v8353_v19, %v8352_v40  ;;  %v8355_v0 = vpop.f32.mrb[170].mxu0  ;;  %v7225_v19 = vadd.f32 %v11822_v26, %v11964_v27 }
 0x695   :  { %v8356_v9 = vpop.f32.mrb[171].mxu0 }
 0x696   :  { %v11939_v56 = vadd.f32 %v8356_v9, %v8355_v0 }
 0x6aa   :  { %v8358_v31 = vpop.f32.mrb[172].mxu0 }
 0x6ab   :  { %v8359_v39 = vpop.f32.mrb[173].mxu0 }
 0x6ac   :  { %v11941_v44 = vadd.f32 %v8359_v39, %v8358_v31  ;;  %v8361_v43 = vpop.f32.mrb[174].mxu0 }
 0x6ad   :  { %v8362_v21 = vpop.f32.mrb[175].mxu0 }
 0x6ae   :  { %v11943_v47 = vadd.f32 %v8362_v21, %v8361_v43 }
 0x6c2   :  { %v8364_v24 = vpop.f32.mrb[176].mxu0 }
 0x6c3   :  { %v8365_v12 = vpop.f32.mrb[177].mxu0 }
 0x6c4   :  { %v11945_v38 = vadd.f32 %v8365_v12, %v8364_v24  ;;  %v8367_v50 = vpop.f32.mrb[178].mxu0 }
 0x6c5   :  { %v8368_v41 = vpop.f32.mrb[179].mxu0 }
 0x6c6   :  { %v11947_v46 = vadd.f32 %v8368_v41, %v8367_v50  ;;  %v7238_v50 = vadd.f32 %v11852_v25, %v11964_v27 }
 0x6d6   :  { %v8370_v42 = vpop.f32.mrb[180].mxu0 }
 0x6d7   :  { %v8371_v30 = vpop.f32.mrb[181].mxu0 }
 0x6d8   :  { %v11949_v15 = vadd.f32 %v8371_v30, %v8370_v42  ;;  %v8373_v61 = vpop.f32.mrb[182].mxu0  ;;  %v7249_v42 = vadd.f32 %v11870_v16, %v11964_v27 }
 0x6d9   :  { %v8374_v10 = vpop.f32.mrb[183].mxu0 }
 0x6da   :  { %v11951_v63 = vadd.f32 %v8374_v10, %v8373_v61  ;;  %v7241_v10 = vadd.f32 %v11854_v59, %v11964_v27 }
 0x6e7   :  { %v8376_v57 = vpop.f32.mrb[184].mxu0 }
 0x6e8   :  { %v8377_v29 = vpop.f32.mrb[185].mxu0 }
 0x6e9   :  { %v11953_v35 = vadd.f32 %v8377_v29, %v8376_v57  ;;  %v8379_v55 = vpop.f32.mrb[186].mxu0 }
 0x6ea   :  { %v8380_v37 = vpop.f32.mrb[187].mxu0 }
 0x6eb   :  { %v11955_v32 = vadd.f32 %v8380_v37, %v8379_v55 }
 0x6f2   :  { %v8382_v4 = vpop.f32.mrb[188].mxu0 }
 0x6f3   :  { %v8383_v1 = vpop.f32.mrb[189].mxu0 }
 0x6f4   :  { %v11957_v28 = vadd.f32 %v8383_v1, %v8382_v4  ;;  %v8385_v5 = vpop.f32.mrb[190].mxu0 }
 0x6f5   :  { %v8386_v45 = vpop.f32.mrb[191].mxu0 }
 0x6f6   :  { %v11959_v7 = vadd.f32 %v8386_v45, %v8385_v5  ;;  %v7262_v5 = vadd.f32 %v11901_v20, %v11964_v27  ;;  %v7257_v20 = vadd.f32 %v11888_v11, %v11964_v27 }
 0x6fa   :  { %v8712_v49 = vpop.f32.mrb[192].mxu0 }
 0x6fb   :  { %v7391_v58 = vadd.f32 %v8712_v49, %v7230_v48  ;;  %v7382_v2 = vpop.f32.mrb[193].mxu0  ;;  %v7254_v48 = vadd.f32 %v11886_v51, %v11964_v27 }
 0x6fc   :  { %v7383_v62 = vadd.f32 %v7382_v2, %v7222_v13  ;;  %v8713_v40 = vpop.f32.mrb[194].mxu0  ;;  %v7265_v2 = vadd.f32 %v11903_v6, %v11964_v27 }
 0x6fd   :  { %v7511_v0 = vmax.f32 %v7391_v58, 0.0  ;;  %v7394_v9 = vadd.f32 %v8713_v40, %v7233_v17  ;;  %v7385_v31 = vpop.f32.mrb[195].mxu0 }
 0x6fe   :  { %v7509_v39 = vmax.f32 %v7383_v62, 0.0  ;;  %v7386_v43 = vadd.f32 %v7385_v31, %v7225_v19 }
 0x6ff   :  { %v7512_v23 = vmax.f32 %v7394_v9, 0.0 }
 0x700   :  { %v7541_v21 = vmax.f32 %v7509_v39, %v7511_v0  ;;  %v7510_v24 = vmax.f32 %v7386_v43, 0.0 }
 0x702   :  { %7557 = vst.msk [vmem:[#allocation5] sm:$0xff] %vm3811_vm4, %v7541_v21  ;;  %v7542_v12 = vmax.f32 %v7510_v24, %v7512_v23  ;;  %v8716_v34 = vpop.f32.mrb[196].mxu0  ;;  %v7278_v21 = vadd.f32 %v11920_v3, %v11964_v27  ;;  %v7273_v3 = vadd.f32 %v11912_v14, %v11964_v27 }
 0x703   :  { %v7407_v41 = vadd.f32 %v8716_v34, %v7246_v36  ;;  %v7398_v26 = vpop.f32.mrb[197].mxu0  ;;  %v7270_v36 = vadd.f32 %v11910_v18, %v11964_v27 }
 0x704   :  { %7558 = vst.msk [vmem:[#allocation5 + $0x8] sm:$0xff] %vm3811_vm4, %v7542_v12  ;;  %v7399_v30 = vadd.f32 %v7398_v26, %v7238_v50  ;;  %v8717_v61 = vpop.f32.mrb[198].mxu0  ;;  %v7281_v26 = vadd.f32 %v11922_v8, %v11964_v27 }
 0x705   :  { %v7515_v53 = vmax.f32 %v7407_v41, 0.0  ;;  %v7410_v57 = vadd.f32 %v8717_v61, %v7249_v42  ;;  %v7401_v29 = vpop.f32.mrb[199].mxu0 }
 0x706   :  { %v7513_v55 = vmax.f32 %v7399_v30, 0.0  ;;  %v7402_v37 = vadd.f32 %v7401_v29, %v7241_v10 }
 0x707   :  { %v7516_v4 = vmax.f32 %v7410_v57, 0.0 }
 0x708   :  { %v7543_v1 = vmax.f32 %v7513_v55, %v7515_v53  ;;  %v7514_v25 = vmax.f32 %v7402_v37, 0.0 }
 0x70a   :  { %7559 = vst.msk [vmem:[#allocation5 + $0x10] sm:$0xff] %vm3811_vm4, %v7543_v1  ;;  %v7544_v16 = vmax.f32 %v7514_v25, %v7516_v4  ;;  %v8720_v45 = vpop.f32.mrb[200].mxu0  ;;  %v7294_v1 = vadd.f32 %v11933_v52, %v11964_v27  ;;  %v7289_v52 = vadd.f32 %v11931_v54, %v11964_v27 }
 0x70b   :  { %v7573_v49 = vld [vmem:[#allocation5] ss:$2 sm:$0xff]  ;;  %v7581_v59 = vld [vmem:[#allocation5 + $0x1] ss:$2 sm:$0xff]  ;;  %v7423_v13 = vadd.f32 %v8720_v45, %v7262_v5  ;;  %v7414_v58 = vpop.f32.mrb[201].mxu0  ;;  %v7286_v5 = vadd.f32 %v11929_v60, %v11964_v27 }
 0x70c   :  { %v7589_v17 = vmax.f32 %v7573_v49, %v7581_v59  ;;  %7560 = vst.msk [vmem:[#allocation5 + $0x18] sm:$0xff] %vm3811_vm4, %v7544_v16  ;;  %v7415_v62 = vadd.f32 %v7414_v58, %v7254_v48  ;;  %v8721_v40 = vpop.f32.mrb[202].mxu0  ;;  %v7297_v59 = vadd.f32 %v11935_v33, %v11964_v27 }
 0x70d   :  { %v7519_v19 = vmax.f32 %v7423_v13, 0.0  ;;  %v7426_v0 = vadd.f32 %v8721_v40, %v7265_v2  ;;  %v7417_v9 = vpop.f32.mrb[203].mxu0 }
 0x70e   :  { %v8006_v31 = vpack.c.bf16 %v7589_v17, %v7589_v17  ;;  %v7517_v51 = vmax.f32 %v7415_v62, 0.0  ;;  %v7418_v39 = vadd.f32 %v7417_v9, %v7257_v20 }
 0x70f   :  { %v7520_v43 = vmax.f32 %v7426_v0, 0.0 }
 0x710   :  { %7990 = vst.msk [vmem:[%s12083_s5 + $0x20] sm:$0xf] %vm3899_vm5, %v8006_v31  ;;  %v7545_v6 = vmax.f32 %v7517_v51, %v7519_v19  ;;  %v7518_v23 = vmax.f32 %v7418_v39, 0.0  ;;  %v7310_v31 = vadd.f32 %v11941_v44, %v11964_v27  ;;  %v7302_v39 = vadd.f32 %v11937_v22, %v11964_v27 }
 0x711   :  { %v7305_v44 = vadd.f32 %v11939_v56, %v11964_v27 }
 0x712   :  { %7561 = vst.msk [vmem:[#allocation5 + $0x20] sm:$0xff] %vm3811_vm4, %v7545_v6  ;;  %v7546_v11 = vmax.f32 %v7518_v23, %v7520_v43  ;;  %v8724_v24 = vpop.f32.mrb[204].mxu0 }
 0x713   :  { %v7574_v12 = vld [vmem:[#allocation5 + $0x10] ss:$2 sm:$0xff]  ;;  %v7582_v34 = vld [vmem:[#allocation5 + $0x11] ss:$2 sm:$0xff]  ;;  %v7439_v50 = vadd.f32 %v8724_v24, %v7278_v21  ;;  %v7430_v41 = vpop.f32.mrb[205].mxu0 }
 0x714   :  { %v7590_v42 = vmax.f32 %v7574_v12, %v7582_v34  ;;  %7562 = vst.msk [vmem:[#allocation5 + $0x28] sm:$0xff] %vm3811_vm4, %v7546_v11  ;;  %v7431_v30 = vadd.f32 %v7430_v41, %v7270_v36  ;;  %v8725_v61 = vpop.f32.mrb[206].mxu0  ;;  %v7313_v11 = vadd.f32 %v11943_v47, %v11964_v27 }
 0x715   :  { %v7523_v10 = vmax.f32 %v7439_v50, 0.0  ;;  %v7442_v53 = vadd.f32 %v8725_v61, %v7281_v26  ;;  %v7433_v57 = vpop.f32.mrb[207].mxu0 }
 0x716   :  { %v8007_v29 = vpack.c.bf16 %v7590_v42, %v7590_v42  ;;  %v7521_v18 = vmax.f32 %v7431_v30, 0.0  ;;  %v7434_v55 = vadd.f32 %v7433_v57, %v7273_v3  ;;  %v7326_v3 = vadd.f32 %v11949_v15, %v11964_v27 }
 0x717   :  { %v7524_v37 = vmax.f32 %v7442_v53, 0.0  ;;  %v7318_v53 = vadd.f32 %v11945_v38, %v11964_v27  ;;  %v7321_v15 = vadd.f32 %v11947_v46, %v11964_v27 }
 0x718   :  { %7991 = vst.msk [vmem:[%s12083_s5 + $0x24] sm:$0xf] %vm3899_vm5, %v8007_v29  ;;  %v7547_v8 = vmax.f32 %v7521_v18, %v7523_v10  ;;  %v7522_v4 = vmax.f32 %v7434_v55, 0.0 }
 0x71a   :  { %7563 = vst.msk [vmem:[#allocation5 + $0x30] sm:$0xff] %vm3811_vm4, %v7547_v8  ;;  %v7548_v14 = vmax.f32 %v7522_v4, %v7524_v37  ;;  %v8728_v25 = vpop.f32.mrb[208].mxu0  ;;  %v7329_v37 = vadd.f32 %v11951_v63, %v11964_v27 }
 0x71b   :  { %v7575_v16 = vld [vmem:[#allocation5 + $0x20] ss:$2 sm:$0xff]  ;;  %v7583_v45 = vld [vmem:[#allocation5 + $0x21] ss:$2 sm:$0xff]  ;;  %v7455_v48 = vadd.f32 %v8728_v25, %v7294_v1  ;;  %v7446_v49 = vpop.f32.mrb[209].mxu0 }
 0x71c   :  { %v7591_v13 = vmax.f32 %v7575_v16, %v7583_v45  ;;  %7564 = vst.msk [vmem:[#allocation5 + $0x38] sm:$0xff] %vm3811_vm4, %v7548_v14  ;;  %v7447_v58 = vadd.f32 %v7446_v49, %v7286_v5  ;;  %v8729_v2 = vpop.f32.mrb[210].mxu0 }
 0x71d   :  { %v7527_v17 = vmax.f32 %v7455_v48, 0.0  ;;  %v7458_v62 = vadd.f32 %v8729_v2, %v7297_v59  ;;  %v7449_v40 = vpop.f32.mrb[211].mxu0  ;;  %v7342_v59 = vadd.f32 %v11957_v28, %v11964_v27  ;;  %v7337_v28 = vadd.f32 %v11955_v32, %v11964_v27 }
 0x71e   :  { %v8008_v20 = vpack.c.bf16 %v7591_v13, %v7591_v13  ;;  %v7525_v60 = vmax.f32 %v7447_v58, 0.0  ;;  %v7450_v19 = vadd.f32 %v7449_v40, %v7289_v52  ;;  %v7334_v58 = vadd.f32 %v11953_v35, %v11964_v27 }
 0x71f   :  { %v7528_v0 = vmax.f32 %v7458_v62, 0.0  ;;  %v7345_v40 = vadd.f32 %v11959_v7, %v11964_v27 }
 0x720   :  { %7992 = vst.msk [vmem:[%s12083_s5 + $0x28] sm:$0xf] %vm3899_vm5, %v8008_v20  ;;  %v7549_v33 = vmax.f32 %v7525_v60, %v7527_v17  ;;  %v7526_v9 = vmax.f32 %v7450_v19, 0.0 }
 0x722   :  { %7565 = vst.msk [vmem:[#allocation5 + $0x40] sm:$0xff] %vm3811_vm4, %v7549_v33  ;;  %v7550_v54 = vmax.f32 %v7526_v9, %v7528_v0  ;;  %v8732_v51 = vpop.f32.mrb[212].mxu0 }
 0x723   :  { %v7576_v43 = vld [vmem:[#allocation5 + $0x30] ss:$2 sm:$0xff]  ;;  %v7584_v6 = vld [vmem:[#allocation5 + $0x31] ss:$2 sm:$0xff]  ;;  %v7471_v23 = vadd.f32 %v8732_v51, %v7310_v31  ;;  %v7462_v21 = vpop.f32.mrb[213].mxu0 }
 0x724   :  { %v7592_v24 = vmax.f32 %v7576_v43, %v7584_v6  ;;  %7566 = vst.msk [vmem:[#allocation5 + $0x48] sm:$0xff] %vm3811_vm4, %v7550_v54  ;;  %v7463_v36 = vadd.f32 %v7462_v21, %v7302_v39  ;;  %v8733_v12 = vpop.f32.mrb[214].mxu0 }
 0x725   :  { %v7531_v34 = vmax.f32 %v7471_v23, 0.0  ;;  %v7474_v50 = vadd.f32 %v8733_v12, %v7313_v11  ;;  %v7465_v41 = vpop.f32.mrb[215].mxu0 }
 0x726   :  { %v8009_v26 = vpack.c.bf16 %v7592_v24, %v7592_v24  ;;  %v7529_v22 = vmax.f32 %v7463_v36, 0.0  ;;  %v7466_v42 = vadd.f32 %v7465_v41, %v7305_v44 }
 0x727   :  { %v7532_v30 = vmax.f32 %v7474_v50, 0.0 }
 0x728   :  { %7993 = vst.msk [vmem:[%s12083_s5 + $0x2c] sm:$0xf] %vm3899_vm5, %v8009_v26  ;;  %v7551_v47 = vmax.f32 %v7529_v22, %v7531_v34  ;;  %v7530_v61 = vmax.f32 %v7466_v42, 0.0 }
 0x72a   :  { %7567 = vst.msk [vmem:[#allocation5 + $0x50] sm:$0xff] %vm3811_vm4, %v7551_v47  ;;  %v7552_v56 = vmax.f32 %v7530_v61, %v7532_v30  ;;  %v8736_v10 = vpop.f32.mrb[216].mxu0 }
 0x72b   :  { %v7577_v57 = vld [vmem:[#allocation5 + $0x40] ss:$2 sm:$0xff]  ;;  %v7585_v29 = vld [vmem:[#allocation5 + $0x41] ss:$2 sm:$0xff]  ;;  %v7487_v18 = vadd.f32 %v8736_v10, %v7326_v3  ;;  %v7478_v55 = vpop.f32.mrb[217].mxu0 }
 0x72c   :  { %v7593_v8 = vmax.f32 %v7577_v57, %v7585_v29  ;;  %7568 = vst.msk [vmem:[#allocation5 + $0x58] sm:$0xff] %vm3811_vm4, %v7552_v56  ;;  %v7479_v4 = vadd.f32 %v7478_v55, %v7318_v53  ;;  %v8737_v1 = vpop.f32.mrb[218].mxu0 }
 0x72d   :  { %v7535_v14 = vmax.f32 %v7487_v18, 0.0  ;;  %v7490_v25 = vadd.f32 %v8737_v1, %v7329_v37  ;;  %v7481_v5 = vpop.f32.mrb[219].mxu0 }
 0x72e   :  { %v8010_v16 = vpack.c.bf16 %v7593_v8, %v7593_v8  ;;  %v7533_v38 = vmax.f32 %v7479_v4, 0.0  ;;  %v7482_v45 = vadd.f32 %v7481_v5, %v7321_v15 }
 0x72f   :  { %v7536_v48 = vmax.f32 %v7490_v25, 0.0 }
 0x730   :  { %7994 = vst.msk [vmem:[%s12083_s5 + $0x30] sm:$0xf] %vm3899_vm5, %v8010_v16  ;;  %v7553_v63 = vmax.f32 %v7533_v38, %v7535_v14  ;;  %v7534_v49 = vmax.f32 %v7482_v45, 0.0 }
 0x732   :  { %7569 = vst.msk [vmem:[#allocation5 + $0x60] sm:$0xff] %vm3811_vm4, %v7553_v63  ;;  %v7554_v46 = vmax.f32 %v7534_v49, %v7536_v48  ;;  %v8740_v13 = vpop.f32.mrb[220].mxu0 }
 0x733   :  { %v7578_v2 = vld [vmem:[#allocation5 + $0x50] ss:$2 sm:$0xff]  ;;  %v7586_v52 = vld [vmem:[#allocation5 + $0x51] ss:$2 sm:$0xff]  ;;  %v7503_v17 = vadd.f32 %v8740_v13, %v7342_v59  ;;  %v7494_v62 = vpop.f32.mrb[221].mxu0 }
 0x734   :  { %v7594_v20 = vmax.f32 %v7578_v2, %v7586_v52  ;;  %7570 = vst.msk [vmem:[#allocation5 + $0x68] sm:$0xff] %vm3811_vm4, %v7554_v46  ;;  %v7495_v60 = vadd.f32 %v7494_v62, %v7334_v58  ;;  %v8741_v19 = vpop.f32.mrb[222].mxu0 }
 0x735   :  { %v7539_v0 = vmax.f32 %v7503_v17, 0.0  ;;  %v7506_v33 = vadd.f32 %v8741_v19, %v7345_v40  ;;  %v7497_v9 = vpop.f32.mrb[223].mxu0 }
 0x736   :  { %v8011_v31 = vpack.c.bf16 %v7594_v20, %v7594_v20  ;;  %v7537_v35 = vmax.f32 %v7495_v60, 0.0  ;;  %v7498_v54 = vadd.f32 %v7497_v9, %v7337_v28 }
 0x737   :  { %v7540_v51 = vmax.f32 %v7506_v33, 0.0 }
 0x738   :  { %7995 = vst.msk [vmem:[%s12083_s5 + $0x34] sm:$0xf] %vm3899_vm5, %v8011_v31  ;;  %v7555_v7 = vmax.f32 %v7537_v35, %v7539_v0  ;;  %v7538_v39 = vmax.f32 %v7498_v54, 0.0 }
 0x73a   :  { %7571 = vst.msk [vmem:[#allocation5 + $0x70] sm:$0xff] %vm3811_vm4, %v7555_v7  ;;  %v7556_v43 = vmax.f32 %v7538_v39, %v7540_v51 }
 0x73b   :  { %v7579_v6 = vld [vmem:[#allocation5 + $0x60] ss:$2 sm:$0xff]  ;;  %v7587_v23 = vld [vmem:[#allocation5 + $0x61] ss:$2 sm:$0xff] }
 0x73c   :  { %v7595_v32 = vmax.f32 %v7579_v6, %v7587_v23  ;;  %7572 = vst.msk [vmem:[#allocation5 + $0x78] sm:$0xff] %vm3811_vm4, %v7556_v43 }
 0x73e   :  { %v8012_v27 = vpack.c.bf16 %v7595_v32, %v7595_v32 }
 0x740   :  { %7996 = vst.msk [vmem:[%s12083_s5 + $0x38] sm:$0xf] %vm3899_vm5, %v8012_v27 }
 0x743   :  { %v7580_v21 = vld [vmem:[#allocation5 + $0x70] ss:$2 sm:$0xff]  ;;  %v7588_v11 = vld [vmem:[#allocation5 + $0x71] ss:$2 sm:$0xff] }
 0x744   :  { %v7596_v24 = vmax.f32 %v7580_v21, %v7588_v11 }
 0x746   :  { %v8013_v36 = vpack.c.bf16 %v7596_v24, %v7596_v24 }
 0x748   :  { %7997 = vst.msk [vmem:[%s12083_s5 + $0x3c] sm:$0xf] %vm3899_vm5, %v8013_v36 }

</bundles_post_ra>
